<compile_context>
chip_gen: v5e
topology: v5e:2x2
jax: 0.10.0
libtpu: 0.0.40
codegen_flags: <defaults>
</compile_context>

<pallas_src>
import math
import jax
import jax.numpy as jnp
from jax import lax
from jax.experimental import pallas as pl
from jax.experimental.pallas import tpu as pltpu

# ---- Config (matches the PyTorch dataclass) ----
BLOCK_SIZE = 64                   # T
N_HEAD = 4
N_EMBD = 128                      # C
HEAD_DIM = N_EMBD // N_HEAD       # 32
BATCH = 8                         # B in the original script


def _attn_kernel(x_ref, w_attn_ref, b_attn_ref, w_proj_ref, b_proj_ref,
                 o_ref, y_scratch):
    BB, T, C = x_ref.shape        # (block_b, 64, 128)
    H, D = N_HEAD, HEAD_DIM
    M = BB * T                    # rows fed to the MXU (256 for block_b=4)

    # ---- QKV projection at M = BB*T (bf16 MXU operands, f32 accumulate) ----
    x = x_ref[...].reshape(M, C).astype(jnp.bfloat16)
    w_attn = w_attn_ref[...].astype(jnp.bfloat16)
    qkv = jnp.dot(x, w_attn, preferred_element_type=jnp.float32)
    qkv = qkv + b_attn_ref[...]                              # (M, 3C) f32

    # Additive causal mask, hoisted out of the batch/head loops.
    row = lax.broadcasted_iota(jnp.int32, (T, T), 0)
    col = lax.broadcasted_iota(jnp.int32, (T, T), 1)
    neg_mask = jnp.where(row >= col, 0.0, -1e30).astype(jnp.float32)

    # ---- Attention: static loops over batch and head, 2-D matmuls only ----
    for b in range(BB):
        r0 = b * T
        for h in range(H):
            c0 = h * D
            # 1/sqrt(D) is already folded into the Q columns of w_attn/b_attn.
            q_h = qkv[r0:r0 + T, 0 * C + c0:0 * C + c0 + D]   # (T, D)
            k_h = qkv[r0:r0 + T, 1 * C + c0:1 * C + c0 + D]
            v_h = qkv[r0:r0 + T, 2 * C + c0:2 * C + c0 + D]

            # scores = q @ k^T   (T, T), f32 accumulation on the MXU
            s = lax.dot_general(q_h.astype(jnp.bfloat16),
                                k_h.astype(jnp.bfloat16),
                                (((1,), (1,)), ((), ())),
                                preferred_element_type=jnp.float32)
            s = s + neg_mask

            # softmax over keys (f32 VPU math, reciprocal on the EUP)
            m = jnp.max(s, axis=-1, keepdims=True)
            p = jnp.exp(s - m)
            p = p * pl.reciprocal(jnp.sum(p, axis=-1, keepdims=True),
                                  approx=True)

            # y_h = p @ v   (T, D)
            y_h = jnp.dot(p.astype(jnp.bfloat16), v_h.astype(jnp.bfloat16),
                          preferred_element_type=jnp.float32)
            y_scratch[r0:r0 + T, c0:c0 + D] = y_h.astype(jnp.bfloat16)

    # ---- Output projection at M = BB*T ----
    w_proj = w_proj_ref[...].astype(jnp.bfloat16)
    out = jnp.dot(y_scratch[...], w_proj, preferred_element_type=jnp.float32)
    out = out + b_proj_ref[...]
    # TODO(synk): nn.Dropout(p=0.1) is identity in eval mode; training-mode dropout not applied.
    o_ref[...] = out.reshape(BB, T, C).astype(o_ref.dtype)


def prepare_weights(w_attn, b_attn, w_proj, b_proj):
    """One-time weight transform: fold the 1/sqrt(head_dim) attention scale
    into the Q columns of the QKV projection (weight and bias)."""
    scale = 1.0 / math.sqrt(HEAD_DIM)
    C = N_EMBD
    w_attn = w_attn.at[:, :C].multiply(scale)
    b_attn = b_attn.at[:, :C].multiply(scale)
    return w_attn, b_attn, w_proj, b_proj


def causal_self_attention(x, w_attn, b_attn, w_proj, b_proj, *, block_b=None):
    """x: (B, T, C) float32. Weights pre-transposed to (in, out), with the
    attention scale pre-folded into Q (see prepare_weights)."""
    B, T, C = x.shape
    if block_b is None:
        block_b = 4 if B % 4 == 0 else (2 if B % 2 == 0 else 1)
    assert B % block_b == 0
    grid = (B // block_b,)
    return pl.pallas_call(
        _attn_kernel,
        out_shape=jax.ShapeDtypeStruct((B, T, C), x.dtype),
        grid_spec=pltpu.PrefetchScalarGridSpec(
            num_scalar_prefetch=0,
            grid=grid,
            in_specs=[
                pl.BlockSpec((block_b, T, C), lambda g: (g, 0, 0)),
                pl.BlockSpec((C, 3 * C), lambda g: (0, 0)),   # resident weights
                pl.BlockSpec((1, 3 * C), lambda g: (0, 0)),
                pl.BlockSpec((C, C), lambda g: (0, 0)),
                pl.BlockSpec((1, C), lambda g: (0, 0)),
            ],
            out_specs=pl.BlockSpec((block_b, T, C), lambda g: (g, 0, 0)),
            scratch_shapes=[pltpu.VMEM((block_b * T, C), jnp.bfloat16)],
        ),
        compiler_params=pltpu.CompilerParams(
            dimension_semantics=("parallel",)),
    )(x, w_attn, b_attn, w_proj, b_proj)


def _reference(x, w_attn, b_attn, w_proj, b_proj):
    """Pure-JAX f32 reference matching the PyTorch module (eval mode)."""
    B, T, C = x.shape
    H, D = N_HEAD, HEAD_DIM
    qkv = x @ w_attn + b_attn
    q, k, v = jnp.split(qkv, 3, axis=-1)
    q = q.reshape(B, T, H, D).transpose(0, 2, 1, 3)
    k = k.reshape(B, T, H, D).transpose(0, 2, 1, 3)
    v = v.reshape(B, T, H, D).transpose(0, 2, 1, 3)
    s = jnp.einsum('bhqd,bhkd->bhqk', q, k) / math.sqrt(D)
    mask = jnp.tril(jnp.ones((T, T), dtype=bool))
    s = jnp.where(mask[None, None], s, -1e30)
    p = jax.nn.softmax(s, axis=-1)
    y = jnp.einsum('bhqk,bhkd->bhqd', p, v)
    y = y.transpose(0, 2, 1, 3).reshape(B, T, C)
    return y @ w_proj + b_proj


if __name__ == "__main__":
    B, T, C = BATCH, BLOCK_SIZE, N_EMBD

    key = jax.random.PRNGKey(0)
    kx, k1, k2, k3, k4 = jax.random.split(key, 5)

    x = jax.random.normal(kx, (B, T, C), dtype=jnp.float32)

    # nn.Linear(n_embd, 3*n_embd): weight (3C, C), bias (3C,). Stored transposed (C, 3C).
    bound1 = 1.0 / math.sqrt(C)
    w_attn = jax.random.uniform(k1, (C, 3 * C), minval=-bound1, maxval=bound1, dtype=jnp.float32)
    b_attn = jax.random.uniform(k2, (1, 3 * C), minval=-bound1, maxval=bound1, dtype=jnp.float32)

    # nn.Linear(n_embd, n_embd): weight (C, C), bias (C,). Stored transposed (C, C).
    w_proj = jax.random.uniform(k3, (C, C), minval=-bound1, maxval=bound1, dtype=jnp.float32)
    b_proj = jax.random.uniform(k4, (1, C), minval=-bound1, maxval=bound1, dtype=jnp.float32)

    kw_attn, kb_attn, kw_proj, kb_proj = prepare_weights(w_attn, b_attn, w_proj, b_proj)

    out = causal_self_attention(x, kw_attn, kb_attn, kw_proj, kb_proj)
    out = jax.block_until_ready(out)

    ref = _reference(x, w_attn, b_attn[0], w_proj, b_proj[0])
    assert out.shape == (B, T, C)
    # bf16 MXU operands + approx reciprocal => looser tolerance than a pure-f32 kernel.
    max_err = jnp.max(jnp.abs(out - ref))
    assert jnp.allclose(out, ref, atol=3e-2, rtol=3e-2), (
        f"mismatch vs pure-JAX reference: max abs diff {max_err:.4e}")

    print("KERNEL_OK")
</pallas_src>

<mosaic_0001>
module attributes {stable_mosaic.version = 11 : i64} {
  func.func @_attn_kernel(%arg0: i32, %arg1: memref<4x64x128xf32, #tpu.memory_space<vmem>>, %arg2: memref<128x384xf32, #tpu.memory_space<vmem>>, %arg3: memref<1x384xf32, #tpu.memory_space<vmem>>, %arg4: memref<128x128xf32, #tpu.memory_space<vmem>>, %arg5: memref<1x128xf32, #tpu.memory_space<vmem>>, %arg6: memref<4x64x128xf32, #tpu.memory_space<vmem>>, %arg7: memref<256x128xbf16, #tpu.memory_space<vmem>>) attributes {dimension_semantics = [#tpu.dimension_semantics<parallel>], iteration_bounds = array<i64: 2>, scalar_prefetch = 0 : i64, scratch_operands = 1 : i64, tpu.core_type = #tpu.core_type<tc>, window_params = [{transform_indices = @transform_0, window_bounds = array<i64: 4, 64, 128>}, {pipeline_mode = #tpu.pipeline_mode<synchronous>, transform_indices = @transform_1, window_bounds = array<i64: 128, 384>}, {pipeline_mode = #tpu.pipeline_mode<synchronous>, transform_indices = @transform_2, window_bounds = array<i64: 1, 384>}, {pipeline_mode = #tpu.pipeline_mode<synchronous>, transform_indices = @transform_3, window_bounds = array<i64: 128, 128>}, {pipeline_mode = #tpu.pipeline_mode<synchronous>, transform_indices = @transform_4, window_bounds = array<i64: 1, 128>}, {transform_indices = @transform_5, window_bounds = array<i64: 4, 64, 128>}]} {
    %c0 = arith.constant 0 : index
    %c0_0 = arith.constant 0 : index
    %c0_1 = arith.constant 0 : index
    %0 = vector.load %arg1[%c0, %c0_0, %c0_1] : memref<4x64x128xf32, #tpu.memory_space<vmem>>, vector<4x64x128xf32>
    %1 = vector.shape_cast %0 : vector<4x64x128xf32> to vector<256x128xf32>
    %2 = arith.truncf %1 : vector<256x128xf32> to vector<256x128xbf16>
    %c0_2 = arith.constant 0 : index
    %c0_3 = arith.constant 0 : index
    %3 = vector.load %arg2[%c0_2, %c0_3] : memref<128x384xf32, #tpu.memory_space<vmem>>, vector<128x384xf32>
    %4 = arith.truncf %3 : vector<128x384xf32> to vector<128x384xbf16>
    %cst = arith.constant dense<0.000000e+00> : vector<256x384xf32>
    %5 = tpu.matmul %2, %4, %cst {dimension_numbers = #tpu.dot_dimension_numbers<[1], [0], [0], [1], [0, 0, 1, 1], [], []>} : vector<256x128xbf16>, vector<128x384xbf16>, vector<256x384xf32> -> vector<256x384xf32>
    %c0_4 = arith.constant 0 : index
    %c0_5 = arith.constant 0 : index
    %6 = vector.load %arg3[%c0_4, %c0_5] : memref<1x384xf32, #tpu.memory_space<vmem>>, vector<1x384xf32>
    %7 = vector.broadcast %6 : vector<1x384xf32> to vector<256x384xf32>
    %8 = arith.addf %5, %7 : vector<256x384xf32>
    %9 = tpu.iota {dimensions = array<i32: 0>} : vector<64x64xi32>
    %10 = tpu.iota {dimensions = array<i32: 1>} : vector<64x64xi32>
    %11 = arith.cmpi sge, %9, %10 : vector<64x64xi32>
    %cst_6 = arith.constant 0.000000e+00 : f32
    %cst_7 = arith.constant -1.000000e+30 : f32
    %12 = vector.broadcast %cst_6 : f32 to vector<64x64xf32>
    %13 = vector.broadcast %cst_7 : f32 to vector<64x64xf32>
    %14 = arith.select %11, %12, %13 : vector<64x64xi1>, vector<64x64xf32>
    %15 = vector.extract_strided_slice %8 {offsets = [0, 0], sizes = [64, 32], strides = [1, 1]} : vector<256x384xf32> to vector<64x32xf32>
    %16 = vector.extract_strided_slice %8 {offsets = [0, 128], sizes = [64, 32], strides = [1, 1]} : vector<256x384xf32> to vector<64x32xf32>
    %17 = vector.extract_strided_slice %8 {offsets = [0, 256], sizes = [64, 32], strides = [1, 1]} : vector<256x384xf32> to vector<64x32xf32>
    %18 = arith.truncf %15 : vector<64x32xf32> to vector<64x32xbf16>
    %19 = arith.truncf %16 : vector<64x32xf32> to vector<64x32xbf16>
    %cst_8 = arith.constant dense<0.000000e+00> : vector<64x64xf32>
    %20 = tpu.matmul %18, %19, %cst_8 {dimension_numbers = #tpu.dot_dimension_numbers<[1], [1], [0], [0], [0, 0, 1, 0], [], []>} : vector<64x32xbf16>, vector<64x32xbf16>, vector<64x64xf32> -> vector<64x64xf32>
    %21 = arith.addf %20, %14 : vector<64x64xf32>
    %cst_9 = arith.constant dense<0xFF800000> : vector<64xf32>
    %22 = vector.multi_reduction <maximumf>, %21, %cst_9 [1] : vector<64x64xf32> to vector<64xf32>
    %23 = vector.shape_cast %22 : vector<64xf32> to vector<64x1xf32>
    %24 = vector.broadcast %23 : vector<64x1xf32> to vector<64x64xf32>
    %25 = arith.subf %21, %24 : vector<64x64xf32>
    %26 = math.exp %25 : vector<64x64xf32>
    %cst_10 = arith.constant dense<0.000000e+00> : vector<64xf32>
    %27 = vector.multi_reduction <add>, %26, %cst_10 [1] : vector<64x64xf32> to vector<64xf32>
    %28 = vector.shape_cast %27 : vector<64xf32> to vector<64x1xf32>
    %29 = tpu.reciprocal %28 {approx = true} : vector<64x1xf32> -> vector<64x1xf32>
    %30 = vector.broadcast %29 : vector<64x1xf32> to vector<64x64xf32>
    %31 = arith.mulf %26, %30 : vector<64x64xf32>
    %32 = arith.truncf %31 : vector<64x64xf32> to vector<64x64xbf16>
    %33 = arith.truncf %17 : vector<64x32xf32> to vector<64x32xbf16>
    %cst_11 = arith.constant dense<0.000000e+00> : vector<64x32xf32>
    %34 = tpu.matmul %32, %33, %cst_11 {dimension_numbers = #tpu.dot_dimension_numbers<[1], [0], [0], [1], [0, 0, 1, 1], [], []>} : vector<64x64xbf16>, vector<64x32xbf16>, vector<64x32xf32> -> vector<64x32xf32>
    %35 = arith.truncf %34 : vector<64x32xf32> to vector<64x32xbf16>
    %c0_12 = arith.constant 0 : index
    %c0_13 = arith.constant 0 : index
    %36 = vector.load %arg7[%c0_12, %c0_13] : memref<256x128xbf16, #tpu.memory_space<vmem>>, vector<64x32xbf16>
    tpu.vector_store %arg7[%c0_12, %c0_13], %35 {strides = array<i32>} : memref<256x128xbf16, #tpu.memory_space<vmem>>, vector<64x32xbf16>,
    %37 = vector.extract_strided_slice %8 {offsets = [0, 32], sizes = [64, 32], strides = [1, 1]} : vector<256x384xf32> to vector<64x32xf32>
    %38 = vector.extract_strided_slice %8 {offsets = [0, 160], sizes = [64, 32], strides = [1, 1]} : vector<256x384xf32> to vector<64x32xf32>
    %39 = vector.extract_strided_slice %8 {offsets = [0, 288], sizes = [64, 32], strides = [1, 1]} : vector<256x384xf32> to vector<64x32xf32>
    %40 = arith.truncf %37 : vector<64x32xf32> to vector<64x32xbf16>
    %41 = arith.truncf %38 : vector<64x32xf32> to vector<64x32xbf16>
    %cst_14 = arith.constant dense<0.000000e+00> : vector<64x64xf32>
    %42 = tpu.matmul %40, %41, %cst_14 {dimension_numbers = #tpu.dot_dimension_numbers<[1], [1], [0], [0], [0, 0, 1, 0], [], []>} : vector<64x32xbf16>, vector<64x32xbf16>, vector<64x64xf32> -> vector<64x64xf32>
    %43 = arith.addf %42, %14 : vector<64x64xf32>
    %cst_15 = arith.constant dense<0xFF800000> : vector<64xf32>
    %44 = vector.multi_reduction <maximumf>, %43, %cst_15 [1] : vector<64x64xf32> to vector<64xf32>
    %45 = vector.shape_cast %44 : vector<64xf32> to vector<64x1xf32>
    %46 = vector.broadcast %45 : vector<64x1xf32> to vector<64x64xf32>
    %47 = arith.subf %43, %46 : vector<64x64xf32>
    %48 = math.exp %47 : vector<64x64xf32>
    %cst_16 = arith.constant dense<0.000000e+00> : vector<64xf32>
    %49 = vector.multi_reduction <add>, %48, %cst_16 [1] : vector<64x64xf32> to vector<64xf32>
    %50 = vector.shape_cast %49 : vector<64xf32> to vector<64x1xf32>
    %51 = tpu.reciprocal %50 {approx = true} : vector<64x1xf32> -> vector<64x1xf32>
    %52 = vector.broadcast %51 : vector<64x1xf32> to vector<64x64xf32>
    %53 = arith.mulf %48, %52 : vector<64x64xf32>
    %54 = arith.truncf %53 : vector<64x64xf32> to vector<64x64xbf16>
    %55 = arith.truncf %39 : vector<64x32xf32> to vector<64x32xbf16>
    %cst_17 = arith.constant dense<0.000000e+00> : vector<64x32xf32>
    %56 = tpu.matmul %54, %55, %cst_17 {dimension_numbers = #tpu.dot_dimension_numbers<[1], [0], [0], [1], [0, 0, 1, 1], [], []>} : vector<64x64xbf16>, vector<64x32xbf16>, vector<64x32xf32> -> vector<64x32xf32>
    %57 = arith.truncf %56 : vector<64x32xf32> to vector<64x32xbf16>
    %c0_18 = arith.constant 0 : index
    %c32 = arith.constant 32 : index
    %58 = vector.load %arg7[%c0_18, %c32] : memref<256x128xbf16, #tpu.memory_space<vmem>>, vector<64x32xbf16>
    tpu.vector_store %arg7[%c0_18, %c32], %57 {strides = array<i32>} : memref<256x128xbf16, #tpu.memory_space<vmem>>, vector<64x32xbf16>,
    %59 = vector.extract_strided_slice %8 {offsets = [0, 64], sizes = [64, 32], strides = [1, 1]} : vector<256x384xf32> to vector<64x32xf32>
    %60 = vector.extract_strided_slice %8 {offsets = [0, 192], sizes = [64, 32], strides = [1, 1]} : vector<256x384xf32> to vector<64x32xf32>
    %61 = vector.extract_strided_slice %8 {offsets = [0, 320], sizes = [64, 32], strides = [1, 1]} : vector<256x384xf32> to vector<64x32xf32>
    %62 = arith.truncf %59 : vector<64x32xf32> to vector<64x32xbf16>
    %63 = arith.truncf %60 : vector<64x32xf32> to vector<64x32xbf16>
    %cst_19 = arith.constant dense<0.000000e+00> : vector<64x64xf32>
    %64 = tpu.matmul %62, %63, %cst_19 {dimension_numbers = #tpu.dot_dimension_numbers<[1], [1], [0], [0], [0, 0, 1, 0], [], []>} : vector<64x32xbf16>, vector<64x32xbf16>, vector<64x64xf32> -> vector<64x64xf32>
    %65 = arith.addf %64, %14 : vector<64x64xf32>
    %cst_20 = arith.constant dense<0xFF800000> : vector<64xf32>
    %66 = vector.multi_reduction <maximumf>, %65, %cst_20 [1] : vector<64x64xf32> to vector<64xf32>
    %67 = vector.shape_cast %66 : vector<64xf32> to vector<64x1xf32>
    %68 = vector.broadcast %67 : vector<64x1xf32> to vector<64x64xf32>
    %69 = arith.subf %65, %68 : vector<64x64xf32>
    %70 = math.exp %69 : vector<64x64xf32>
    %cst_21 = arith.constant dense<0.000000e+00> : vector<64xf32>
    %71 = vector.multi_reduction <add>, %70, %cst_21 [1] : vector<64x64xf32> to vector<64xf32>
    %72 = vector.shape_cast %71 : vector<64xf32> to vector<64x1xf32>
    %73 = tpu.reciprocal %72 {approx = true} : vector<64x1xf32> -> vector<64x1xf32>
    %74 = vector.broadcast %73 : vector<64x1xf32> to vector<64x64xf32>
    %75 = arith.mulf %70, %74 : vector<64x64xf32>
    %76 = arith.truncf %75 : vector<64x64xf32> to vector<64x64xbf16>
    %77 = arith.truncf %61 : vector<64x32xf32> to vector<64x32xbf16>
    %cst_22 = arith.constant dense<0.000000e+00> : vector<64x32xf32>
    %78 = tpu.matmul %76, %77, %cst_22 {dimension_numbers = #tpu.dot_dimension_numbers<[1], [0], [0], [1], [0, 0, 1, 1], [], []>} : vector<64x64xbf16>, vector<64x32xbf16>, vector<64x32xf32> -> vector<64x32xf32>
    %79 = arith.truncf %78 : vector<64x32xf32> to vector<64x32xbf16>
    %c0_23 = arith.constant 0 : index
    %c64 = arith.constant 64 : index
    %80 = vector.load %arg7[%c0_23, %c64] : memref<256x128xbf16, #tpu.memory_space<vmem>>, vector<64x32xbf16>
    tpu.vector_store %arg7[%c0_23, %c64], %79 {strides = array<i32>} : memref<256x128xbf16, #tpu.memory_space<vmem>>, vector<64x32xbf16>,
    %81 = vector.extract_strided_slice %8 {offsets = [0, 96], sizes = [64, 32], strides = [1, 1]} : vector<256x384xf32> to vector<64x32xf32>
    %82 = vector.extract_strided_slice %8 {offsets = [0, 224], sizes = [64, 32], strides = [1, 1]} : vector<256x384xf32> to vector<64x32xf32>
    %83 = vector.extract_strided_slice %8 {offsets = [0, 352], sizes = [64, 32], strides = [1, 1]} : vector<256x384xf32> to vector<64x32xf32>
    %84 = arith.truncf %81 : vector<64x32xf32> to vector<64x32xbf16>
    %85 = arith.truncf %82 : vector<64x32xf32> to vector<64x32xbf16>
    %cst_24 = arith.constant dense<0.000000e+00> : vector<64x64xf32>
    %86 = tpu.matmul %84, %85, %cst_24 {dimension_numbers = #tpu.dot_dimension_numbers<[1], [1], [0], [0], [0, 0, 1, 0], [], []>} : vector<64x32xbf16>, vector<64x32xbf16>, vector<64x64xf32> -> vector<64x64xf32>
    %87 = arith.addf %86, %14 : vector<64x64xf32>
    %cst_25 = arith.constant dense<0xFF800000> : vector<64xf32>
    %88 = vector.multi_reduction <maximumf>, %87, %cst_25 [1] : vector<64x64xf32> to vector<64xf32>
    %89 = vector.shape_cast %88 : vector<64xf32> to vector<64x1xf32>
    %90 = vector.broadcast %89 : vector<64x1xf32> to vector<64x64xf32>
    %91 = arith.subf %87, %90 : vector<64x64xf32>
    %92 = math.exp %91 : vector<64x64xf32>
    %cst_26 = arith.constant dense<0.000000e+00> : vector<64xf32>
    %93 = vector.multi_reduction <add>, %92, %cst_26 [1] : vector<64x64xf32> to vector<64xf32>
    %94 = vector.shape_cast %93 : vector<64xf32> to vector<64x1xf32>
    %95 = tpu.reciprocal %94 {approx = true} : vector<64x1xf32> -> vector<64x1xf32>
    %96 = vector.broadcast %95 : vector<64x1xf32> to vector<64x64xf32>
    %97 = arith.mulf %92, %96 : vector<64x64xf32>
    %98 = arith.truncf %97 : vector<64x64xf32> to vector<64x64xbf16>
    %99 = arith.truncf %83 : vector<64x32xf32> to vector<64x32xbf16>
    %cst_27 = arith.constant dense<0.000000e+00> : vector<64x32xf32>
    %100 = tpu.matmul %98, %99, %cst_27 {dimension_numbers = #tpu.dot_dimension_numbers<[1], [0], [0], [1], [0, 0, 1, 1], [], []>} : vector<64x64xbf16>, vector<64x32xbf16>, vector<64x32xf32> -> vector<64x32xf32>
    %101 = arith.truncf %100 : vector<64x32xf32> to vector<64x32xbf16>
    %c0_28 = arith.constant 0 : index
    %c96 = arith.constant 96 : index
    %102 = vector.load %arg7[%c0_28, %c96] : memref<256x128xbf16, #tpu.memory_space<vmem>>, vector<64x32xbf16>
    tpu.vector_store %arg7[%c0_28, %c96], %101 {strides = array<i32>} : memref<256x128xbf16, #tpu.memory_space<vmem>>, vector<64x32xbf16>,
    %103 = vector.extract_strided_slice %8 {offsets = [64, 0], sizes = [64, 32], strides = [1, 1]} : vector<256x384xf32> to vector<64x32xf32>
    %104 = vector.extract_strided_slice %8 {offsets = [64, 128], sizes = [64, 32], strides = [1, 1]} : vector<256x384xf32> to vector<64x32xf32>
    %105 = vector.extract_strided_slice %8 {offsets = [64, 256], sizes = [64, 32], strides = [1, 1]} : vector<256x384xf32> to vector<64x32xf32>
    %106 = arith.truncf %103 : vector<64x32xf32> to vector<64x32xbf16>
    %107 = arith.truncf %104 : vector<64x32xf32> to vector<64x32xbf16>
    %cst_29 = arith.constant dense<0.000000e+00> : vector<64x64xf32>
    %108 = tpu.matmul %106, %107, %cst_29 {dimension_numbers = #tpu.dot_dimension_numbers<[1], [1], [0], [0], [0, 0, 1, 0], [], []>} : vector<64x32xbf16>, vector<64x32xbf16>, vector<64x64xf32> -> vector<64x64xf32>
    %109 = arith.addf %108, %14 : vector<64x64xf32>
    %cst_30 = arith.constant dense<0xFF800000> : vector<64xf32>
    %110 = vector.multi_reduction <maximumf>, %109, %cst_30 [1] : vector<64x64xf32> to vector<64xf32>
    %111 = vector.shape_cast %110 : vector<64xf32> to vector<64x1xf32>
    %112 = vector.broadcast %111 : vector<64x1xf32> to vector<64x64xf32>
    %113 = arith.subf %109, %112 : vector<64x64xf32>
    %114 = math.exp %113 : vector<64x64xf32>
    %cst_31 = arith.constant dense<0.000000e+00> : vector<64xf32>
    %115 = vector.multi_reduction <add>, %114, %cst_31 [1] : vector<64x64xf32> to vector<64xf32>
    %116 = vector.shape_cast %115 : vector<64xf32> to vector<64x1xf32>
    %117 = tpu.reciprocal %116 {approx = true} : vector<64x1xf32> -> vector<64x1xf32>
    %118 = vector.broadcast %117 : vector<64x1xf32> to vector<64x64xf32>
    %119 = arith.mulf %114, %118 : vector<64x64xf32>
    %120 = arith.truncf %119 : vector<64x64xf32> to vector<64x64xbf16>
    %121 = arith.truncf %105 : vector<64x32xf32> to vector<64x32xbf16>
    %cst_32 = arith.constant dense<0.000000e+00> : vector<64x32xf32>
    %122 = tpu.matmul %120, %121, %cst_32 {dimension_numbers = #tpu.dot_dimension_numbers<[1], [0], [0], [1], [0, 0, 1, 1], [], []>} : vector<64x64xbf16>, vector<64x32xbf16>, vector<64x32xf32> -> vector<64x32xf32>
    %123 = arith.truncf %122 : vector<64x32xf32> to vector<64x32xbf16>
    %c64_33 = arith.constant 64 : index
    %c0_34 = arith.constant 0 : index
    %124 = vector.load %arg7[%c64_33, %c0_34] : memref<256x128xbf16, #tpu.memory_space<vmem>>, vector<64x32xbf16>
    tpu.vector_store %arg7[%c64_33, %c0_34], %123 {strides = array<i32>} : memref<256x128xbf16, #tpu.memory_space<vmem>>, vector<64x32xbf16>,
    %125 = vector.extract_strided_slice %8 {offsets = [64, 32], sizes = [64, 32], strides = [1, 1]} : vector<256x384xf32> to vector<64x32xf32>
    %126 = vector.extract_strided_slice %8 {offsets = [64, 160], sizes = [64, 32], strides = [1, 1]} : vector<256x384xf32> to vector<64x32xf32>
    %127 = vector.extract_strided_slice %8 {offsets = [64, 288], sizes = [64, 32], strides = [1, 1]} : vector<256x384xf32> to vector<64x32xf32>
    %128 = arith.truncf %125 : vector<64x32xf32> to vector<64x32xbf16>
    %129 = arith.truncf %126 : vector<64x32xf32> to vector<64x32xbf16>
    %cst_35 = arith.constant dense<0.000000e+00> : vector<64x64xf32>
    %130 = tpu.matmul %128, %129, %cst_35 {dimension_numbers = #tpu.dot_dimension_numbers<[1], [1], [0], [0], [0, 0, 1, 0], [], []>} : vector<64x32xbf16>, vector<64x32xbf16>, vector<64x64xf32> -> vector<64x64xf32>
    %131 = arith.addf %130, %14 : vector<64x64xf32>
    %cst_36 = arith.constant dense<0xFF800000> : vector<64xf32>
    %132 = vector.multi_reduction <maximumf>, %131, %cst_36 [1] : vector<64x64xf32> to vector<64xf32>
    %133 = vector.shape_cast %132 : vector<64xf32> to vector<64x1xf32>
    %134 = vector.broadcast %133 : vector<64x1xf32> to vector<64x64xf32>
    %135 = arith.subf %131, %134 : vector<64x64xf32>
    %136 = math.exp %135 : vector<64x64xf32>
    %cst_37 = arith.constant dense<0.000000e+00> : vector<64xf32>
    %137 = vector.multi_reduction <add>, %136, %cst_37 [1] : vector<64x64xf32> to vector<64xf32>
    %138 = vector.shape_cast %137 : vector<64xf32> to vector<64x1xf32>
    %139 = tpu.reciprocal %138 {approx = true} : vector<64x1xf32> -> vector<64x1xf32>
    %140 = vector.broadcast %139 : vector<64x1xf32> to vector<64x64xf32>
    %141 = arith.mulf %136, %140 : vector<64x64xf32>
    %142 = arith.truncf %141 : vector<64x64xf32> to vector<64x64xbf16>
    %143 = arith.truncf %127 : vector<64x32xf32> to vector<64x32xbf16>
    %cst_38 = arith.constant dense<0.000000e+00> : vector<64x32xf32>
    %144 = tpu.matmul %142, %143, %cst_38 {dimension_numbers = #tpu.dot_dimension_numbers<[1], [0], [0], [1], [0, 0, 1, 1], [], []>} : vector<64x64xbf16>, vector<64x32xbf16>, vector<64x32xf32> -> vector<64x32xf32>
    %145 = arith.truncf %144 : vector<64x32xf32> to vector<64x32xbf16>
    %c64_39 = arith.constant 64 : index
    %c32_40 = arith.constant 32 : index
    %146 = vector.load %arg7[%c64_39, %c32_40] : memref<256x128xbf16, #tpu.memory_space<vmem>>, vector<64x32xbf16>
    tpu.vector_store %arg7[%c64_39, %c32_40], %145 {strides = array<i32>} : memref<256x128xbf16, #tpu.memory_space<vmem>>, vector<64x32xbf16>,
    %147 = vector.extract_strided_slice %8 {offsets = [64, 64], sizes = [64, 32], strides = [1, 1]} : vector<256x384xf32> to vector<64x32xf32>
    %148 = vector.extract_strided_slice %8 {offsets = [64, 192], sizes = [64, 32], strides = [1, 1]} : vector<256x384xf32> to vector<64x32xf32>
    %149 = vector.extract_strided_slice %8 {offsets = [64, 320], sizes = [64, 32], strides = [1, 1]} : vector<256x384xf32> to vector<64x32xf32>
    %150 = arith.truncf %147 : vector<64x32xf32> to vector<64x32xbf16>
    %151 = arith.truncf %148 : vector<64x32xf32> to vector<64x32xbf16>
    %cst_41 = arith.constant dense<0.000000e+00> : vector<64x64xf32>
    %152 = tpu.matmul %150, %151, %cst_41 {dimension_numbers = #tpu.dot_dimension_numbers<[1], [1], [0], [0], [0, 0, 1, 0], [], []>} : vector<64x32xbf16>, vector<64x32xbf16>, vector<64x64xf32> -> vector<64x64xf32>
    %153 = arith.addf %152, %14 : vector<64x64xf32>
    %cst_42 = arith.constant dense<0xFF800000> : vector<64xf32>
    %154 = vector.multi_reduction <maximumf>, %153, %cst_42 [1] : vector<64x64xf32> to vector<64xf32>
    %155 = vector.shape_cast %154 : vector<64xf32> to vector<64x1xf32>
    %156 = vector.broadcast %155 : vector<64x1xf32> to vector<64x64xf32>
    %157 = arith.subf %153, %156 : vector<64x64xf32>
    %158 = math.exp %157 : vector<64x64xf32>
    %cst_43 = arith.constant dense<0.000000e+00> : vector<64xf32>
    %159 = vector.multi_reduction <add>, %158, %cst_43 [1] : vector<64x64xf32> to vector<64xf32>
    %160 = vector.shape_cast %159 : vector<64xf32> to vector<64x1xf32>
    %161 = tpu.reciprocal %160 {approx = true} : vector<64x1xf32> -> vector<64x1xf32>
    %162 = vector.broadcast %161 : vector<64x1xf32> to vector<64x64xf32>
    %163 = arith.mulf %158, %162 : vector<64x64xf32>
    %164 = arith.truncf %163 : vector<64x64xf32> to vector<64x64xbf16>
    %165 = arith.truncf %149 : vector<64x32xf32> to vector<64x32xbf16>
    %cst_44 = arith.constant dense<0.000000e+00> : vector<64x32xf32>
    %166 = tpu.matmul %164, %165, %cst_44 {dimension_numbers = #tpu.dot_dimension_numbers<[1], [0], [0], [1], [0, 0, 1, 1], [], []>} : vector<64x64xbf16>, vector<64x32xbf16>, vector<64x32xf32> -> vector<64x32xf32>
    %167 = arith.truncf %166 : vector<64x32xf32> to vector<64x32xbf16>
    %c64_45 = arith.constant 64 : index
    %c64_46 = arith.constant 64 : index
    %168 = vector.load %arg7[%c64_45, %c64_46] : memref<256x128xbf16, #tpu.memory_space<vmem>>, vector<64x32xbf16>
    tpu.vector_store %arg7[%c64_45, %c64_46], %167 {strides = array<i32>} : memref<256x128xbf16, #tpu.memory_space<vmem>>, vector<64x32xbf16>,
    %169 = vector.extract_strided_slice %8 {offsets = [64, 96], sizes = [64, 32], strides = [1, 1]} : vector<256x384xf32> to vector<64x32xf32>
    %170 = vector.extract_strided_slice %8 {offsets = [64, 224], sizes = [64, 32], strides = [1, 1]} : vector<256x384xf32> to vector<64x32xf32>
    %171 = vector.extract_strided_slice %8 {offsets = [64, 352], sizes = [64, 32], strides = [1, 1]} : vector<256x384xf32> to vector<64x32xf32>
    %172 = arith.truncf %169 : vector<64x32xf32> to vector<64x32xbf16>
    %173 = arith.truncf %170 : vector<64x32xf32> to vector<64x32xbf16>
    %cst_47 = arith.constant dense<0.000000e+00> : vector<64x64xf32>
    %174 = tpu.matmul %172, %173, %cst_47 {dimension_numbers = #tpu.dot_dimension_numbers<[1], [1], [0], [0], [0, 0, 1, 0], [], []>} : vector<64x32xbf16>, vector<64x32xbf16>, vector<64x64xf32> -> vector<64x64xf32>
    %175 = arith.addf %174, %14 : vector<64x64xf32>
    %cst_48 = arith.constant dense<0xFF800000> : vector<64xf32>
    %176 = vector.multi_reduction <maximumf>, %175, %cst_48 [1] : vector<64x64xf32> to vector<64xf32>
    %177 = vector.shape_cast %176 : vector<64xf32> to vector<64x1xf32>
    %178 = vector.broadcast %177 : vector<64x1xf32> to vector<64x64xf32>
    %179 = arith.subf %175, %178 : vector<64x64xf32>
    %180 = math.exp %179 : vector<64x64xf32>
    %cst_49 = arith.constant dense<0.000000e+00> : vector<64xf32>
    %181 = vector.multi_reduction <add>, %180, %cst_49 [1] : vector<64x64xf32> to vector<64xf32>
    %182 = vector.shape_cast %181 : vector<64xf32> to vector<64x1xf32>
    %183 = tpu.reciprocal %182 {approx = true} : vector<64x1xf32> -> vector<64x1xf32>
    %184 = vector.broadcast %183 : vector<64x1xf32> to vector<64x64xf32>
    %185 = arith.mulf %180, %184 : vector<64x64xf32>
    %186 = arith.truncf %185 : vector<64x64xf32> to vector<64x64xbf16>
    %187 = arith.truncf %171 : vector<64x32xf32> to vector<64x32xbf16>
    %cst_50 = arith.constant dense<0.000000e+00> : vector<64x32xf32>
    %188 = tpu.matmul %186, %187, %cst_50 {dimension_numbers = #tpu.dot_dimension_numbers<[1], [0], [0], [1], [0, 0, 1, 1], [], []>} : vector<64x64xbf16>, vector<64x32xbf16>, vector<64x32xf32> -> vector<64x32xf32>
    %189 = arith.truncf %188 : vector<64x32xf32> to vector<64x32xbf16>
    %c64_51 = arith.constant 64 : index
    %c96_52 = arith.constant 96 : index
    %190 = vector.load %arg7[%c64_51, %c96_52] : memref<256x128xbf16, #tpu.memory_space<vmem>>, vector<64x32xbf16>
    tpu.vector_store %arg7[%c64_51, %c96_52], %189 {strides = array<i32>} : memref<256x128xbf16, #tpu.memory_space<vmem>>, vector<64x32xbf16>,
    %191 = vector.extract_strided_slice %8 {offsets = [128, 0], sizes = [64, 32], strides = [1, 1]} : vector<256x384xf32> to vector<64x32xf32>
    %192 = vector.extract_strided_slice %8 {offsets = [128, 128], sizes = [64, 32], strides = [1, 1]} : vector<256x384xf32> to vector<64x32xf32>
    %193 = vector.extract_strided_slice %8 {offsets = [128, 256], sizes = [64, 32], strides = [1, 1]} : vector<256x384xf32> to vector<64x32xf32>
    %194 = arith.truncf %191 : vector<64x32xf32> to vector<64x32xbf16>
    %195 = arith.truncf %192 : vector<64x32xf32> to vector<64x32xbf16>
    %cst_53 = arith.constant dense<0.000000e+00> : vector<64x64xf32>
    %196 = tpu.matmul %194, %195, %cst_53 {dimension_numbers = #tpu.dot_dimension_numbers<[1], [1], [0], [0], [0, 0, 1, 0], [], []>} : vector<64x32xbf16>, vector<64x32xbf16>, vector<64x64xf32> -> vector<64x64xf32>
    %197 = arith.addf %196, %14 : vector<64x64xf32>
    %cst_54 = arith.constant dense<0xFF800000> : vector<64xf32>
    %198 = vector.multi_reduction <maximumf>, %197, %cst_54 [1] : vector<64x64xf32> to vector<64xf32>
    %199 = vector.shape_cast %198 : vector<64xf32> to vector<64x1xf32>
    %200 = vector.broadcast %199 : vector<64x1xf32> to vector<64x64xf32>
    %201 = arith.subf %197, %200 : vector<64x64xf32>
    %202 = math.exp %201 : vector<64x64xf32>
    %cst_55 = arith.constant dense<0.000000e+00> : vector<64xf32>
    %203 = vector.multi_reduction <add>, %202, %cst_55 [1] : vector<64x64xf32> to vector<64xf32>
    %204 = vector.shape_cast %203 : vector<64xf32> to vector<64x1xf32>
    %205 = tpu.reciprocal %204 {approx = true} : vector<64x1xf32> -> vector<64x1xf32>
    %206 = vector.broadcast %205 : vector<64x1xf32> to vector<64x64xf32>
    %207 = arith.mulf %202, %206 : vector<64x64xf32>
    %208 = arith.truncf %207 : vector<64x64xf32> to vector<64x64xbf16>
    %209 = arith.truncf %193 : vector<64x32xf32> to vector<64x32xbf16>
    %cst_56 = arith.constant dense<0.000000e+00> : vector<64x32xf32>
    %210 = tpu.matmul %208, %209, %cst_56 {dimension_numbers = #tpu.dot_dimension_numbers<[1], [0], [0], [1], [0, 0, 1, 1], [], []>} : vector<64x64xbf16>, vector<64x32xbf16>, vector<64x32xf32> -> vector<64x32xf32>
    %211 = arith.truncf %210 : vector<64x32xf32> to vector<64x32xbf16>
    %c128 = arith.constant 128 : index
    %c0_57 = arith.constant 0 : index
    %212 = vector.load %arg7[%c128, %c0_57] : memref<256x128xbf16, #tpu.memory_space<vmem>>, vector<64x32xbf16>
    tpu.vector_store %arg7[%c128, %c0_57], %211 {strides = array<i32>} : memref<256x128xbf16, #tpu.memory_space<vmem>>, vector<64x32xbf16>,
    %213 = vector.extract_strided_slice %8 {offsets = [128, 32], sizes = [64, 32], strides = [1, 1]} : vector<256x384xf32> to vector<64x32xf32>
    %214 = vector.extract_strided_slice %8 {offsets = [128, 160], sizes = [64, 32], strides = [1, 1]} : vector<256x384xf32> to vector<64x32xf32>
    %215 = vector.extract_strided_slice %8 {offsets = [128, 288], sizes = [64, 32], strides = [1, 1]} : vector<256x384xf32> to vector<64x32xf32>
    %216 = arith.truncf %213 : vector<64x32xf32> to vector<64x32xbf16>
    %217 = arith.truncf %214 : vector<64x32xf32> to vector<64x32xbf16>
    %cst_58 = arith.constant dense<0.000000e+00> : vector<64x64xf32>
    %218 = tpu.matmul %216, %217, %cst_58 {dimension_numbers = #tpu.dot_dimension_numbers<[1], [1], [0], [0], [0, 0, 1, 0], [], []>} : vector<64x32xbf16>, vector<64x32xbf16>, vector<64x64xf32> -> vector<64x64xf32>
    %219 = arith.addf %218, %14 : vector<64x64xf32>
    %cst_59 = arith.constant dense<0xFF800000> : vector<64xf32>
    %220 = vector.multi_reduction <maximumf>, %219, %cst_59 [1] : vector<64x64xf32> to vector<64xf32>
    %221 = vector.shape_cast %220 : vector<64xf32> to vector<64x1xf32>
    %222 = vector.broadcast %221 : vector<64x1xf32> to vector<64x64xf32>
    %223 = arith.subf %219, %222 : vector<64x64xf32>
    %224 = math.exp %223 : vector<64x64xf32>
    %cst_60 = arith.constant dense<0.000000e+00> : vector<64xf32>
    %225 = vector.multi_reduction <add>, %224, %cst_60 [1] : vector<64x64xf32> to vector<64xf32>
    %226 = vector.shape_cast %225 : vector<64xf32> to vector<64x1xf32>
    %227 = tpu.reciprocal %226 {approx = true} : vector<64x1xf32> -> vector<64x1xf32>
    %228 = vector.broadcast %227 : vector<64x1xf32> to vector<64x64xf32>
    %229 = arith.mulf %224, %228 : vector<64x64xf32>
    %230 = arith.truncf %229 : vector<64x64xf32> to vector<64x64xbf16>
    %231 = arith.truncf %215 : vector<64x32xf32> to vector<64x32xbf16>
    %cst_61 = arith.constant dense<0.000000e+00> : vector<64x32xf32>
    %232 = tpu.matmul %230, %231, %cst_61 {dimension_numbers = #tpu.dot_dimension_numbers<[1], [0], [0], [1], [0, 0, 1, 1], [], []>} : vector<64x64xbf16>, vector<64x32xbf16>, vector<64x32xf32> -> vector<64x32xf32>
    %233 = arith.truncf %232 : vector<64x32xf32> to vector<64x32xbf16>
    %c128_62 = arith.constant 128 : index
    %c32_63 = arith.constant 32 : index
    %234 = vector.load %arg7[%c128_62, %c32_63] : memref<256x128xbf16, #tpu.memory_space<vmem>>, vector<64x32xbf16>
    tpu.vector_store %arg7[%c128_62, %c32_63], %233 {strides = array<i32>} : memref<256x128xbf16, #tpu.memory_space<vmem>>, vector<64x32xbf16>,
    %235 = vector.extract_strided_slice %8 {offsets = [128, 64], sizes = [64, 32], strides = [1, 1]} : vector<256x384xf32> to vector<64x32xf32>
    %236 = vector.extract_strided_slice %8 {offsets = [128, 192], sizes = [64, 32], strides = [1, 1]} : vector<256x384xf32> to vector<64x32xf32>
    %237 = vector.extract_strided_slice %8 {offsets = [128, 320], sizes = [64, 32], strides = [1, 1]} : vector<256x384xf32> to vector<64x32xf32>
    %238 = arith.truncf %235 : vector<64x32xf32> to vector<64x32xbf16>
    %239 = arith.truncf %236 : vector<64x32xf32> to vector<64x32xbf16>
    %cst_64 = arith.constant dense<0.000000e+00> : vector<64x64xf32>
    %240 = tpu.matmul %238, %239, %cst_64 {dimension_numbers = #tpu.dot_dimension_numbers<[1], [1], [0], [0], [0, 0, 1, 0], [], []>} : vector<64x32xbf16>, vector<64x32xbf16>, vector<64x64xf32> -> vector<64x64xf32>
    %241 = arith.addf %240, %14 : vector<64x64xf32>
    %cst_65 = arith.constant dense<0xFF800000> : vector<64xf32>
    %242 = vector.multi_reduction <maximumf>, %241, %cst_65 [1] : vector<64x64xf32> to vector<64xf32>
    %243 = vector.shape_cast %242 : vector<64xf32> to vector<64x1xf32>
    %244 = vector.broadcast %243 : vector<64x1xf32> to vector<64x64xf32>
    %245 = arith.subf %241, %244 : vector<64x64xf32>
    %246 = math.exp %245 : vector<64x64xf32>
    %cst_66 = arith.constant dense<0.000000e+00> : vector<64xf32>
    %247 = vector.multi_reduction <add>, %246, %cst_66 [1] : vector<64x64xf32> to vector<64xf32>
    %248 = vector.shape_cast %247 : vector<64xf32> to vector<64x1xf32>
    %249 = tpu.reciprocal %248 {approx = true} : vector<64x1xf32> -> vector<64x1xf32>
    %250 = vector.broadcast %249 : vector<64x1xf32> to vector<64x64xf32>
    %251 = arith.mulf %246, %250 : vector<64x64xf32>
    %252 = arith.truncf %251 : vector<64x64xf32> to vector<64x64xbf16>
    %253 = arith.truncf %237 : vector<64x32xf32> to vector<64x32xbf16>
    %cst_67 = arith.constant dense<0.000000e+00> : vector<64x32xf32>
    %254 = tpu.matmul %252, %253, %cst_67 {dimension_numbers = #tpu.dot_dimension_numbers<[1], [0], [0], [1], [0, 0, 1, 1], [], []>} : vector<64x64xbf16>, vector<64x32xbf16>, vector<64x32xf32> -> vector<64x32xf32>
    %255 = arith.truncf %254 : vector<64x32xf32> to vector<64x32xbf16>
    %c128_68 = arith.constant 128 : index
    %c64_69 = arith.constant 64 : index
    %256 = vector.load %arg7[%c128_68, %c64_69] : memref<256x128xbf16, #tpu.memory_space<vmem>>, vector<64x32xbf16>
    tpu.vector_store %arg7[%c128_68, %c64_69], %255 {strides = array<i32>} : memref<256x128xbf16, #tpu.memory_space<vmem>>, vector<64x32xbf16>,
    %257 = vector.extract_strided_slice %8 {offsets = [128, 96], sizes = [64, 32], strides = [1, 1]} : vector<256x384xf32> to vector<64x32xf32>
    %258 = vector.extract_strided_slice %8 {offsets = [128, 224], sizes = [64, 32], strides = [1, 1]} : vector<256x384xf32> to vector<64x32xf32>
    %259 = vector.extract_strided_slice %8 {offsets = [128, 352], sizes = [64, 32], strides = [1, 1]} : vector<256x384xf32> to vector<64x32xf32>
    %260 = arith.truncf %257 : vector<64x32xf32> to vector<64x32xbf16>
    %261 = arith.truncf %258 : vector<64x32xf32> to vector<64x32xbf16>
    %cst_70 = arith.constant dense<0.000000e+00> : vector<64x64xf32>
    %262 = tpu.matmul %260, %261, %cst_70 {dimension_numbers = #tpu.dot_dimension_numbers<[1], [1], [0], [0], [0, 0, 1, 0], [], []>} : vector<64x32xbf16>, vector<64x32xbf16>, vector<64x64xf32> -> vector<64x64xf32>
    %263 = arith.addf %262, %14 : vector<64x64xf32>
    %cst_71 = arith.constant dense<0xFF800000> : vector<64xf32>
    %264 = vector.multi_reduction <maximumf>, %263, %cst_71 [1] : vector<64x64xf32> to vector<64xf32>
    %265 = vector.shape_cast %264 : vector<64xf32> to vector<64x1xf32>
    %266 = vector.broadcast %265 : vector<64x1xf32> to vector<64x64xf32>
    %267 = arith.subf %263, %266 : vector<64x64xf32>
    %268 = math.exp %267 : vector<64x64xf32>
    %cst_72 = arith.constant dense<0.000000e+00> : vector<64xf32>
    %269 = vector.multi_reduction <add>, %268, %cst_72 [1] : vector<64x64xf32> to vector<64xf32>
    %270 = vector.shape_cast %269 : vector<64xf32> to vector<64x1xf32>
    %271 = tpu.reciprocal %270 {approx = true} : vector<64x1xf32> -> vector<64x1xf32>
    %272 = vector.broadcast %271 : vector<64x1xf32> to vector<64x64xf32>
    %273 = arith.mulf %268, %272 : vector<64x64xf32>
    %274 = arith.truncf %273 : vector<64x64xf32> to vector<64x64xbf16>
    %275 = arith.truncf %259 : vector<64x32xf32> to vector<64x32xbf16>
    %cst_73 = arith.constant dense<0.000000e+00> : vector<64x32xf32>
    %276 = tpu.matmul %274, %275, %cst_73 {dimension_numbers = #tpu.dot_dimension_numbers<[1], [0], [0], [1], [0, 0, 1, 1], [], []>} : vector<64x64xbf16>, vector<64x32xbf16>, vector<64x32xf32> -> vector<64x32xf32>
    %277 = arith.truncf %276 : vector<64x32xf32> to vector<64x32xbf16>
    %c128_74 = arith.constant 128 : index
    %c96_75 = arith.constant 96 : index
    %278 = vector.load %arg7[%c128_74, %c96_75] : memref<256x128xbf16, #tpu.memory_space<vmem>>, vector<64x32xbf16>
    tpu.vector_store %arg7[%c128_74, %c96_75], %277 {strides = array<i32>} : memref<256x128xbf16, #tpu.memory_space<vmem>>, vector<64x32xbf16>,
    %279 = vector.extract_strided_slice %8 {offsets = [192, 0], sizes = [64, 32], strides = [1, 1]} : vector<256x384xf32> to vector<64x32xf32>
    %280 = vector.extract_strided_slice %8 {offsets = [192, 128], sizes = [64, 32], strides = [1, 1]} : vector<256x384xf32> to vector<64x32xf32>
    %281 = vector.extract_strided_slice %8 {offsets = [192, 256], sizes = [64, 32], strides = [1, 1]} : vector<256x384xf32> to vector<64x32xf32>
    %282 = arith.truncf %279 : vector<64x32xf32> to vector<64x32xbf16>
    %283 = arith.truncf %280 : vector<64x32xf32> to vector<64x32xbf16>
    %cst_76 = arith.constant dense<0.000000e+00> : vector<64x64xf32>
    %284 = tpu.matmul %282, %283, %cst_76 {dimension_numbers = #tpu.dot_dimension_numbers<[1], [1], [0], [0], [0, 0, 1, 0], [], []>} : vector<64x32xbf16>, vector<64x32xbf16>, vector<64x64xf32> -> vector<64x64xf32>
    %285 = arith.addf %284, %14 : vector<64x64xf32>
    %cst_77 = arith.constant dense<0xFF800000> : vector<64xf32>
    %286 = vector.multi_reduction <maximumf>, %285, %cst_77 [1] : vector<64x64xf32> to vector<64xf32>
    %287 = vector.shape_cast %286 : vector<64xf32> to vector<64x1xf32>
    %288 = vector.broadcast %287 : vector<64x1xf32> to vector<64x64xf32>
    %289 = arith.subf %285, %288 : vector<64x64xf32>
    %290 = math.exp %289 : vector<64x64xf32>
    %cst_78 = arith.constant dense<0.000000e+00> : vector<64xf32>
    %291 = vector.multi_reduction <add>, %290, %cst_78 [1] : vector<64x64xf32> to vector<64xf32>
    %292 = vector.shape_cast %291 : vector<64xf32> to vector<64x1xf32>
    %293 = tpu.reciprocal %292 {approx = true} : vector<64x1xf32> -> vector<64x1xf32>
    %294 = vector.broadcast %293 : vector<64x1xf32> to vector<64x64xf32>
    %295 = arith.mulf %290, %294 : vector<64x64xf32>
    %296 = arith.truncf %295 : vector<64x64xf32> to vector<64x64xbf16>
    %297 = arith.truncf %281 : vector<64x32xf32> to vector<64x32xbf16>
    %cst_79 = arith.constant dense<0.000000e+00> : vector<64x32xf32>
    %298 = tpu.matmul %296, %297, %cst_79 {dimension_numbers = #tpu.dot_dimension_numbers<[1], [0], [0], [1], [0, 0, 1, 1], [], []>} : vector<64x64xbf16>, vector<64x32xbf16>, vector<64x32xf32> -> vector<64x32xf32>
    %299 = arith.truncf %298 : vector<64x32xf32> to vector<64x32xbf16>
    %c192 = arith.constant 192 : index
    %c0_80 = arith.constant 0 : index
    %300 = vector.load %arg7[%c192, %c0_80] : memref<256x128xbf16, #tpu.memory_space<vmem>>, vector<64x32xbf16>
    tpu.vector_store %arg7[%c192, %c0_80], %299 {strides = array<i32>} : memref<256x128xbf16, #tpu.memory_space<vmem>>, vector<64x32xbf16>,
    %301 = vector.extract_strided_slice %8 {offsets = [192, 32], sizes = [64, 32], strides = [1, 1]} : vector<256x384xf32> to vector<64x32xf32>
    %302 = vector.extract_strided_slice %8 {offsets = [192, 160], sizes = [64, 32], strides = [1, 1]} : vector<256x384xf32> to vector<64x32xf32>
    %303 = vector.extract_strided_slice %8 {offsets = [192, 288], sizes = [64, 32], strides = [1, 1]} : vector<256x384xf32> to vector<64x32xf32>
    %304 = arith.truncf %301 : vector<64x32xf32> to vector<64x32xbf16>
    %305 = arith.truncf %302 : vector<64x32xf32> to vector<64x32xbf16>
    %cst_81 = arith.constant dense<0.000000e+00> : vector<64x64xf32>
    %306 = tpu.matmul %304, %305, %cst_81 {dimension_numbers = #tpu.dot_dimension_numbers<[1], [1], [0], [0], [0, 0, 1, 0], [], []>} : vector<64x32xbf16>, vector<64x32xbf16>, vector<64x64xf32> -> vector<64x64xf32>
    %307 = arith.addf %306, %14 : vector<64x64xf32>
    %cst_82 = arith.constant dense<0xFF800000> : vector<64xf32>
    %308 = vector.multi_reduction <maximumf>, %307, %cst_82 [1] : vector<64x64xf32> to vector<64xf32>
    %309 = vector.shape_cast %308 : vector<64xf32> to vector<64x1xf32>
    %310 = vector.broadcast %309 : vector<64x1xf32> to vector<64x64xf32>
    %311 = arith.subf %307, %310 : vector<64x64xf32>
    %312 = math.exp %311 : vector<64x64xf32>
    %cst_83 = arith.constant dense<0.000000e+00> : vector<64xf32>
    %313 = vector.multi_reduction <add>, %312, %cst_83 [1] : vector<64x64xf32> to vector<64xf32>
    %314 = vector.shape_cast %313 : vector<64xf32> to vector<64x1xf32>
    %315 = tpu.reciprocal %314 {approx = true} : vector<64x1xf32> -> vector<64x1xf32>
    %316 = vector.broadcast %315 : vector<64x1xf32> to vector<64x64xf32>
    %317 = arith.mulf %312, %316 : vector<64x64xf32>
    %318 = arith.truncf %317 : vector<64x64xf32> to vector<64x64xbf16>
    %319 = arith.truncf %303 : vector<64x32xf32> to vector<64x32xbf16>
    %cst_84 = arith.constant dense<0.000000e+00> : vector<64x32xf32>
    %320 = tpu.matmul %318, %319, %cst_84 {dimension_numbers = #tpu.dot_dimension_numbers<[1], [0], [0], [1], [0, 0, 1, 1], [], []>} : vector<64x64xbf16>, vector<64x32xbf16>, vector<64x32xf32> -> vector<64x32xf32>
    %321 = arith.truncf %320 : vector<64x32xf32> to vector<64x32xbf16>
    %c192_85 = arith.constant 192 : index
    %c32_86 = arith.constant 32 : index
    %322 = vector.load %arg7[%c192_85, %c32_86] : memref<256x128xbf16, #tpu.memory_space<vmem>>, vector<64x32xbf16>
    tpu.vector_store %arg7[%c192_85, %c32_86], %321 {strides = array<i32>} : memref<256x128xbf16, #tpu.memory_space<vmem>>, vector<64x32xbf16>,
    %323 = vector.extract_strided_slice %8 {offsets = [192, 64], sizes = [64, 32], strides = [1, 1]} : vector<256x384xf32> to vector<64x32xf32>
    %324 = vector.extract_strided_slice %8 {offsets = [192, 192], sizes = [64, 32], strides = [1, 1]} : vector<256x384xf32> to vector<64x32xf32>
    %325 = vector.extract_strided_slice %8 {offsets = [192, 320], sizes = [64, 32], strides = [1, 1]} : vector<256x384xf32> to vector<64x32xf32>
    %326 = arith.truncf %323 : vector<64x32xf32> to vector<64x32xbf16>
    %327 = arith.truncf %324 : vector<64x32xf32> to vector<64x32xbf16>
    %cst_87 = arith.constant dense<0.000000e+00> : vector<64x64xf32>
    %328 = tpu.matmul %326, %327, %cst_87 {dimension_numbers = #tpu.dot_dimension_numbers<[1], [1], [0], [0], [0, 0, 1, 0], [], []>} : vector<64x32xbf16>, vector<64x32xbf16>, vector<64x64xf32> -> vector<64x64xf32>
    %329 = arith.addf %328, %14 : vector<64x64xf32>
    %cst_88 = arith.constant dense<0xFF800000> : vector<64xf32>
    %330 = vector.multi_reduction <maximumf>, %329, %cst_88 [1] : vector<64x64xf32> to vector<64xf32>
    %331 = vector.shape_cast %330 : vector<64xf32> to vector<64x1xf32>
    %332 = vector.broadcast %331 : vector<64x1xf32> to vector<64x64xf32>
    %333 = arith.subf %329, %332 : vector<64x64xf32>
    %334 = math.exp %333 : vector<64x64xf32>
    %cst_89 = arith.constant dense<0.000000e+00> : vector<64xf32>
    %335 = vector.multi_reduction <add>, %334, %cst_89 [1] : vector<64x64xf32> to vector<64xf32>
    %336 = vector.shape_cast %335 : vector<64xf32> to vector<64x1xf32>
    %337 = tpu.reciprocal %336 {approx = true} : vector<64x1xf32> -> vector<64x1xf32>
    %338 = vector.broadcast %337 : vector<64x1xf32> to vector<64x64xf32>
    %339 = arith.mulf %334, %338 : vector<64x64xf32>
    %340 = arith.truncf %339 : vector<64x64xf32> to vector<64x64xbf16>
    %341 = arith.truncf %325 : vector<64x32xf32> to vector<64x32xbf16>
    %cst_90 = arith.constant dense<0.000000e+00> : vector<64x32xf32>
    %342 = tpu.matmul %340, %341, %cst_90 {dimension_numbers = #tpu.dot_dimension_numbers<[1], [0], [0], [1], [0, 0, 1, 1], [], []>} : vector<64x64xbf16>, vector<64x32xbf16>, vector<64x32xf32> -> vector<64x32xf32>
    %343 = arith.truncf %342 : vector<64x32xf32> to vector<64x32xbf16>
    %c192_91 = arith.constant 192 : index
    %c64_92 = arith.constant 64 : index
    %344 = vector.load %arg7[%c192_91, %c64_92] : memref<256x128xbf16, #tpu.memory_space<vmem>>, vector<64x32xbf16>
    tpu.vector_store %arg7[%c192_91, %c64_92], %343 {strides = array<i32>} : memref<256x128xbf16, #tpu.memory_space<vmem>>, vector<64x32xbf16>,
    %345 = vector.extract_strided_slice %8 {offsets = [192, 96], sizes = [64, 32], strides = [1, 1]} : vector<256x384xf32> to vector<64x32xf32>
    %346 = vector.extract_strided_slice %8 {offsets = [192, 224], sizes = [64, 32], strides = [1, 1]} : vector<256x384xf32> to vector<64x32xf32>
    %347 = vector.extract_strided_slice %8 {offsets = [192, 352], sizes = [64, 32], strides = [1, 1]} : vector<256x384xf32> to vector<64x32xf32>
    %348 = arith.truncf %345 : vector<64x32xf32> to vector<64x32xbf16>
    %349 = arith.truncf %346 : vector<64x32xf32> to vector<64x32xbf16>
    %cst_93 = arith.constant dense<0.000000e+00> : vector<64x64xf32>
    %350 = tpu.matmul %348, %349, %cst_93 {dimension_numbers = #tpu.dot_dimension_numbers<[1], [1], [0], [0], [0, 0, 1, 0], [], []>} : vector<64x32xbf16>, vector<64x32xbf16>, vector<64x64xf32> -> vector<64x64xf32>
    %351 = arith.addf %350, %14 : vector<64x64xf32>
    %cst_94 = arith.constant dense<0xFF800000> : vector<64xf32>
    %352 = vector.multi_reduction <maximumf>, %351, %cst_94 [1] : vector<64x64xf32> to vector<64xf32>
    %353 = vector.shape_cast %352 : vector<64xf32> to vector<64x1xf32>
    %354 = vector.broadcast %353 : vector<64x1xf32> to vector<64x64xf32>
    %355 = arith.subf %351, %354 : vector<64x64xf32>
    %356 = math.exp %355 : vector<64x64xf32>
    %cst_95 = arith.constant dense<0.000000e+00> : vector<64xf32>
    %357 = vector.multi_reduction <add>, %356, %cst_95 [1] : vector<64x64xf32> to vector<64xf32>
    %358 = vector.shape_cast %357 : vector<64xf32> to vector<64x1xf32>
    %359 = tpu.reciprocal %358 {approx = true} : vector<64x1xf32> -> vector<64x1xf32>
    %360 = vector.broadcast %359 : vector<64x1xf32> to vector<64x64xf32>
    %361 = arith.mulf %356, %360 : vector<64x64xf32>
    %362 = arith.truncf %361 : vector<64x64xf32> to vector<64x64xbf16>
    %363 = arith.truncf %347 : vector<64x32xf32> to vector<64x32xbf16>
    %cst_96 = arith.constant dense<0.000000e+00> : vector<64x32xf32>
    %364 = tpu.matmul %362, %363, %cst_96 {dimension_numbers = #tpu.dot_dimension_numbers<[1], [0], [0], [1], [0, 0, 1, 1], [], []>} : vector<64x64xbf16>, vector<64x32xbf16>, vector<64x32xf32> -> vector<64x32xf32>
    %365 = arith.truncf %364 : vector<64x32xf32> to vector<64x32xbf16>
    %c192_97 = arith.constant 192 : index
    %c96_98 = arith.constant 96 : index
    %366 = vector.load %arg7[%c192_97, %c96_98] : memref<256x128xbf16, #tpu.memory_space<vmem>>, vector<64x32xbf16>
    tpu.vector_store %arg7[%c192_97, %c96_98], %365 {strides = array<i32>} : memref<256x128xbf16, #tpu.memory_space<vmem>>, vector<64x32xbf16>,
    %c0_99 = arith.constant 0 : index
    %c0_100 = arith.constant 0 : index
    %367 = vector.load %arg4[%c0_99, %c0_100] : memref<128x128xf32, #tpu.memory_space<vmem>>, vector<128x128xf32>
    %368 = arith.truncf %367 : vector<128x128xf32> to vector<128x128xbf16>
    %c0_101 = arith.constant 0 : index
    %c0_102 = arith.constant 0 : index
    %369 = vector.load %arg7[%c0_101, %c0_102] : memref<256x128xbf16, #tpu.memory_space<vmem>>, vector<256x128xbf16>
    %cst_103 = arith.constant dense<0.000000e+00> : vector<256x128xf32>
    %370 = tpu.matmul %369, %368, %cst_103 {dimension_numbers = #tpu.dot_dimension_numbers<[1], [0], [0], [1], [0, 0, 1, 1], [], []>} : vector<256x128xbf16>, vector<128x128xbf16>, vector<256x128xf32> -> vector<256x128xf32>
    %c0_104 = arith.constant 0 : index
    %c0_105 = arith.constant 0 : index
    %371 = vector.load %arg5[%c0_104, %c0_105] : memref<1x128xf32, #tpu.memory_space<vmem>>, vector<1x128xf32>
    %372 = vector.broadcast %371 : vector<1x128xf32> to vector<256x128xf32>
    %373 = arith.addf %370, %372 : vector<256x128xf32>
    %374 = vector.shape_cast %373 : vector<256x128xf32> to vector<4x64x128xf32>
    %c0_106 = arith.constant 0 : index
    %c0_107 = arith.constant 0 : index
    %c0_108 = arith.constant 0 : index
    %375 = vector.load %arg6[%c0_106, %c0_107, %c0_108] : memref<4x64x128xf32, #tpu.memory_space<vmem>>, vector<4x64x128xf32>
    tpu.vector_store %arg6[%c0_106, %c0_107, %c0_108], %374 {strides = array<i32>} : memref<4x64x128xf32, #tpu.memory_space<vmem>>, vector<4x64x128xf32>,
    return
  }
  func.func @transform_0(%arg0: i32) -> (i32, i32, i32) {
    %c0_i32 = arith.constant 0 : i32
    %c0_i32_0 = arith.constant 0 : i32
    %c0_i32_1 = arith.constant 0 : i32
    return %arg0, %c0_i32, %c0_i32_0 : i32, i32, i32
  }
  func.func @transform_1(%arg0: i32) -> (i32, i32) {
    %c0_i32 = arith.constant 0 : i32
    %c0_i32_0 = arith.constant 0 : i32
    %c0_i32_1 = arith.constant 0 : i32
    return %c0_i32, %c0_i32_0 : i32, i32
  }
  func.func @transform_2(%arg0: i32) -> (i32, i32) {
    %c0_i32 = arith.constant 0 : i32
    %c0_i32_0 = arith.constant 0 : i32
    %c0_i32_1 = arith.constant 0 : i32
    return %c0_i32, %c0_i32_0 : i32, i32
  }
  func.func @transform_3(%arg0: i32) -> (i32, i32) {
    %c0_i32 = arith.constant 0 : i32
    %c0_i32_0 = arith.constant 0 : i32
    %c0_i32_1 = arith.constant 0 : i32
    return %c0_i32, %c0_i32_0 : i32, i32
  }
  func.func @transform_4(%arg0: i32) -> (i32, i32) {
    %c0_i32 = arith.constant 0 : i32
    %c0_i32_0 = arith.constant 0 : i32
    %c0_i32_1 = arith.constant 0 : i32
    return %c0_i32, %c0_i32_0 : i32, i32
  }
  func.func @transform_5(%arg0: i32) -> (i32, i32, i32) {
    %c0_i32 = arith.constant 0 : i32
    %c0_i32_0 = arith.constant 0 : i32
    %c0_i32_1 = arith.constant 0 : i32
    return %arg0, %c0_i32, %c0_i32_0 : i32, i32, i32
  }
}

</mosaic_0001>

<bundles_post_ra>
// kernel: tpu_custom_call.1
= control target key start
LH: loop header
LB: loop body
LE: loop exit
PB: predicated region body
PF: predicated region fallthrough
CT: control target
= control target key end

     0   :  { %10 = vsyncpa [#allocation4], 0  ;;  %s9876_s0 = inlined_call_operand.hbm [shape: f32[8,64,128], index: 0, kind: input, shape index: {}]   ;;  %s9877_s1 = inlined_call_operand.hbm [shape: f32[128,384], index: 1, kind: input, shape index: {}]   ;;  %s9878_s2 = inlined_call_operand.hbm [shape: f32[1,384], index: 2, kind: input, shape index: {}]   ;;  %s9879_s3 = inlined_call_operand.hbm [shape: f32[128,128], index: 3, kind: input, shape index: {}]   ;;  %s9880_s4 = inlined_call_operand.vmem [shape: f32[1,128], index: 4, kind: input, shape index: {}]   ;;  %s9881_s5 = inlined_call_operand.hbm [shape: f32[8,64,128], index: 5, kind: output, shape index: {}]  }
   0x1   :  { %12 = vsyncpa [#allocation4 + $0x1], 0 }
   0x2   :  { %13 = vsyncpa [#allocation7], 0 }
   0x3   :  { %14 = vsyncpa [#allocation10], 0 }
   0x4   :  { %15 = vsyncpa [#allocation5], 0 }
   0x5   :  { %17 = vsyncpa [#allocation5 + $0x1], 0  ;;  %s6267_s18 = smov 0   ;;  %s6269_s19 = smov 0  }
   0x6   :  { %s6271_s20 = smov 0   ;;  %s6273_s21 = smov 0  }
   0x7 LB: > { %s6288_s22 = sadd.s32 4294967295, %s6222_s21   ;;  %s5169_s23 = sadd.s32 4294967294, %s6222_s21   ;;  %s6222_s21 = sphi %s6273_s21, %s10211_s21   ;;  %s6218_s20 = sphi %s6271_s20, %s10210_s20   ;;  %s6214_s19 = sphi %s6269_s19, %s10209_s19   ;;  %s6210_s18 = sphi %s6267_s18, %s10208_s18  }
   0x8   : > { %p43_p0 = scmp.ne.s32.totalorder %s6214_s19, %s6210_s18  ;;  %p44_p1 = scmp.eq.s32.totalorder %s6288_s22, 0 }
   0x9   : > { %p151_p2 = scmp.eq.s32.totalorder %s6288_s22, 1  ;;  %p157_p3 = scmp.eq.s32.totalorder %s5169_s23, 1 }
   0xa   : > { %p6297_p4 = por %p44_p1, %p43_p0  ;;  %p5170_p5 = scmp.ge.s32.totalorder %s6222_s21, 1 }
   0xb   : > { %p6302_p6 = por %p157_p3, %p43_p0  ;;  %p164_p7 = scmp.lt.s32.totalorder %s6222_s21, 3 }
   0xc   : > { %s175_s28 = sshll.u32 %s9877_s1, 4  ;;  %s6224_s30 = smov [#allocation6]   ;;  %s176_s28 = int_to_ptr.hbm [resolvable:$true] %s175_s28 }
   0xd   : > { %p6310_p8 = pnand %p5170_p5, %p164_p7  ;;  %s177_s6 = sshll.u32 %s6224_s30, 4  ;;  %s178_s6 = int_to_ptr.vmem [resolvable:$true] %s177_s6 }
   0xe   : > { %s190_s10 = sshll.u32 %s9878_s2, 4  ;;  %s6225_s11 = smov 384   ;;  %s191_s10 = int_to_ptr.hbm [resolvable:$true] %s190_s10 }
   0xf   : > { %p5443_p9 = pneg %p6310_p8  ;;  %s6226_s12 = smov 24  }
  0x10   : > { %s6227_s13 = smov [#allocation8]   ;;  %s201_s17 = sshll.u32 %s9879_s3, 4  ;;  %s202_s17 = int_to_ptr.hbm [resolvable:$true] %s201_s17 }
  0x11   : > { %p6318_p10 = pnand %p5443_p9, %p44_p1  ;;  %s192_s14 = sshll.u32 %s6227_s13, 4  ;;  %s193_s14 = int_to_ptr.vmem [resolvable:$true] %s192_s14 }
  0x12   : > { %s6228_s23 = smov [#allocation9]   ;;  %s9882_s27 = smov 128  }
  0x13   : > { %5446 = dma.hbm_to_vmem [thread:$0]  (!%p6318_p10), %s176_s28, 6144, %s178_s6, [#allocation7], %s6225_s11, %s6225_s11, %s6226_s12  }
  0x14   : > { %5449 = dma.hbm_to_vmem [thread:$0]  (!%p6318_p10), %s191_s10, 48, %s193_s14, [#allocation7]  }
  0x15   : > { %s203_s26 = sshll.u32 %s6228_s23, 4  ;;  %s6230_s28 = smov 8   ;;  %s204_s26 = int_to_ptr.vmem [resolvable:$true] %s203_s26 }
  0x16   : > { %5452 = dma.hbm_to_vmem [thread:$0]  (!%p6318_p10), %s202_s17, 2048, %s204_s26, [#allocation10], %s9882_s27, %s9882_s27, %s6230_s28  }
  0x17   : > { %s6339_s30 = sadd.s32 1, %s6222_s21   ;;  %s30_s8 = sadd.s32 1, %s6218_s20 }
  0x18   : > { %s27_s6 = ssub.s32 %s6222_s21, %s6339_s30  ;;  %p37_p13 = scmp.ne.s32.totalorder %s6218_s20, %s6214_s19 }
  0x19   : > { %p28_p12 = scmp.eq.s32.totalorder %s27_s6, 0  ;;  %p38_p0 = scmp.eq.s32.totalorder %s6222_s21, 0 }
  0x1a   : > { %p6352_p3 = por %p151_p2, %p37_p13  ;;  %p5464_p5 = scmp.lt.s32.totalorder %s6222_s21, 2 }
  0x1b   : > { %s6348_s9 = scalar_select %p28_p12, %s6218_s20, %s30_s8  }
  0x1c   : > { %s220_s7 = sand.u32 1, %s6218_s20   ;;  %s5384_s11 = sshll.u32 %s6222_s21, 8 }
  0x1d   : > { %p39_p7 = por %p38_p0, %p37_p13  ;;  %s5175_s12 = sshll.u32 %s220_s7, 8 }
  0x1e   : > { %s230_s15 = scalar_lea.hbm %s9876_s0, %s5384_s11  ;;  %s224_s17 = scalar_lea.vmem [#allocation3], %s5175_s12 }
  0x1f   : > { %s231_s16 = sshll.u32 %s230_s15, 4  ;;  %s233_s23 = sshll.u32 %s224_s17, 4  ;;  %s232_s16 = int_to_ptr.hbm [resolvable:$true] %s231_s16  ;;  %s234_s23 = int_to_ptr.vmem [resolvable:$true] %s233_s23 }
  0x20   : > { %p6362_p9 = pnand %p5464_p5, %p39_p7  ;;  %s221_s6 = scalar_lea.sflag [#allocation4], %s220_s7 }
  0x21   : > { %s6118_s8 = sshra.s32 %s232_s16, 4  ;;  %s6125_s12 = scalar_lea.hbm %s9876_s0, 512  ;;  %s6119_s8 = int_to_ptr.hbm [resolvable:$true] %s6118_s8 }
  0x22   : > { %s6120_s27 = scalar_lea.hbm %s6119_s8, 256  ;;  %p6122_p10 = pneg %p6362_p9 }
  0x23   : > { %p6121_p2 = scmp.ne.s32.totalorder %s6119_s8, %s6120_s27  ;;  %p6126_p0 = scmp.lt.s32.totalorder %s6119_s8, %s9876_s0 }
  0x24   : > { %p6127_p5 = scmp.lt.s32.totalorder %s6125_s12, %s6120_s27 }
  0x25   : > { %p6123_p12 = pnand %p6122_p10, %p6121_p2 }
  0x26   : > { %p6128_p7 = por %p6127_p5, %p6126_p0 }
  0x27   : > { %p6124_p13 = pneg %p6123_p12 }
  0x29   : > { %p6129_p11 = pnand %p6128_p7, %p6124_p13 }
  0x2b   : > { %6132 = shalt.err (!%p6129_p11)
}
  0x2c   : > { %s9955_s7 = smov 128   ;;  %245 = sbr.rel (%p6310_p8) target bundleno = 3114 (0xc2a), region = 40 }
  0x2d   : > { %5456 = dma.hbm_to_vmem [thread:$0]  (!%p6362_p9), %s232_s16, 4096, %s234_s23, %s221_s6, %s9955_s7, %s9955_s7, %s6230_s28  }
  0x31   : > { %s6382_s17 = sand.u32 1, %s6214_s19  }
  0x32   : > { %s5180_s27 = sshll.u32 %s6382_s17, 8  ;;  %s248_s8 = scalar_lea.sflag [#allocation4], %s6382_s17 }
  0x33   : > { %s6388_s11 = scalar_lea.vmem [#allocation3], %s5180_s27 }
  0x34   : > { %6193 = dma.done.wait (%p6297_p4), %s248_s8, 4096  }
  0x35   : > { %6195 = vsyncadd (%p6297_p4), %s248_s8, 4294963200 }
  0x36   : > { %6197 = dma.done.wait (%p44_p1), [#allocation7], 6192  }
  0x37   : > { %6199 = vsyncadd (%p44_p1), [#allocation7], 4294961104 }
  0x38   : > { %6201 = dma.done.wait (%p44_p1), [#allocation10], 2048  }
  0x39   : > { %6203 = vsyncadd (%p44_p1), [#allocation10], 4294965248  ;;  %v387_v0 = vld [vmem:[#allocation6 + $0x150] sm:$0xff]  ;;  %v390_v1 = vld [vmem:[#allocation6 + $0x168] sm:$0xff]  ;;  %s6231_s24 = smov 32   ;;  %s6232_s29 = smov 64  }
  0x3a   : > { %v381_v2 = vld [vmem:[#allocation6 + $0x120] sm:$0xff]  ;;  %v414_v3 = vpack.c.bf16 %v390_v1, %v387_v0  ;;  %v384_v4 = vld [vmem:[#allocation6 + $0x138] sm:$0xff]  ;;  %v375_v6 = vld [vmem:[#allocation6 + $0xf0] sm:$0xff]  ;;  %s6233_s28 = smov 96   ;;  %vm727_vm0 = vcmask 261120   ;;  %vm781_vm2 = vcmask 523264  }
  0x3b   : > { %v411_v5 = vpack.c.bf16 %v384_v4, %v381_v2  ;;  %v378_v7 = vld [vmem:[#allocation6 + $0x108] sm:$0xff]  ;;  %v369_v9 = vld [vmem:[#allocation6 + $0xc0] sm:$0xff]  ;;  %v372_v10 = vld [vmem:[#allocation6 + $0xd8] sm:$0xff]  ;;  %vm927_vm10 = vcmask 257024   ;;  %vm1202_vm11 = vcmask 519424   ;;  %vm1465_vm12 = vcmask 781824  }
  0x3c   : > { %425 = vmatpush.bf16.msra.mxu0 %v414_v3  ;;  %5403 = vmatpush.bf16.msra.mxu1 %v414_v3  ;;  %v408_v8 = vpack.c.bf16 %v378_v7, %v375_v6  ;;  %v405_v11 = vpack.c.bf16 %v372_v10, %v369_v9  ;;  %v363_v12 = vld [vmem:[#allocation6 + $0x90] sm:$0xff]  ;;  %v366_v13 = vld [vmem:[#allocation6 + $0xa8] sm:$0xff]  ;;  %v357_v15 = vld [vmem:[#allocation6 + $0x60] sm:$0xff]  ;;  %vm1728_vm13 = vcmask 1044224   ;;  %s8925_s26 = scalar_lea.vmem [#allocation11], %s5180_s27  ;;  %s5402_s12 = sshll.u32 %s6288_s22, 8 }
  0x3d   : > { %5404 = vmatpush.bf16.msra.mxu2 %v414_v3  ;;  %5405 = vmatpush.bf16.msra.mxu3 %v414_v3  ;;  %v402_v14 = vpack.c.bf16 %v366_v13, %v363_v12  ;;  %v360_v16 = vld [vmem:[#allocation6 + $0x78] sm:$0xff]  ;;  %v351_v18 = vld [vmem:[#allocation6 + $0x30] sm:$0xff]  ;;  %v354_v19 = vld [vmem:[#allocation6 + $0x48] sm:$0xff]  ;;  %s5063_s7 = scalar_lea.hbm %s9881_s5, %s5402_s12  ;;  %s5064_s27 = sshll.u32 %s8925_s26, 4  ;;  %s5065_s27 = int_to_ptr.vmem [resolvable:$true] %s5064_s27 }
  0x3e   : > { %v399_v17 = vpack.c.bf16 %v360_v16, %v357_v15  ;;  %v396_v20 = vpack.c.bf16 %v354_v19, %v351_v18  ;;  %v345_v21 = vld [vmem:[#allocation6] sm:$0xff]  ;;  %v348_v22 = vld [vmem:[#allocation6 + $0x18] sm:$0xff]  ;;  %v298_v25 = vld [vmem:[%s6388_s11 + $0x8] sm:$0xff]  ;;  %s5066_s8 = sshll.u32 %s5063_s7, 4  ;;  %s6168_s16 = scalar_lea.hbm %s9881_s5, 512  ;;  %s5067_s8 = int_to_ptr.hbm [resolvable:$true] %s5066_s8 }
  0x3f   : > { %v297_v23 = vld [vmem:[%s6388_s11] sm:$0xff]  ;;  %v393_v24 = vpack.c.bf16 %v348_v22, %v345_v21  ;;  %v306_v27 = vld [vmem:[%s6388_s11 + $0x48] sm:$0xff]  ;;  %v388_v33 = vld [vmem:[#allocation6 + $0x158] sm:$0xff] }
  0x40   : > { %426 = vmatpush.bf16.msra.mxu0 %v411_v5  ;;  %5406 = vmatpush.bf16.msra.mxu1 %v411_v5  ;;  %v305_v26 = vld [vmem:[%s6388_s11 + $0x40] sm:$0xff]  ;;  %v314_v29 = vld [vmem:[%s6388_s11 + $0x88] sm:$0xff]  ;;  %v6408_v30 = vpack.c.bf16 %v298_v25, %v297_v23  ;;  %v391_v34 = vld [vmem:[#allocation6 + $0x170] sm:$0xff] }
  0x41   : > { %5407 = vmatpush.bf16.msra.mxu2 %v411_v5  ;;  %5408 = vmatpush.bf16.msra.mxu3 %v411_v5  ;;  %v313_v28 = vld [vmem:[%s6388_s11 + $0x80] sm:$0xff]  ;;  %v6410_v31 = vpack.c.bf16 %v306_v27, %v305_v26  ;;  %v415_v35 = vpack.c.bf16 %v391_v34, %v388_v33  ;;  %v392_v37 = vld [vmem:[#allocation6 + $0x178] sm:$0xff]  ;;  %v382_v39 = vld [vmem:[#allocation6 + $0x128] sm:$0xff] }
  0x42   : > { %v6412_v32 = vpack.c.bf16 %v314_v29, %v313_v28  ;;  %v389_v36 = vld [vmem:[#allocation6 + $0x160] sm:$0xff]  ;;  %v383_v41 = vld [vmem:[#allocation6 + $0x130] sm:$0xff]  ;;  %v386_v43 = vld [vmem:[#allocation6 + $0x148] sm:$0xff] }
  0x43   : > { %v416_v38 = vpack.c.bf16 %v392_v37, %v389_v36  ;;  %v385_v40 = vld [vmem:[#allocation6 + $0x140] sm:$0xff]  ;;  %v413_v44 = vpack.c.bf16 %v386_v43, %v383_v41  ;;  %v376_v45 = vld [vmem:[#allocation6 + $0xf8] sm:$0xff]  ;;  %v379_v46 = vld [vmem:[#allocation6 + $0x110] sm:$0xff] }
  0x44   : > { %427 = vmatpush.bf16.msra.mxu0 %v408_v8  ;;  %5409 = vmatpush.bf16.msra.mxu1 %v408_v8  ;;  %v412_v42 = vpack.c.bf16 %v385_v40, %v382_v39  ;;  %v377_v47 = vld [vmem:[#allocation6 + $0x100] sm:$0xff]  ;;  %v380_v48 = vld [vmem:[#allocation6 + $0x118] sm:$0xff]  ;;  %v409_v49 = vpack.c.bf16 %v379_v46, %v376_v45  ;;  %v370_v51 = vld [vmem:[#allocation6 + $0xc8] sm:$0xff] }
  0x45   : > { %5410 = vmatpush.bf16.msra.mxu2 %v408_v8  ;;  %5411 = vmatpush.bf16.msra.mxu3 %v408_v8  ;;  %v410_v50 = vpack.c.bf16 %v380_v48, %v377_v47  ;;  %v373_v52 = vld [vmem:[#allocation6 + $0xe0] sm:$0xff]  ;;  %v299_v53 = vld [vmem:[%s6388_s11 + $0x10] sm:$0xff]  ;;  %v374_v55 = vld [vmem:[#allocation6 + $0xe8] sm:$0xff] }
  0x46   : > { %v371_v54 = vld [vmem:[#allocation6 + $0xd0] sm:$0xff]  ;;  %v300_v56 = vld [vmem:[%s6388_s11 + $0x18] sm:$0xff]  ;;  %v406_v61 = vpack.c.bf16 %v373_v52, %v370_v51  ;;  %v365_v5 = vld [vmem:[#allocation6 + $0xa0] sm:$0xff] }
  0x47   : > { %v307_v57 = vld [vmem:[%s6388_s11 + $0x50] sm:$0xff]  ;;  %v308_v58 = vld [vmem:[%s6388_s11 + $0x58] sm:$0xff]  ;;  %v407_v62 = vpack.c.bf16 %v374_v55, %v371_v54  ;;  %v6423_v63 = vpack.c.bf16 %v300_v56, %v299_v53  ;;  %v358_v8 = vld [vmem:[#allocation6 + $0x68] sm:$0xff] }
  0x48   : > { %428 = vmatpush.bf16.msra.mxu0 %v405_v11  ;;  %5412 = vmatpush.bf16.msra.mxu1 %v405_v11  ;;  %v315_v59 = vld [vmem:[%s6388_s11 + $0x90] sm:$0xff]  ;;  %v316_v60 = vld [vmem:[%s6388_s11 + $0x98] sm:$0xff]  ;;  %v6425_v0 = vpack.c.bf16 %v308_v58, %v307_v57  ;;  %v361_v9 = vld [vmem:[#allocation6 + $0x80] sm:$0xff] }
  0x49   : > { %5413 = vmatpush.bf16.msra.mxu2 %v405_v11  ;;  %5414 = vmatpush.bf16.msra.mxu3 %v405_v11  ;;  %v6427_v1 = vpack.c.bf16 %v316_v60, %v315_v59  ;;  %v364_v2 = vld [vmem:[#allocation6 + $0x98] sm:$0xff]  ;;  %v367_v3 = vld [vmem:[#allocation6 + $0xb0] sm:$0xff]  ;;  %v400_v11 = vpack.c.bf16 %v361_v9, %v358_v8  ;;  %v362_v12 = vld [vmem:[#allocation6 + $0x88] sm:$0xff] }
  0x4a   : > { %v403_v4 = vpack.c.bf16 %v367_v3, %v364_v2  ;;  %v368_v6 = vld [vmem:[#allocation6 + $0xb8] sm:$0xff]  ;;  %v359_v10 = vld [vmem:[#allocation6 + $0x70] sm:$0xff]  ;;  %v353_v16 = vld [vmem:[#allocation6 + $0x40] sm:$0xff] }
  0x4b   : > { %v404_v7 = vpack.c.bf16 %v368_v6, %v365_v5  ;;  %v401_v13 = vpack.c.bf16 %v362_v12, %v359_v10  ;;  %v355_v15 = vld [vmem:[#allocation6 + $0x50] sm:$0xff]  ;;  %v349_v21 = vld [vmem:[#allocation6 + $0x20] sm:$0xff]  ;;  %v302_v25 = vld [vmem:[%s6388_s11 + $0x28] sm:$0xff] }
  0x4c   : > { %429 = vmatpush.bf16.msra.mxu0 %v402_v14  ;;  %5415 = vmatpush.bf16.msra.mxu1 %v402_v14  ;;  %v301_v22 = vld [vmem:[%s6388_s11 + $0x20] sm:$0xff]  ;;  %v347_v23 = vld [vmem:[#allocation6 + $0x10] sm:$0xff]  ;;  %v310_v27 = vld [vmem:[%s6388_s11 + $0x68] sm:$0xff] }
  0x4d   : > { %5416 = vmatpush.bf16.msra.mxu2 %v402_v14  ;;  %5417 = vmatpush.bf16.msra.mxu3 %v402_v14  ;;  %v352_v14 = vld [vmem:[#allocation6 + $0x38] sm:$0xff]  ;;  %v309_v26 = vld [vmem:[%s6388_s11 + $0x60] sm:$0xff]  ;;  %v318_v29 = vld [vmem:[%s6388_s11 + $0xa8] sm:$0xff] }
  0x4e   : > { %v397_v18 = vpack.c.bf16 %v355_v15, %v352_v14  ;;  %v317_v28 = vld [vmem:[%s6388_s11 + $0xa0] sm:$0xff]  ;;  %v6438_v36 = vpack.c.bf16 %v310_v27, %v309_v26  ;;  %v304_v39 = vld [vmem:[%s6388_s11 + $0x38] sm:$0xff]  ;;  %v311_v40 = vld [vmem:[%s6388_s11 + $0x70] sm:$0xff] }
  0x4f   : > { %v6440_v37 = vpack.c.bf16 %v318_v29, %v317_v28  ;;  %v312_v41 = vld [vmem:[%s6388_s11 + $0x78] sm:$0xff] }
  0x50   : > { %430 = vmatpush.bf16.msra.mxu0 %v399_v17  ;;  %5418 = vmatpush.bf16.msra.mxu1 %v399_v17  ;;  %v320_v43 = vld [vmem:[%s6388_s11 + $0xb8] sm:$0xff]  ;;  %v6450_v45 = vpack.c.bf16 %v312_v41, %v311_v40  ;;  %v321_v41 = vld [vmem:[%s6388_s11 + $0xc0] sm:$0xff] }
  0x51   : > { %5419 = vmatpush.bf16.msra.mxu2 %v399_v17  ;;  %5420 = vmatpush.bf16.msra.mxu3 %v399_v17  ;;  %v356_v17 = vld [vmem:[#allocation6 + $0x58] sm:$0xff] }
  0x52   : > { %v398_v19 = vpack.c.bf16 %v356_v17, %v353_v16 }
  0x54   : > { %431 = vmatpush.bf16.msra.mxu0 %v396_v20  ;;  %5421 = vmatpush.bf16.msra.mxu1 %v396_v20 }
  0x55   : > { %5422 = vmatpush.bf16.msra.mxu2 %v396_v20  ;;  %5423 = vmatpush.bf16.msra.mxu3 %v396_v20  ;;  %v346_v20 = vld [vmem:[#allocation6 + $0x8] sm:$0xff] }
  0x56   : > { %v394_v33 = vpack.c.bf16 %v349_v21, %v346_v20 }
  0x58   : > { %432 = vmatpush.bf16.msra.mxu0 %v393_v24  ;;  %5424 = vmatpush.bf16.msra.mxu1 %v393_v24 }
  0x59   : > { %5425 = vmatpush.bf16.msra.mxu2 %v393_v24  ;;  %5426 = vmatpush.bf16.msra.mxu3 %v393_v24  ;;  %v350_v24 = vld [vmem:[#allocation6 + $0x28] sm:$0xff] }
  0x5a   : > { %v395_v34 = vpack.c.bf16 %v350_v24, %v347_v23 }
  0x5b   : > { %433 = vmatmul.bf16.vlgmr.msra.gmra.mxu0 %v6408_v30  ;;  %453 = vmatmul.bf16.vlgmr.msra.gmra.mxu1 %v6410_v31 }
  0x5c   : > { %473 = vmatmul.bf16.vlgmr.msra.gmra.mxu2 %v6412_v32  ;;  %514 = vmatpush.bf16.msrb.mxu1 %v415_v35  ;;  %v331_v35 = vpack.c.bf16 %v302_v25, %v301_v22 }
  0x5d   : > { %603 = vmatpush.bf16.msrb.mxu2 %v416_v38  ;;  %v303_v38 = vld [vmem:[%s6388_s11 + $0x30] sm:$0xff] }
  0x60   : > { %515 = vmatpush.bf16.msrb.mxu1 %v412_v42  ;;  %v319_v42 = vld [vmem:[%s6388_s11 + $0xb0] sm:$0xff] }
  0x61   : > { %604 = vmatpush.bf16.msrb.mxu2 %v413_v44  ;;  %v332_v44 = vpack.c.bf16 %v304_v39, %v303_v38  ;;  %v6452_v46 = vpack.c.bf16 %v320_v43, %v319_v42  ;;  %v322_v42 = vld [vmem:[%s6388_s11 + $0xc8] sm:$0xff] }
  0x62   : > { %v6545_v43 = vpack.c.bf16 %v322_v42, %v321_v41 }
  0x64   : > { %516 = vmatpush.bf16.msrb.mxu1 %v409_v49  ;;  %v6460_v49 = vld [vmem:[#allocation8] sm:$0x7]  ;;  %493 = vmatmul.bf16.vlgmr.msra.gmra.mxu3 %v6545_v43 }
  0x65   : > { %605 = vmatpush.bf16.msrb.mxu2 %v410_v50  ;;  %v6465_v50 = vperm.slane %v6460_v49, 0 }
  0x67   : > { %9956 = vst [vmem:[#allocation16_spill] sm:$0xff] %v6465_v50 }
  0x68   : > { %517 = vmatpush.bf16.msrb.mxu1 %v406_v61 }
  0x69   : > { %606 = vmatpush.bf16.msrb.mxu2 %v407_v62 }
  0x6b   : > { %438 = vmatmul.bf16.gmra.mxu0 %v6423_v63  ;;  %458 = vmatmul.bf16.gmra.mxu1 %v6425_v0 }
  0x6c   : > { %478 = vmatmul.bf16.gmra.mxu2 %v6427_v1  ;;  %518 = vmatpush.bf16.msrb.mxu1 %v403_v4 }
  0x6d   : > { %607 = vmatpush.bf16.msrb.mxu2 %v404_v7 }
  0x70   : > { %519 = vmatpush.bf16.msrb.mxu1 %v400_v11 }
  0x71   : > { %608 = vmatpush.bf16.msrb.mxu2 %v401_v13 }
  0x74   : > { %520 = vmatpush.bf16.msrb.mxu1 %v397_v18 }
  0x75   : > { %609 = vmatpush.bf16.msrb.mxu2 %v398_v19 }
  0x78   : > { %521 = vmatpush.bf16.msrb.mxu1 %v394_v33 }
  0x79   : > { %610 = vmatpush.bf16.msrb.mxu2 %v395_v34 }
  0x7b   : > { %443 = vmatmul.bf16.gmra.mxu0 %v331_v35  ;;  %463 = vmatmul.bf16.gmra.mxu1 %v6438_v36 }
  0x7c   : > { %483 = vmatmul.bf16.gmra.mxu2 %v6440_v37 }
  0x8b   : > { %448 = vmatmul.bf16.gmra.mxu0 %v332_v44  ;;  %468 = vmatmul.bf16.gmra.mxu1 %v6450_v45 }
  0x8c   : > { %488 = vmatmul.bf16.gmra.mxu2 %v6452_v46 }
  0x9b   : > { %522 = vmatmul.bf16.vlgmr.msrb.gmra.mxu1 %v6408_v30 }
  0x9c   : > { %611 = vmatmul.bf16.vlgmr.msrb.gmra.mxu2 %v6408_v30 }
  0xab   : > { %527 = vmatmul.bf16.gmra.mxu1 %v6423_v63 }
  0xac   : > { %616 = vmatmul.bf16.gmra.mxu2 %v6423_v63 }
  0xbb   : > { %532 = vmatmul.bf16.gmra.mxu1 %v331_v35 }
  0xbc   : > { %621 = vmatmul.bf16.gmra.mxu2 %v331_v35 }
  0xcb   : > { %537 = vmatmul.bf16.gmra.mxu1 %v332_v44 }
  0xcc   : > { %626 = vmatmul.bf16.gmra.mxu2 %v332_v44 }
  0xd8   : > { %v434_v47 = vpop.f32.mrf.mxu0  ;;  %v454_v48 = vpop.f32.mrf.mxu1 }
  0xd9   : > { %v435_v53 = vadd.f32 %v434_v47, %v6465_v50  ;;  %v455_v61 = vadd.f32 %v454_v48, %v6465_v50 }
  0xdb   : > { %542 = vmatmul.bf16.gmra.mxu1 %v6410_v31 }
  0xdc   : > { %631 = vmatmul.bf16.gmra.mxu2 %v6410_v31 }
  0xdf   : > { %v474_v30 = vpop.f32.mrf.mxu2 }
  0xe0   : > { %v436_v51 = vpop.f32.mrf.mxu0  ;;  %v456_v52 = vpop.f32.mrf.mxu1  ;;  %v475_v57 = vadd.f32 %v474_v30, %v6465_v50 }
  0xe1   : > { %v437_v54 = vadd.f32 %v436_v51, %v6465_v50  ;;  %v457_v31 = vadd.f32 %v456_v52, %v6465_v50  ;;  %v6561_v51 = vperm.slane %v6460_v49, 1 }
  0xe3   : > { %v6469_v55 = vpack.c.bf16 %v437_v54, %v435_v53  ;;  %v6483_v63 = vpack.c.bf16 %v457_v31, %v455_v61  ;;  %9959 = vst [vmem:[#allocation19_spill] sm:$0xff] %v6561_v51 }
  0xe5   : > { %1474 = vrot.lane.b32.xlu0 %v6469_v55, %s6231_s24  ;;  %1211 = vrot.lane.b32.xlu2 %v6469_v55, %s6232_s29 }
  0xe6   : > { %940 = vrot.lane.b32.xlu1 %v6469_v55, %s6233_s28 }
  0xe7   : > { %v476_v56 = vpop.f32.mrf.mxu2 }
  0xe8   : > { %v439_v58 = vpop.f32.mrf.mxu0  ;;  %v459_v59 = vpop.f32.mrf.mxu1  ;;  %v477_v60 = vadd.f32 %v476_v56, %v6465_v50 }
  0xe9   : > { %v440_v5 = vadd.f32 %v439_v58, %v6465_v50  ;;  %v460_v6 = vadd.f32 %v459_v59, %v6465_v50  ;;  %v323_v59 = vld [vmem:[%s6388_s11 + $0xd0] sm:$0xff] }
  0xea   : > { %v6481_v62 = vpack.c.bf16 %v477_v60, %v475_v57  ;;  %v324_v60 = vld [vmem:[%s6388_s11 + $0xd8] sm:$0xff] }
  0xeb   : > { %547 = vmatmul.bf16.gmra.mxu1 %v6425_v0  ;;  %v6579_v61 = vpack.c.bf16 %v324_v60, %v323_v59 }
  0xec   : > { %636 = vmatmul.bf16.gmra.mxu2 %v6425_v0 }
  0xed   : > { %1955 = vrot.lane.b32.xlu2 %v6483_v63, %s6233_s28  ;;  %498 = vmatmul.bf16.gmra.mxu3 %v6579_v61 }
  0xef   : > { %v479_v2 = vpop.f32.mrf.mxu2 }
  0xf0   : > { %v441_v3 = vpop.f32.mrf.mxu0  ;;  %v461_v4 = vpop.f32.mrf.mxu1  ;;  %v480_v11 = vadd.f32 %v479_v2, %v6465_v50 }
  0xf1   : > { %v442_v7 = vadd.f32 %v441_v3, %v6465_v50  ;;  %v462_v8 = vadd.f32 %v461_v4, %v6465_v50  ;;  %v6591_v4 = vperm.slane %v6460_v49, 2 }
  0xf3   : > { %v6493_v9 = vpack.c.bf16 %v442_v7, %v440_v5  ;;  %v6495_v10 = vpack.c.bf16 %v462_v8, %v460_v6  ;;  %9960 = vst [vmem:[#allocation20_spill] sm:$0xff] %v6591_v4 }
  0xf5   : > { %1213 = vrot.lane.b32.xlu0 %v6493_v9, %s6232_s29  ;;  %2225 = vrot.lane.b32.xlu2 %v6483_v63, %s6232_s29 }
  0xf6   : > { %2227 = vrot.lane.b32.xlu1 %v6495_v10, %s6232_s29 }
  0xf7   : > { %v481_v0 = vpop.f32.mrf.mxu2 }
  0xf8   : > { %v444_v12 = vpop.f32.mrf.mxu0  ;;  %v464_v13 = vpop.f32.mrf.mxu1  ;;  %v482_v14 = vadd.f32 %v481_v0, %v6465_v50 }
  0xf9   : > { %v445_v16 = vadd.f32 %v444_v12, %v6465_v50  ;;  %v325_v12 = vld [vmem:[%s6388_s11 + $0xe0] sm:$0xff] }
  0xfa   : > { %v6505_v15 = vpack.c.bf16 %v482_v14, %v480_v11 }
  0xfb   : > { %552 = vmatmul.bf16.gmra.mxu1 %v6438_v36 }
  0xfc   : > { %641 = vmatmul.bf16.gmra.mxu2 %v6438_v36  ;;  %v465_v36 = vadd.f32 %v464_v13, %v6465_v50  ;;  %v326_v13 = vld [vmem:[%s6388_s11 + $0xe8] sm:$0xff] }
  0xfd   : > { %1957 = vrot.lane.b32.xlu0 %v6495_v10, %s6233_s28  ;;  %2487 = vrot.lane.b32.xlu2 %v6483_v63, %s6231_s24  ;;  %v6607_v14 = vpack.c.bf16 %v326_v13, %v325_v12 }
  0xff   : > { %v484_v17 = vpop.f32.mrf.mxu2  ;;  %503 = vmatmul.bf16.gmra.mxu3 %v6607_v14 }
 0x100   : > { %v446_v18 = vpop.f32.mrf.mxu0  ;;  %v466_v19 = vpop.f32.mrf.mxu1  ;;  %v485_v23 = vadd.f32 %v484_v17, %v6465_v50 }
 0x101   : > { %v447_v20 = vadd.f32 %v446_v18, %v6465_v50  ;;  %v467_v28 = vadd.f32 %v466_v19, %v6465_v50 }
 0x103   : > { %v6515_v21 = vpack.c.bf16 %v447_v20, %v445_v16  ;;  %v6539_v39 = vpack.c.bf16 %v467_v28, %v465_v36 }
 0x105   : > { %2489 = vrot.lane.b32.xlu0 %v6495_v10, %s6231_s24  ;;  %942 = vrot.lane.b32.xlu2 %v6493_v9, %s6233_s28 }
 0x106   : > { %1215 = vrot.lane.b32.xlu1 %v6515_v21, %s6232_s29 }
 0x107   : > { %v486_v22 = vpop.f32.mrf.mxu2 }
 0x108   : > { %v449_v24 = vpop.f32.mrf.mxu0  ;;  %v469_v25 = vpop.f32.mrf.mxu1  ;;  %v487_v26 = vadd.f32 %v486_v22, %v6465_v50 }
 0x109   : > { %v450_v29 = vadd.f32 %v449_v24, %v6465_v50  ;;  %v470_v31 = vadd.f32 %v469_v25, %v6465_v50  ;;  %v328_v25 = vld [vmem:[%s6388_s11 + $0xf8] sm:$0xff] }
 0x10a   : > { %v6525_v27 = vpack.c.bf16 %v487_v26, %v485_v23 }
 0x10b   : > { %557 = vmatmul.bf16.gmra.mxu1 %v6450_v45 }
 0x10c   : > { %9957 = vst [vmem:[#allocation17_spill] sm:$0xff] %v6525_v27  ;;  %646 = vmatmul.bf16.gmra.mxu2 %v6450_v45 }
 0x10d   : > { %944 = vrot.lane.b32.xlu0 %v6515_v21, %s6233_s28  ;;  %1476 = vrot.lane.b32.xlu2 %v6493_v9, %s6231_s24 }
 0x10e   : > { %1478 = vrot.lane.b32.xlu1 %v6515_v21, %s6231_s24 }
 0x10f   : > { %v489_v33 = vpop.f32.mrf.mxu2 }
 0x110   : > { %v451_v34 = vpop.f32.mrf.mxu0  ;;  %v471_v35 = vpop.f32.mrf.mxu1  ;;  %v490_v45 = vadd.f32 %v489_v33, %v6465_v50 }
 0x111   : > { %v452_v38 = vadd.f32 %v451_v34, %v6465_v50  ;;  %v472_v52 = vadd.f32 %v471_v35, %v6465_v50 }
 0x113   : > { %v6541_v40 = vpack.c.bf16 %v452_v38, %v450_v29  ;;  %v6573_v57 = vpack.c.bf16 %v472_v52, %v470_v31 }
 0x115   : > { %2229 = vrot.lane.b32.xlu0 %v6539_v39, %s6232_s29  ;;  %946 = vrot.lane.b32.xlu2 %v6541_v40, %s6233_s28 }
 0x116   : > { %1959 = vrot.lane.b32.xlu1 %v6539_v39, %s6233_s28 }
 0x117   : > { %v491_v44 = vpop.f32.mrf.mxu2 }
 0x118   : > { %v492_v47 = vadd.f32 %v491_v44, %v6465_v50  ;;  %v523_v48 = vpop.f32.mrf.mxu1 }
 0x11a   : > { %v6556_v30 = vpack.c.bf16 %v492_v47, %v490_v45 }
 0x11b   : > { %562 = vmatmul.bf16.gmra.mxu1 %v6412_v32 }
 0x11c   : > { %9958 = vst [vmem:[#allocation18_spill] sm:$0xff] %v6556_v30  ;;  %651 = vmatmul.bf16.gmra.mxu2 %v6412_v32  ;;  %v524_v32 = vadd.f32 %v523_v48, %v6561_v51 }
 0x11d   : > { %1480 = vrot.lane.b32.xlu0 %v6541_v40, %s6231_s24  ;;  %1217 = vrot.lane.b32.xlu2 %v6541_v40, %s6232_s29 }
 0x11e   : > { %2491 = vrot.lane.b32.xlu1 %v6539_v39, %s6231_s24 }
 0x11f   : > { %v612_v53 = vpop.f32.mrf.mxu2 }
 0x120   : > { %v525_v54 = vpop.f32.mrf.mxu1  ;;  %v613_v8 = vadd.f32 %v612_v53, %v6591_v4 }
 0x121   : > { %v526_v56 = vadd.f32 %v525_v54, %v6561_v51 }
 0x123   : > { %v6575_v58 = vpack.c.bf16 %v526_v56, %v524_v32 }
 0x125   : > { %1961 = vrot.lane.b32.xlu0 %v6573_v57, %s6233_s28  ;;  %2231 = vrot.lane.b32.xlu2 %v6573_v57, %s6232_s29 }
 0x126   : > { %952 = vrot.lane.b32.xlu1 %v6575_v58, %s6233_s28 }
 0x127   : > { %v614_v2 = vpop.f32.mrf.mxu2 }
 0x128   : > { %v528_v3 = vpop.f32.mrf.mxu1  ;;  %v615_v5 = vadd.f32 %v614_v2, %v6591_v4 }
 0x129   : > { %v529_v0 = vadd.f32 %v528_v3, %v6561_v51 }
 0x12b   : > { %567 = vmatmul.bf16.gmra.mxu1 %v6427_v1 }
 0x12c   : > { %656 = vmatmul.bf16.gmra.mxu2 %v6427_v1  ;;  %v6601_v1 = vpack.c.bf16 %v615_v5, %v613_v8 }
 0x12d   : > { %1219 = vrot.lane.b32.xlu0 %v6575_v58, %s6232_s29  ;;  %2493 = vrot.lane.b32.xlu2 %v6573_v57, %s6231_s24 }
 0x12f   : > { %v617_v6 = vpop.f32.mrf.mxu2 }
 0x130   : > { %v530_v7 = vpop.f32.mrf.mxu1  ;;  %v618_v23 = vadd.f32 %v617_v6, %v6591_v4 }
 0x131   : > { %v531_v11 = vadd.f32 %v530_v7, %v6561_v51 }
 0x133   : > { %v6603_v49 = vpack.c.bf16 %v531_v11, %v529_v0 }
 0x135   : > { %1635 = vrot.lane.b32.xlu0 %v6601_v1, %s6231_s24  ;;  %1482 = vrot.lane.b32.xlu2 %v6575_v58, %s6231_s24  ;;  %v744_v11 = vsel %vm727_vm0, %v6603_v49, 0 }
 0x136   : > { %1221 = vrot.lane.b32.xlu1 %v6603_v49, %s6232_s29 }
 0x137   : > { %v619_v16 = vpop.f32.mrf.mxu2 }
 0x138   : > { %v533_v17 = vpop.f32.mrf.mxu1  ;;  %v620_v18 = vadd.f32 %v619_v16, %v6591_v4 }
 0x139   : > { %v534_v36 = vadd.f32 %v533_v17, %v6561_v51 }
 0x13a   : > { %v6628_v24 = vpack.c.bf16 %v620_v18, %v618_v23 }
 0x13b   : > { %572 = vmatmul.bf16.gmra.mxu1 %v6440_v37 }
 0x13c   : > { %661 = vmatmul.bf16.gmra.mxu2 %v6440_v37  ;;  %v327_v37 = vld [vmem:[%s6388_s11 + $0xf0] sm:$0xff]  ;;  %s5051_s11 = scalar_lea.sflag [#allocation5], %s6382_s17 }
 0x13d   : > { %954 = vrot.lane.b32.xlu0 %v6603_v49, %s6233_s28  ;;  %1109 = vrot.lane.b32.xlu2 %v6601_v1, %s6233_s28  ;;  %v6632_v26 = vpack.c.bf16 %v328_v25, %v327_v37 }
 0x13e   : > { %1484 = vrot.lane.b32.xlu1 %v6603_v49, %s6231_s24 }
 0x13f   : > { %v6625_v19 = vpop.permute.xlu2 %1211  ;;  %v622_v20 = vpop.f32.mrf.mxu2  ;;  %508 = vmatmul.bf16.gmra.mxu3 %v6632_v26 }
 0x140   : > { %v535_v22 = vpop.f32.mrf.mxu1  ;;  %v623_v38 = vadd.f32 %v622_v20, %v6591_v4  ;;  %v741_v20 = vsel %vm727_vm0, %v6575_v58, 0 }
 0x141   : > { %v536_v28 = vadd.f32 %v535_v22, %v6561_v51 }
 0x143   : > { %v725_v41 = vpack.c.bf16 %v536_v28, %v534_v36 }
 0x145   : > { %1374 = vrot.lane.b32.xlu0 %v6628_v24, %s6232_s29  ;;  %1372 = vrot.lane.b32.xlu2 %v6601_v1, %s6232_s29  ;;  %v747_v56 = vsel %vm727_vm0, %v725_v41, 0 }
 0x146   : > { %1111 = vrot.lane.b32.xlu1 %v6628_v24, %s6233_s28 }
 0x147   : > { %v6642_v29 = vpop.permute.xlu2 %1955  ;;  %v624_v33 = vpop.f32.mrf.mxu2 }
 0x148   : > { %v538_v34 = vpop.f32.mrf.mxu1  ;;  %v625_v35 = vadd.f32 %v624_v33, %v6591_v4 }
 0x149   : > { %v539_v48 = vadd.f32 %v538_v34, %v6561_v51 }
 0x14a   : > { %v876_v42 = vpack.c.bf16 %v625_v35, %v623_v38 }
 0x14b   : > { %577 = vmatmul.bf16.gmra.mxu1 %v6452_v46 }
 0x14c   : > { %666 = vmatmul.bf16.gmra.mxu2 %v6452_v46 }
 0x14d   : > { %1486 = vrot.lane.b32.xlu0 %v725_v41, %s6231_s24  ;;  %1637 = vrot.lane.b32.xlu2 %v6628_v24, %s6231_s24 }
 0x14e   : > { %1376 = vrot.lane.b32.xlu1 %v876_v42, %s6232_s29 }
 0x14f   : > { %v6653_v44 = vpop.permute.xlu2 %2225  ;;  %v627_v45 = vpop.f32.mrf.mxu2 }
 0x150   : > { %v540_v47 = vpop.f32.mrf.mxu1  ;;  %v628_v5 = vadd.f32 %v627_v45, %v6591_v4 }
 0x151   : > { %v541_v52 = vadd.f32 %v540_v47, %v6561_v51 }
 0x153   : > { %v726_v53 = vpack.c.bf16 %v541_v52, %v539_v48 }
 0x155   : > { %1113 = vrot.lane.b32.xlu0 %v876_v42, %s6233_s28  ;;  %956 = vrot.lane.b32.xlu2 %v725_v41, %s6233_s28  ;;  %v750_v46 = vsel %vm727_vm0, %v726_v53, 0 }
 0x156   : > { %1639 = vrot.lane.b32.xlu1 %v876_v42, %s6231_s24  ;;  %756 = vmatpush.bf16.xpose.msrb.mxu3 %v750_v46 }
 0x157   : > { %v6661_v54 = vpop.permute.xlu2 %2487  ;;  %v629_v32 = vpop.f32.mrf.mxu2 }
 0x158   : > { %v543_v31 = vpop.f32.mrf.mxu1  ;;  %v6669_v59 = vpop.permute.xlu0 %1474  ;;  %v630_v60 = vadd.f32 %v629_v32, %v6591_v4 }
 0x159   : > { %v6689_v16 = vpop.permute.xlu1 %940 }
 0x15a   : > { %v877_v8 = vpack.c.bf16 %v630_v60, %v628_v5  ;;  %9962 = vst [vmem:[#allocation22_spill] sm:$0xff] %v6689_v16 }
 0x15b   : > { %582 = vmatmul.bf16.gmra.mxu1 %v6545_v43 }
 0x15c   : > { %671 = vmatmul.bf16.gmra.mxu2 %v6545_v43  ;;  %v544_v43 = vadd.f32 %v543_v31, %v6561_v51 }
 0x15d   : > { %1225 = vrot.lane.b32.xlu0 %v726_v53, %s6232_s29  ;;  %1223 = vrot.lane.b32.xlu2 %v725_v41, %s6232_s29 }
 0x15e   : > { %958 = vrot.lane.b32.xlu1 %v726_v53, %s6233_s28  ;;  %757 = vmatpush.bf16.xpose.msrb.mxu3 %v747_v56 }
 0x15f   : > { %v6672_v2 = vpop.permute.xlu2 %942  ;;  %v632_v7 = vpop.f32.mrf.mxu2 }
 0x160   : > { %9961 = vst [vmem:[#allocation21_spill] sm:$0xff] %v6672_v2  ;;  %v545_v3 = vpop.f32.mrf.mxu1 }
 0x161   : > { %v546_v6 = vadd.f32 %v545_v3, %v6561_v51 }
 0x163   : > { %v6677_v0 = vpack.c.bf16 %v546_v6, %v544_v43 }
 0x165   : > { %1378 = vrot.lane.b32.xlu0 %v877_v8, %s6232_s29  ;;  %1488 = vrot.lane.b32.xlu2 %v726_v53, %s6231_s24 }
 0x166   : > { %758 = vmatpush.bf16.xpose.msrb.mxu3 %v744_v11  ;;  %2233 = vrot.lane.b32.xlu1 %v6677_v0, %s6232_s29 }
 0x167   : > { %v6685_v12 = vpop.permute.xlu0 %1213  ;;  %v6687_v13 = vpop.permute.xlu2 %1476 }
 0x168   : > { %v548_v17 = vpop.f32.mrf.mxu1  ;;  %v634_v18 = vpop.f32.mrf.mxu2 }
 0x169   : > { %v6701_v23 = vpop.permute.xlu1 %2227  ;;  %v549_v25 = vadd.f32 %v548_v17, %v6561_v51  ;;  %v635_v35 = vadd.f32 %v634_v18, %v6591_v4 }
 0x16b   : > { %587 = vmatmul.bf16.gmra.mxu1 %v6579_v61 }
 0x16c   : > { %676 = vmatmul.bf16.gmra.mxu2 %v6579_v61 }
 0x16d   : > { %1641 = vrot.lane.b32.xlu0 %v877_v8, %s6231_s24  ;;  %1115 = vrot.lane.b32.xlu2 %v877_v8, %s6233_s28 }
 0x16e   : > { %759 = vmatpush.bf16.xpose.msrb.mxu3 %v741_v20 }
 0x16f   : > { %v6697_v49 = vpop.permute.xlu0 %1957  ;;  %v6699_v22 = vpop.permute.xlu2 %946 }
 0x170   : > { %9963 = vst [vmem:[#allocation23_spill] sm:$0xff] %v6699_v22  ;;  %v550_v37 = vpop.f32.mrf.mxu1  ;;  %v637_v28 = vpop.f32.mrf.mxu2 }
 0x171   : > { %v551_v61 = vadd.f32 %v550_v37, %v6561_v51 }
 0x173   : > { %v6705_v33 = vpack.c.bf16 %v551_v61, %v549_v25 }
 0x175   : > { %2497 = vrot.lane.b32.xlu1 %v6705_v33, %s6231_s24  ;;  %5185 = vmatmul.msk.bf16.vlgmr.msrb.gmra.mxu3 %vm727_vm0, %v6469_v55  ;;  %v633_v55 = vadd.f32 %v632_v7, %v6591_v4 }
 0x176   : > { %894 = vmatpush.bf16.msra.mxu3 %v877_v8  ;;  %2495 = vrot.lane.b32.xlu0 %v6677_v0, %s6231_s24 }
 0x177   : > { %1967 = vrot.lane.b32.xlu2 %v6677_v0, %s6233_s28  ;;  %v6716_v58 = vpop.permute.xlu0 %2489  ;;  %v6718_v34 = vpop.permute.xlu2 %1217 }
 0x178   : > { %v6721_v36 = vpop.permute.xlu1 %1215  ;;  %v553_v38 = vpop.f32.mrf.mxu1 }
 0x179   : > { %v639_v41 = vpop.f32.mrf.mxu2  ;;  %v554_v5 = vadd.f32 %v553_v38, %v6561_v51 }
 0x17a   : > { %895 = vmatpush.bf16.msra.mxu3 %v876_v42  ;;  %v638_v42 = vadd.f32 %v637_v28, %v6591_v4  ;;  %v640_v45 = vadd.f32 %v639_v41, %v6591_v4 }
 0x17b   : > { %592 = vmatmul.bf16.gmra.mxu1 %v6607_v14 }
 0x17c   : > { %v6730_v47 = vpack.c.bf16 %v640_v45, %v638_v42  ;;  %681 = vmatmul.bf16.gmra.mxu2 %v6607_v14 }
 0x17e   : > { %896 = vmatpush.bf16.msra.mxu3 %v6628_v24  ;;  %v6728_v24 = vpack.c.bf16 %v635_v35, %v633_v55  ;;  %2126 = vrot.lane.b32.xlu1 %v6730_v47, %s6233_s28 }
 0x17f   : > { %v6737_v48 = vpop.permute.xlu0 %944  ;;  %v6739_v52 = vpop.permute.xlu2 %2231 }
 0x180   : > { %2124 = vrot.lane.b32.xlu0 %v6728_v24, %s6233_s28  ;;  %9964 = vst [vmem:[#allocation24_spill] sm:$0xff] %v6737_v48  ;;  %2386 = vrot.lane.b32.xlu2 %v6728_v24, %s6232_s29  ;;  %v6743_v46 = vpop.permute.xlu1 %1478 }
 0x181   : > { %v642_v53 = vpop.f32.mrf.mxu2 }
 0x182   : > { %897 = vmatpush.bf16.msra.mxu3 %v6601_v1  ;;  %v555_v1 = vpop.f32.mrf.mxu1  ;;  %v643_v3 = vadd.f32 %v642_v53, %v6591_v4  ;;  %v6815_v53 = vpop.f32.mrf.mxu3 }
 0x183   : > { %v556_v56 = vadd.f32 %v555_v1, %v6561_v51  ;;  %9966 = vst [vmem:[#allocation26_spill] sm:$0xff] %v6815_v53 }
 0x185   : > { %5186 = vmatmul.msk.bf16.gmra.mxu3 %vm727_vm0, %v6493_v9  ;;  %v6767_v7 = vpack.c.bf16 %v556_v56, %v554_v5 }
 0x186   : > { %2388 = vrot.lane.b32.xlu1 %v6730_v47, %s6232_s29 }
 0x187   : > { %v6751_v14 = vpop.permute.xlu0 %2229  ;;  %v6753_v31 = vpop.permute.xlu2 %2493 }
 0x188   : > { %1969 = vrot.lane.b32.xlu0 %v6705_v33, %s6233_s28  ;;  %2648 = vrot.lane.b32.xlu2 %v6728_v24, %s6231_s24  ;;  %v6762_v43 = vpop.permute.xlu1 %1959 }
 0x189   : > { %v644_v60 = vpop.f32.mrf.mxu2 }
 0x18a   : > { %v558_v32 = vpop.f32.mrf.mxu1  ;;  %v645_v9 = vadd.f32 %v644_v60, %v6591_v4 }
 0x18b   : > { %597 = vmatmul.bf16.gmra.mxu1 %v6632_v26  ;;  %v559_v18 = vadd.f32 %v558_v32, %v6561_v51 }
 0x18c   : > { %v6764_v6 = vpack.c.bf16 %v645_v9, %v643_v3  ;;  %686 = vmatmul.bf16.gmra.mxu2 %v6632_v26 }
 0x18e   : > { %2652 = vrot.lane.b32.xlu1 %v6764_v6, %s6231_s24 }
 0x18f   : > { %v6773_v8 = vpop.permute.xlu0 %1480  ;;  %v6775_v11 = vpop.permute.xlu2 %1482 }
 0x190   : > { %2235 = vrot.lane.b32.xlu0 %v6705_v33, %s6232_s29  ;;  %1971 = vrot.lane.b32.xlu2 %v6767_v7, %s6233_s28  ;;  %v6785_v37 = vpop.permute.xlu1 %2491 }
 0x191   : > { %v647_v35 = vpop.f32.mrf.mxu2 }
 0x192   : > { %v560_v17 = vpop.f32.mrf.mxu1  ;;  %v648_v45 = vadd.f32 %v647_v35, %v6591_v4 }
 0x193   : > { %v561_v26 = vadd.f32 %v560_v17, %v6561_v51 }
 0x195   : > { %v6781_v20 = vpack.c.bf16 %v561_v26, %v559_v18  ;;  %5187 = vmatmul.msk.bf16.gmra.mxu3 %vm727_vm0, %v6515_v21 }
 0x197   : > { %1973 = vrot.lane.b32.xlu1 %v6781_v20, %s6233_s28  ;;  %v6791_v25 = vpop.permute.xlu0 %1961  ;;  %v6793_v61 = vpop.permute.xlu2 %1109 }
 0x198   : > { %2650 = vrot.lane.b32.xlu0 %v6730_v47, %s6231_s24  ;;  %9965 = vst [vmem:[#allocation25_spill] sm:$0xff] %v6793_v61  ;;  %2237 = vrot.lane.b32.xlu2 %v6767_v7, %s6232_s29  ;;  %v6807_v41 = vpop.permute.xlu1 %952 }
 0x199   : > { %v649_v42 = vpop.f32.mrf.mxu2 }
 0x19a   : > { %v563_v28 = vpop.f32.mrf.mxu1  ;;  %v650_v1 = vadd.f32 %v649_v42, %v6591_v4  ;;  %v6835_v42 = vpop.f32.mrf.mxu3 }
 0x19b   : > { %v564_v26 = vadd.f32 %v563_v28, %v6561_v51  ;;  %9969 = vst [vmem:[#allocation29_spill] sm:$0xff] %v6835_v42 }
 0x19f   : > { %2239 = vrot.lane.b32.xlu1 %v6781_v20, %s6232_s29  ;;  %v6801_v21 = vpop.permute.xlu0 %1219  ;;  %v6803_v38 = vpop.permute.xlu2 %1372 }
 0x1a0   : > { %2390 = vrot.lane.b32.xlu0 %v6764_v6, %s6232_s29  ;;  %2499 = vrot.lane.b32.xlu2 %v6767_v7, %s6231_s24 }
 0x1a1   : > { %v6858_v16 = vpop.f32.mrf.mxu2 }
 0x1a2   : > { %v565_v55 = vpop.f32.mrf.mxu1  ;;  %9975 = vst [vmem:[#allocation35_spill] sm:$0xff] %v6858_v16 }
 0x1a3   : > { %v566_v35 = vadd.f32 %v565_v55, %v6561_v51  ;;  %v6847_v55 = vpop.f32.mrf.mxu3 }
 0x1a4   : > { %9972 = vst [vmem:[#allocation32_spill] sm:$0xff] %v6847_v55 }
 0x1a5   : > { %5188 = vmatmul.msk.bf16.gmra.mxu3 %vm727_vm0, %v6541_v40  ;;  %v6825_v40 = vpack.c.bf16 %v650_v1, %v648_v45  ;;  %v6837_v53 = vpack.c.bf16 %v566_v35, %v564_v26 }
 0x1a7   : > { %v6817_v32 = vpop.permute.xlu0 %1635  ;;  %v6819_v56 = vpop.permute.xlu2 %1637  ;;  %9970 = vst [vmem:[#allocation30_spill] sm:$0xff] %v6837_v53 }
 0x1a8   : > { %2501 = vrot.lane.b32.xlu0 %v6781_v20, %s6231_s24  ;;  %9967 = vst [vmem:[#allocation27_spill] sm:$0xff] %v6817_v32  ;;  %2128 = vrot.lane.b32.xlu2 %v6764_v6, %s6233_s28  ;;  %v6823_v60 = vpop.permute.xlu1 %1221 }
 0x1a9   : > { %9968 = vst [vmem:[#allocation28_spill] sm:$0xff] %v6819_v56  ;;  %v6869_v61 = vpop.f32.mrf.mxu2 }
 0x1aa   : > { %v568_v3 = vpop.f32.mrf.mxu1  ;;  %9979 = vst [vmem:[#allocation39_spill] sm:$0xff] %v6869_v61 }
 0x1ab   : > { %v569_v50 = vadd.f32 %v568_v3, %v6561_v51 }
 0x1af   : > { %v6829_v9 = vpop.permute.xlu0 %954  ;;  %v957_v5 = vpop.permute.xlu2 %956 }
 0x1b0   : > { %2130 = vrot.lane.b32.xlu0 %v6825_v40, %s6233_s28  ;;  %2392 = vrot.lane.b32.xlu2 %v6825_v40, %s6232_s29  ;;  %v1485_v17 = vpop.permute.xlu1 %1484 }
 0x1b2   : > { %v570_v18 = vpop.f32.mrf.mxu1 }
 0x1b3   : > { %v571_v4 = vadd.f32 %v570_v18, %v6561_v51 }
 0x1b5   : > { %v6849_v42 = vpack.c.bf16 %v571_v4, %v569_v50  ;;  %v6860_v50 = vpop.f32.mrf.mxu3 }
 0x1b6   : > { %9976 = vst [vmem:[#allocation36_spill] sm:$0xff] %v6860_v50 }
 0x1b7   : > { %v1375_v45 = vpop.permute.xlu0 %1374  ;;  %v1224_v1 = vpop.permute.xlu2 %1223  ;;  %9973 = vst [vmem:[#allocation33_spill] sm:$0xff] %v6849_v42 }
 0x1b8   : > { %2654 = vrot.lane.b32.xlu0 %v6825_v40, %s6231_s24  ;;  %2979 = vrot.lane.b32.xlu2 %v6837_v53, %s6233_s28  ;;  %v6845_v22 = vpop.permute.xlu1 %1111 }
 0x1b9   : > { %9971 = vst [vmem:[#allocation31_spill] sm:$0xff] %v6845_v22  ;;  %v1506_v22 = vsel %vm727_vm0, %v1485_v17, 0  ;;  %v1503_v17 = vsel %vm727_vm0, %v6775_v11, 0  ;;  %v976_v11 = vsel %vm727_vm0, %v6829_v9, 0  ;;  %v973_v9 = vsel %vm727_vm0, %v6807_v41, 0 }
 0x1ba   : > { %v573_v28 = vpop.f32.mrf.mxu1 }
 0x1bb   : > { %v574_v26 = vadd.f32 %v573_v28, %v6561_v51 }
 0x1bf   : > { %v1487_v35 = vpop.permute.xlu0 %1486  ;;  %v1489_v48 = vpop.permute.xlu2 %1488 }
 0x1c0   : > { %2981 = vrot.lane.b32.xlu0 %v6849_v42, %s6233_s28  ;;  %v1512_v2 = vsel %vm727_vm0, %v1489_v48, 0  ;;  %v1377_v32 = vpop.permute.xlu1 %1376  ;;  %v1509_v48 = vsel %vm727_vm0, %v1487_v35, 0 }
 0x1c1   : > { %1518 = vmatpush.bf16.xpose.msra.mxu2 %v1512_v2 }
 0x1c2   : > { %v575_v3 = vpop.f32.mrf.mxu1 }
 0x1c3   : > { %v576_v18 = vadd.f32 %v575_v3, %v6561_v51  ;;  %v6872_v3 = vpop.f32.mrf.mxu3 }
 0x1c4   : > { %9980 = vst [vmem:[#allocation40_spill] sm:$0xff] %v6872_v3 }
 0x1c5   : > { %v6856_v56 = vpack.c.bf16 %v576_v18, %v574_v26 }
 0x1c7   : > { %9974 = vst [vmem:[#allocation34_spill] sm:$0xff] %v6856_v56  ;;  %v6864_v4 = vpop.permute.xlu0 %1113 }
 0x1c8   : > { %2983 = vrot.lane.b32.xlu0 %v6856_v56, %s6233_s28  ;;  %9977 = vst [vmem:[#allocation37_spill] sm:$0xff] %v6864_v4  ;;  %v6866_v28 = vpop.permute.xlu1 %1639 }
 0x1c9   : > { %9978 = vst [vmem:[#allocation38_spill] sm:$0xff] %v6866_v28  ;;  %1519 = vmatpush.bf16.xpose.msra.mxu2 %v1509_v48  ;;  %v6882_v48 = vpop.f32.mrf.mxu2 }
 0x1ca   : > { %v578_v55 = vpop.f32.mrf.mxu1  ;;  %9982 = vst [vmem:[#allocation42_spill] sm:$0xff] %v6882_v48 }
 0x1cb   : > { %v579_v2 = vadd.f32 %v578_v55, %v6561_v51 }
 0x1cf   : > { %v1226_v26 = vpop.permute.xlu0 %1225 }
 0x1d0   : > { %v959_v18 = vpop.permute.xlu1 %958  ;;  %v1249_v16 = vsel %vm727_vm0, %v1226_v26, 0  ;;  %v1246_v26 = vsel %vm727_vm0, %v1224_v1, 0  ;;  %v1243_v1 = vsel %vm727_vm0, %v6823_v60, 0 }
 0x1d1   : > { %v982_v4 = vsel %vm727_vm0, %v959_v18, 0  ;;  %1255 = vmatpush.bf16.xpose.msrb.mxu0 %v1249_v16  ;;  %1520 = vmatpush.bf16.xpose.msra.mxu2 %v1506_v22  ;;  %v979_v18 = vsel %vm727_vm0, %v957_v5, 0  ;;  %v6888_v16 = vpop.f32.mrf.mxu3  ;;  %v6900_v5 = vpop.f32.mrf.mxu2 }
 0x1d2   : > { %v580_v50 = vpop.f32.mrf.mxu1  ;;  %988 = vmatpush.bf16.xpose.msrb.mxu3 %v982_v4  ;;  %9983 = vst [vmem:[#allocation43_spill] sm:$0xff] %v6888_v16  ;;  %v6902_v4 = vpop.permute.xlu2 %1115 }
 0x1d3   : > { %v581_v28 = vadd.f32 %v580_v50, %v6561_v51  ;;  %9984 = vst [vmem:[#allocation44_spill] sm:$0xff] %v6900_v5 }
 0x1d5   : > { %v6878_v35 = vpack.c.bf16 %v581_v28, %v579_v2  ;;  %v1767_v28 = vsel %vm727_vm0, %v6781_v20, 0 }
 0x1d7   : > { %9981 = vst [vmem:[#allocation41_spill] sm:$0xff] %v6878_v35  ;;  %2985 = vrot.lane.b32.xlu0 %v6878_v35, %s6233_s28  ;;  %v1379_v55 = vpop.permute.xlu0 %1378 }
 0x1d8   : > { %1400 = vmatpush.bf16.msra.mxu1 %v1379_v55  ;;  %v6890_v22 = vpop.permute.xlu1 %2233 }
 0x1d9   : > { %1256 = vmatpush.bf16.xpose.msrb.mxu0 %v1246_v26  ;;  %1521 = vmatpush.bf16.xpose.msra.mxu2 %v1503_v17  ;;  %v1764_v26 = vsel %vm727_vm0, %v6767_v7, 0 }
 0x1da   : > { %989 = vmatpush.bf16.xpose.msrb.mxu3 %v979_v18  ;;  %v6921_v2 = vpop.permute.xlu2 %1967 }
 0x1dc   : > { %1401 = vmatpush.bf16.msra.mxu1 %v1377_v32  ;;  %v6905_v32 = vpop.f32.mrf.mxu3 }
 0x1dd   : > { %9985 = vst [vmem:[#allocation45_spill] sm:$0xff] %v6905_v32 }
 0x1df   : > { %v6892_v50 = vpop.permute.xlu0 %1641 }
 0x1e0   : > { %1402 = vmatpush.bf16.msra.mxu1 %v1375_v45  ;;  %5209 = vmatmul.msk.bf16.vlgmr.msra.gmra.mxu2 %vm727_vm0, %v6669_v59  ;;  %v1240_v59 = vsel %vm727_vm0, %v6801_v21, 0 }
 0x1e1   : > { %1257 = vmatpush.bf16.xpose.msrb.mxu0 %v1243_v1 }
 0x1e2   : > { %990 = vmatpush.bf16.xpose.msrb.mxu3 %v976_v11  ;;  %v6948_v17 = vpop.permute.xlu2 %2386 }
 0x1e3   : > { %9991 = vst [vmem:[#allocation51_spill] sm:$0xff] %v6948_v17 }
 0x1e4   : > { %1403 = vmatpush.bf16.msra.mxu1 %v6803_v38  ;;  %v6919_v38 = vpop.f32.mrf.mxu2  ;;  %v6924_v21 = vpop.f32.mrf.mxu3 }
 0x1e5   : > { %9986 = vst [vmem:[#allocation46_spill] sm:$0xff] %v6919_v38 }
 0x1e6   : > { %9987 = vst [vmem:[#allocation47_spill] sm:$0xff] %v6924_v21 }
 0x1e7   : > { %v6908_v45 = vpop.permute.xlu1 %2497 }
 0x1e8   : > { %1910 = vmatpush.bf16.msrb.mxu1 %v6825_v40  ;;  %v6912_v60 = vpop.permute.xlu0 %2495  ;;  %v692_v40 = vlaneseq }
 0x1e9   : > { %1258 = vmatpush.bf16.xpose.msrb.mxu0 %v1240_v59 }
 0x1ea   : > { %991 = vmatpush.bf16.xpose.msrb.mxu3 %v973_v9  ;;  %v6934_v20 = vand.u32 127, %v692_v40 }
 0x1ec   : > { %1911 = vmatpush.bf16.msrb.mxu1 %v6764_v6  ;;  %v6932_v6 = vshrl.u32 %v692_v40, 7 }
 0x1ee   : > { %vm703_vm1 = vcmp.ge.s32.totalorder %v6932_v6, %v6934_v20  ;;  %v694_v11 = vadd.s32 8, %v6932_v6  ;;  %v695_v40 = vadd.s32 16, %v6932_v6 }
 0x1f0   : > { %1912 = vmatpush.bf16.msrb.mxu1 %v6730_v47  ;;  %v6926_v55 = vpop.permute.xlu1 %2126  ;;  %5201 = vmatmul.msk.bf16.vlgmr.msrb.gmra.mxu0 %vm727_vm0, %v6625_v19  ;;  %v6943_v47 = vpop.f32.mrf.mxu2  ;;  %v9887_v19 = vmov -1e+30   ;;  %vm704_vm3 = vcmp.ge.s32.totalorder %v694_v11, %v6934_v20  ;;  %vm705_vm4 = vcmp.ge.s32.totalorder %v695_v40, %v6934_v20 }
 0x1f1   : > { %1773 = vmatpush.bf16.xpose.msra.mxu0 %v1767_v28  ;;  %9988 = vst [vmem:[#allocation48_spill] sm:$0xff] %v6926_v55  ;;  %5210 = vmatmul.msk.bf16.gmra.mxu2 %vm727_vm0, %v6687_v13  ;;  %v6946_v13 = vsel %vm703_vm1, 0.0, %v9887_v19  ;;  %v6962_v28 = vsel %vm704_vm3, 0.0, %v9887_v19 }
 0x1f2   : > { %v6936_v41 = vpop.permute.xlu0 %2124  ;;  %9990 = vst [vmem:[#allocation50_spill] sm:$0xff] %v6943_v47 }
 0x1f3   : > { %9989 = vst [vmem:[#allocation49_spill] sm:$0xff] %v6936_v41 }
 0x1f4   : > { %1913 = vmatpush.bf16.msrb.mxu1 %v6728_v24  ;;  %v1761_v24 = vsel %vm727_vm0, %v6705_v33, 0 }
 0x1f8   : > { %v6950_v18 = vpop.permute.xlu1 %2388  ;;  %v761_v1 = vpop.f32.mrf.mxu3 }
 0x1f9   : > { %1774 = vmatpush.bf16.xpose.msra.mxu0 %v1764_v26  ;;  %9992 = vst [vmem:[#allocation52_spill] sm:$0xff] %v6950_v18  ;;  %v6956_v59 = vadd.f32 %v761_v1, %v6946_v13  ;;  %v6965_v26 = vpop.f32.mrf.mxu2  ;;  %v1758_v1 = vsel %vm727_vm0, %v6677_v0, 0 }
 0x1fa   : > { %v1970_v7 = vpop.permute.xlu0 %1969  ;;  %9993 = vst [vmem:[#allocation53_spill] sm:$0xff] %v6965_v26 }
 0x1fb   : > { %v782_v9 = vsel %vm781_vm2, %v6956_v59, -inf }
 0x200   : > { %v6967_v33 = vpop.permute.xlu1 %2652  ;;  %v763_v41 = vpop.f32.mrf.mxu3  ;;  %5202 = vmatmul.msk.bf16.gmra.mxu0 %vm727_vm0, %v6685_v12 }
 0x201   : > { %1775 = vmatpush.bf16.xpose.msra.mxu0 %v1761_v24  ;;  %783 = vmax.xlane.f32.xlu0 %v782_v9  ;;  %9994 = vst [vmem:[#allocation54_spill] sm:$0xff] %v6967_v33  ;;  %v6976_v24 = vadd.f32 %v763_v41, %v6962_v28  ;;  %v6978_v9 = vpop.permute.xlu2 %2648  ;;  %v9996_v33 = vmov -1e+30  }
 0x202   : > { %5211 = vmatmul.msk.bf16.gmra.mxu2 %vm727_vm0, %v6743_v46  ;;  %v2236_v11 = vpop.permute.xlu0 %2235  ;;  %9995 = vst [vmem:[#allocation55_spill] sm:$0xff] %v6978_v9  ;;  %v6984_v12 = vsel %vm705_vm4, 0.0, %v9996_v33  ;;  %v696_v46 = vadd.s32 24, %v6932_v6  ;;  %v6991_v9 = vpop.f32.mrf.mxu2 }
 0x203   : > { %v785_v19 = vsel %vm781_vm2, %v6976_v24, -inf  ;;  %9997 = vst [vmem:[#allocation56_spill] sm:$0xff] %v6984_v12 }
 0x204   : > { %9998 = vst [vmem:[#allocation57_spill] sm:$0xff] %v6991_v9  ;;  %vm706_vm5 = vcmp.ge.s32.totalorder %v696_v46, %v6934_v20 }
 0x205   : > { %v6999_v3 = vsel %vm706_vm5, 0.0, %v9996_v33 }
 0x208   : > { %v766_v0 = vpop.f32.mrf.mxu3 }
 0x209   : > { %1776 = vmatpush.bf16.xpose.msra.mxu0 %v1758_v1  ;;  %786 = vmax.xlane.f32.xlu0 %v785_v19  ;;  %v1974_v55 = vpop.permute.xlu1 %1973  ;;  %v6989_v41 = vadd.f32 %v766_v0, %v6984_v12  ;;  %v1972_v19 = vpop.permute.xlu2 %1971 }
 0x20a   : > { %v1997_v16 = vsel %vm727_vm0, %v1974_v55, 0  ;;  %v6993_v1 = vpop.permute.xlu0 %2650  ;;  %v697_v55 = vadd.s32 32, %v6932_v6  ;;  %v1994_v46 = vsel %vm727_vm0, %v1972_v19, 0  ;;  %v698_v19 = vadd.s32 40, %v6932_v6 }
 0x20b   : > { %9999 = vst [vmem:[#allocation58_spill] sm:$0xff] %v6993_v1  ;;  %2003 = vmatpush.bf16.xpose.msrb.mxu2 %v1997_v16  ;;  %v788_v40 = vsel %vm781_vm2, %v6989_v41, -inf }
 0x20c   : > { %789 = vmax.xlane.f32.xlu1 %v788_v40  ;;  %vm707_vm6 = vcmp.ge.s32.totalorder %v697_v55, %v6934_v20  ;;  %vm708_vm7 = vcmp.ge.s32.totalorder %v698_v19, %v6934_v20  ;;  %v2257_v19 = vsel %vm727_vm0, %v2236_v11, 0 }
 0x210   : > { %v768_v21 = vpop.f32.mrf.mxu3  ;;  %5203 = vmatmul.msk.bf16.gmra.mxu0 %vm727_vm0, %v6721_v36  ;;  %v7016_v36 = vpop.f32.mrf.mxu2 }
 0x211   : > { %v2240_v16 = vpop.permute.xlu1 %2239  ;;  %v7007_v0 = vadd.f32 %v768_v21, %v6999_v3  ;;  %10001 = vst [vmem:[#allocation60_spill] sm:$0xff] %v7016_v36  ;;  %v2238_v21 = vpop.permute.xlu2 %2237  ;;  %v7033_v36 = vsel %vm708_vm7, 0.0, %v9996_v33 }
 0x212   : > { %5212 = vmatmul.msk.bf16.gmra.mxu2 %vm727_vm0, %v6773_v8  ;;  %v7010_v40 = vpop.permute.xlu0 %2390  ;;  %v2263_v1 = vsel %vm727_vm0, %v2240_v16, 0  ;;  %v7019_v8 = vsel %vm707_vm6, 0.0, %v9996_v33 }
 0x213   : > { %10000 = vst [vmem:[#allocation59_spill] sm:$0xff] %v7010_v40  ;;  %2004 = vmatpush.bf16.xpose.msrb.mxu2 %v1994_v46  ;;  %2269 = vmatpush.bf16.xpose.msrb.mxu0 %v2263_v1  ;;  %v791_v32 = vsel %vm781_vm2, %v7007_v0, -inf  ;;  %v1991_v1 = vsel %vm727_vm0, %v1970_v7, 0  ;;  %v2260_v46 = vsel %vm727_vm0, %v2238_v21, 0  ;;  %v1988_v21 = vsel %vm727_vm0, %v6921_v2, 0 }
 0x214   : > { %792 = vmax.xlane.f32.xlu1 %v791_v32  ;;  %10002 = vst [vmem:[#allocation61_spill] sm:$0xff] %v7019_v8 }
 0x218   : > { %v771_v51 = vpop.f32.mrf.mxu3  ;;  %v7030_v55 = vpop.f32.mrf.mxu2 }
 0x219   : > { %v7023_v61 = vadd.f32 %v771_v51, %v7019_v8  ;;  %10003 = vst [vmem:[#allocation62_spill] sm:$0xff] %v7030_v55  ;;  %v699_v51 = vadd.s32 48, %v6932_v6  ;;  %v2500_v11 = vpop.permute.xlu2 %2499 }
 0x21a   : > { %v2502_v16 = vpop.permute.xlu0 %2501 }
 0x21b   : > { %2005 = vmatpush.bf16.xpose.msrb.mxu2 %v1991_v1  ;;  %2270 = vmatpush.bf16.xpose.msrb.mxu0 %v2260_v46  ;;  %v794_v32 = vsel %vm781_vm2, %v7023_v61, -inf  ;;  %v2525_v1 = vsel %vm727_vm0, %v2502_v16, 0  ;;  %vm709_vm8 = vcmp.ge.s32.totalorder %v699_v51, %v6934_v20  ;;  %v2254_v51 = vsel %vm727_vm0, %v6890_v22, 0 }
 0x21c   : > { %795 = vmax.xlane.f32.xlu2 %v794_v32 }
 0x220   : > { %v773_v5 = vpop.f32.mrf.mxu3  ;;  %5204 = vmatmul.msk.bf16.gmra.mxu0 %vm727_vm0, %v6718_v34  ;;  %v7051_v34 = vsel %vm709_vm8, 0.0, %v9996_v33  ;;  %v7054_v2 = vpop.f32.mrf.mxu2 }
 0x221   : > { %v7039_v7 = vadd.f32 %v773_v5, %v7033_v36  ;;  %v700_v5 = vadd.s32 56, %v6932_v6  ;;  %10005 = vst [vmem:[#allocation64_spill] sm:$0xff] %v7054_v2 }
 0x222   : > { %v7048_v32 = vpop.permute.xlu0 %2130 }
 0x223   : > { %2006 = vmatpush.bf16.xpose.msrb.mxu2 %v1988_v21  ;;  %2271 = vmatpush.bf16.xpose.msrb.mxu0 %v2257_v19  ;;  %v797_v46 = vsel %vm781_vm2, %v7039_v7, -inf  ;;  %10004 = vst [vmem:[#allocation63_spill] sm:$0xff] %v7048_v32  ;;  %v2522_v19 = vsel %vm727_vm0, %v2500_v11, 0  ;;  %vm710_vm9 = vcmp.ge.s32.totalorder %v700_v5, %v6934_v20  ;;  %v2519_v20 = vsel %vm727_vm0, %v6908_v45, 0 }
 0x224   : > { %798 = vmax.xlane.f32.xlu2 %v797_v46  ;;  %v7070_v46 = vsel %vm710_vm9, 0.0, %v9996_v33 }
 0x228   : > { %v776_v21 = vpop.f32.mrf.mxu3  ;;  %v7079_v11 = vpop.f32.mrf.mxu2 }
 0x229   : > { %v7057_v16 = vadd.f32 %v776_v21, %v7051_v34  ;;  %10007 = vst [vmem:[#allocation66_spill] sm:$0xff] %v7079_v11 }
 0x22a   : > { %5225 = vmatmul.msk.bf16.vlgmr.msrb.gmra.mxu2 %vm727_vm0, %v6642_v29  ;;  %v7067_v6 = vpop.permute.xlu0 %2654  ;;  %v2779_v29 = vsel %vm727_vm0, %v6878_v35, 0 }
 0x22b   : > { %2531 = vmatpush.bf16.xpose.msra.mxu2 %v2525_v1  ;;  %2272 = vmatpush.bf16.xpose.msrb.mxu0 %v2254_v51  ;;  %v800_v1 = vsel %vm781_vm2, %v7057_v16, -inf  ;;  %10006 = vst [vmem:[#allocation65_spill] sm:$0xff] %v7067_v6  ;;  %v2516_v51 = vsel %vm727_vm0, %v6912_v60, 0  ;;  %v7104_v60 = vpop.permute.xlu2 %2128 }
 0x22c   : > { %801 = vmax.xlane.f32.xlu0 %v800_v1  ;;  %v2773_v1 = vsel %vm727_vm0, %v6849_v42, 0  ;;  %10010 = vst [vmem:[#allocation69_spill] sm:$0xff] %v7104_v60 }
 0x230   : > { %v778_v21 = vpop.f32.mrf.mxu3  ;;  %5217 = vmatmul.msk.bf16.vlgmr.msra.gmra.mxu0 %vm727_vm0, %v6483_v63  ;;  %v2776_v63 = vsel %vm727_vm0, %v6856_v56, 0 }
 0x231   : > { %v7077_v22 = vadd.f32 %v778_v21, %v7070_v46 }
 0x232   : > { %v2982_v5 = vpop.permute.xlu0 %2981 }
 0x233   : > { %2532 = vmatpush.bf16.xpose.msra.mxu2 %v2522_v19  ;;  %2785 = vmatpush.bf16.xpose.msra.mxu0 %v2779_v29  ;;  %v803_v33 = vsel %vm781_vm2, %v7077_v22, -inf  ;;  %v7091_v19 = vpop.f32.mrf.mxu2 }
 0x234   : > { %804 = vmax.xlane.f32.xlu1 %v803_v33  ;;  %10008 = vst [vmem:[#allocation67_spill] sm:$0xff] %v7091_v19 }
 0x23a   : > { %5226 = vmatmul.msk.bf16.gmra.mxu2 %vm727_vm0, %v6697_v49  ;;  %v2984_v45 = vpop.permute.xlu0 %2983 }
 0x23b   : > { %2533 = vmatpush.bf16.xpose.msra.mxu2 %v2519_v20  ;;  %2786 = vmatpush.bf16.xpose.msra.mxu0 %v2776_v63  ;;  %v7097_v21 = vpop.f32.mrf.mxu2  ;;  %v2770_v20 = vsel %vm727_vm0, %v6837_v53, 0  ;;  %v3006_v33 = vsel %vm727_vm0, %v2984_v45, 0  ;;  %v7111_v63 = vpop.permute.xlu2 %2392 }
 0x23c   : > { %10009 = vst [vmem:[#allocation68_spill] sm:$0xff] %v7097_v21 }
 0x240   : > { %5218 = vmatmul.msk.bf16.gmra.mxu0 %vm727_vm0, %v6495_v10 }
 0x243   : > { %2534 = vmatpush.bf16.xpose.msra.mxu2 %v2516_v51  ;;  %2787 = vmatpush.bf16.xpose.msra.mxu0 %v2773_v1  ;;  %v7106_v10 = vpop.f32.mrf.mxu2  ;;  %v2980_v1 = vpop.permute.xlu2 %2979 }
 0x244   : > { %10011 = vst [vmem:[#allocation70_spill] sm:$0xff] %v7106_v10 }
 0x249   : > { %v2986_v29 = vpop.permute.xlu0 %2985 }
 0x24a   : > { %v3009_v49 = vsel %vm727_vm0, %v2986_v29, 0  ;;  %5227 = vmatmul.msk.bf16.gmra.mxu2 %vm727_vm0, %v6762_v43  ;;  %v3003_v43 = vsel %vm727_vm0, %v2982_v5, 0  ;;  %v3000_v29 = vsel %vm727_vm0, %v2980_v1, 0 }
 0x24b   : > { %2788 = vmatpush.bf16.xpose.msra.mxu0 %v2770_v20  ;;  %3015 = vmatpush.bf16.xpose.msrb.mxu2 %v3009_v49  ;;  %v7115_v51 = vpop.f32.mrf.mxu2 }
 0x24c   : > { %10012 = vst [vmem:[#allocation71_spill] sm:$0xff] %v7115_v51 }
 0x250   : > { %5219 = vmatmul.msk.bf16.gmra.mxu0 %vm727_vm0, %v6539_v39 }
 0x253   : > { %3016 = vmatpush.bf16.xpose.msrb.mxu2 %v3006_v33 }
 0x25a   : > { %5228 = vmatmul.msk.bf16.gmra.mxu2 %vm727_vm0, %v6791_v25 }
 0x25b   : > { %3017 = vmatpush.bf16.xpose.msrb.mxu2 %v3003_v43 }
 0x260   : > { %5220 = vmatmul.msk.bf16.gmra.mxu0 %vm727_vm0, %v6573_v57 }
 0x263   : > { %3018 = vmatpush.bf16.xpose.msrb.mxu2 %v3000_v29  ;;  %v1523_v39 = vpop.f32.mrf.mxu2 }
 0x264   : > { %v7137_v1 = vadd.f32 %v1523_v39, %v6946_v13 }
 0x26a   : > { %5241 = vmatmul.msk.bf16.vlgmr.msra.gmra.mxu2 %vm727_vm0, %v6661_v54 }
 0x26b   : > { %v1525_v45 = vpop.f32.mrf.mxu2 }
 0x26c   : > { %v7124_v49 = vadd.f32 %v1525_v45, %v6962_v28 }
 0x26d   : > { %v1260_v25 = vpop.f32.mrf.mxu0 }
 0x26e   : > { %v7127_v20 = vadd.f32 %v1260_v25, %v6946_v13  ;;  %v1546_v5 = vsel %vm781_vm2, %v7124_v49, -inf }
 0x26f   : > { %1547 = vmax.xlane.f32.xlu0 %v1546_v5 }
 0x270   : > { %5233 = vmatmul.msk.bf16.vlgmr.msrb.gmra.mxu0 %vm727_vm0, %v6653_v44  ;;  %v1280_v57 = vsel %vm781_vm2, %v7127_v20, -inf }
 0x271   : > { %1281 = vmax.xlane.f32.xlu1 %v1280_v57 }
 0x274   : > { %v784_v54 = vpop.xlane.xlu0 %783  ;;  %v1528_v43 = vpop.f32.mrf.mxu2 }
 0x275   : > { %v806_v33 = vsub.f32 %v6956_v59, %v784_v54  ;;  %v1262_v45 = vpop.f32.mrf.mxu0  ;;  %v1543_v59 = vsel %vm781_vm2, %v7137_v1, -inf }
 0x276   : > { %v7140_v25 = vadd.f32 %v1262_v45, %v6962_v28 }
 0x277   : > { %v814_v29 = vmul.f32 1.442695, %v806_v33 }
 0x278   : > { %v1283_v44 = vsel %vm781_vm2, %v7140_v25, -inf }
 0x279   : > { %5515 = vpow2.f32 %v814_v29  ;;  %1284 = vmax.xlane.f32.xlu2 %v1283_v44  ;;  %1544 = vmax.xlane.f32.xlu1 %v1543_v59  ;;  %v7161_v59 = vadd.f32 %v1528_v43, %v6984_v12 }
 0x27a   : > { %5242 = vmatmul.msk.bf16.gmra.mxu2 %vm727_vm0, %v6716_v58 }
 0x27b   : > { %v1549_v43 = vsel %vm781_vm2, %v7161_v59, -inf }
 0x27c   : > { %v787_v5 = vpop.xlane.xlu0 %786  ;;  %v1530_v57 = vpop.f32.mrf.mxu2 }
 0x27d   : > { %v807_v39 = vsub.f32 %v6976_v24, %v787_v5  ;;  %v1265_v45 = vpop.f32.mrf.mxu0 }
 0x27e   : > { %v7152_v29 = vadd.f32 %v1265_v45, %v6984_v12 }
 0x27f   : > { %v7149_v54 = vpop.eup %5515  ;;  %v816_v33 = vmul.f32 1.442695, %v807_v39  ;;  %v790_v55 = vpop.xlane.xlu1 %789 }
 0x280   : > { %5234 = vmatmul.msk.bf16.gmra.mxu0 %vm727_vm0, %v6701_v23  ;;  %v1286_v58 = vsel %vm781_vm2, %v7152_v29, -inf  ;;  %v830_v44 = vsel %vm781_vm2, %v7149_v54, 0.0  ;;  %v808_v23 = vsub.f32 %v6989_v41, %v790_v55  ;;  %v7179_v41 = vadd.f32 %v1530_v57, %v6999_v3 }
 0x281   : > { %5517 = vpow2.f32 %v816_v33  ;;  %1287 = vmax.xlane.f32.xlu0 %v1286_v58  ;;  %831 = vadd.xlane.f32.xlu2 %v830_v44 }
 0x282   : > { %v818_v44 = vmul.f32 1.442695, %v808_v23  ;;  %v1552_v57 = vsel %vm781_vm2, %v7179_v41, -inf }
 0x284   : > { %5519 = vpow2.f32 %v818_v44 }
 0x285   : > { %v1533_v24 = vpop.f32.mrf.mxu2  ;;  %v1267_v5 = vpop.f32.mrf.mxu0 }
 0x286   : > { %v7166_v33 = vadd.f32 %v1267_v5, %v6999_v3  ;;  %v7182_v55 = vadd.f32 %v1533_v24, %v7019_v8 }
 0x287   : > { %v7163_v39 = vpop.eup %5517  ;;  %v793_v45 = vpop.xlane.xlu1 %792 }
 0x288   : > { %v809_v11 = vsub.f32 %v7007_v0, %v793_v45  ;;  %v1289_v2 = vsel %vm781_vm2, %v7166_v33, -inf  ;;  %v833_v58 = vsel %vm781_vm2, %v7163_v39, 0.0  ;;  %v1555_v24 = vsel %vm781_vm2, %v7182_v55, -inf }
 0x289   : > { %1290 = vmax.xlane.f32.xlu1 %v1289_v2  ;;  %1550 = vmax.xlane.f32.xlu2 %v1549_v43 }
 0x28a   : > { %5243 = vmatmul.msk.bf16.gmra.mxu2 %vm727_vm0, %v6785_v37  ;;  %834 = vadd.xlane.f32.xlu0 %v833_v58  ;;  %v820_v0 = vmul.f32 1.442695, %v809_v11  ;;  %v7196_v43 = vpop.eup %5519 }
 0x28c   : > { %5521 = vpow2.f32 %v820_v0  ;;  %v836_v0 = vsel %vm781_vm2, %v7196_v43, 0.0 }
 0x28d   : > { %v1270_v5 = vpop.f32.mrf.mxu0  ;;  %v1535_v45 = vpop.f32.mrf.mxu2 }
 0x28e   : > { %v7185_v37 = vadd.f32 %v1270_v5, %v7019_v8 }
 0x28f   : > { %v796_v2 = vpop.xlane.xlu2 %795 }
 0x290   : > { %v810_v21 = vsub.f32 %v7023_v61, %v796_v2  ;;  %5235 = vmatmul.msk.bf16.gmra.mxu0 %vm727_vm0, %v6751_v14  ;;  %v1292_v11 = vsel %vm781_vm2, %v7185_v37, -inf }
 0x291   : > { %1553 = vmax.xlane.f32.xlu1 %v1552_v57  ;;  %1293 = vmax.xlane.f32.xlu2 %v1292_v11  ;;  %v7212_v57 = vadd.f32 %v1535_v45, %v7033_v36 }
 0x292   : > { %1556 = vmax.xlane.f32.xlu0 %v1555_v24  ;;  %v822_v23 = vmul.f32 1.442695, %v810_v21  ;;  %v7198_v61 = vpop.eup %5521 }
 0x293   : > { %v839_v21 = vsel %vm781_vm2, %v7198_v61, 0.0  ;;  %v1558_v45 = vsel %vm781_vm2, %v7212_v57, -inf }
 0x294   : > { %5523 = vpow2.f32 %v822_v23 }
 0x295   : > { %v1272_v58 = vpop.f32.mrf.mxu0  ;;  %v1538_v44 = vpop.f32.mrf.mxu2 }
 0x296   : > { %v7201_v14 = vadd.f32 %v1272_v58, %v7033_v36 }
 0x297   : > { %v799_v2 = vpop.xlane.xlu2 %798 }
 0x298   : > { %v1295_v5 = vsel %vm781_vm2, %v7201_v14, -inf  ;;  %v811_v58 = vsub.f32 %v7039_v7, %v799_v2  ;;  %v7230_v2 = vadd.f32 %v1538_v44, %v7051_v34 }
 0x299   : > { %837 = vadd.xlane.f32.xlu1 %v836_v0  ;;  %840 = vadd.xlane.f32.xlu2 %v839_v21 }
 0x29a   : > { %5244 = vmatmul.msk.bf16.gmra.mxu2 %vm727_vm0, %v6753_v31  ;;  %1296 = vmax.xlane.f32.xlu0 %v1295_v5  ;;  %v7214_v24 = vpop.eup %5523  ;;  %v824_v7 = vmul.f32 1.442695, %v811_v58 }
 0x29b   : > { %v842_v5 = vsel %vm781_vm2, %v7214_v24, 0.0 }
 0x29c   : > { %5525 = vpow2.f32 %v824_v7 }
 0x29d   : > { %v1275_v11 = vpop.f32.mrf.mxu0  ;;  %v1540_v21 = vpop.f32.mrf.mxu2 }
 0x29e   : > { %v7217_v23 = vadd.f32 %v1275_v11, %v7051_v34 }
 0x29f   : > { %v802_v19 = vpop.xlane.xlu0 %801 }
 0x2a0   : > { %v812_v31 = vsub.f32 %v7057_v16, %v802_v19  ;;  %5236 = vmatmul.msk.bf16.gmra.mxu0 %vm727_vm0, %v6739_v52  ;;  %v1298_v0 = vsel %vm781_vm2, %v7217_v23, -inf  ;;  %v7233_v52 = vadd.f32 %v1540_v21, %v7070_v46 }
 0x2a1   : > { %1299 = vmax.xlane.f32.xlu1 %v1298_v0  ;;  %1559 = vmax.xlane.f32.xlu2 %v1558_v45  ;;  %v1561_v45 = vsel %vm781_vm2, %v7230_v2, -inf }
 0x2a2   : > { %843 = vadd.xlane.f32.xlu0 %v842_v5  ;;  %v826_v16 = vmul.f32 1.442695, %v812_v31  ;;  %v1564_v58 = vsel %vm781_vm2, %v7233_v52, -inf  ;;  %v7245_v21 = vpop.eup %5525 }
 0x2a4   : > { %5527 = vpow2.f32 %v826_v16 }
 0x2a5   : > { %v1277_v19 = vpop.f32.mrf.mxu0 }
 0x2a6   : > { %v7236_v11 = vadd.f32 %v1277_v19, %v7070_v46  ;;  %v845_v19 = vsel %vm781_vm2, %v7245_v21, 0.0 }
 0x2a7   : > { %v805_v0 = vpop.xlane.xlu1 %804 }
 0x2a8   : > { %v813_v51 = vsub.f32 %v7077_v22, %v805_v0  ;;  %v1301_v44 = vsel %vm781_vm2, %v7236_v11, -inf }
 0x2a9   : > { %1562 = vmax.xlane.f32.xlu1 %v1561_v45  ;;  %1302 = vmax.xlane.f32.xlu2 %v1301_v44 }
 0x2aa   : > { %1565 = vmax.xlane.f32.xlu0 %v1564_v58  ;;  %v828_v31 = vmul.f32 1.442695, %v813_v51  ;;  %v7250_v16 = vpop.eup %5527 }
 0x2ab   : > { %v848_v0 = vsel %vm781_vm2, %v7250_v16, 0.0 }
 0x2ac   : > { %5529 = vpow2.f32 %v828_v31 }
 0x2ad   : > { %v2008_v5 = vpop.f32.mrf.mxu2  ;;  %v1778_v22 = vpop.f32.mrf.mxu0 }
 0x2ae   : > { %v7248_v7 = vadd.f32 %v2008_v5, %v6946_v13  ;;  %v7261_v45 = vadd.f32 %v1778_v22, %v6946_v13 }
 0x2b0   : > { %5249 = vmatmul.msk.bf16.vlgmr.msra.gmra.mxu0 %vm727_vm0, %v6481_v62  ;;  %v2028_v51 = vsel %vm781_vm2, %v7248_v7, -inf }
 0x2b1   : > { %846 = vadd.xlane.f32.xlu1 %v845_v19  ;;  %849 = vadd.xlane.f32.xlu2 %v848_v0  ;;  %v1798_v19 = vsel %vm781_vm2, %v7261_v45, -inf }
 0x2b2   : > { %2029 = vmax.xlane.f32.xlu0 %v2028_v51  ;;  %v7263_v31 = vpop.eup %5529 }
 0x2b3   : > { %v851_v51 = vsel %vm781_vm2, %v7263_v31, 0.0 }
 0x2b5   : > { %v2010_v44 = vpop.f32.mrf.mxu2  ;;  %v1780_v58 = vpop.f32.mrf.mxu0 }
 0x2b6   : > { %v7266_v5 = vadd.f32 %v1780_v58, %v6962_v28  ;;  %v7275_v0 = vadd.f32 %v2010_v44, %v6962_v28 }
 0x2b8   : > { %v1801_v10 = vsel %vm781_vm2, %v7266_v5, -inf  ;;  %v2031_v44 = vsel %vm781_vm2, %v7275_v0, -inf }
 0x2b9   : > { %1799 = vmax.xlane.f32.xlu1 %v1798_v19  ;;  %1802 = vmax.xlane.f32.xlu2 %v1801_v10 }
 0x2ba   : > { %852 = vadd.xlane.f32.xlu0 %v851_v51 }
 0x2bd   : > { %v2013_v22 = vpop.f32.mrf.mxu2  ;;  %v1783_v58 = vpop.f32.mrf.mxu0 }
 0x2be   : > { %v7278_v6 = vadd.f32 %v2013_v22, %v6984_v12  ;;  %v7281_v60 = vadd.f32 %v1783_v58, %v6984_v12 }
 0x2c0   : > { %10013 = vst [vmem:[#allocation72_spill] sm:$0xff] %v7281_v60  ;;  %5250 = vmatmul.msk.bf16.gmra.mxu0 %vm727_vm0, %v6505_v15  ;;  %v2034_v19 = vsel %vm781_vm2, %v7278_v6, -inf  ;;  %v1804_v10 = vsel %vm781_vm2, %v7281_v60, -inf }
 0x2c1   : > { %2035 = vmax.xlane.f32.xlu1 %v2034_v19  ;;  %2032 = vmax.xlane.f32.xlu2 %v2031_v44 }
 0x2c2   : > { %1805 = vmax.xlane.f32.xlu0 %v1804_v10 }
 0x2c5   : > { %v2015_v51 = vpop.f32.mrf.mxu2  ;;  %v1785_v58 = vpop.f32.mrf.mxu0 }
 0x2c6   : > { %v7292_v22 = vadd.f32 %v2015_v51, %v6999_v3  ;;  %v7295_v32 = vadd.f32 %v1785_v58, %v6999_v3 }
 0x2c8   : > { %v1807_v53 = vsel %vm781_vm2, %v7295_v32, -inf  ;;  %v2037_v19 = vsel %vm781_vm2, %v7292_v22, -inf }
 0x2c9   : > { %1808 = vmax.xlane.f32.xlu1 %v1807_v53  ;;  %2038 = vmax.xlane.f32.xlu2 %v2037_v19 }
 0x2cd   : > { %v2018_v56 = vpop.f32.mrf.mxu2  ;;  %v1788_v44 = vpop.f32.mrf.mxu0 }
 0x2ce   : > { %v7302_v10 = vadd.f32 %v2018_v56, %v7019_v8  ;;  %v7305_v51 = vadd.f32 %v1788_v44, %v7019_v8 }
 0x2d0   : > { %10014 = vst [vmem:[#allocation73_spill] sm:$0xff] %v7302_v10  ;;  %v2040_v58 = vsel %vm781_vm2, %v7302_v10, -inf  ;;  %5251 = vmatmul.msk.bf16.gmra.mxu0 %vm727_vm0, %v6525_v27  ;;  %v1810_v53 = vsel %vm781_vm2, %v7305_v51, -inf }
 0x2d1   : > { %2041 = vmax.xlane.f32.xlu0 %v2040_v58  ;;  %1811 = vmax.xlane.f32.xlu2 %v1810_v53 }
 0x2d5   : > { %v2020_v19 = vpop.f32.mrf.mxu2  ;;  %v1790_v56 = vpop.f32.mrf.mxu0 }
 0x2d6   : > { %v7314_v35 = vadd.f32 %v2020_v19, %v7033_v36  ;;  %v7317_v42 = vadd.f32 %v1790_v56, %v7033_v36 }
 0x2d8   : > { %10015 = vst [vmem:[#allocation74_spill] sm:$0xff] %v7317_v42  ;;  %v2043_v44 = vsel %vm781_vm2, %v7314_v35, -inf  ;;  %v1813_v58 = vsel %vm781_vm2, %v7317_v42, -inf }
 0x2d9   : > { %2044 = vmax.xlane.f32.xlu1 %v2043_v44  ;;  %1814 = vmax.xlane.f32.xlu0 %v1813_v58 }
 0x2dd   : > { %v2023_v27 = vpop.f32.mrf.mxu2  ;;  %v1793_v53 = vpop.f32.mrf.mxu0 }
 0x2de   : > { %v7324_v48 = vadd.f32 %v2023_v27, %v7051_v34  ;;  %v7327_v19 = vadd.f32 %v1793_v53, %v7051_v34 }
 0x2e0   : > { %10016 = vst [vmem:[#allocation75_spill] sm:$0xff] %v7324_v48  ;;  %v2046_v56 = vsel %vm781_vm2, %v7324_v48, -inf  ;;  %5252 = vmatmul.msk.bf16.gmra.mxu0 %vm727_vm0, %v6556_v30  ;;  %v1816_v44 = vsel %vm781_vm2, %v7327_v19, -inf }
 0x2e1   : > { %2047 = vmax.xlane.f32.xlu2 %v2046_v56  ;;  %1817 = vmax.xlane.f32.xlu1 %v1816_v44 }
 0x2e2   : > { %v1548_v44 = vpop.xlane.xlu0 %1547 }
 0x2e4   : > { %v1282_v47 = vpop.xlane.xlu1 %1281 }
 0x2e5   : > { %v2025_v58 = vpop.f32.mrf.mxu2  ;;  %v1304_v38 = vsub.f32 %v7127_v20, %v1282_v47  ;;  %v1795_v53 = vpop.f32.mrf.mxu0 }
 0x2e6   : > { %v7336_v27 = vadd.f32 %v2025_v58, %v7070_v46  ;;  %v7340_v9 = vadd.f32 %v1795_v53, %v7070_v46 }
 0x2e7   : > { %v1312_v26 = vmul.f32 1.442695, %v1304_v38 }
 0x2e8   : > { %10017 = vst [vmem:[#allocation76_spill] sm:$0xff] %v7336_v27  ;;  %v2049_v56 = vsel %vm781_vm2, %v7336_v27, -inf  ;;  %v1819_v30 = vsel %vm781_vm2, %v7340_v9, -inf }
 0x2e9   : > { %10018 = vst [vmem:[#allocation77_spill] sm:$0xff] %v7340_v9  ;;  %2050 = vmax.xlane.f32.xlu0 %v2049_v56  ;;  %5531 = vpow2.f32 %v1312_v26  ;;  %1820 = vmax.xlane.f32.xlu2 %v1819_v30  ;;  %v1568_v56 = vsub.f32 %v7124_v49, %v1548_v44 }
 0x2ec   : > { %v1285_v58 = vpop.xlane.xlu2 %1284  ;;  %v1545_v20 = vpop.xlane.xlu1 %1544 }
 0x2ed   : > { %v2536_v48 = vpop.f32.mrf.mxu2  ;;  %v1305_v47 = vsub.f32 %v7140_v25, %v1285_v58  ;;  %v2274_v53 = vpop.f32.mrf.mxu0  ;;  %v1567_v38 = vsub.f32 %v7137_v1, %v1545_v20  ;;  %v1577_v25 = vmul.f32 1.442695, %v1568_v56 }
 0x2ee   : > { %v7347_v42 = vadd.f32 %v2536_v48, %v6946_v13  ;;  %v7359_v58 = vadd.f32 %v2274_v53, %v6946_v13 }
 0x2ef   : > { %v7351_v10 = vpop.eup %5531  ;;  %v1314_v27 = vmul.f32 1.442695, %v1305_v47  ;;  %v1575_v26 = vmul.f32 1.442695, %v1567_v38 }
 0x2f0   : > { %v2556_v30 = vsel %vm781_vm2, %v7347_v42, -inf  ;;  %v1328_v48 = vsel %vm781_vm2, %v7351_v10, 0.0  ;;  %10019 = vst [vmem:[#allocation78_spill] sm:$0xff] %v7359_v58 }
 0x2f1   : > { %2557 = vmax.xlane.f32.xlu1 %v2556_v30  ;;  %5533 = vpow2.f32 %v1314_v27  ;;  %1329 = vadd.xlane.f32.xlu0 %v1328_v48  ;;  %v2294_v27 = vsel %vm781_vm2, %v7359_v58, -inf }
 0x2f2   : > { %5535 = vpow2.f32 %v1575_v26 }
 0x2f3   : > { %5537 = vpow2.f32 %v1577_v25 }
 0x2f4   : > { %v832_v1 = vpop.xlane.xlu2 %831  ;;  %v1288_v9 = vpop.xlane.xlu0 %1287 }
 0x2f5   : > { %v2538_v20 = vpop.f32.mrf.mxu2  ;;  %v2276_v44 = vpop.f32.mrf.mxu0  ;;  %5539 = vrcp.f32 %v832_v1 }
 0x2f6   : > { %v7374_v26 = vadd.f32 %v2276_v44, %v6962_v28 }
 0x2f7   : > { %v7361_v49 = vpop.eup %5533 }
 0x2f8   : > { %v7363_v47 = vpop.eup %5535  ;;  %v1331_v38 = vsel %vm781_vm2, %v7361_v49, 0.0  ;;  %v2297_v1 = vsel %vm781_vm2, %v7374_v26, -inf }
 0x2f9   : > { %10020 = vst [vmem:[#allocation79_spill] sm:$0xff] %v7363_v47  ;;  %1332 = vadd.xlane.f32.xlu1 %v1331_v38  ;;  %2295 = vmax.xlane.f32.xlu0 %v2294_v27  ;;  %v1591_v53 = vsel %vm781_vm2, %v7363_v47, 0.0  ;;  %v7371_v30 = vpop.eup %5537  ;;  %v1306_v27 = vsub.f32 %v7152_v29, %v1288_v9  ;;  %v7388_v29 = vadd.f32 %v2538_v20, %v6962_v28 }
 0x2fa   : > { %1592 = vadd.xlane.f32.xlu2 %v1591_v53  ;;  %10021 = vst [vmem:[#allocation80_spill] sm:$0xff] %v7371_v30  ;;  %v1594_v38 = vsel %vm781_vm2, %v7371_v30, 0.0 }
 0x2fb   : > { %v5540_v47 = vpop.eup %5539 }
 0x2fc   : > { %v1291_v56 = vpop.xlane.xlu1 %1290  ;;  %v1551_v48 = vpop.xlane.xlu2 %1550 }
 0x2fd   : > { %v835_v25 = vpop.xlane.xlu0 %834  ;;  %v1569_v17 = vsub.f32 %v7161_v59, %v1551_v48  ;;  %v2541_v60 = vpop.f32.mrf.mxu2  ;;  %v1316_v48 = vmul.f32 1.442695, %v1306_v27 }
 0x2fe   : > { %5541 = vrcp.f32 %v835_v25  ;;  %v2279_v53 = vpop.f32.mrf.mxu0 }
 0x2ff   : > { %v1579_v58 = vmul.f32 1.442695, %v1569_v17  ;;  %v7383_v18 = vadd.f32 %v2279_v53, %v6984_v12  ;;  %v862_v17 = vmul.f32 %v5540_v47, %v7149_v54 }
 0x301   : > { %1595 = vadd.xlane.f32.xlu1 %v1594_v38  ;;  %5543 = vpow2.f32 %v1579_v58  ;;  %v2300_v53 = vsel %vm781_vm2, %v7383_v18, -inf }
 0x302   : > { %2298 = vmax.xlane.f32.xlu2 %v2297_v1  ;;  %v1307_v1 = vsub.f32 %v7166_v33, %v1291_v56  ;;  %5545 = vpow2.f32 %v1316_v48 }
 0x304   : > { %v5542_v44 = vpop.eup %5541  ;;  %v1554_v59 = vpop.xlane.xlu1 %1553  ;;  %v1318_v20 = vmul.f32 1.442695, %v1307_v1 }
 0x305   : > { %v863_v25 = vmul.f32 %v5542_v44, %v7163_v39  ;;  %v1294_v30 = vpop.xlane.xlu2 %1293  ;;  %v1557_v9 = vpop.xlane.xlu0 %1556  ;;  %v1570_v47 = vsub.f32 %v7179_v41, %v1554_v59 }
 0x306   : > { %v1308_v38 = vsub.f32 %v7185_v37, %v1294_v30  ;;  %v2543_v54 = vpop.f32.mrf.mxu2  ;;  %v2559_v37 = vsel %vm781_vm2, %v7388_v29, -inf  ;;  %v2281_v30 = vpop.f32.mrf.mxu0  ;;  %v1571_v48 = vsub.f32 %v7182_v55, %v1557_v9 }
 0x307   : > { %v870_v40 = vpack.c.bf16 %v863_v25, %v862_v17  ;;  %v7391_v58 = vpop.eup %5543  ;;  %v7404_v56 = vadd.f32 %v2543_v54, %v6999_v3  ;;  %v1581_v27 = vmul.f32 1.442695, %v1570_v47 }
 0x308   : > { %10022 = vst [vmem:[#allocation81_spill] sm:$0xff] %v7391_v58  ;;  %v1597_v39 = vsel %vm781_vm2, %v7391_v58, 0.0  ;;  %v1320_v33 = vmul.f32 1.442695, %v1308_v38  ;;  %v7410_v17 = vpop.eup %5545  ;;  %v10024_v38 = vld [vmem:[#allocation31_spill] sm:$0xff] }
 0x309   : > { %5189 = vmatmul.msk.bf16.vlgmr.msra.gmra.mxu3 %vm781_vm2, %v870_v40  ;;  %2301 = vmax.xlane.f32.xlu1 %v2300_v53  ;;  %v7407_v40 = vadd.f32 %v2541_v60, %v6984_v12  ;;  %v2565_v25 = vsel %vm781_vm2, %v7404_v56, -inf  ;;  %v1334_v1 = vsel %vm781_vm2, %v7410_v17, 0.0  ;;  %v1583_v54 = vmul.f32 1.442695, %v1571_v48 }
 0x30a   : > { %1137 = vmatpush.bf16.msra.mxu3 %v6902_v4  ;;  %1598 = vadd.xlane.f32.xlu0 %v1597_v39  ;;  %v10023_v4 = vld [vmem:[#allocation37_spill] sm:$0xff] }
 0x30b   : > { %2560 = vmax.xlane.f32.xlu2 %v2559_v37  ;;  %v2562_v60 = vsel %vm781_vm2, %v7407_v40, -inf }
 0x30c   : > { %v838_v41 = vpop.xlane.xlu1 %837 }
 0x30d   : > { %5547 = vrcp.f32 %v838_v41  ;;  %v841_v44 = vpop.xlane.xlu2 %840  ;;  %v1297_v59 = vpop.xlane.xlu0 %1296 }
 0x30e   : > { %5549 = vrcp.f32 %v841_v44  ;;  %1138 = vmatpush.bf16.msra.mxu3 %v10023_v4  ;;  %v2546_v55 = vpop.f32.mrf.mxu2  ;;  %v10025_v44 = vld [vmem:[#allocation25_spill] sm:$0xff]  ;;  %v2284_v48 = vpop.f32.mrf.mxu0 }
 0x30f   : > { %5551 = vpow2.f32 %v1320_v33 }
 0x310   : > { %5553 = vpow2.f32 %v1318_v20 }
 0x311   : > { %5555 = vpow2.f32 %v1581_v27  ;;  %2566 = vmax.xlane.f32.xlu1 %v2565_v25 }
 0x312   : > { %1139 = vmatpush.bf16.msra.mxu3 %v10024_v38  ;;  %2563 = vmax.xlane.f32.xlu0 %v2562_v60  ;;  %5557 = vpow2.f32 %v1583_v54 }
 0x313   : > { %v5548_v53 = vpop.eup %5547  ;;  %1335 = vadd.xlane.f32.xlu2 %v1334_v1 }
 0x314   : > { %v5550_v47 = vpop.eup %5549  ;;  %v1300_v9 = vpop.xlane.xlu1 %1299  ;;  %v864_v39 = vmul.f32 %v5548_v53, %v7196_v43 }
 0x315   : > { %v7421_v37 = vpop.eup %5551  ;;  %v1560_v33 = vpop.xlane.xlu2 %1559  ;;  %v865_v41 = vmul.f32 %v5550_v47, %v7198_v61 }
 0x316   : > { %v844_v20 = vpop.xlane.xlu0 %843  ;;  %v7424_v27 = vpop.eup %5553  ;;  %1140 = vmatpush.bf16.msra.mxu3 %v10025_v44  ;;  %v1572_v60 = vsub.f32 %v7212_v57, %v1560_v33  ;;  %v1340_v43 = vsel %vm781_vm2, %v7421_v37, 0.0  ;;  %v7440_v57 = vadd.f32 %v2281_v30, %v6999_v3  ;;  %v7443_v33 = vadd.f32 %v2284_v48, %v7019_v8 }
 0x317   : > { %v7427_v4 = vpop.eup %5555  ;;  %v871_v25 = vpack.c.bf16 %v865_v41, %v864_v39  ;;  %v1337_v38 = vsel %vm781_vm2, %v7424_v27, 0.0  ;;  %v2548_v41 = vpop.f32.mrf.mxu2 }
 0x318   : > { %10026 = vst [vmem:[#allocation37_spill] sm:$0xff] %v7427_v4  ;;  %v1600_v61 = vsel %vm781_vm2, %v7427_v4, 0.0  ;;  %v1585_v1 = vmul.f32 1.442695, %v1572_v60  ;;  %v7437_v54 = vpop.eup %5557  ;;  %v2303_v60 = vsel %vm781_vm2, %v7440_v57, -inf  ;;  %v2306_v30 = vsel %vm781_vm2, %v7443_v33, -inf }
 0x319   : > { %5190 = vmatmul.msk.bf16.gmra.mxu3 %vm781_vm2, %v871_v25  ;;  %1341 = vadd.xlane.f32.xlu1 %v1340_v43  ;;  %10027 = vst [vmem:[#allocation31_spill] sm:$0xff] %v7437_v54  ;;  %v1603_v44 = vsel %vm781_vm2, %v7437_v54, 0.0  ;;  %v1309_v25 = vsub.f32 %v7201_v14, %v1297_v59  ;;  %v2286_v43 = vpop.f32.mrf.mxu0  ;;  %v7458_v59 = vadd.f32 %v2546_v55, %v7019_v8 }
 0x31a   : > { %1338 = vadd.xlane.f32.xlu0 %v1337_v38  ;;  %5559 = vpow2.f32 %v1585_v1  ;;  %v7453_v48 = vadd.f32 %v2286_v43, %v7033_v36 }
 0x31b   : > { %1601 = vadd.xlane.f32.xlu2 %v1600_v61  ;;  %5561 = vrcp.f32 %v844_v20  ;;  %v1322_v61 = vmul.f32 1.442695, %v1309_v25  ;;  %v2568_v55 = vsel %vm781_vm2, %v7458_v59, -inf }
 0x31c   : > { %v1563_v53 = vpop.xlane.xlu1 %1562  ;;  %v2309_v43 = vsel %vm781_vm2, %v7453_v48, -inf }
 0x31d   : > { %v1303_v47 = vpop.xlane.xlu2 %1302  ;;  %v1573_v20 = vsub.f32 %v7230_v2, %v1563_v53 }
 0x31e   : > { %v1566_v39 = vpop.xlane.xlu0 %1565 }
 0x31f   : > { %v2551_v25 = vpop.f32.mrf.mxu2 }
 0x320   : > { %v7455_v14 = vpop.eup %5559  ;;  %v7470_v2 = vadd.f32 %v2551_v25, %v7051_v34 }
 0x321   : > { %1604 = vadd.xlane.f32.xlu1 %v1603_v44  ;;  %10028 = vst [vmem:[#allocation25_spill] sm:$0xff] %v7455_v14  ;;  %v1310_v44 = vsub.f32 %v7217_v23, %v1300_v9 }
 0x322   : > { %2304 = vmax.xlane.f32.xlu0 %v2303_v60  ;;  %v1311_v60 = vsub.f32 %v7236_v11, %v1303_v47  ;;  %v1587_v11 = vmul.f32 1.442695, %v1573_v20  ;;  %v2289_v20 = vpop.f32.mrf.mxu0 }
 0x323   : > { %2307 = vmax.xlane.f32.xlu2 %v2306_v30  ;;  %v5562_v30 = vpop.eup %5561  ;;  %v1324_v58 = vmul.f32 1.442695, %v1310_v44 }
 0x324   : > { %v847_v38 = vpop.xlane.xlu1 %846  ;;  %v1326_v9 = vmul.f32 1.442695, %v1311_v60  ;;  %v866_v53 = vmul.f32 %v5562_v30, %v7214_v24  ;;  %v1574_v60 = vsub.f32 %v7233_v52, %v1566_v39  ;;  %v2574_v24 = vsel %vm781_vm2, %v7470_v2, -inf }
 0x325   : > { %5563 = vrcp.f32 %v847_v38  ;;  %v850_v1 = vpop.xlane.xlu2 %849  ;;  %v1606_v38 = vsel %vm781_vm2, %v7455_v14, 0.0 }
 0x326   : > { %v2030_v54 = vpop.xlane.xlu0 %2029  ;;  %5565 = vpow2.f32 %v1322_v61  ;;  %v7475_v61 = vadd.f32 %v2548_v41, %v7033_v36  ;;  %v1589_v30 = vmul.f32 1.442695, %v1574_v60 }
 0x327   : > { %5567 = vpow2.f32 %v1324_v58 }
 0x328   : > { %5569 = vpow2.f32 %v1326_v9  ;;  %v2571_v58 = vsel %vm781_vm2, %v7475_v61, -inf }
 0x329   : > { %2310 = vmax.xlane.f32.xlu1 %v2309_v43  ;;  %5571 = vpow2.f32 %v1587_v11 }
 0x32a   : > { %1607 = vadd.xlane.f32.xlu0 %v1606_v38 }
 0x32b   : > { %v5564_v23 = vpop.eup %5563  ;;  %2569 = vmax.xlane.f32.xlu2 %v2568_v55 }
 0x32c   : > { %v867_v47 = vmul.f32 %v5564_v23, %v7245_v21  ;;  %v7477_v14 = vpop.eup %5565  ;;  %v1800_v21 = vpop.xlane.xlu1 %1799  ;;  %v2052_v23 = vsub.f32 %v7248_v7, %v2030_v54 }
 0x32d   : > { %v1803_v44 = vpop.xlane.xlu2 %1802  ;;  %v1343_v41 = vsel %vm781_vm2, %v7477_v14, 0.0  ;;  %v7487_v52 = vpop.eup %5567  ;;  %v1822_v9 = vsub.f32 %v7261_v45, %v1800_v21 }
 0x32e   : > { %v853_v43 = vpop.xlane.xlu0 %852  ;;  %v872_v38 = vpack.c.bf16 %v867_v47, %v866_v53  ;;  %v7489_v39 = vpop.eup %5569  ;;  %v2060_v60 = vmul.f32 1.442695, %v2052_v23 }
 0x32f   : > { %5573 = vrcp.f32 %v853_v43  ;;  %v7491_v25 = vpop.eup %5571  ;;  %v1349_v53 = vsel %vm781_vm2, %v7489_v39, 0.0  ;;  %v2291_v7 = vpop.f32.mrf.mxu0  ;;  %v1830_v45 = vmul.f32 1.442695, %v1822_v9 }
 0x330   : > { %5191 = vmatmul.msk.bf16.gmra.mxu3 %vm781_vm2, %v872_v38  ;;  %5575 = vrcp.f32 %v850_v1  ;;  %10029 = vst [vmem:[#allocation82_spill] sm:$0xff] %v7491_v25  ;;  %v1346_v1 = vsel %vm781_vm2, %v7487_v52, 0.0  ;;  %v1609_v43 = vsel %vm781_vm2, %v7491_v25, 0.0  ;;  %v2553_v9 = vpop.f32.mrf.mxu2 }
 0x331   : > { %2575 = vmax.xlane.f32.xlu1 %v2574_v24  ;;  %5577 = vpow2.f32 %v1589_v30 }
 0x332   : > { %2572 = vmax.xlane.f32.xlu0 %v2571_v58  ;;  %v7508_v58 = vadd.f32 %v2289_v20, %v7051_v34  ;;  %5579 = vpow2.f32 %v2060_v60 }
 0x333   : > { %1344 = vadd.xlane.f32.xlu2 %v1343_v41  ;;  %v7511_v41 = vadd.f32 %v2291_v7, %v7070_v46  ;;  %5581 = vpow2.f32 %v1830_v45 }
 0x334   : > { %v2036_v54 = vpop.xlane.xlu1 %2035 }
 0x335   : > { %v5574_v55 = vpop.eup %5573  ;;  %v7495_v11 = vpop.xlane.xlu2 %2032  ;;  %v2315_v23 = vsel %vm781_vm2, %v7511_v41, -inf }
 0x336   : > { %v5576_v47 = vpop.eup %5575  ;;  %v869_v38 = vmul.f32 %v5574_v55, %v7263_v31  ;;  %v2054_v31 = vsub.f32 %v7278_v6, %v2036_v54  ;;  %v2312_v55 = vsel %vm781_vm2, %v7508_v58, -inf  ;;  %v7530_v60 = vpop.xlane.xlu0 %1805 }
 0x337   : > { %v868_v24 = vmul.f32 %v5576_v47, %v7250_v16  ;;  %v7505_v21 = vpop.eup %5577 }
 0x338   : > { %10030 = vst [vmem:[#allocation83_spill] sm:$0xff] %v7505_v21  ;;  %v1612_v16 = vsel %vm781_vm2, %v7505_v21, 0.0 }
 0x339   : > { %1350 = vadd.xlane.f32.xlu1 %v1349_v53  ;;  %v873_v30 = vpack.c.bf16 %v869_v38, %v868_v24  ;;  %v1823_v53 = vsub.f32 %v7266_v5, %v1803_v44  ;;  %v2064_v5 = vmul.f32 1.442695, %v2054_v31  ;;  %v7522_v44 = vpop.eup %5579 }
 0x33a   : > { %1347 = vadd.xlane.f32.xlu0 %v1346_v1  ;;  %10031 = vst [vmem:[#allocation84_spill] sm:$0xff] %v7522_v44  ;;  %v7524_v1 = vpop.eup %5581  ;;  %v2076_v54 = vsel %vm781_vm2, %v7522_v44, 0.0 }
 0x33b   : > { %1610 = vadd.xlane.f32.xlu2 %v1609_v43  ;;  %v1832_v47 = vmul.f32 1.442695, %v1823_v53  ;;  %v7527_v43 = vadd.f32 %v2553_v9, %v7070_v46  ;;  %v1846_v45 = vsel %vm781_vm2, %v7524_v1, 0.0  ;;  %v10033_v9 = vld [vmem:[#allocation22_spill] sm:$0xff] }
 0x33c   : > { %v1809_v6 = vpop.xlane.xlu1 %1808 }
 0x33d   : > { %v2039_v20 = vpop.xlane.xlu2 %2038  ;;  %5583 = vpow2.f32 %v1832_v47  ;;  %v1825_v7 = vsub.f32 %v7295_v32, %v1809_v6  ;;  %v2577_v24 = vsel %vm781_vm2, %v7527_v43, -inf }
 0x33e   : > { %v2055_v38 = vsub.f32 %v7292_v22, %v2039_v20  ;;  %5585 = vpow2.f32 %v2064_v5 }
 0x33f   : > { %v1836_v53 = vmul.f32 1.442695, %v1825_v7 }
 0x340   : > { %5192 = vmatmul.msk.bf16.gmra.mxu3 %vm781_vm2, %v873_v30  ;;  %v2066_v30 = vmul.f32 1.442695, %v2055_v38 }
 0x341   : > { %1613 = vadd.xlane.f32.xlu1 %v1612_v16 }
 0x342   : > { %2313 = vmax.xlane.f32.xlu0 %v2312_v55  ;;  %5587 = vpow2.f32 %v2066_v30  ;;  %v10036_v30 = vld [vmem:[#allocation28_spill] sm:$0xff] }
 0x343   : > { %2316 = vmax.xlane.f32.xlu2 %v2315_v23  ;;  %v7539_v31 = vpop.eup %5583  ;;  %5589 = vpow2.f32 %v1836_v53 }
 0x344   : > { %v7541_v55 = vpop.eup %5585  ;;  %v7544_v20 = vpop.xlane.xlu0 %2041  ;;  %v1849_v47 = vsel %vm781_vm2, %v7539_v31, 0.0 }
 0x345   : > { %v1812_v22 = vpop.xlane.xlu2 %1811  ;;  %10032 = vst [vmem:[#allocation85_spill] sm:$0xff] %v7541_v55  ;;  %v2082_v5 = vsel %vm781_vm2, %v7541_v55, 0.0 }
 0x346   : > { %v1826_v32 = vsub.f32 %v7305_v51, %v1812_v22 }
 0x348   : > { %v1838_v6 = vmul.f32 1.442695, %v1826_v32  ;;  %v7554_v38 = vpop.eup %5587 }
 0x349   : > { %2077 = vadd.xlane.f32.xlu1 %v2076_v54  ;;  %10034 = vst [vmem:[#allocation22_spill] sm:$0xff] %v7554_v38  ;;  %v10035_v54 = vld [vmem:[#allocation38_spill] sm:$0xff] }
 0x34a   : > { %1847 = vadd.xlane.f32.xlu0 %v1846_v45  ;;  %5591 = vpow2.f32 %v1838_v6 }
 0x34b   : > { %2578 = vmax.xlane.f32.xlu2 %v2577_v24  ;;  %v2085_v24 = vsel %vm781_vm2, %v7554_v38, 0.0 }
 0x34c   : > { %v2045_v16 = vpop.xlane.xlu1 %2044  ;;  %v7559_v45 = vpop.xlane.xlu0 %1814 }
 0x34d   : > { %v2057_v23 = vsub.f32 %v7314_v35, %v2045_v16  ;;  %v7557_v35 = vpop.eup %5589 }
 0x34e   : > { %v1855_v53 = vsel %vm781_vm2, %v7557_v35, 0.0 }
 0x34f   : > { %v2070_v51 = vmul.f32 1.442695, %v2057_v23  ;;  %v10037_v23 = vld [vmem:[#allocation27_spill] sm:$0xff] }
 0x350   : > { %5193 = vmatmul.msk.bf16.vlgmr.msrb.gmra.mxu3 %vm727_vm0, %v10033_v9  ;;  %v7567_v16 = vpop.eup %5591 }
 0x351   : > { %1663 = vmatpush.bf16.msrb.mxu3 %v6892_v50  ;;  %1850 = vadd.xlane.f32.xlu1 %v1849_v47  ;;  %5593 = vpow2.f32 %v2070_v51  ;;  %v10039_v47 = vld [vmem:[#allocation21_spill] sm:$0xff] }
 0x352   : > { %2083 = vadd.xlane.f32.xlu0 %v2082_v5  ;;  %v1858_v5 = vsel %vm781_vm2, %v7567_v16, 0.0 }
 0x354   : > { %v1818_v7 = vpop.xlane.xlu1 %1817  ;;  %v7569_v32 = vpop.xlane.xlu2 %2047 }
 0x355   : > { %1664 = vmatpush.bf16.msrb.mxu3 %v10035_v54  ;;  %v1828_v50 = vsub.f32 %v7327_v19, %v1818_v7 }
 0x357   : > { %v1842_v22 = vmul.f32 1.442695, %v1828_v50  ;;  %v7572_v9 = vpop.eup %5593 }
 0x358   : > { %10038 = vst [vmem:[#allocation38_spill] sm:$0xff] %v7572_v9  ;;  %v2091_v6 = vsel %vm781_vm2, %v7572_v9, 0.0 }
 0x359   : > { %1665 = vmatpush.bf16.msrb.mxu3 %v10036_v30  ;;  %2086 = vadd.xlane.f32.xlu1 %v2085_v24  ;;  %5595 = vpow2.f32 %v1842_v22 }
 0x35a   : > { %1856 = vadd.xlane.f32.xlu0 %v1855_v53  ;;  %v2790_v53 = vpop.f32.mrf.mxu0 }
 0x35c   : > { %v7574_v19 = vpop.xlane.xlu0 %2050  ;;  %v7584_v7 = vpop.xlane.xlu2 %1820 }
 0x35d   : > { %1666 = vmatpush.bf16.msrb.mxu3 %v10037_v23 }
 0x35f   : > { %v7586_v54 = vpop.eup %5595 }
 0x360   : > { %5194 = vmatmul.msk.bf16.gmra.mxu3 %vm727_vm0, %v10039_v47  ;;  %v1864_v30 = vsel %vm781_vm2, %v7586_v54, 0.0  ;;  %v7592_v47 = vadd.f32 %v2790_v53, %v6946_v13 }
 0x361   : > { %1859 = vadd.xlane.f32.xlu1 %v1858_v5 }
 0x362   : > { %2092 = vadd.xlane.f32.xlu0 %v2091_v6  ;;  %10040 = vst [vmem:[#allocation28_spill] sm:$0xff] %v7592_v47  ;;  %v10041_v6 = vld [vmem:[#allocation24_spill] sm:$0xff] }
 0x363   : > { %2967 = vrot.lane.b32.xlu2 %v6481_v62, %s6233_s28 }
 0x364   : > { %v2558_v51 = vpop.xlane.xlu1 %2557  ;;  %v1330_v24 = vpop.xlane.xlu0 %1329 }
 0x365   : > { %v2580_v50 = vsub.f32 %v7347_v42, %v2558_v51  ;;  %5597 = vrcp.f32 %v1330_v24  ;;  %v2810_v51 = vsel %vm781_vm2, %v7592_v47, -inf }
 0x367   : > { %v2588_v22 = vmul.f32 1.442695, %v2580_v50 }
 0x36a   : > { %1865 = vadd.xlane.f32.xlu0 %v1864_v30 }
 0x36b   : > { %v5598_v42 = vpop.eup %5597 }
 0x36c   : > { %v1333_v23 = vpop.xlane.xlu1 %1332  ;;  %v1360_v24 = vmul.f32 %v5598_v42, %v7351_v10  ;;  %v7604_v53 = vpop.xlane.xlu0 %2295  ;;  %v10043_v42 = vld [vmem:[#allocation59_spill] sm:$0xff] }
 0x36d   : > { %5599 = vrcp.f32 %v1333_v23  ;;  %v7594_v5 = vpop.xlane.xlu2 %1592 }
 0x36e   : > { %5601 = vpow2.f32 %v2588_v22 }
 0x370   : > { %5195 = vmatmul.msk.bf16.gmra.mxu3 %vm727_vm0, %v10041_v6 }
 0x372   : > { %2811 = vmax.xlane.f32.xlu0 %v2810_v51 }
 0x373   : > { %v5600_v9 = vpop.eup %5599 }
 0x374   : > { %v1361_v50 = vmul.f32 %v5600_v9, %v7361_v49  ;;  %v7602_v30 = vpop.xlane.xlu1 %1595  ;;  %v7606_v55 = vpop.eup %5601  ;;  %v2053_v49 = vsub.f32 %v7275_v0, %v7495_v11  ;;  %v10046_v0 = vld [vmem:[#allocation52_spill] sm:$0xff] }
 0x375   : > { %v2299_v23 = vpop.xlane.xlu2 %2298  ;;  %10042 = vst [vmem:[#allocation27_spill] sm:$0xff] %v7606_v55  ;;  %v2604_v10 = vsel %vm781_vm2, %v7606_v55, 0.0 }
 0x376   : > { %v1368_v22 = vpack.c.bf16 %v1361_v50, %v1360_v24  ;;  %v2319_v6 = vsub.f32 %v7374_v26, %v2299_v23  ;;  %v2062_v51 = vmul.f32 1.442695, %v2053_v49  ;;  %v10045_v50 = vld [vmem:[#allocation23_spill] sm:$0xff] }
 0x378   : > { %v2328_v38 = vmul.f32 1.442695, %v2319_v6  ;;  %5205 = vmatmul.msk.bf16.vlgmr.msra.gmra.mxu1 %vm781_vm2, %v1368_v22 }
 0x379   : > { %2414 = vmatpush.bf16.msra.mxu1 %v7111_v63 }
 0x37a   : > { %5603 = vpow2.f32 %v2328_v38  ;;  %2605 = vadd.xlane.f32.xlu0 %v2604_v10  ;;  %2969 = vrot.lane.b32.xlu1 %v6505_v15, %s6233_s28  ;;  %v10047_v38 = vld [vmem:[#allocation72_spill] sm:$0xff]  ;;  %v10048_v10 = vld [vmem:[#allocation51_spill] sm:$0xff] }
 0x37b   : > { %5605 = vpow2.f32 %v2062_v51  ;;  %v1824_v23 = vsub.f32 %v10047_v38, %v7530_v60  ;;  %v10050_v51 = vld [vmem:[#allocation73_spill] sm:$0xff] }
 0x37c   : > { %v7617_v9 = vpop.xlane.xlu1 %2301 }
 0x37d   : > { %2415 = vmatpush.bf16.msra.mxu1 %v10043_v42  ;;  %v7620_v26 = vpop.xlane.xlu0 %1598  ;;  %v1834_v42 = vmul.f32 1.442695, %v1824_v23 }
 0x37e   : > { %10044 = vst [vmem:[#allocation21_spill] sm:$0xff] %v7620_v26  ;;  %v7622_v24 = vpop.xlane.xlu2 %2560 }
 0x380   : > { %v7624_v63 = vpop.eup %5603  ;;  %5196 = vmatmul.msk.bf16.gmra.mxu3 %vm727_vm0, %v10045_v50 }
 0x381   : > { %2416 = vmatpush.bf16.msra.mxu1 %v10046_v0  ;;  %v2345_v11 = vsel %vm781_vm2, %v7624_v63, 0.0  ;;  %v7637_v47 = vpop.eup %5605  ;;  %v2056_v0 = vsub.f32 %v10050_v51, %v7544_v20 }
 0x382   : > { %2346 = vadd.xlane.f32.xlu0 %v2345_v11  ;;  %10049 = vst [vmem:[#allocation24_spill] sm:$0xff] %v7637_v47  ;;  %v2079_v60 = vsel %vm781_vm2, %v7637_v47, 0.0 }
 0x384   : > { %v2567_v22 = vpop.xlane.xlu1 %2566 }
 0x385   : > { %v2583_v6 = vsub.f32 %v7404_v56, %v2567_v22  ;;  %2417 = vmatpush.bf16.msra.mxu1 %v10048_v10  ;;  %v7635_v49 = vpop.xlane.xlu0 %2563  ;;  %v2068_v22 = vmul.f32 1.442695, %v2056_v0  ;;  %v10053_v0 = vld [vmem:[#allocation75_spill] sm:$0xff] }
 0x386   : > { %v1336_v55 = vpop.xlane.xlu2 %1335 }
 0x387   : > { %v2594_v50 = vmul.f32 1.442695, %v2583_v6 }
 0x389   : > { %5607 = vpow2.f32 %v2594_v50 }
 0x38a   : > { %5609 = vpow2.f32 %v1834_v42  ;;  %v10052_v42 = vld [vmem:[#allocation74_spill] sm:$0xff] }
 0x38b   : > { %5611 = vrcp.f32 %v1336_v55  ;;  %v1827_v50 = vsub.f32 %v10052_v42, %v7559_v45 }
 0x38c   : > { %2080 = vadd.xlane.f32.xlu2 %v2079_v60  ;;  %v899_v56 = vpop.f32.mrf.mxu3  ;;  %v7643_v11 = vpop.xlane.xlu1 %1341  ;;  %v2058_v60 = vsub.f32 %v10053_v0, %v7569_v32 }
 0x38d   : > { %v919_v38 = vpack.c.bf16 %v899_v56, %v899_v56  ;;  %v1339_v23 = vpop.xlane.xlu0 %1338  ;;  %v1840_v47 = vmul.f32 1.442695, %v1827_v50 }
 0x38e   : > { %v7645_v6 = vpop.xlane.xlu2 %1601  ;;  %5613 = vrcp.f32 %v1339_v23 }
 0x38f   : > { %v7647_v10 = vpop.eup %5607  ;;  %928 = vst.msk [vmem:[#allocation2] sm:$0xf] %vm927_vm10, %v919_v38  ;;  %5615 = vpow2.f32 %v2068_v22  ;;  %v2072_v22 = vmul.f32 1.442695, %v2058_v60 }
 0x390   : > { %10051 = vst [vmem:[#allocation59_spill] sm:$0xff] %v7647_v10  ;;  %v7650_v20 = vpop.eup %5609  ;;  %v2613_v55 = vsel %vm781_vm2, %v7647_v10, 0.0  ;;  %5617 = vpow2.f32 %v1840_v47 }
 0x391   : > { %2614 = vadd.xlane.f32.xlu0 %v2613_v55  ;;  %v5612_v51 = vpop.eup %5611  ;;  %v1852_v56 = vsel %vm781_vm2, %v7650_v20, 0.0  ;;  %5619 = vpow2.f32 %v2072_v22 }
 0x392   : > { %v1362_v10 = vmul.f32 %v5612_v51, %v7410_v17  ;;  %v10057_v17 = vld [vmem:[#allocation77_spill] sm:$0xff] }
 0x394   : > { %v5614_v23 = vpop.eup %5613  ;;  %1853 = vadd.xlane.f32.xlu2 %v1852_v56  ;;  %v901_v38 = vpop.f32.mrf.mxu3  ;;  %v10056_v56 = vld [vmem:[#allocation76_spill] sm:$0xff] }
 0x395   : > { %v7660_v44 = vpop.xlane.xlu1 %1604  ;;  %v1363_v25 = vmul.f32 %v5614_v23, %v7424_v27  ;;  %v920_v45 = vpack.c.bf16 %v901_v38, %v901_v38  ;;  %v7664_v55 = vpop.xlane.xlu0 %2304  ;;  %v2059_v50 = vsub.f32 %v10056_v56, %v7574_v19  ;;  %v1829_v27 = vsub.f32 %v10057_v17, %v7584_v7 }
 0x396   : > { %10054 = vst [vmem:[#allocation23_spill] sm:$0xff] %v7660_v44  ;;  %v2308_v42 = vpop.xlane.xlu2 %2307  ;;  %v7668_v21 = vpop.eup %5615 }
 0x397   : > { %929 = vst.msk [vmem:[#allocation2 + $0x4] sm:$0xf] %vm927_vm10, %v920_v45  ;;  %v2322_v32 = vsub.f32 %v7443_v33, %v2308_v42  ;;  %v1369_v0 = vpack.c.bf16 %v1363_v25, %v1362_v10  ;;  %v2088_v51 = vsel %vm781_vm2, %v7668_v21, 0.0  ;;  %v2074_v10 = vmul.f32 1.442695, %v2059_v50  ;;  %v7683_v38 = vpop.eup %5617 }
 0x398   : > { %10055 = vst [vmem:[#allocation52_spill] sm:$0xff] %v7668_v21  ;;  %v1844_v19 = vmul.f32 1.442695, %v1829_v27  ;;  %v7686_v7 = vpop.eup %5619  ;;  %v2320_v42 = vsub.f32 %v7383_v18, %v7617_v9 }
 0x399   : > { %v2334_v44 = vmul.f32 1.442695, %v2322_v32  ;;  %5206 = vmatmul.msk.bf16.gmra.mxu1 %vm781_vm2, %v1369_v0  ;;  %10059 = vst [vmem:[#allocation51_spill] sm:$0xff] %v7686_v7  ;;  %v1861_v0 = vsel %vm781_vm2, %v7683_v38, 0.0  ;;  %v2094_v56 = vsel %vm781_vm2, %v7686_v7, 0.0  ;;  %v10089_v7 = vld [vmem:[#allocation18_spill] sm:$0xff] }
 0x39b   : > { %5621 = vpow2.f32 %v2334_v44  ;;  %v10060_v44 = vld [vmem:[#allocation78_spill] sm:$0xff] }
 0x39c   : > { %2089 = vadd.xlane.f32.xlu2 %v2088_v51  ;;  %v904_v33 = vpop.f32.mrf.mxu3  ;;  %v2318_v45 = vsub.f32 %v10060_v44, %v7604_v53  ;;  %5623 = vpow2.f32 %v2074_v10  ;;  %v2330_v51 = vmul.f32 1.442695, %v2320_v42  ;;  %v2581_v44 = vsub.f32 %v7388_v29, %v7622_v24 }
 0x39d   : > { %v7677_v25 = vpop.xlane.xlu1 %2310  ;;  %v921_v47 = vpack.c.bf16 %v904_v33, %v904_v33  ;;  %v7679_v60 = vpop.xlane.xlu0 %1607  ;;  %5625 = vpow2.f32 %v1844_v19 }
 0x39e   : > { %10058 = vst [vmem:[#allocation72_spill] sm:$0xff] %v7679_v60  ;;  %v7681_v23 = vpop.xlane.xlu2 %2569  ;;  %v2326_v50 = vmul.f32 1.442695, %v2318_v45  ;;  %5627 = vrcp.f32 %v7643_v11  ;;  %v2582_v11 = vsub.f32 %v7407_v40, %v7635_v49 }
 0x39f   : > { %930 = vst.msk [vmem:[#allocation2 + $0x8] sm:$0xf] %vm927_vm10, %v921_v47 }
 0x3a1   : > { %v7690_v22 = vpop.eup %5621 }
 0x3a2   : > { %v2354_v32 = vsel %vm781_vm2, %v7690_v22, 0.0  ;;  %v7704_v10 = vpop.eup %5623 }
 0x3a3   : > { %2355 = vadd.xlane.f32.xlu0 %v2354_v32  ;;  %10061 = vst [vmem:[#allocation73_spill] sm:$0xff] %v7704_v10  ;;  %v7707_v19 = vpop.eup %5625  ;;  %v2097_v45 = vsel %vm781_vm2, %v7704_v10, 0.0  ;;  %v2590_v32 = vmul.f32 1.442695, %v2581_v44 }
 0x3a4   : > { %1862 = vadd.xlane.f32.xlu2 %v1861_v0  ;;  %v906_v53 = vpop.f32.mrf.mxu3  ;;  %2095 = vadd.xlane.f32.xlu1 %v2094_v56  ;;  %v1867_v42 = vsel %vm781_vm2, %v7707_v19, 0.0 }
 0x3a5   : > { %v2576_v17 = vpop.xlane.xlu1 %2575  ;;  %v922_v27 = vpack.c.bf16 %v906_v53, %v906_v53  ;;  %v7702_v9 = vpop.xlane.xlu0 %2572 }
 0x3a6   : > { %v2586_v18 = vsub.f32 %v7470_v2, %v2576_v17  ;;  %v1345_v33 = vpop.xlane.xlu2 %1344  ;;  %v5628_v2 = vpop.eup %5627 }
 0x3a7   : > { %931 = vst.msk [vmem:[#allocation2 + $0xc] sm:$0xf] %vm927_vm10, %v922_v27  ;;  %5629 = vrcp.f32 %v1345_v33  ;;  %v1364_v40 = vmul.f32 %v5628_v2, %v7421_v37  ;;  %v2321_v33 = vsub.f32 %v7440_v57, %v7664_v55  ;;  %v2323_v37 = vsub.f32 %v7453_v48, %v7677_v25 }
 0x3a8   : > { %v2600_v47 = vmul.f32 1.442695, %v2586_v18  ;;  %5631 = vpow2.f32 %v2326_v50  ;;  %v2592_v50 = vmul.f32 1.442695, %v2582_v11 }
 0x3a9   : > { %v2332_v57 = vmul.f32 1.442695, %v2321_v33  ;;  %v2336_v48 = vmul.f32 1.442695, %v2323_v37 }
 0x3aa   : > { %5633 = vpow2.f32 %v2600_v47 }
 0x3ab   : > { %5635 = vpow2.f32 %v2330_v51 }
 0x3ac   : > { %2098 = vadd.xlane.f32.xlu2 %v2097_v45  ;;  %1868 = vadd.xlane.f32.xlu1 %v1867_v42  ;;  %5637 = vpow2.f32 %v2590_v32 }
 0x3ad   : > { %v1351_v0 = vpop.xlane.xlu1 %1350  ;;  %v5630_v56 = vpop.eup %5629  ;;  %5639 = vpow2.f32 %v2592_v50  ;;  %v2584_v50 = vsub.f32 %v7458_v59, %v7681_v23 }
 0x3ae   : > { %v1348_v53 = vpop.xlane.xlu0 %1347  ;;  %v7717_v29 = vpop.eup %5631  ;;  %v1365_v24 = vmul.f32 %v5630_v56, %v7477_v14  ;;  %5641 = vrcp.f32 %v1351_v0 }
 0x3af   : > { %v7721_v49 = vpop.xlane.xlu2 %1610  ;;  %5643 = vrcp.f32 %v1348_v53  ;;  %v2342_v44 = vsel %vm781_vm2, %v7717_v29, 0.0 }
 0x3b0   : > { %10062 = vst [vmem:[#allocation74_spill] sm:$0xff] %v7721_v49  ;;  %v7723_v17 = vpop.eup %5633  ;;  %v1370_v18 = vpack.c.bf16 %v1365_v24, %v1364_v40  ;;  %5645 = vpow2.f32 %v2332_v57  ;;  %v2585_v40 = vsub.f32 %v7475_v61, %v7702_v9  ;;  %v7752_v24 = vpop.f32.mrf.mxu1  ;;  %v2596_v61 = vmul.f32 1.442695, %v2584_v50 }
 0x3b1   : > { %10063 = vst [vmem:[#allocation75_spill] sm:$0xff] %v7723_v17  ;;  %v7725_v27 = vpop.eup %5635  ;;  %v2622_v51 = vsel %vm781_vm2, %v7723_v17, 0.0  ;;  %5647 = vpow2.f32 %v2336_v48 }
 0x3b2   : > { %2623 = vadd.xlane.f32.xlu0 %v2622_v51  ;;  %5207 = vmatmul.msk.bf16.gmra.mxu1 %vm781_vm2, %v1370_v18  ;;  %v2348_v14 = vsel %vm781_vm2, %v7725_v27, 0.0  ;;  %v7740_v55 = vpop.eup %5637  ;;  %v2598_v9 = vmul.f32 1.442695, %v2585_v40 }
 0x3b3   : > { %v909_v47 = vpop.f32.mrf.mxu3  ;;  %10065 = vst [vmem:[#allocation77_spill] sm:$0xff] %v7740_v55  ;;  %v7745_v42 = vpop.eup %5639 }
 0x3b4   : > { %2349 = vadd.xlane.f32.xlu2 %v2348_v14  ;;  %v923_v11 = vpack.c.bf16 %v909_v47, %v909_v47  ;;  %2343 = vadd.xlane.f32.xlu1 %v2342_v44  ;;  %10066 = vst [vmem:[#allocation78_spill] sm:$0xff] %v7745_v42  ;;  %v5642_v0 = vpop.eup %5641  ;;  %v2610_v18 = vsel %vm781_vm2, %v7745_v42, 0.0 }
 0x3b5   : > { %v7738_v2 = vpop.xlane.xlu1 %1613  ;;  %v5644_v56 = vpop.eup %5643  ;;  %v1367_v33 = vmul.f32 %v5642_v0, %v7489_v39 }
 0x3b6   : > { %10064 = vst [vmem:[#allocation76_spill] sm:$0xff] %v7738_v2  ;;  %v7743_v45 = vpop.xlane.xlu0 %2313  ;;  %v1366_v37 = vmul.f32 %v5644_v56, %v7487_v52  ;;  %v7765_v47 = vpop.eup %5645 }
 0x3b7   : > { %932 = vst.msk [vmem:[#allocation2 + $0x10] sm:$0xf] %vm927_vm10, %v923_v11  ;;  %v2317_v25 = vpop.xlane.xlu2 %2316  ;;  %v7767_v44 = vpop.eup %5647 }
 0x3b8   : > { %v2325_v32 = vsub.f32 %v7511_v41, %v2317_v25  ;;  %v2607_v41 = vsel %vm781_vm2, %v7740_v55, 0.0  ;;  %v1371_v57 = vpack.c.bf16 %v1367_v33, %v1366_v37  ;;  %v2357_v48 = vsel %vm781_vm2, %v7767_v44, 0.0  ;;  %v7778_v50 = vpop.f32.mrf.mxu1 }
 0x3ba   : > { %v2340_v53 = vmul.f32 1.442695, %v2325_v32  ;;  %v2351_v32 = vsel %vm781_vm2, %v7765_v47, 0.0 }
 0x3bb   : > { %v911_v51 = vpop.f32.mrf.mxu3 }
 0x3bc   : > { %5649 = vpow2.f32 %v2340_v53  ;;  %2611 = vadd.xlane.f32.xlu2 %v2610_v18  ;;  %v924_v59 = vpack.c.bf16 %v911_v51, %v911_v51  ;;  %2608 = vadd.xlane.f32.xlu1 %v2607_v41 }
 0x3bd   : > { %v7760_v23 = vpop.xlane.xlu1 %2077  ;;  %5651 = vpow2.f32 %v2596_v61  ;;  %v2792_v61 = vpop.f32.mrf.mxu0 }
 0x3be   : > { %10067 = vst [vmem:[#allocation86_spill] sm:$0xff] %v7760_v23  ;;  %v1848_v11 = vpop.xlane.xlu0 %1847  ;;  %5653 = vpow2.f32 %v2598_v9 }
 0x3bf   : > { %933 = vst.msk [vmem:[#allocation2 + $0x14] sm:$0xf] %vm927_vm10, %v924_v59  ;;  %v7763_v14 = vpop.xlane.xlu2 %2578  ;;  %5655 = vrcp.f32 %v1848_v11 }
 0x3c0   : > { %v7800_v17 = vpop.f32.mrf.mxu1 }
 0x3c2   : > { %v7769_v39 = vpop.eup %5649  ;;  %5208 = vmatmul.msk.bf16.gmra.mxu1 %vm781_vm2, %v1371_v57 }
 0x3c3   : > { %v2363_v52 = vsel %vm781_vm2, %v7769_v39, 0.0  ;;  %v914_v25 = vpop.f32.mrf.mxu3  ;;  %v7781_v40 = vpop.eup %5651 }
 0x3c4   : > { %2364 = vadd.xlane.f32.xlu0 %v2363_v52  ;;  %2358 = vadd.xlane.f32.xlu2 %v2357_v48  ;;  %v925_v0 = vpack.c.bf16 %v914_v25, %v914_v25  ;;  %10068 = vst [vmem:[#allocation87_spill] sm:$0xff] %v7781_v40  ;;  %v7784_v18 = vpop.eup %5653  ;;  %v2616_v59 = vsel %vm781_vm2, %v7781_v40, 0.0  ;;  %v10070_v52 = vld [vmem:[#allocation20_spill] sm:$0xff]  ;;  %v10071_v48 = vld [vmem:[#allocation53_spill] sm:$0xff] }
 0x3c5   : > { %v1851_v56 = vpop.xlane.xlu1 %1850  ;;  %2352 = vadd.xlane.f32.xlu1 %v2351_v32  ;;  %10069 = vst [vmem:[#allocation88_spill] sm:$0xff] %v7784_v18  ;;  %v5656_v51 = vpop.eup %5655  ;;  %v2619_v33 = vsel %vm781_vm2, %v7784_v18, 0.0  ;;  %v668_v25 = vadd.f32 %v10071_v48, %v10070_v52  ;;  %v10072_v32 = vld [vmem:[#allocation57_spill] sm:$0xff] }
 0x3c6   : > { %5657 = vrcp.f32 %v1851_v56  ;;  %934 = vst.msk [vmem:[#allocation2 + $0x18] sm:$0xf] %vm927_vm10, %v925_v0  ;;  %v1878_v9 = vmul.f32 %v5656_v51, %v7524_v1  ;;  %v670_v0 = vadd.f32 %v10072_v32, %v10070_v52  ;;  %v10073_v1 = vld [vmem:[#allocation46_spill] sm:$0xff]  ;;  %v7860_v18 = vpop.xlane.xlu0 %2083 }
 0x3c7   : > { %v2968_v53 = vpop.permute.xlu2 %2967  ;;  %v10074_v51 = vld [vmem:[#allocation50_spill] sm:$0xff] }
 0x3c8   : > { %5257 = vmatmul.msk.bf16.vlgmr.msrb.gmra.mxu2 %vm727_vm0, %v2968_v53  ;;  %v7798_v53 = vadd.f32 %v2792_v61, %v6962_v28 }
 0x3cb   : > { %v916_v37 = vpop.f32.mrf.mxu3 }
 0x3cc   : > { %v5658_v41 = vpop.eup %5657  ;;  %2620 = vadd.xlane.f32.xlu2 %v2619_v33  ;;  %v926_v57 = vpack.c.bf16 %v916_v37, %v916_v37  ;;  %v7806_v33 = vpack.c.bf16 %v670_v0, %v668_v25  ;;  %v2813_v37 = vsel %vm781_vm2, %v7798_v53, -inf  ;;  %v10078_v0 = vld [vmem:[#allocation35_spill] sm:$0xff] }
 0x3cd   : > { %v1879_v11 = vmul.f32 %v5658_v41, %v7539_v31  ;;  %2617 = vadd.xlane.f32.xlu1 %v2616_v59  ;;  %v663_v31 = vadd.f32 %v10073_v1, %v10070_v52  ;;  %v665_v41 = vadd.f32 %v10074_v51, %v10070_v52  ;;  %v10079_v1 = vld [vmem:[#allocation39_spill] sm:$0xff] }
 0x3ce   : > { %935 = vst.msk [vmem:[#allocation2 + $0x1c] sm:$0xf] %vm927_vm10, %v926_v57  ;;  %v10076_v57 = vld [vmem:[#allocation44_spill] sm:$0xff]  ;;  %v655_v51 = vadd.f32 %v10079_v1, %v10070_v52  ;;  %v10084_v1 = vld [vmem:[#allocation33_spill] sm:$0xff]  ;;  %v1857_v55 = vpop.xlane.xlu0 %1856 }
 0x3cf   : > { %v1886_v56 = vpack.c.bf16 %v1879_v11, %v1878_v9  ;;  %v10075_v9 = vld [vmem:[#allocation42_spill] sm:$0xff]  ;;  %v660_v48 = vadd.f32 %v10076_v57, %v10070_v52  ;;  %v7819_v25 = vpack.c.bf16 %v665_v41, %v663_v31  ;;  %5659 = vrcp.f32 %v1857_v55 }
 0x3d0   : > { %v658_v11 = vadd.f32 %v10075_v9, %v10070_v52  ;;  %v7832_v9 = vpop.xlane.xlu1 %2086  ;;  %10087 = vst [vmem:[#allocation42_spill] sm:$0xff] %v7860_v18 }
 0x3d1   : > { %10077 = vst [vmem:[#allocation53_spill] sm:$0xff] %v7819_v25 }
 0x3d2   : > { %5221 = vmatmul.msk.bf16.vlgmr.msrb.gmra.mxu1 %vm781_vm2, %v1886_v56  ;;  %v653_v56 = vadd.f32 %v10078_v0, %v10070_v52  ;;  %10081 = vst [vmem:[#allocation46_spill] sm:$0xff] %v7832_v9  ;;  %v10083_v0 = vld [vmem:[#allocation17_spill] sm:$0xff] }
 0x3d3   : > { %2922 = vmatpush.bf16.msrb.mxu1 %v7806_v33  ;;  %v993_v59 = vpop.f32.mrf.mxu3 }
 0x3d4   : > { %2814 = vmax.xlane.f32.xlu2 %v2813_v37  ;;  %v7813_v61 = vadd.f32 %v993_v59, %v6946_v13  ;;  %v7828_v37 = vpack.c.bf16 %v660_v48, %v658_v11  ;;  %v7830_v59 = vpop.f32.mrf.mxu1  ;;  %v7838_v57 = vpack.c.bf16 %v655_v51, %v653_v56  ;;  %v10085_v56 = vld [vmem:[#allocation41_spill] sm:$0xff] }
 0x3d6   : > { %v1013_v32 = vsel %vm781_vm2, %v7813_v61, -inf  ;;  %10080 = vst [vmem:[#allocation57_spill] sm:$0xff] %v7828_v37  ;;  %v7874_v18 = vpop.xlane.xlu0 %2092 }
 0x3d7   : > { %2923 = vmatpush.bf16.msrb.mxu1 %v7819_v25  ;;  %1014 = vmax.xlane.f32.xlu0 %v1013_v32  ;;  %10082 = vst [vmem:[#allocation50_spill] sm:$0xff] %v7838_v57 }
 0x3d8   : > { %v1860_v48 = vpop.xlane.xlu1 %1859  ;;  %10090 = vst [vmem:[#allocation35_spill] sm:$0xff] %v7874_v18 }
 0x3db   : > { %2924 = vmatpush.bf16.msrb.mxu1 %v7828_v37  ;;  %v995_v31 = vpop.f32.mrf.mxu3 }
 0x3dc   : > { %v7836_v41 = vadd.f32 %v995_v31, %v6962_v28  ;;  %v7843_v11 = vpop.f32.mrf.mxu1 }
 0x3de   : > { %v1016_v32 = vsel %vm781_vm2, %v7836_v41, -inf  ;;  %v1866_v55 = vpop.xlane.xlu0 %1865 }
 0x3df   : > { %2925 = vmatpush.bf16.msrb.mxu1 %v7838_v57  ;;  %1017 = vmax.xlane.f32.xlu2 %v1016_v32  ;;  %v10086_v32 = vld [vmem:[#allocation34_spill] sm:$0xff] }
 0x3e3   : > { %v7856_v51 = vpop.f32.mrf.mxu3 }
 0x3e4   : > { %v7849_v31 = vpop.f32.mrf.mxu1 }
 0x3e6   : > { %2971 = vrot.lane.b32.xlu1 %v10083_v0, %s6233_s28 }
 0x3eb   : > { %3509 = vrot.lane.b32.xlu0 %v10084_v1, %s6231_s24 }
 0x3ec   : > { %v2970_v52 = vpop.permute.xlu1 %2969  ;;  %v7862_v40 = vpop.f32.mrf.mxu1 }
 0x3ed   : > { %5258 = vmatmul.msk.bf16.gmra.mxu2 %vm727_vm0, %v2970_v52  ;;  %v1000_v52 = vpop.f32.mrf.mxu3 }
 0x3ee   : > { %3513 = vrot.lane.b32.xlu1 %v10085_v56, %s6231_s24  ;;  %v7890_v4 = vadd.f32 %v1000_v52, %v6999_v3 }
 0x3f3   : > { %3499 = vrot.lane.b32.xlu0 %v6481_v62, %s6231_s24 }
 0x3f4   : > { %v7870_v57 = vpop.f32.mrf.mxu1 }
 0x3f5   : > { %v1003_v21 = vpop.f32.mrf.mxu3 }
 0x3f6   : > { %3511 = vrot.lane.b32.xlu1 %v10086_v32, %s6231_s24 }
 0x3f7   : > { %3249 = vrot.lane.b32.xlu2 %v10086_v32, %s6232_s29  ;;  %v5660_v32 = vpop.eup %5659 }
 0x3fc   : > { %v7876_v9 = vpop.f32.mrf.mxu1 }
 0x3fd   : > { %v7882_v2 = vpop.f32.mrf.mxu3 }
 0x3fe   : > { %3251 = vrot.lane.b32.xlu1 %v10085_v56, %s6232_s29  ;;  %v1881_v56 = vmul.f32 %v5660_v32, %v7557_v35  ;;  %v7893_v35 = vadd.f32 %v1003_v21, %v7019_v8 }
 0x3ff   : > { %v7868_v42 = vpop.xlane.xlu2 %2080 }
 0x400   : > { %10088 = vst [vmem:[#allocation44_spill] sm:$0xff] %v7868_v42  ;;  %v1025_v21 = vsel %vm781_vm2, %v7893_v35, -inf }
 0x406   : > { %2973 = vrot.lane.b32.xlu1 %v10089_v7, %s6233_s28 }
 0x407   : > { %v1854_v10 = vpop.xlane.xlu2 %1853 }
 0x408   : > { %5661 = vrcp.f32 %v1854_v10  ;;  %v7885_v10 = vpop.f32.mrf.mxu1 }
 0x409   : > { %5663 = vrcp.f32 %v1860_v48 }
 0x40e   : > { %v5662_v23 = vpop.eup %5661 }
 0x40f   : > { %v1880_v42 = vmul.f32 %v5662_v23, %v7650_v20  ;;  %v7880_v25 = vpop.xlane.xlu2 %2089  ;;  %v5664_v20 = vpop.eup %5663 }
 0x410   : > { %10091 = vst [vmem:[#allocation39_spill] sm:$0xff] %v7880_v25  ;;  %v1008_v23 = vpop.f32.mrf.mxu3 }
 0x411   : > { %v1887_v49 = vpack.c.bf16 %v1881_v56, %v1880_v42  ;;  %v1022_v42 = vsel %vm781_vm2, %v7890_v4, -inf  ;;  %v1882_v56 = vmul.f32 %v5664_v20, %v7567_v16  ;;  %v7906_v52 = vadd.f32 %v1008_v23, %v7051_v34 }
 0x413   : > { %5222 = vmatmul.msk.bf16.gmra.mxu1 %vm781_vm2, %v1887_v49  ;;  %v2324_v49 = vsub.f32 %v7508_v58, %v7743_v45  ;;  %v1031_v16 = vsel %vm781_vm2, %v7906_v52, -inf }
 0x415   : > { %v2338_v25 = vmul.f32 1.442695, %v2324_v49 }
 0x416   : > { %v1410_v32 = vpop.f32.mrf.mxu1 }
 0x417   : > { %v1863_v18 = vpop.xlane.xlu2 %1862  ;;  %v7887_v60 = vpop.xlane.xlu1 %2095 }
 0x418   : > { %10092 = vst [vmem:[#allocation17_spill] sm:$0xff] %v7887_v60  ;;  %5665 = vrcp.f32 %v1863_v18  ;;  %v7900_v60 = vpop.xlane.xlu0 %2811 }
 0x41d   : > { %1023 = vmax.xlane.f32.xlu0 %v1022_v42 }
 0x41e   : > { %v5666_v48 = vpop.eup %5665  ;;  %v7913_v45 = vpop.f32.mrf.mxu1 }
 0x41f   : > { %v1883_v18 = vmul.f32 %v5666_v48, %v7683_v38  ;;  %v1869_v26 = vpop.xlane.xlu1 %1868  ;;  %v2587_v38 = vsub.f32 %v7527_v43, %v7763_v14 }
 0x420   : > { %1026 = vmax.xlane.f32.xlu2 %v1025_v21  ;;  %5667 = vrcp.f32 %v1869_v26  ;;  %v7915_v42 = vpop.xlane.xlu0 %2605 }
 0x421   : > { %v1888_v58 = vpack.c.bf16 %v1883_v18, %v1882_v56  ;;  %5669 = vpow2.f32 %v2338_v25  ;;  %v2602_v20 = vmul.f32 1.442695, %v2587_v38 }
 0x422   : > { %5671 = vrcp.f32 %v1866_v55  ;;  %v7925_v55 = vpop.xlane.xlu2 %2098 }
 0x423   : > { %5223 = vmatmul.msk.bf16.gmra.mxu1 %vm781_vm2, %v1888_v58  ;;  %5673 = vpow2.f32 %v2602_v20 }
 0x425   : > { %1032 = vmax.xlane.f32.xlu0 %v1031_v16 }
 0x426   : > { %v5668_v49 = vpop.eup %5667 }
 0x427   : > { %v7917_v23 = vpop.eup %5669  ;;  %v1885_v26 = vmul.f32 %v5668_v49, %v7707_v19  ;;  %v2344_v56 = vpop.xlane.xlu1 %2343  ;;  %v1425_v19 = vpack.c.bf16 %v7876_v9, %v7876_v9 }
 0x428   : > { %v5672_v48 = vpop.eup %5671  ;;  %v2360_v25 = vsel %vm781_vm2, %v7917_v23, 0.0  ;;  %v2347_v58 = vpop.xlane.xlu0 %2346  ;;  %5675 = vrcp.f32 %v2344_v56 }
 0x429   : > { %v1884_v43 = vmul.f32 %v5672_v48, %v7586_v54  ;;  %v7927_v21 = vpop.eup %5673  ;;  %5677 = vrcp.f32 %v2347_v58  ;;  %v1427_v54 = vpack.c.bf16 %v1410_v32, %v1410_v32 }
 0x42a   : > { %10093 = vst [vmem:[#allocation33_spill] sm:$0xff] %v7927_v21  ;;  %v2625_v16 = vsel %vm781_vm2, %v7927_v21, 0.0  ;;  %v2350_v48 = vpop.xlane.xlu2 %2349 }
 0x42b   : > { %v1889_v18 = vpack.c.bf16 %v1885_v26, %v1884_v43 }
 0x42e   : > { %v5676_v49 = vpop.eup %5675 }
 0x42f   : > { %v7923_v14 = vpop.f32.mrf.mxu1  ;;  %v7934_v38 = vpop.xlane.xlu1 %2608  ;;  %v2374_v56 = vmul.f32 %v5676_v49, %v7717_v29 }
 0x430   : > { %2361 = vadd.xlane.f32.xlu1 %v2360_v25  ;;  %v5678_v26 = vpop.eup %5677 }
 0x431   : > { %v2375_v25 = vmul.f32 %v5678_v26, %v7624_v63 }
 0x432   : > { %v7946_v58 = vpop.xlane.xlu2 %2611 }
 0x433   : > { %5224 = vmatmul.msk.bf16.gmra.mxu1 %vm781_vm2, %v1889_v18  ;;  %v2382_v32 = vpack.c.bf16 %v2375_v25, %v2374_v56 }
 0x437   : > { %v1417_v20 = vpop.f32.mrf.mxu1 }
 0x438   : > { %2626 = vadd.xlane.f32.xlu1 %v2625_v16  ;;  %1441 = vrot.lane.b32.xlu2 %v1425_v19, %s6232_s29  ;;  %v1430_v9 = vpack.c.bf16 %v1417_v20, %v1417_v20  ;;  %v2353_v18 = vpop.xlane.xlu1 %2352  ;;  %v7948_v19 = vpop.xlane.xlu0 %2614 }
 0x439   : > { %1445 = vrot.lane.b32.xlu0 %v1427_v54, %s6232_s29  ;;  %5679 = vrcp.f32 %v2353_v18 }
 0x43a   : > { %5681 = vrcp.f32 %v2350_v48 }
 0x43f   : > { %v7940_v43 = vpop.f32.mrf.mxu1  ;;  %v5680_v63 = vpop.eup %5679 }
 0x440   : > { %3237 = vrot.lane.b32.xlu2 %v6481_v62, %s6232_s29  ;;  %v5682_v16 = vpop.eup %5681  ;;  %v2356_v54 = vpop.xlane.xlu0 %2355  ;;  %v2377_v20 = vmul.f32 %v5680_v63, %v7765_v47 }
 0x441   : > { %1451 = vrot.lane.b32.xlu0 %v1430_v9, %s6232_s29  ;;  %v2359_v62 = vpop.xlane.xlu2 %2358  ;;  %v2376_v49 = vmul.f32 %v5682_v16, %v7725_v27  ;;  %v7954_v26 = vpop.xlane.xlu1 %2617  ;;  %v10094_v9 = vld [vmem:[#allocation30_spill] sm:$0xff] }
 0x442   : > { %5683 = vrcp.f32 %v2359_v62 }
 0x443   : > { %5237 = vmatmul.msk.bf16.vlgmr.msra.gmra.mxu1 %vm781_vm2, %v2382_v32  ;;  %v2383_v32 = vpack.c.bf16 %v2377_v20, %v2376_v49  ;;  %5685 = vrcp.f32 %v2356_v54 }
 0x447   : > { %v7950_v29 = vpop.f32.mrf.mxu1 }
 0x448   : > { %v7960_v48 = vpop.xlane.xlu0 %2623  ;;  %v5684_v16 = vpop.eup %5683 }
 0x449   : > { %10095 = vst [vmem:[#allocation41_spill] sm:$0xff] %v7960_v48  ;;  %v7965_v27 = vpop.xlane.xlu2 %2620  ;;  %v5686_v20 = vpop.eup %5685  ;;  %v2379_v62 = vmul.f32 %v5684_v16, %v7767_v44 }
 0x44a   : > { %v2378_v54 = vmul.f32 %v5686_v20, %v7690_v22 }
 0x44f   : > { %v1915_v56 = vpop.f32.mrf.mxu1 }
 0x450   : > { %v1935_v25 = vpack.c.bf16 %v1915_v56, %v1915_v56  ;;  %v7968_v49 = vpop.xlane.xlu0 %2364  ;;  %v2795_v56 = vpop.f32.mrf.mxu0 }
 0x451   : > { %3507 = vrot.lane.b32.xlu1 %v10094_v9, %s6231_s24  ;;  %v7984_v22 = vadd.f32 %v2795_v56, %v6984_v12  ;;  %5687 = vrcp.f32 %v7968_v49 }
 0x452   : > { %1943 = vst.msk [vmem:[#allocation2 + $0x20] sm:$0xf] %vm927_vm10, %v1935_v25 }
 0x453   : > { %5238 = vmatmul.msk.bf16.gmra.mxu1 %vm781_vm2, %v2383_v32 }
 0x457   : > { %v1917_v47 = vpop.f32.mrf.mxu1 }
 0x458   : > { %v2972_v18 = vpop.permute.xlu1 %2971  ;;  %v1936_v63 = vpack.c.bf16 %v1917_v47, %v1917_v47  ;;  %v2384_v47 = vpack.c.bf16 %v2379_v62, %v2378_v54  ;;  %v7981_v44 = vpop.xlane.xlu0 %1014  ;;  %v2816_v54 = vsel %vm781_vm2, %v7984_v22, -inf }
 0x459   : > { %5259 = vmatmul.msk.bf16.gmra.mxu2 %vm727_vm0, %v2972_v18  ;;  %3247 = vrot.lane.b32.xlu1 %v10084_v1, %s6232_s29  ;;  %v1010_v1 = vpop.f32.mrf.mxu3  ;;  %v7975_v18 = vpop.xlane.xlu2 %2814 }
 0x45a   : > { %1944 = vst.msk [vmem:[#allocation2 + $0x24] sm:$0xf] %vm927_vm10, %v1936_v63  ;;  %v7979_v63 = vadd.f32 %v1010_v1, %v7070_v46  ;;  %v2797_v62 = vpop.f32.mrf.mxu0 }
 0x45b   : > { %v7994_v1 = vadd.f32 %v2797_v62, %v6999_v3 }
 0x460   : > { %v3514_v25 = vpop.permute.xlu1 %3513 }
 0x461   : > { %v3537_v32 = vsel %vm727_vm0, %v3514_v25, 0  ;;  %3245 = vrot.lane.b32.xlu1 %v10094_v9, %s6232_s29  ;;  %v1034_v9 = vsel %vm781_vm2, %v7979_v63, -inf  ;;  %v7991_v25 = vpop.xlane.xlu2 %1017 }
 0x462   : > { %3543 = vmatpush.bf16.xpose.msra.mxu2 %v3537_v32  ;;  %v3510_v32 = vpop.permute.xlu0 %3509  ;;  %v1038_v49 = vsub.f32 %v7836_v41, %v7991_v25 }
 0x463   : > { %5239 = vmatmul.msk.bf16.gmra.mxu1 %vm781_vm2, %v2384_v47 }
 0x468   : > { %v3512_v16 = vpop.permute.xlu1 %3511 }
 0x469   : > { %v3534_v20 = vsel %vm727_vm0, %v3512_v16, 0  ;;  %1035 = vmax.xlane.f32.xlu2 %v1034_v9  ;;  %v3531_v16 = vsel %vm727_vm0, %v3510_v32, 0  ;;  %v2800_v9 = vpop.f32.mrf.mxu0  ;;  %v3250_v21 = vpop.permute.xlu2 %3249 }
 0x46a   : > { %3544 = vmatpush.bf16.xpose.msra.mxu2 %v3534_v20  ;;  %v2819_v20 = vsel %vm781_vm2, %v7994_v1, -inf  ;;  %v8001_v48 = vadd.f32 %v2800_v9, %v7019_v8  ;;  %v3272_v62 = vsel %vm727_vm0, %v3250_v21, 0 }
 0x46b   : > { %2817 = vmax.xlane.f32.xlu0 %v2816_v54 }
 0x46c   : > { %10096 = vst [vmem:[#allocation34_spill] sm:$0xff] %v8001_v48  ;;  %v2822_v32 = vsel %vm781_vm2, %v8001_v48, -inf }
 0x470   : > { %v3252_v56 = vpop.permute.xlu1 %3251 }
 0x471   : > { %v3275_v47 = vsel %vm727_vm0, %v3252_v56, 0  ;;  %v1428_v56 = vpack.c.bf16 %v7913_v45, %v7913_v45 }
 0x472   : > { %3281 = vmatpush.bf16.xpose.msrb.mxu0 %v3275_v47  ;;  %3545 = vmatpush.bf16.xpose.msra.mxu2 %v3531_v16  ;;  %v8012_v47 = vadd.f32 %v7856_v51, %v6984_v12  ;;  %v10097_v16 = vld [vmem:[#allocation19_spill] sm:$0xff] }
 0x473   : > { %2820 = vmax.xlane.f32.xlu0 %v2819_v20  ;;  %v594_v20 = vadd.f32 %v7843_v11, %v10097_v16  ;;  %v596_v21 = vadd.f32 %v7849_v31, %v10097_v16  ;;  %v599_v45 = vadd.f32 %v7862_v40, %v10097_v16  ;;  %v601_v51 = vadd.f32 %v7870_v57, %v10097_v16 }
 0x474   : > { %v1019_v9 = vsel %vm781_vm2, %v8012_v47, -inf  ;;  %v8030_v11 = vadd.f32 %v7882_v2, %v7033_v36  ;;  %v1431_v2 = vpack.c.bf16 %v7940_v43, %v7940_v43  ;;  %v591_v43 = vadd.f32 %v7830_v59, %v10097_v16 }
 0x475   : > { %v8032_v31 = vpack.c.bf16 %v601_v51, %v599_v45  ;;  %v589_v45 = vadd.f32 %v7800_v17, %v10097_v16  ;;  %v5688_v51 = vpop.eup %5687 }
 0x476   : > { %v1028_v40 = vsel %vm781_vm2, %v8030_v11, -inf  ;;  %v2381_v17 = vmul.f32 %v5688_v51, %v7769_v39  ;;  %v10098_v39 = vld [vmem:[#allocation16_spill] sm:$0xff] }
 0x478   : > { %v2974_v54 = vpop.permute.xlu1 %2973 }
 0x479   : > { %5260 = vmatmul.msk.bf16.gmra.mxu2 %vm727_vm0, %v2974_v54  ;;  %v8026_v54 = vpack.c.bf16 %v596_v21, %v594_v20 }
 0x47a   : > { %3282 = vmatpush.bf16.xpose.msrb.mxu0 %v3272_v62 }
 0x47b   : > { %2823 = vmax.xlane.f32.xlu0 %v2822_v32 }
 0x481   : > { %1447 = vrot.lane.b32.xlu2 %v1428_v56, %s6232_s29 }
 0x489   : > { %3239 = vrot.lane.b32.xlu2 %v6505_v15, %s6232_s29 }
 0x48b   : > { %1020 = vmax.xlane.f32.xlu1 %v1019_v9 }
 0x48f   : > { %4523 = vrot.lane.b32.xlu0 %v8026_v54, %s6231_s24 }
 0x490   : > { %v1920_v62 = vpop.f32.mrf.mxu1 }
 0x491   : > { %v1937_v32 = vpack.c.bf16 %v1920_v62, %v1920_v62  ;;  %3997 = vrot.lane.b32.xlu2 %v8032_v31, %s6233_s28  ;;  %v8053_v62 = vpack.c.bf16 %v591_v43, %v589_v45  ;;  %v10100_v43 = vld [vmem:[#allocation36_spill] sm:$0xff] }
 0x492   : > { %v502_v51 = vadd.f32 %v10100_v43, %v10098_v39 }
 0x493   : > { %1029 = vmax.xlane.f32.xlu1 %v1028_v40  ;;  %1945 = vst.msk [vmem:[#allocation2 + $0x28] sm:$0xf] %vm927_vm10, %v1937_v32 }
 0x498   : > { %v1922_v57 = vpop.f32.mrf.mxu1 }
 0x499   : > { %v1938_v56 = vpack.c.bf16 %v1922_v57, %v1922_v57  ;;  %1453 = vrot.lane.b32.xlu2 %v1431_v2, %s6232_s29  ;;  %v1426_v2 = vpack.c.bf16 %v7885_v10, %v7885_v10 }
 0x49b   : > { %1946 = vst.msk [vmem:[#allocation2 + $0x2c] sm:$0xf] %vm927_vm10, %v1938_v56  ;;  %v1047_v56 = vmul.f32 1.442695, %v1038_v49 }
 0x4a0   : > { %v1925_v20 = vpop.f32.mrf.mxu1 }
 0x4a1   : > { %v1939_v21 = vpack.c.bf16 %v1925_v20, %v1925_v20  ;;  %3241 = vrot.lane.b32.xlu2 %v10083_v0, %s6232_s29  ;;  %v1027_v20 = vpop.xlane.xlu2 %1026 }
 0x4a2   : > { %v1041_v10 = vsub.f32 %v7893_v35, %v1027_v20  ;;  %v10101_v20 = vld [vmem:[#allocation45_spill] sm:$0xff] }
 0x4a3   : > { %v2362_v9 = vpop.xlane.xlu1 %2361  ;;  %1947 = vst.msk [vmem:[#allocation2 + $0x30] sm:$0xf] %vm927_vm10, %v1939_v21  ;;  %v1429_v21 = vpack.c.bf16 %v7923_v14, %v7923_v14 }
 0x4a4   : > { %5689 = vrcp.f32 %v2362_v9  ;;  %v1053_v49 = vmul.f32 1.442695, %v1041_v10  ;;  %v10102_v10 = vld [vmem:[#allocation47_spill] sm:$0xff] }
 0x4a5   : > { %5691 = vpow2.f32 %v1047_v56 }
 0x4a6   : > { %5693 = vpow2.f32 %v1053_v49 }
 0x4a8   : > { %v1927_v32 = vpop.f32.mrf.mxu1 }
 0x4a9   : > { %v1940_v57 = vpack.c.bf16 %v1927_v32, %v1927_v32  ;;  %3993 = vrot.lane.b32.xlu2 %v8053_v62, %s6233_s28 }
 0x4aa   : > { %v5690_v40 = vpop.eup %5689 }
 0x4ab   : > { %v2380_v59 = vmul.f32 %v5690_v40, %v7917_v23  ;;  %1948 = vst.msk [vmem:[#allocation2 + $0x34] sm:$0xf] %vm927_vm10, %v1940_v57  ;;  %v10099_v23 = vld [vmem:[#allocation32_spill] sm:$0xff]  ;;  %v8077_v35 = vpop.eup %5691  ;;  %v8085_v57 = vpop.xlane.xlu1 %2626 }
 0x4ac   : > { %1443 = vrot.lane.b32.xlu1 %v1426_v2, %s6232_s29  ;;  %v500_v45 = vadd.f32 %v10099_v23, %v10098_v39  ;;  %v1064_v40 = vsel %vm781_vm2, %v8077_v35, 0.0  ;;  %v8107_v23 = vpop.permute.xlu2 %1441 }
 0x4ad   : > { %v2385_v41 = vpack.c.bf16 %v2381_v17, %v2380_v59  ;;  %v8090_v17 = vpop.eup %5693 }
 0x4ae   : > { %v8079_v32 = vpack.c.bf16 %v502_v51, %v500_v45  ;;  %v1073_v59 = vsel %vm781_vm2, %v8090_v17, 0.0 }
 0x4af   : > { %5240 = vmatmul.msk.bf16.gmra.mxu1 %vm781_vm2, %v2385_v41  ;;  %v510_v41 = vadd.f32 %v10101_v20, %v10098_v39 }
 0x4b0   : > { %v1930_v25 = vpop.f32.mrf.mxu1 }
 0x4b1   : > { %v1941_v9 = vpack.c.bf16 %v1930_v25, %v1930_v25  ;;  %3243 = vrot.lane.b32.xlu2 %v10089_v7, %s6232_s29  ;;  %v512_v25 = vadd.f32 %v10102_v10, %v10098_v39  ;;  %v10103_v10 = vld [vmem:[#allocation26_spill] sm:$0xff] }
 0x4b3   : > { %1949 = vst.msk [vmem:[#allocation2 + $0x38] sm:$0xf] %vm927_vm10, %v1941_v9  ;;  %v3500_v9 = vpop.permute.xlu0 %3499 }
 0x4b4   : > { %1449 = vrot.lane.b32.xlu1 %v1429_v21, %s6232_s29  ;;  %v8103_v21 = vpack.c.bf16 %v512_v25, %v510_v41  ;;  %v3788_v41 = vsel %vm727_vm0, %v8026_v54, 0  ;;  %v10104_v25 = vld [vmem:[#allocation29_spill] sm:$0xff] }
 0x4b8   : > { %v1932_v14 = vpop.f32.mrf.mxu1 }
 0x4b9   : > { %v1942_v2 = vpack.c.bf16 %v1932_v14, %v1932_v14  ;;  %1065 = vadd.xlane.f32.xlu0 %v1064_v40  ;;  %3981 = vrot.lane.b32.xlu2 %v8079_v32, %s6233_s28  ;;  %v3238_v40 = vpop.permute.xlu2 %3237 }
 0x4bb   : > { %1950 = vst.msk [vmem:[#allocation2 + $0x3c] sm:$0xf] %vm927_vm10, %v1942_v2  ;;  %v3791_v2 = vsel %vm727_vm0, %v8032_v31, 0 }
 0x4bc   : > { %3501 = vrot.lane.b32.xlu1 %v6505_v15, %s6231_s24 }
 0x4c1   : > { %1074 = vadd.xlane.f32.xlu0 %v1073_v59  ;;  %4525 = vrot.lane.b32.xlu2 %v8032_v31, %s6231_s24  ;;  %v584_v59 = vadd.f32 %v7752_v24, %v10097_v16  ;;  %v495_v24 = vadd.f32 %v10103_v10, %v10098_v39 }
 0x4c3   : > { %v3508_v56 = vpop.permute.xlu1 %3507 }
 0x4c4   : > { %3503 = vrot.lane.b32.xlu1 %v10083_v0, %s6231_s24  ;;  %v3528_v15 = vsel %vm727_vm0, %v3508_v56, 0  ;;  %v2419_v0 = vpop.f32.mrf.mxu1  ;;  %v586_v56 = vadd.f32 %v7778_v50, %v10097_v16  ;;  %v497_v50 = vadd.f32 %v10104_v25, %v10098_v39 }
 0x4c5   : > { %3546 = vmatpush.bf16.xpose.msra.mxu2 %v3528_v15  ;;  %v2439_v49 = vpack.c.bf16 %v2419_v0, %v2419_v0 }
 0x4c6   : > { %v8125_v20 = vpack.c.bf16 %v586_v56, %v584_v59  ;;  %v8136_v16 = vpack.c.bf16 %v497_v50, %v495_v24  ;;  %v1432_v56 = vpack.c.bf16 %v7950_v29, %v7950_v29 }
 0x4c9   : > { %3985 = vrot.lane.b32.xlu2 %v8103_v21, %s6233_s28 }
 0x4cb   : > { %v3248_v45 = vpop.permute.xlu1 %3247 }
 0x4cc   : > { %3995 = vrot.lane.b32.xlu1 %v8026_v54, %s6233_s28  ;;  %5273 = vmatmul.msk.bf16.vlgmr.msra.gmra.mxu2 %vm727_vm0, %v3500_v9  ;;  %v3269_v43 = vsel %vm727_vm0, %v3248_v45, 0  ;;  %v3785_v9 = vsel %vm727_vm0, %v8053_v62, 0  ;;  %v10105_v45 = vld [vmem:[#allocation40_spill] sm:$0xff] }
 0x4cd   : > { %3283 = vmatpush.bf16.xpose.msrb.mxu0 %v3269_v43  ;;  %v10106_v43 = vld [vmem:[#allocation43_spill] sm:$0xff] }
 0x4ce   : > { %v507_v0 = vadd.f32 %v10106_v43, %v10098_v39 }
 0x4d1   : > { %4261 = vrot.lane.b32.xlu2 %v8026_v54, %s6232_s29  ;;  %v505_v54 = vadd.f32 %v10105_v45, %v10098_v39 }
 0x4d3   : > { %v3246_v51 = vpop.permute.xlu1 %3245 }
 0x4d4   : > { %3505 = vrot.lane.b32.xlu1 %v10089_v7, %s6231_s24  ;;  %v3266_v14 = vsel %vm727_vm0, %v3246_v51, 0  ;;  %v8148_v51 = vpack.c.bf16 %v507_v0, %v505_v54 }
 0x4d5   : > { %3284 = vmatpush.bf16.xpose.msrb.mxu0 %v3266_v14  ;;  %2455 = vrot.lane.b32.xlu0 %v2439_v49, %s6232_s29 }
 0x4dc   : > { %3991 = vrot.lane.b32.xlu1 %v8125_v20, %s6233_s28  ;;  %5265 = vmatmul.msk.bf16.vlgmr.msrb.gmra.mxu0 %vm727_vm0, %v3238_v40  ;;  %v1036_v7 = vpop.xlane.xlu2 %1035  ;;  %v3782_v40 = vsel %vm727_vm0, %v8125_v20, 0 }
 0x4dd   : > { %3797 = vmatpush.bf16.xpose.msra.mxu0 %v3791_v2  ;;  %v1044_v14 = vsub.f32 %v7979_v63, %v1036_v7 }
 0x4df   : > { %v1059_v2 = vmul.f32 1.442695, %v1044_v14 }
 0x4e1   : > { %5695 = vpow2.f32 %v1059_v2 }
 0x4e4   : > { %3979 = vrot.lane.b32.xlu1 %v8136_v16, %s6233_s28  ;;  %v8140_v15 = vpop.permute.xlu2 %1447 }
 0x4e5   : > { %3798 = vmatpush.bf16.xpose.msra.mxu0 %v3788_v41  ;;  %v8161_v41 = vpop.f32.mrf.mxu1 }
 0x4e7   : > { %v8163_v63 = vpop.eup %5695 }
 0x4ec   : > { %3983 = vrot.lane.b32.xlu1 %v8148_v51, %s6233_s28  ;;  %v3240_v49 = vpop.permute.xlu2 %3239 }
 0x4ed   : > { %3799 = vmatpush.bf16.xpose.msra.mxu0 %v3785_v9  ;;  %v2424_v29 = vpop.f32.mrf.mxu1 }
 0x4ee   : > { %5266 = vmatmul.msk.bf16.gmra.mxu0 %vm727_vm0, %v3240_v49 }
 0x4f4   : > { %4263 = vrot.lane.b32.xlu1 %v8032_v31, %s6232_s29  ;;  %v3998_v39 = vpop.permute.xlu2 %3997  ;;  %v1082_v31 = vsel %vm781_vm2, %v8163_v63, 0.0 }
 0x4f5   : > { %3800 = vmatpush.bf16.xpose.msra.mxu0 %v3782_v40  ;;  %v4021_v59 = vsel %vm727_vm0, %v3998_v39, 0  ;;  %v2426_v49 = vpop.f32.mrf.mxu1 }
 0x4f6   : > { %4027 = vmatpush.bf16.xpose.msrb.mxu2 %v4021_v59  ;;  %v2442_v40 = vpack.c.bf16 %v2426_v49, %v2426_v49  ;;  %v1037_v59 = vsub.f32 %v7813_v61, %v7981_v44 }
 0x4fc   : > { %1455 = vrot.lane.b32.xlu1 %v1432_v56, %s6232_s29  ;;  %v8166_v7 = vpop.permute.xlu2 %1453 }
 0x4fd   : > { %10107 = vst [vmem:[#allocation18_spill] sm:$0xff] %v8166_v7 }
 0x4fe   : > { %v1021_v10 = vpop.xlane.xlu1 %1020 }
 0x4ff   : > { %v1039_v24 = vsub.f32 %v8012_v47, %v1021_v10  ;;  %1083 = vadd.xlane.f32.xlu0 %v1082_v31 }
 0x501   : > { %v1049_v25 = vmul.f32 1.442695, %v1039_v24  ;;  %v1045_v24 = vmul.f32 1.442695, %v1037_v59 }
 0x503   : > { %5697 = vpow2.f32 %v1049_v25  ;;  %v8194_v25 = vpop.f32.mrf.mxu1 }
 0x504   : > { %4521 = vrot.lane.b32.xlu1 %v8053_v62, %s6231_s24  ;;  %v3242_v50 = vpop.permute.xlu2 %3241 }
 0x505   : > { %5267 = vmatmul.msk.bf16.gmra.mxu0 %vm727_vm0, %v3242_v50 }
 0x506   : > { %v1030_v9 = vpop.xlane.xlu1 %1029 }
 0x507   : > { %v1042_v45 = vsub.f32 %v8030_v11, %v1030_v9  ;;  %v1024_v11 = vpop.xlane.xlu0 %1023  ;;  %v2441_v9 = vpack.c.bf16 %v2424_v29, %v2424_v29 }
 0x508   : > { %v1040_v31 = vsub.f32 %v7890_v4, %v1024_v11 }
 0x509   : > { %v8175_v54 = vpop.eup %5697  ;;  %v1055_v43 = vmul.f32 1.442695, %v1042_v45 }
 0x50a   : > { %v1067_v47 = vsel %vm781_vm2, %v8175_v54, 0.0  ;;  %v1051_v50 = vmul.f32 1.442695, %v1040_v31 }
 0x50b   : > { %5699 = vpow2.f32 %v1055_v43  ;;  %1068 = vadd.xlane.f32.xlu2 %v1067_v47 }
 0x50c   : > { %v3994_v0 = vpop.permute.xlu2 %3993  ;;  %5701 = vpow2.f32 %v1045_v24 }
 0x50d   : > { %5703 = vpow2.f32 %v1051_v50 }
 0x50f   : > { %v8191_v10 = vpop.xlane.xlu0 %1032 }
 0x511   : > { %v8179_v14 = vpop.eup %5699 }
 0x512   : > { %v1076_v2 = vsel %vm781_vm2, %v8179_v14, 0.0  ;;  %v8204_v45 = vpop.eup %5701 }
 0x513   : > { %1077 = vadd.xlane.f32.xlu2 %v1076_v2  ;;  %2461 = vrot.lane.b32.xlu0 %v2442_v40, %s6232_s29  ;;  %v1061_v4 = vsel %vm781_vm2, %v8204_v45, 0.0  ;;  %v8214_v29 = vpop.eup %5703  ;;  %v3020_v2 = vpop.f32.mrf.mxu2 }
 0x514   : > { %v3244_v39 = vpop.permute.xlu2 %3243  ;;  %v1070_v40 = vsel %vm781_vm2, %v8214_v29, 0.0  ;;  %v8224_v59 = vadd.f32 %v3020_v2, %v6946_v13 }
 0x515   : > { %5268 = vmatmul.msk.bf16.gmra.mxu0 %vm727_vm0, %v3244_v39 }
 0x517   : > { %v8202_v44 = vpop.permute.xlu0 %1445 }
 0x51b   : > { %4519 = vrot.lane.b32.xlu0 %v8125_v20, %s6231_s24 }
 0x51e   : > { %v8189_v56 = vpop.permute.xlu1 %1443 }
 0x51f   : > { %v8212_v47 = vpop.permute.xlu0 %1451 }
 0x523   : > { %4259 = vrot.lane.b32.xlu0 %v8053_v62, %s6232_s29  ;;  %v2431_v62 = vpop.f32.mrf.mxu1 }
 0x524   : > { %v2444_v49 = vpack.c.bf16 %v2431_v62, %v2431_v62  ;;  %v3982_v62 = vpop.permute.xlu2 %3981 }
 0x525   : > { %5281 = vmatmul.msk.bf16.vlgmr.msra.gmra.mxu0 %vm727_vm0, %v8136_v16 }
 0x526   : > { %v8200_v61 = vpop.permute.xlu1 %1449 }
 0x527   : > { %v8226_v24 = vpop.xlane.xlu0 %2817 }
 0x52b   : > { %2459 = vrot.lane.b32.xlu2 %v2441_v9, %s6232_s29  ;;  %4511 = vrot.lane.b32.xlu0 %v8136_v16, %s6231_s24 }
 0x52c   : > { %v2434_v39 = vpop.f32.mrf.mxu1  ;;  %v4526_v2 = vpop.permute.xlu2 %4525 }
 0x52d   : > { %v2445_v31 = vpack.c.bf16 %v2434_v39, %v2434_v39 }
 0x52e   : > { %v3502_v43 = vpop.permute.xlu1 %3501  ;;  %1062 = vadd.xlane.f32.xlu1 %v1061_v4 }
 0x52f   : > { %5274 = vmatmul.msk.bf16.gmra.mxu2 %vm727_vm0, %v3502_v43  ;;  %v8233_v4 = vpop.xlane.xlu0 %2820 }
 0x533   : > { %2465 = vrot.lane.b32.xlu2 %v2444_v49, %s6232_s29  ;;  %4257 = vrot.lane.b32.xlu0 %v8125_v20, %s6232_s29  ;;  %v3040_v20 = vsel %vm781_vm2, %v8224_v59, -inf  ;;  %v4015_v49 = vsel %vm727_vm0, %v3994_v0, 0 }
 0x535   : > { %5282 = vmatmul.msk.bf16.gmra.mxu0 %vm727_vm0, %v8079_v32 }
 0x536   : > { %v3504_v11 = vpop.permute.xlu1 %3503  ;;  %1071 = vadd.xlane.f32.xlu1 %v1070_v40 }
 0x537   : > { %v8238_v40 = vpop.xlane.xlu0 %2823 }
 0x538   : > { %10108 = vst [vmem:[#allocation30_spill] sm:$0xff] %v8238_v40 }
 0x53b   : > { %2467 = vrot.lane.b32.xlu0 %v2445_v31, %s6232_s29  ;;  %v4549_v31 = vsel %vm727_vm0, %v4526_v2, 0 }
 0x53e   : > { %v3996_v50 = vpop.permute.xlu1 %3995  ;;  %3041 = vmax.xlane.f32.xlu1 %v3040_v20  ;;  %v3022_v20 = vpop.f32.mrf.mxu2 }
 0x53f   : > { %5275 = vmatmul.msk.bf16.gmra.mxu2 %vm727_vm0, %v3504_v11  ;;  %v4018_v9 = vsel %vm727_vm0, %v3996_v50, 0  ;;  %v2440_v50 = vpack.c.bf16 %v8161_v41, %v8161_v41 }
 0x540   : > { %4028 = vmatpush.bf16.xpose.msrb.mxu2 %v4018_v9  ;;  %v4524_v9 = vpop.permute.xlu0 %4523 }
 0x545   : > { %5283 = vmatmul.msk.bf16.gmra.mxu0 %vm727_vm0, %v8148_v51 }
 0x546   : > { %v3506_v43 = vpop.permute.xlu1 %3505 }
 0x548   : > { %4029 = vmatpush.bf16.xpose.msrb.mxu2 %v4015_v49  ;;  %v8248_v49 = vadd.f32 %v3022_v20, %v6962_v28  ;;  %v1066_v7 = vpop.xlane.xlu0 %1065 }
 0x54a   : > { %v3043_v2 = vsel %vm781_vm2, %v8248_v49, -inf }
 0x54e   : > { %v3992_v39 = vpop.permute.xlu1 %3991 }
 0x54f   : > { %5276 = vmatmul.msk.bf16.gmra.mxu2 %vm727_vm0, %v3506_v43  ;;  %v4012_v11 = vsel %vm727_vm0, %v3992_v39, 0  ;;  %v4546_v43 = vsel %vm727_vm0, %v4524_v9, 0  ;;  %v3025_v39 = vpop.f32.mrf.mxu2 }
 0x550   : > { %4030 = vmatpush.bf16.xpose.msrb.mxu2 %v4012_v11  ;;  %v8256_v41 = vadd.f32 %v3025_v39, %v6984_v12  ;;  %v8266_v39 = vpop.xlane.xlu0 %1074  ;;  %v1043_v12 = vsub.f32 %v7906_v52, %v8191_v10 }
 0x552   : > { %v3046_v20 = vsel %vm781_vm2, %v8256_v41, -inf }
 0x555   : > { %5284 = vmatmul.msk.bf16.gmra.mxu0 %vm727_vm0, %v8103_v21 }
 0x556   : > { %v3980_v0 = vpop.permute.xlu1 %3979 }
 0x557   : > { %2457 = vrot.lane.b32.xlu1 %v2440_v50, %s6232_s29  ;;  %v2802_v50 = vpop.f32.mrf.mxu0 }
 0x558   : > { %4555 = vmatpush.bf16.xpose.msra.mxu2 %v4549_v31  ;;  %v3986_v31 = vpop.permute.xlu2 %3985 }
 0x55c   : > { %3044 = vmax.xlane.f32.xlu2 %v3043_v2 }
 0x55e   : > { %v3984_v11 = vpop.permute.xlu1 %3983 }
 0x55f   : > { %5289 = vmatmul.msk.bf16.vlgmr.msrb.gmra.mxu2 %vm727_vm0, %v3980_v0 }
 0x560   : > { %4556 = vmatpush.bf16.xpose.msra.mxu2 %v4546_v43  ;;  %v8262_v43 = vadd.f32 %v2802_v50, %v7033_v36  ;;  %v4262_v2 = vpop.permute.xlu2 %4261  ;;  %v8276_v50 = vpop.permute.xlu0 %2455 }
 0x561   : > { %10111 = vst [vmem:[#allocation32_spill] sm:$0xff] %v8276_v50 }
 0x562   : > { %10109 = vst [vmem:[#allocation19_spill] sm:$0xff] %v8262_v43  ;;  %v2825_v0 = vsel %vm781_vm2, %v8262_v43, -inf }
 0x565   : > { %3047 = vmax.xlane.f32.xlu0 %v3046_v20  ;;  %v1057_v20 = vmul.f32 1.442695, %v1043_v12  ;;  %v3027_v12 = vpop.f32.mrf.mxu2 }
 0x566   : > { %v4264_v48 = vpop.permute.xlu1 %4263 }
 0x567   : > { %v4287_v9 = vsel %vm727_vm0, %v4264_v48, 0  ;;  %v4284_v48 = vsel %vm727_vm0, %v4262_v2, 0  ;;  %5705 = vpow2.f32 %v1057_v20 }
 0x568   : > { %4293 = vmatpush.bf16.xpose.msrb.mxu0 %v4287_v9  ;;  %5707 = vrcp.f32 %v1066_v7 }
 0x56d   : > { %2826 = vmax.xlane.f32.xlu0 %v2825_v0  ;;  %v8279_v0 = vpop.eup %5705  ;;  %v3030_v10 = vpop.f32.mrf.mxu2 }
 0x56e   : > { %v8268_v40 = vpop.permute.xlu1 %1455  ;;  %v1079_v52 = vsel %vm781_vm2, %v8279_v0, 0.0  ;;  %v8298_v20 = vadd.f32 %v3030_v10, %v7019_v8 }
 0x56f   : > { %10110 = vst [vmem:[#allocation16_spill] sm:$0xff] %v8268_v40  ;;  %5290 = vmatmul.msk.bf16.gmra.mxu2 %vm727_vm0, %v3982_v62 }
 0x570   : > { %4294 = vmatpush.bf16.xpose.msrb.mxu0 %v4284_v48 }
 0x572   : > { %v8281_v40 = vpop.xlane.xlu0 %1083 }
 0x574   : > { %4249 = vrot.lane.b32.xlu2 %v8136_v16, %s6232_s29 }
 0x576   : > { %v4522_v9 = vpop.permute.xlu1 %4521 }
 0x577   : > { %v4543_v43 = vsel %vm727_vm0, %v4522_v9, 0  ;;  %v2443_v9 = vpack.c.bf16 %v8194_v25, %v8194_v25 }
 0x578   : > { %4557 = vmatpush.bf16.xpose.msra.mxu2 %v4543_v43 }
 0x57e   : > { %v1069_v50 = vpop.xlane.xlu2 %1068 }
 0x57f   : > { %5291 = vmatmul.msk.bf16.gmra.mxu2 %vm727_vm0, %v3984_v11  ;;  %v8294_v11 = vpop.f32.mrf.mxu2 }
 0x581   : > { %1080 = vadd.xlane.f32.xlu1 %v1079_v52  ;;  %4251 = vrot.lane.b32.xlu0 %v8079_v32, %s6232_s29 }
 0x585   : > { %v8288_v16 = vpop.permute.xlu0 %2461 }
 0x586   : > { %10112 = vst [vmem:[#allocation36_spill] sm:$0xff] %v8288_v16 }
 0x587   : > { %v3035_v52 = vpop.f32.mrf.mxu2 }
 0x589   : > { %4515 = vrot.lane.b32.xlu0 %v8148_v51, %s6231_s24 }
 0x58d   : > { %v4520_v62 = vpop.permute.xlu0 %4519 }
 0x58e   : > { %v4540_v43 = vsel %vm727_vm0, %v4520_v62, 0 }
 0x58f   : > { %5292 = vmatmul.msk.bf16.gmra.mxu2 %vm727_vm0, %v3986_v31  ;;  %v3052_v31 = vsel %vm781_vm2, %v8298_v20, -inf  ;;  %v3037_v7 = vpop.f32.mrf.mxu2 }
 0x590   : > { %4558 = vmatpush.bf16.xpose.msra.mxu2 %v4540_v43  ;;  %v8307_v43 = vadd.f32 %v3035_v52, %v7051_v34 }
 0x592   : > { %v3058_v25 = vsel %vm781_vm2, %v8307_v43, -inf }
 0x595   : > { %v4260_v2 = vpop.permute.xlu0 %4259 }
 0x596   : > { %v4281_v48 = vsel %vm727_vm0, %v4260_v2, 0  ;;  %v5708_v2 = vpop.eup %5707 }
 0x597   : > { %4295 = vmatpush.bf16.xpose.msrb.mxu0 %v4281_v48 }
 0x59a   : > { %2463 = vrot.lane.b32.xlu1 %v2443_v9, %s6232_s29 }
 0x59d   : > { %3053 = vmax.xlane.f32.xlu2 %v3052_v31  ;;  %v4512_v62 = vpop.permute.xlu0 %4511  ;;  %v1094_v31 = vmul.f32 %v5708_v2, %v8077_v35 }
 0x59f   : > { %5305 = vmatmul.msk.bf16.vlgmr.msra.gmra.mxu2 %vm727_vm0, %v4512_v62 }
 0x5a1   : > { %v1063_v10 = vpop.xlane.xlu1 %1062 }
 0x5a2   : > { %5709 = vrcp.f32 %v1063_v10  ;;  %v10113_v10 = vld [vmem:[#allocation63_spill] sm:$0xff] }
 0x5a5   : > { %3059 = vmax.xlane.f32.xlu2 %v3058_v25  ;;  %v4258_v48 = vpop.permute.xlu0 %4257  ;;  %v8317_v25 = vadd.f32 %v3037_v7, %v7070_v46 }
 0x5a6   : > { %v4278_v9 = vsel %vm727_vm0, %v4258_v48, 0  ;;  %v10114_v48 = vld [vmem:[#allocation69_spill] sm:$0xff] }
 0x5a7   : > { %4296 = vmatpush.bf16.xpose.msrb.mxu0 %v4278_v9  ;;  %v1078_v9 = vpop.xlane.xlu2 %1077  ;;  %v3061_v35 = vsel %vm781_vm2, %v8317_v25, -inf }
 0x5a8   : > { %v5710_v16 = vpop.eup %5709 }
 0x5a9   : > { %v1093_v62 = vmul.f32 %v5710_v16, %v8204_v45  ;;  %v1072_v8 = vpop.xlane.xlu1 %1071  ;;  %v10115_v16 = vld [vmem:[#allocation48_spill] sm:$0xff] }
 0x5aa   : > { %5711 = vrcp.f32 %v1072_v8 }
 0x5ab   : > { %v1101_v52 = vpack.c.bf16 %v1094_v31, %v1093_v62  ;;  %5713 = vrcp.f32 %v1069_v50  ;;  %v10116_v62 = vld [vmem:[#allocation49_spill] sm:$0xff]  ;;  %v8332_v50 = vadd.f32 %v3027_v12, %v6999_v3 }
 0x5ac   : > { %5715 = vrcp.f32 %v1078_v9 }
 0x5ad   : > { %5197 = vmatmul.msk.bf16.vlgmr.msra.gmra.mxu3 %vm781_vm2, %v1101_v52  ;;  %5717 = vrcp.f32 %v8266_v39  ;;  %v8344_v39 = vpop.f32.mrf.mxu0 }
 0x5ae   : > { %2152 = vmatpush.bf16.msra.mxu3 %v10113_v10 }
 0x5af   : > { %v8326_v7 = vpop.permute.xlu2 %2459 }
 0x5b0   : > { %v5712_v2 = vpop.eup %5711  ;;  %10117 = vst [vmem:[#allocation45_spill] sm:$0xff] %v8326_v7 }
 0x5b1   : > { %v5714_v45 = vpop.eup %5713  ;;  %v1096_v31 = vmul.f32 %v5712_v2, %v8214_v29  ;;  %v3049_v29 = vsel %vm781_vm2, %v8332_v50, -inf }
 0x5b2   : > { %2153 = vmatpush.bf16.msra.mxu3 %v10114_v48  ;;  %v1095_v8 = vmul.f32 %v5714_v45, %v8175_v54  ;;  %v5716_v54 = vpop.eup %5715 }
 0x5b3   : > { %3062 = vmax.xlane.f32.xlu0 %v3061_v35  ;;  %v5718_v10 = vpop.eup %5717  ;;  %v1098_v48 = vmul.f32 %v5716_v54, %v8179_v14 }
 0x5b4   : > { %v1102_v52 = vpack.c.bf16 %v1096_v31, %v1095_v8  ;;  %v1097_v9 = vmul.f32 %v5718_v10, %v8090_v17  ;;  %v8347_v31 = vpop.permute.xlu0 %2467 }
 0x5b5   : > { %10119 = vst [vmem:[#allocation26_spill] sm:$0xff] %v8347_v31  ;;  %v2807_v8 = vpop.f32.mrf.mxu0 }
 0x5b6   : > { %2154 = vmatpush.bf16.msra.mxu3 %v10115_v16  ;;  %v1103_v2 = vpack.c.bf16 %v1098_v48, %v1097_v9  ;;  %v2436_v16 = vpop.f32.mrf.mxu1  ;;  %v8353_v17 = vadd.f32 %v2807_v8, %v7070_v46 }
 0x5b7   : > { %v8338_v35 = vpop.permute.xlu2 %2465  ;;  %v2446_v14 = vpack.c.bf16 %v2436_v16, %v2436_v16 }
 0x5b8   : > { %10118 = vst [vmem:[#allocation47_spill] sm:$0xff] %v8338_v35  ;;  %v2831_v54 = vsel %vm781_vm2, %v8353_v17, -inf }
 0x5ba   : > { %2155 = vmatpush.bf16.msra.mxu3 %v10116_v62 }
 0x5bd   : > { %3142 = vrot.lane.b32.xlu2 %v7806_v33, %s6233_s28  ;;  %5198 = vmatmul.msk.bf16.gmra.mxu3 %vm781_vm2, %v1102_v52 }
 0x5c4   : > { %3050 = vmax.xlane.f32.xlu1 %v3049_v29  ;;  %v3042_v29 = vpop.xlane.xlu1 %3041 }
 0x5c7   : > { %4253 = vrot.lane.b32.xlu0 %v8148_v51, %s6232_s29  ;;  %v2835_v51 = vsub.f32 %v7798_v53, %v7975_v18 }
 0x5c9   : > { %v2844_v52 = vmul.f32 1.442695, %v2835_v51 }
 0x5cb   : > { %5719 = vpow2.f32 %v2844_v52 }
 0x5cc   : > { %v8361_v10 = vpop.permute.xlu1 %2457  ;;  %5721 = vrcp.f32 %v8281_v40  ;;  %v3064_v40 = vsub.f32 %v8224_v59, %v3042_v29 }
 0x5cd   : > { %5199 = vmatmul.msk.bf16.gmra.mxu3 %vm781_vm2, %v1103_v2 }
 0x5cf   : > { %v3045_v12 = vpop.xlane.xlu2 %3044 }
 0x5d1   : > { %v8365_v53 = vpop.eup %5719 }
 0x5d2   : > { %v2861_v18 = vsel %vm781_vm2, %v8365_v53, 0.0 }
 0x5d7   : > { %v4250_v45 = vpop.permute.xlu2 %4249 }
 0x5d8   : > { %5297 = vmatmul.msk.bf16.vlgmr.msrb.gmra.mxu0 %vm727_vm0, %v4250_v45  ;;  %v8355_v62 = vpop.xlane.xlu0 %3047 }
 0x5dd   : > { %2469 = vrot.lane.b32.xlu1 %v2446_v14, %s6232_s29 }
 0x5e0   : > { %v8363_v48 = vpop.xlane.xlu0 %2826 }
 0x5e5   : > { %4513 = vrot.lane.b32.xlu1 %v8079_v32, %s6231_s24  ;;  %v5722_v32 = vpop.eup %5721 }
 0x5e6   : > { %2832 = vmax.xlane.f32.xlu2 %v2831_v54  ;;  %v1100_v16 = vmul.f32 %v5722_v32, %v8163_v63  ;;  %v3072_v63 = vmul.f32 1.442695, %v3064_v40  ;;  %v10120_v54 = vld [vmem:[#allocation80_spill] sm:$0xff]  ;;  %v10122_v32 = vld [vmem:[#allocation65_spill] sm:$0xff] }
 0x5e7   : > { %v10126_v40 = vld [vmem:[#allocation37_spill] sm:$0xff] }
 0x5f1   : > { %2862 = vadd.xlane.f32.xlu0 %v2861_v18  ;;  %v8384_v18 = vadd.f32 %v8294_v11, %v7033_v36  ;;  %v10123_v11 = vld [vmem:[#allocation21_spill] sm:$0xff] }
 0x5f3   : > { %v4252_v2 = vpop.permute.xlu0 %4251  ;;  %v3055_v59 = vsel %vm781_vm2, %v8384_v18, -inf }
 0x5f4   : > { %v1081_v9 = vpop.xlane.xlu1 %1080  ;;  %5298 = vmatmul.msk.bf16.gmra.mxu0 %vm727_vm0, %v4252_v2 }
 0x5f5   : > { %5723 = vrcp.f32 %v1081_v9  ;;  %v10121_v9 = vld [vmem:[#allocation79_spill] sm:$0xff] }
 0x5f6   : > { %5725 = vrcp.f32 %v7602_v30  ;;  %v3065_v30 = vsub.f32 %v8248_v49, %v3045_v12 }
 0x5f7   : > { %5727 = vrcp.f32 %v7594_v5 }
 0x5f8   : > { %5729 = vpow2.f32 %v3072_v63  ;;  %v3074_v29 = vmul.f32 1.442695, %v3065_v30  ;;  %v8411_v30 = vadd.f32 %v8344_v39, %v7051_v34  ;;  %v10133_v39 = vld [vmem:[#allocation76_spill] sm:$0xff] }
 0x5f9   : > { %5731 = vrcp.f32 %v7645_v6 }
 0x5fa   : > { %5733 = vrcp.f32 %v10123_v11  ;;  %v10131_v11 = vld [vmem:[#allocation25_spill] sm:$0xff] }
 0x5fb   : > { %v5724_v45 = vpop.eup %5723  ;;  %5735 = vpow2.f32 %v3074_v29 }
 0x5fc   : > { %v1099_v14 = vmul.f32 %v5724_v45, %v8279_v0  ;;  %v5726_v51 = vpop.eup %5725 }
 0x5fd   : > { %v5728_v52 = vpop.eup %5727  ;;  %v1624_v0 = vmul.f32 %v5726_v51, %v10120_v54  ;;  %v10128_v54 = vld [vmem:[#allocation55_spill] sm:$0xff] }
 0x5fe   : > { %3138 = vrot.lane.b32.xlu2 %v7828_v37, %s6233_s28  ;;  %v1104_v8 = vpack.c.bf16 %v1100_v16, %v1099_v14  ;;  %v1623_v2 = vmul.f32 %v5728_v52, %v10121_v9  ;;  %v8393_v45 = vpop.eup %5729  ;;  %v10124_v16 = vld [vmem:[#allocation54_spill] sm:$0xff]  ;;  %v10127_v52 = vld [vmem:[#allocation81_spill] sm:$0xff] }
 0x5ff   : > { %v3088_v49 = vsel %vm781_vm2, %v8393_v45, 0.0  ;;  %v5732_v12 = vpop.eup %5731 }
 0x600   : > { %5200 = vmatmul.msk.bf16.gmra.mxu3 %vm781_vm2, %v1104_v8  ;;  %v1631_v5 = vpack.c.bf16 %v1624_v0, %v1623_v2  ;;  %v5734_v14 = vpop.eup %5733  ;;  %v10125_v8 = vld [vmem:[#allocation58_spill] sm:$0xff]  ;;  %v1626_v6 = vmul.f32 %v5732_v12, %v10126_v40  ;;  %v10129_v2 = vld [vmem:[#allocation72_spill] sm:$0xff]  ;;  %v10132_v12 = vld [vmem:[#allocation31_spill] sm:$0xff] }
 0x601   : > { %v8401_v51 = vpop.eup %5735  ;;  %v1625_v63 = vmul.f32 %v5734_v14, %v10127_v52  ;;  %5737 = vrcp.f32 %v10129_v2  ;;  %v10135_v2 = vld [vmem:[#allocation83_spill] sm:$0xff] }
 0x602   : > { %v3091_v0 = vsel %vm781_vm2, %v8401_v51, 0.0 }
 0x603   : > { %v1632_v9 = vpack.c.bf16 %v1626_v6, %v1625_v63  ;;  %v10134_v63 = vld [vmem:[#allocation74_spill] sm:$0xff] }
 0x606   : > { %4517 = vrot.lane.b32.xlu2 %v8103_v21, %s6231_s24 }
 0x607   : > { %v5738_v29 = vpop.eup %5737 }
 0x60f   : > { %3056 = vmax.xlane.f32.xlu1 %v3055_v59  ;;  %v2828_v59 = vsel %vm781_vm2, %v8411_v30, -inf }
 0x610   : > { %5213 = vmatmul.msk.bf16.vlgmr.msrb.gmra.mxu3 %vm781_vm2, %v1631_v5  ;;  %v10130_v5 = vld [vmem:[#allocation23_spill] sm:$0xff] }
 0x611   : > { %2676 = vmatpush.bf16.msrb.mxu3 %v10122_v32  ;;  %5739 = vrcp.f32 %v10130_v5 }
 0x612   : > { %5741 = vrcp.f32 %v10133_v39 }
 0x613   : > { %5743 = vrcp.f32 %v10134_v63 }
 0x615   : > { %2677 = vmatpush.bf16.msrb.mxu3 %v10124_v16  ;;  %v1628_v16 = vmul.f32 %v5738_v29, %v10131_v11  ;;  %v10136_v29 = vld [vmem:[#allocation82_spill] sm:$0xff]  ;;  %v8431_v11 = vpop.xlane.xlu2 %3053 }
 0x617   : > { %3089 = vadd.xlane.f32.xlu1 %v3088_v49  ;;  %v5740_v32 = vpop.eup %5739  ;;  %v8417_v49 = vpop.permute.xlu0 %4515 }
 0x618   : > { %v1627_v14 = vmul.f32 %v5740_v32, %v10132_v12  ;;  %v8433_v12 = vpop.permute.xlu1 %2463 }
 0x619   : > { %2678 = vmatpush.bf16.msrb.mxu3 %v10125_v8 }
 0x61a   : > { %v1633_v8 = vpack.c.bf16 %v1628_v16, %v1627_v14  ;;  %v10137_v14 = vld [vmem:[#allocation53_spill] sm:$0xff] }
 0x61d   : > { %2679 = vmatpush.bf16.msrb.mxu3 %v10128_v54  ;;  %v5742_v54 = vpop.eup %5741  ;;  %v8441_v63 = vpop.xlane.xlu2 %3059 }
 0x61e   : > { %v1630_v5 = vmul.f32 %v5742_v54, %v10135_v2 }
 0x61f   : > { %3092 = vadd.xlane.f32.xlu1 %v3091_v0 }
 0x620   : > { %5214 = vmatmul.msk.bf16.gmra.mxu3 %vm781_vm2, %v1632_v9  ;;  %v5744_v9 = vpop.eup %5743 }
 0x621   : > { %v1629_v32 = vmul.f32 %v5744_v9, %v10136_v29  ;;  %v3548_v29 = vpop.f32.mrf.mxu2 }
 0x623   : > { %v1634_v16 = vpack.c.bf16 %v1630_v5, %v1629_v32  ;;  %v10140_v5 = vld [vmem:[#allocation24_spill] sm:$0xff] }
 0x624   : > { %v10141_v32 = vld [vmem:[#allocation84_spill] sm:$0xff] }
 0x626   : > { %v8422_v52 = vpop.xlane.xlu0 %3062 }
 0x627   : > { %2829 = vmax.xlane.f32.xlu1 %v2828_v59 }
 0x629   : > { %v3550_v35 = vpop.f32.mrf.mxu2 }
 0x630   : > { %v1142_v40 = vpop.f32.mrf.mxu3  ;;  %5215 = vmatmul.msk.bf16.gmra.mxu3 %vm781_vm2, %v1633_v8 }
 0x631   : > { %v1162_v6 = vpack.c.bf16 %v1142_v40, %v1142_v40  ;;  %v10138_v40 = vld [vmem:[#allocation44_spill] sm:$0xff] }
 0x632   : > { %5745 = vrcp.f32 %v10138_v40  ;;  %v3143_v40 = vpop.permute.xlu2 %3142 }
 0x633   : > { %1178 = vrot.lane.b32.xlu0 %v1162_v6, %s6231_s24  ;;  %v10139_v6 = vld [vmem:[#allocation86_spill] sm:$0xff] }
 0x634   : > { %5747 = vrcp.f32 %v10139_v6  ;;  %v3066_v6 = vsub.f32 %v8256_v41, %v8355_v62 }
 0x637   : > { %v8443_v9 = vpop.xlane.xlu1 %3050 }
 0x638   : > { %v8426_v0 = vpop.f32.mrf.mxu3  ;;  %v5746_v54 = vpop.eup %5745 }
 0x639   : > { %v4254_v59 = vpop.permute.xlu0 %4253 }
 0x63a   : > { %5299 = vmatmul.msk.bf16.gmra.mxu0 %vm727_vm0, %v4254_v59  ;;  %v5748_v2 = vpop.eup %5747  ;;  %v2109_v59 = vmul.f32 %v5746_v54, %v10140_v5  ;;  %v3076_v54 = vmul.f32 1.442695, %v3066_v6  ;;  %v10149_v6 = vld [vmem:[#allocation35_spill] sm:$0xff] }
 0x63b   : > { %v2108_v31 = vmul.f32 %v5748_v2, %v10141_v32  ;;  %v10145_v2 = vld [vmem:[#allocation28_spill] sm:$0xff]  ;;  %v10146_v32 = vld [vmem:[#allocation22_spill] sm:$0xff] }
 0x63d   : > { %v2116_v37 = vpack.c.bf16 %v2109_v59, %v2108_v31  ;;  %v2834_v31 = vsub.f32 %v10145_v2, %v7900_v60  ;;  %v8457_v59 = vadd.f32 %v3550_v35, %v6962_v28  ;;  %v10148_v35 = vld [vmem:[#allocation39_spill] sm:$0xff] }
 0x63f   : > { %v3571_v41 = vsel %vm781_vm2, %v8457_v59, -inf }
 0x640   : > { %3140 = vrot.lane.b32.xlu1 %v10137_v14, %s6233_s28  ;;  %v1147_v8 = vpop.f32.mrf.mxu3  ;;  %5216 = vmatmul.msk.bf16.gmra.mxu3 %vm781_vm2, %v1634_v16 }
 0x641   : > { %v1164_v39 = vpack.c.bf16 %v1147_v8, %v1147_v8  ;;  %v10143_v8 = vld [vmem:[#allocation46_spill] sm:$0xff] }
 0x642   : > { %5749 = vrcp.f32 %v10143_v8  ;;  %v10147_v8 = vld [vmem:[#allocation85_spill] sm:$0xff] }
 0x643   : > { %1182 = vrot.lane.b32.xlu2 %v1164_v39, %s6231_s24  ;;  %v10144_v39 = vld [vmem:[#allocation42_spill] sm:$0xff] }
 0x644   : > { %5751 = vrcp.f32 %v10144_v39 }
 0x645   : > { %5753 = vpow2.f32 %v3076_v54 }
 0x648   : > { %v5750_v14 = vpop.eup %5749 }
 0x64f   : > { %v8447_v16 = vpop.permute.xlu1 %2469 }
 0x650   : > { %10142 = vst [vmem:[#allocation29_spill] sm:$0xff] %v8447_v16  ;;  %5229 = vmatmul.msk.bf16.vlgmr.msra.gmra.mxu3 %vm781_vm2, %v2116_v37  ;;  %v5752_v37 = vpop.eup %5751  ;;  %v2842_v16 = vmul.f32 1.442695, %v2834_v31  ;;  %v8476_v31 = vadd.f32 %v3548_v29, %v6946_v13 }
 0x651   : > { %3164 = vmatpush.bf16.msra.mxu3 %v3143_v40  ;;  %v2111_v40 = vmul.f32 %v5750_v14, %v10146_v32  ;;  %v2110_v39 = vmul.f32 %v5752_v37, %v10147_v8  ;;  %v8465_v60 = vpop.eup %5753 }
 0x652   : > { %5755 = vpow2.f32 %v2842_v16  ;;  %v3094_v14 = vsel %vm781_vm2, %v8465_v60, 0.0  ;;  %v1149_v16 = vpop.f32.mrf.mxu3 }
 0x653   : > { %v2117_v62 = vpack.c.bf16 %v2111_v40, %v2110_v39  ;;  %5757 = vrcp.f32 %v10148_v35  ;;  %v10150_v40 = vld [vmem:[#allocation52_spill] sm:$0xff]  ;;  %v3568_v39 = vsel %vm781_vm2, %v8476_v31, -inf  ;;  %v1165_v7 = vpack.c.bf16 %v1149_v16, %v1149_v16  ;;  %v10155_v16 = vld [vmem:[#allocation50_spill] sm:$0xff] }
 0x654   : > { %5759 = vrcp.f32 %v10149_v6  ;;  %v10152_v6 = vld [vmem:[#allocation17_spill] sm:$0xff] }
 0x655   : > { %5761 = vrcp.f32 %v7925_v55 }
 0x656   : > { %5763 = vrcp.f32 %v10152_v6 }
 0x657   : > { %v4514_v5 = vpop.permute.xlu1 %4513  ;;  %5765 = vrcp.f32 %v7934_v38 }
 0x658   : > { %5306 = vmatmul.msk.bf16.gmra.mxu2 %vm727_vm0, %v4514_v5  ;;  %v8473_v54 = vpop.eup %5755  ;;  %5767 = vrcp.f32 %v7915_v42 }
 0x659   : > { %v8469_v5 = vpop.xlane.xlu2 %2832  ;;  %v5758_v2 = vpop.eup %5757  ;;  %v2858_v32 = vsel %vm781_vm2, %v8473_v54, 0.0  ;;  %5769 = vrcp.f32 %v7946_v58  ;;  %v10159_v58 = vld [vmem:[#allocation59_spill] sm:$0xff] }
 0x65a   : > { %v5760_v37 = vpop.eup %5759  ;;  %v2112_v8 = vmul.f32 %v5758_v2, %v10150_v40  ;;  %5771 = vrcp.f32 %v7948_v19 }
 0x65b   : > { %5773 = vrcp.f32 %v7954_v26 }
 0x65c   : > { %5775 = vrcp.f32 %v7965_v27 }
 0x65d   : > { %3572 = vmax.xlane.f32.xlu0 %v3571_v41  ;;  %v10151_v41 = vld [vmem:[#allocation38_spill] sm:$0xff] }
 0x660   : > { %5230 = vmatmul.msk.bf16.gmra.mxu3 %vm781_vm2, %v2117_v62  ;;  %v2113_v62 = vmul.f32 %v5760_v37, %v10151_v41  ;;  %v10153_v37 = vld [vmem:[#allocation73_spill] sm:$0xff]  ;;  %v10154_v41 = vld [vmem:[#allocation51_spill] sm:$0xff] }
 0x661   : > { %v8486_v35 = vpop.permute.xlu2 %3138 }
 0x662   : > { %v2118_v29 = vpack.c.bf16 %v2113_v62, %v2112_v8 }
 0x664   : > { %v8526_v19 = vpop.xlane.xlu0 %2862 }
 0x665   : > { %3095 = vadd.xlane.f32.xlu0 %v3094_v14  ;;  %v5762_v14 = vpop.eup %5761 }
 0x666   : > { %v2115_v40 = vmul.f32 %v5762_v14, %v10153_v37  ;;  %v1163_v14 = vpack.c.bf16 %v8426_v0, %v8426_v0  ;;  %v10157_v37 = vld [vmem:[#allocation27_spill] sm:$0xff] }
 0x668   : > { %5307 = vmatmul.msk.bf16.gmra.mxu2 %vm727_vm0, %v8417_v49  ;;  %v1152_v49 = vpop.f32.mrf.mxu3 }
 0x669   : > { %v4518_v2 = vpop.permute.xlu2 %4517 }
 0x66a   : > { %2859 = vadd.xlane.f32.xlu1 %v2858_v32  ;;  %v5764_v32 = vpop.eup %5763 }
 0x66b   : > { %v2114_v8 = vmul.f32 %v5764_v32, %v10154_v41  ;;  %v1166_v41 = vpack.c.bf16 %v1152_v49, %v1152_v49 }
 0x66c   : > { %3569 = vmax.xlane.f32.xlu2 %v3568_v39 }
 0x66d   : > { %v2119_v62 = vpack.c.bf16 %v2115_v40, %v2114_v8 }
 0x670   : > { %5231 = vmatmul.msk.bf16.gmra.mxu3 %vm781_vm2, %v2118_v29  ;;  %v1154_v39 = vpop.f32.mrf.mxu3 }
 0x671   : > { %v1167_v55 = vpack.c.bf16 %v1154_v39, %v1154_v39 }
 0x678   : > { %5308 = vmatmul.msk.bf16.gmra.mxu2 %vm727_vm0, %v4518_v2  ;;  %v10156_v2 = vld [vmem:[#allocation77_spill] sm:$0xff] }
 0x679   : > { %1184 = vrot.lane.b32.xlu0 %v1165_v7, %s6231_s24  ;;  %v5766_v7 = vpop.eup %5765 }
 0x67a   : > { %v5768_v6 = vpop.eup %5767  ;;  %v2637_v32 = vmul.f32 %v5766_v7, %v10156_v2  ;;  %v3286_v7 = vpop.f32.mrf.mxu0  ;;  %v2836_v2 = vsub.f32 %v7984_v22, %v8226_v24 }
 0x67b   : > { %v2636_v42 = vmul.f32 %v5768_v6, %v10157_v37  ;;  %v10158_v6 = vld [vmem:[#allocation78_spill] sm:$0xff] }
 0x67d   : > { %v2644_v39 = vpack.c.bf16 %v2637_v32, %v2636_v42  ;;  %v8529_v42 = vadd.f32 %v3286_v7, %v6946_v13 }
 0x67f   : > { %v3306_v24 = vsel %vm781_vm2, %v8529_v42, -inf }
 0x680   : > { %5232 = vmatmul.msk.bf16.gmra.mxu3 %vm781_vm2, %v2119_v62  ;;  %v5770_v62 = vpop.eup %5769 }
 0x682   : > { %v8510_v40 = vpop.xlane.xlu1 %3056 }
 0x683   : > { %3136 = vrot.lane.b32.xlu1 %v10155_v16, %s6233_s28  ;;  %v8500_v29 = vpop.f32.mrf.mxu3 }
 0x684   : > { %1188 = vrot.lane.b32.xlu2 %v1167_v55, %s6231_s24  ;;  %v5772_v55 = vpop.eup %5771 }
 0x685   : > { %v2639_v49 = vmul.f32 %v5772_v55, %v10159_v58  ;;  %v3288_v55 = vpop.f32.mrf.mxu0  ;;  %v5774_v26 = vpop.eup %5773  ;;  %v10160_v58 = vld [vmem:[#allocation87_spill] sm:$0xff] }
 0x686   : > { %v5776_v27 = vpop.eup %5775 }
 0x68a   : > { %v8518_v8 = vpop.xlane.xlu1 %3089 }
 0x68b   : > { %1180 = vrot.lane.b32.xlu1 %v1163_v14, %s6231_s24  ;;  %v8507_v38 = vpop.f32.mrf.mxu3  ;;  %v2638_v14 = vmul.f32 %v5770_v62, %v10158_v6  ;;  %v2837_v62 = vsub.f32 %v7994_v1, %v8233_v4  ;;  %v8546_v6 = vadd.f32 %v3288_v55, %v6962_v28  ;;  %v2640_v1 = vmul.f32 %v5774_v26, %v10160_v58  ;;  %v10162_v26 = vld [vmem:[#allocation41_spill] sm:$0xff] }
 0x690   : > { %5245 = vmatmul.msk.bf16.vlgmr.msrb.gmra.mxu3 %vm781_vm2, %v2644_v39  ;;  %v2645_v39 = vpack.c.bf16 %v2639_v49, %v2638_v14  ;;  %v2848_v14 = vmul.f32 1.442695, %v2837_v62  ;;  %v3309_v49 = vsel %vm781_vm2, %v8546_v6, -inf }
 0x692   : > { %v8534_v22 = vpop.xlane.xlu1 %3092 }
 0x693   : > { %1186 = vrot.lane.b32.xlu1 %v1166_v41, %s6231_s24  ;;  %v8516_v0 = vpop.f32.mrf.mxu3  ;;  %v2846_v41 = vmul.f32 1.442695, %v2836_v2 }
 0x695   : > { %5777 = vpow2.f32 %v2846_v41  ;;  %v10161_v41 = vld [vmem:[#allocation88_spill] sm:$0xff] }
 0x696   : > { %5779 = vpow2.f32 %v2848_v14 }
 0x697   : > { %5781 = vrcp.f32 %v8085_v57  ;;  %v10164_v57 = vld [vmem:[#allocation75_spill] sm:$0xff] }
 0x698   : > { %5783 = vrcp.f32 %v10162_v26  ;;  %v1688_v26 = vpack.c.bf16 %v8516_v0, %v8516_v0 }
 0x69a   : > { %v8554_v4 = vpop.xlane.xlu1 %2829 }
 0x69b   : > { %v8523_v32 = vpop.f32.mrf.mxu3  ;;  %v8551_v2 = vpop.eup %5777 }
 0x69d   : > { %v1183_v37 = vpop.permute.xlu2 %1182 }
 0x69e   : > { %1205 = vst.msk [vmem:[#allocation2 + $0x8] sm:$0xf] %vm1202_vm11, %v1183_v37  ;;  %v3067_v37 = vsub.f32 %v8332_v50, %v8443_v9 }
 0x69f   : > { %1468 = vst.msk [vmem:[#allocation2 + $0x8] sm:$0xf] %vm1465_vm12, %v8202_v44 }
 0x6a0   : > { %5246 = vmatmul.msk.bf16.gmra.mxu3 %vm781_vm2, %v2645_v39  ;;  %v3078_v55 = vmul.f32 1.442695, %v3067_v37 }
 0x6a2   : > { %5785 = vpow2.f32 %v3078_v55 }
 0x6a3   : > { %v8543_v7 = vpop.f32.mrf.mxu3  ;;  %3307 = vmax.xlane.f32.xlu0 %v3306_v24  ;;  %v2641_v24 = vmul.f32 %v5776_v27, %v10161_v41  ;;  %5787 = vrcp.f32 %v8526_v19 }
 0x6a5   : > { %v1179_v44 = vpop.permute.xlu0 %1178  ;;  %v2646_v62 = vpack.c.bf16 %v2641_v24, %v2640_v1 }
 0x6a6   : > { %1203 = vst.msk [vmem:[#allocation2] sm:$0xf] %vm1202_vm11, %v1179_v44  ;;  %v8564_v44 = vpop.eup %5779 }
 0x6a7   : > { %1466 = vst.msk [vmem:[#allocation2] sm:$0xf] %vm1465_vm12, %v8107_v23  ;;  %v2864_v23 = vsel %vm781_vm2, %v8551_v2, 0.0  ;;  %v2867_v9 = vsel %vm781_vm2, %v8564_v44, 0.0  ;;  %v5782_v27 = vpop.eup %5781 }
 0x6a8   : > { %v5784_v58 = vpop.eup %5783 }
 0x6a9   : > { %v8571_v1 = vpop.eup %5785  ;;  %v2642_v24 = vmul.f32 %v5784_v58, %v10164_v57 }
 0x6ab   : > { %v1675_v39 = vpop.f32.mrf.mxu3  ;;  %3310 = vmax.xlane.f32.xlu0 %v3309_v49  ;;  %v10163_v49 = vld [vmem:[#allocation33_spill] sm:$0xff] }
 0x6ac   : > { %v2643_v37 = vmul.f32 %v5782_v27, %v10163_v49  ;;  %v1169_v27 = vpack.c.bf16 %v8507_v38, %v8507_v38  ;;  %v1690_v49 = vpack.c.bf16 %v8543_v7, %v8543_v7 }
 0x6ad   : > { %2865 = vadd.xlane.f32.xlu2 %v2864_v23  ;;  %v3097_v23 = vsel %vm781_vm2, %v8571_v1, 0.0 }
 0x6ae   : > { %v2647_v55 = vpack.c.bf16 %v2643_v37, %v2642_v24 }
 0x6b0   : > { %5247 = vmatmul.msk.bf16.gmra.mxu3 %vm781_vm2, %v2646_v62  ;;  %v1168_v62 = vpack.c.bf16 %v8500_v29, %v8500_v29  ;;  %v1691_v29 = vpack.c.bf16 %v1675_v39, %v1675_v39 }
 0x6b2   : > { %v3141_v14 = vpop.permute.xlu1 %3140 }
 0x6b3   : > { %v1678_v50 = vpop.f32.mrf.mxu3  ;;  %3165 = vmatpush.bf16.msra.mxu3 %v3141_v14  ;;  %v1689_v14 = vpack.c.bf16 %v8523_v32, %v8523_v32 }
 0x6b4   : > { %v1692_v58 = vpack.c.bf16 %v1678_v50, %v1678_v50  ;;  %v5788_v50 = vpop.eup %5787 }
 0x6b5   : > { %2868 = vadd.xlane.f32.xlu2 %v2867_v9  ;;  %v2891_v19 = vmul.f32 %v5788_v50, %v8365_v53 }
 0x6b7   : > { %3166 = vmatpush.bf16.msra.mxu3 %v8486_v35 }
 0x6bb   : > { %v1680_v41 = vpop.f32.mrf.mxu3 }
 0x6bd   : > { %3098 = vadd.xlane.f32.xlu1 %v3097_v23  ;;  %v1693_v23 = vpack.c.bf16 %v1680_v41, %v1680_v41 }
 0x6bf   : > { %1190 = vrot.lane.b32.xlu0 %v1168_v62, %s6231_s24 }
 0x6c0   : > { %5248 = vmatmul.msk.bf16.gmra.mxu3 %vm781_vm2, %v2647_v55 }
 0x6c3   : > { %v1683_v35 = vpop.f32.mrf.mxu3 }
 0x6c4   : > { %v1694_v32 = vpack.c.bf16 %v1683_v35, %v1683_v35 }
 0x6c7   : > { %4255 = vrot.lane.b32.xlu0 %v8103_v21, %s6232_s29 }
 0x6cb   : > { %v1685_v9 = vpop.f32.mrf.mxu3 }
 0x6cc   : > { %v1695_v39 = vpack.c.bf16 %v1685_v9, %v1685_v9 }
 0x6cd   : > { %1704 = vrot.lane.b32.xlu2 %v1688_v26, %s6233_s28 }
 0x6cf   : > { %1706 = vrot.lane.b32.xlu0 %v1689_v14, %s6233_s28 }
 0x6d0   : > { %v8594_v0 = vpop.xlane.xlu0 %3572 }
 0x6d3   : > { %v2157_v21 = vpop.f32.mrf.mxu3 }
 0x6d4   : > { %v2177_v53 = vpack.c.bf16 %v2157_v21, %v2157_v21 }
 0x6d5   : > { %1710 = vrot.lane.b32.xlu2 %v1691_v29, %s6233_s28  ;;  %v3553_v29 = vpop.f32.mrf.mxu2 }
 0x6d6   : > { %1192 = vrot.lane.b32.xlu1 %v1169_v27, %s6231_s24 }
 0x6d7   : > { %1712 = vrot.lane.b32.xlu0 %v1692_v58, %s6233_s28  ;;  %v3069_v58 = vsub.f32 %v8384_v18, %v8510_v40  ;;  %v3068_v18 = vsub.f32 %v8298_v20, %v8431_v11  ;;  %v4788_v20 = vld [vmem:[#allocation9 + $0x78] sm:$0xff] }
 0x6d8   : > { %v8604_v62 = vpop.xlane.xlu0 %3095 }
 0x6db   : > { %v2159_v57 = vpop.f32.mrf.mxu3 }
 0x6dc   : > { %v2178_v7 = vpack.c.bf16 %v2159_v57, %v2159_v57  ;;  %v10165_v57 = vld [vmem:[#allocation56_spill] sm:$0xff] }
 0x6dd   : > { %v2860_v37 = vpop.xlane.xlu1 %2859  ;;  %1716 = vrot.lane.b32.xlu2 %v1694_v32, %s6233_s28  ;;  %v3555_v32 = vpop.f32.mrf.mxu2 }
 0x6de   : > { %5789 = vrcp.f32 %v2860_v37  ;;  %1708 = vrot.lane.b32.xlu1 %v1690_v49, %s6233_s28  ;;  %v3080_v37 = vmul.f32 1.442695, %v3068_v18 }
 0x6df   : > { %v8601_v38 = vpop.xlane.xlu2 %3569  ;;  %1718 = vrot.lane.b32.xlu0 %v1695_v39, %s6233_s28  ;;  %5791 = vrcp.f32 %v8534_v22 }
 0x6e0   : > { %5793 = vrcp.f32 %v8518_v8  ;;  %v3291_v8 = vpop.f32.mrf.mxu0 }
 0x6e3   : > { %v8635_v40 = vpop.f32.mrf.mxu3 }
 0x6e4   : > { %v5790_v24 = vpop.eup %5789 }
 0x6e5   : > { %v2890_v55 = vmul.f32 %v5790_v24, %v8473_v54  ;;  %v5792_v54 = vpop.eup %5791  ;;  %v8643_v24 = vadd.f32 %v3553_v29, %v10165_v57 }
 0x6e6   : > { %1714 = vrot.lane.b32.xlu1 %v1693_v23, %s6233_s28  ;;  %v5794_v14 = vpop.eup %5793  ;;  %v3121_v9 = vmul.f32 %v5792_v54, %v8401_v51  ;;  %v8629_v51 = vadd.f32 %v3555_v32, %v6999_v3  ;;  %v10166_v23 = vld [vmem:[#allocation19_spill] sm:$0xff] }
 0x6e7   : > { %v2898_v35 = vpack.c.bf16 %v2891_v19, %v2890_v55  ;;  %v1189_v26 = vpop.permute.xlu2 %1188  ;;  %2195 = vrot.lane.b32.xlu0 %v2178_v7, %s6231_s24  ;;  %v2839_v19 = vsub.f32 %v10166_v23, %v8363_v48  ;;  %v4787_v7 = vld [vmem:[#allocation9 + $0x70] sm:$0xff] }
 0x6e8   : > { %1208 = vst.msk [vmem:[#allocation2 + $0x14] sm:$0xf] %vm1202_vm11, %v1189_v26  ;;  %v3577_v39 = vsel %vm781_vm2, %v8629_v51, -inf  ;;  %v4796_v55 = vpack.c.bf16 %v4788_v20, %v4787_v7  ;;  %v3574_v26 = vsel %vm781_vm2, %v8643_v24, -inf }
 0x6e9   : > { %5253 = vmatmul.msk.bf16.vlgmr.msrb.gmra.mxu1 %vm781_vm2, %v2898_v35  ;;  %1471 = vst.msk [vmem:[#allocation2 + $0x14] sm:$0xf] %vm1465_vm12, %v8212_v47  ;;  %v3120_v47 = vmul.f32 %v5794_v14, %v8393_v45  ;;  %v3293_v45 = vpop.f32.mrf.mxu0 }
 0x6ea   : > { %4929 = vmatpush.bf16.msra.mxu0 %v4796_v55  ;;  %v8654_v54 = vadd.f32 %v3293_v45, %v6999_v3  ;;  %v10169_v45 = vld [vmem:[#allocation34_spill] sm:$0xff]  ;;  %v3071_v55 = vsub.f32 %v8317_v25, %v8422_v52  ;;  %v4777_v25 = vld [vmem:[#allocation9 + $0x20] sm:$0xff]  ;;  %v4778_v52 = vld [vmem:[#allocation9 + $0x28] sm:$0xff] }
 0x6eb   : > { %v1185_v41 = vpop.permute.xlu0 %1184  ;;  %v3128_v22 = vpack.c.bf16 %v3121_v9, %v3120_v47  ;;  %v8649_v35 = vpop.f32.mrf.mxu3  ;;  %v10167_v9 = vld [vmem:[#allocation61_spill] sm:$0xff] }
 0x6ec   : > { %1206 = vst.msk [vmem:[#allocation2 + $0xc] sm:$0xf] %vm1202_vm11, %v1185_v41  ;;  %v4786_v41 = vld [vmem:[#allocation9 + $0x68] sm:$0xff]  ;;  %v8661_v47 = vpop.f32.mrf.mxu2 }
 0x6ed   : > { %1469 = vst.msk [vmem:[#allocation2 + $0xc] sm:$0xf] %vm1465_vm12, %v8140_v15  ;;  %v3082_v15 = vmul.f32 1.442695, %v3069_v58 }
 0x6ee   : > { %2193 = vrot.lane.b32.xlu1 %v2177_v53, %s6231_s24  ;;  %v4785_v53 = vld [vmem:[#allocation9 + $0x60] sm:$0xff] }
 0x6ef   : > { %5795 = vpow2.f32 %v3082_v15  ;;  %v4795_v48 = vpack.c.bf16 %v4786_v41, %v4785_v53  ;;  %v10168_v15 = vld [vmem:[#allocation30_spill] sm:$0xff] }
 0x6f0   : > { %5797 = vpow2.f32 %v3080_v37  ;;  %v4781_v37 = vld [vmem:[#allocation9 + $0x40] sm:$0xff] }
 0x6f1   : > { %v3296_v50 = vpop.f32.mrf.mxu0  ;;  %4930 = vmatpush.bf16.msra.mxu0 %v4795_v48 }
 0x6f2   : > { %v8659_v29 = vadd.f32 %v3296_v50, %v10167_v9  ;;  %v4782_v50 = vld [vmem:[#allocation9 + $0x48] sm:$0xff] }
 0x6f3   : > { %v4793_v23 = vpack.c.bf16 %v4782_v50, %v4781_v37  ;;  %v2167_v20 = vpop.f32.mrf.mxu3  ;;  %v4775_v37 = vld [vmem:[#allocation9 + $0x10] sm:$0xff]  ;;  %v4776_v50 = vld [vmem:[#allocation9 + $0x18] sm:$0xff] }
 0x6f4   : > { %v3318_v18 = vsel %vm781_vm2, %v8659_v29, -inf  ;;  %v3560_v48 = vpop.f32.mrf.mxu2 }
 0x6f5   : > { %v3137_v27 = vpop.permute.xlu1 %3136 }
 0x6f6   : > { %3167 = vmatpush.bf16.msra.mxu3 %v3137_v27  ;;  %v4783_v27 = vld [vmem:[#allocation9 + $0x50] sm:$0xff] }
 0x6f9   : > { %5261 = vmatmul.msk.bf16.vlgmr.msra.gmra.mxu3 %vm781_vm2, %v3128_v22  ;;  %v4784_v22 = vld [vmem:[#allocation9 + $0x58] sm:$0xff]  ;;  %v8663_v58 = vpop.f32.mrf.mxu0 }
 0x6fa   : > { %v4794_v32 = vpack.c.bf16 %v4784_v22, %v4783_v27 }
 0x6fc   : > { %4931 = vmatpush.bf16.msra.mxu0 %v4794_v32 }
 0x6fd   : > { %v1181_v21 = vpop.permute.xlu1 %1180 }
 0x6fe   : > { %1204 = vst.msk [vmem:[#allocation2 + $0x4] sm:$0xf] %vm1202_vm11, %v1181_v21  ;;  %v3315_v21 = vsel %vm781_vm2, %v8654_v54, -inf }
 0x6ff   : > { %1467 = vst.msk [vmem:[#allocation2 + $0x4] sm:$0xf] %vm1465_vm12, %v8189_v56  ;;  %v8640_v56 = vpop.eup %5795 }
 0x700   : > { %v3103_v11 = vsel %vm781_vm2, %v8640_v56, 0.0  ;;  %v8656_v14 = vpop.eup %5797  ;;  %4932 = vmatpush.bf16.msra.mxu0 %v4793_v23 }
 0x701   : > { %v8682_v27 = vpop.f32.mrf.mxu0 }
 0x705   : > { %v1187_v49 = vpop.permute.xlu1 %1186 }
 0x706   : > { %1207 = vst.msk [vmem:[#allocation2 + $0x10] sm:$0xf] %vm1202_vm11, %v1187_v49  ;;  %3578 = vmax.xlane.f32.xlu2 %v3577_v39  ;;  %v2838_v49 = vsub.f32 %v10169_v45, %v10168_v15  ;;  %v3100_v39 = vsel %vm781_vm2, %v8656_v14, 0.0  ;;  %v8689_v15 = vadd.f32 %v3560_v48, %v7033_v36  ;;  %v4791_v45 = vpack.c.bf16 %v4778_v52, %v4777_v25 }
 0x707   : > { %1470 = vst.msk [vmem:[#allocation2 + $0x10] sm:$0xf] %vm1465_vm12, %v8200_v61  ;;  %v2852_v61 = vmul.f32 1.442695, %v2839_v19 }
 0x708   : > { %v2850_v7 = vmul.f32 1.442695, %v2838_v49  ;;  %v3583_v23 = vsel %vm781_vm2, %v8689_v15, -inf }
 0x709   : > { %5799 = vpow2.f32 %v2852_v61  ;;  %v4779_v61 = vld [vmem:[#allocation9 + $0x30] sm:$0xff] }
 0x70a   : > { %5801 = vpow2.f32 %v2850_v7  ;;  %v4790_v7 = vpack.c.bf16 %v4776_v50, %v4775_v37 }
 0x70e   : > { %3104 = vadd.xlane.f32.xlu2 %v3103_v11  ;;  %v8676_v11 = vadd.f32 %v3291_v8, %v10165_v57 }
 0x70f   : > { %v8673_v19 = vpop.eup %5799 }
 0x710   : > { %v2873_v53 = vsel %vm781_vm2, %v8673_v19, 0.0  ;;  %v3312_v8 = vsel %vm781_vm2, %v8676_v11, -inf  ;;  %v8691_v49 = vpop.eup %5801 }
 0x711   : > { %3575 = vmax.xlane.f32.xlu0 %v3574_v26  ;;  %v4780_v26 = vld [vmem:[#allocation9 + $0x38] sm:$0xff] }
 0x712   : > { %v4792_v41 = vpack.c.bf16 %v4780_v26, %v4779_v61  ;;  %v2870_v61 = vsel %vm781_vm2, %v8691_v49, 0.0 }
 0x714   : > { %4933 = vmatpush.bf16.msra.mxu0 %v4792_v41  ;;  %v8703_v41 = vpop.f32.mrf.mxu0 }
 0x716   : > { %3316 = vmax.xlane.f32.xlu2 %v3315_v21  ;;  %v8684_v22 = vpop.xlane.xlu0 %3307  ;;  %v3086_v21 = vmul.f32 1.442695, %v3071_v55  ;;  %v3070_v55 = vsub.f32 %v8307_v43, %v8441_v63  ;;  %v8711_v63 = vadd.f32 %v8661_v47, %v10167_v9 }
 0x718   : > { %3101 = vadd.xlane.f32.xlu1 %v3100_v39  ;;  %4934 = vmatpush.bf16.msra.mxu0 %v4791_v45  ;;  %5803 = vpow2.f32 %v3086_v21  ;;  %v2840_v39 = vsub.f32 %v8411_v30, %v8554_v4  ;;  %v4773_v30 = vld [vmem:[#allocation9] sm:$0xff]  ;;  %v4774_v4 = vld [vmem:[#allocation9 + $0x8] sm:$0xff]  ;;  %v3084_v43 = vmul.f32 1.442695, %v3070_v55  ;;  %v3580_v47 = vsel %vm781_vm2, %v8711_v63, -inf }
 0x719   : > { %3319 = vmax.xlane.f32.xlu0 %v3318_v18  ;;  %v8695_v18 = vpop.f32.mrf.mxu3 }
 0x71a   : > { %v2854_v26 = vmul.f32 1.442695, %v2840_v39 }
 0x71c   : > { %4935 = vmatpush.bf16.msra.mxu0 %v4790_v7 }
 0x71e   : > { %2874 = vadd.xlane.f32.xlu2 %v2873_v53  ;;  %v8705_v48 = vpop.xlane.xlu0 %3310  ;;  %v8707_v21 = vpop.eup %5803 }
 0x71f   : > { %v3109_v52 = vsel %vm781_vm2, %v8707_v21, 0.0 }
 0x720   : > { %v2866_v32 = vpop.xlane.xlu2 %2865  ;;  %3313 = vmax.xlane.f32.xlu1 %v3312_v8  ;;  %v4789_v8 = vpack.c.bf16 %v4774_v4, %v4773_v30 }
 0x721   : > { %5805 = vrcp.f32 %v2866_v32  ;;  %v2181_v32 = vpack.c.bf16 %v2167_v20, %v2167_v20  ;;  %v8716_v45 = vpop.f32.mrf.mxu3 }
 0x722   : > { %4936 = vmatpush.bf16.msra.mxu0 %v4789_v8 }
 0x726   : > { %3584 = vmax.xlane.f32.xlu2 %v3583_v23 }
 0x727   : > { %v5806_v25 = vpop.eup %5805 }
 0x728   : > { %v2869_v53 = vpop.xlane.xlu2 %2868  ;;  %2871 = vadd.xlane.f32.xlu1 %v2870_v61  ;;  %v2892_v20 = vmul.f32 %v5806_v25, %v8551_v2 }
 0x729   : > { %5807 = vrcp.f32 %v2869_v53 }
 0x72a   : > { %5809 = vpow2.f32 %v2854_v26  ;;  %v10170_v26 = vld [vmem:[#allocation18_spill] sm:$0xff] }
 0x72b   : > { %5811 = vpow2.f32 %v3084_v43  ;;  %v8739_v43 = vpop.f32.mrf.mxu3 }
 0x72c   : > { %5813 = vrcp.f32 %v8604_v62  ;;  %v8727_v62 = vpop.f32.mrf.mxu0 }
 0x72d   : > { %2201 = vrot.lane.b32.xlu0 %v2181_v32, %s6231_s24 }
 0x72e   : > { %3110 = vadd.xlane.f32.xlu2 %v3109_v52 }
 0x72f   : > { %v5808_v39 = vpop.eup %5807 }
 0x730   : > { %v2893_v37 = vmul.f32 %v5808_v39, %v8564_v44  ;;  %v3099_v50 = vpop.xlane.xlu1 %3098  ;;  %v1705_v23 = vpop.permute.xlu2 %1704  ;;  %3581 = vmax.xlane.f32.xlu1 %v3580_v47  ;;  %v8746_v47 = vadd.f32 %v8663_v58, %v7033_v36  ;;  %v2841_v58 = vsub.f32 %v8353_v17, %v8469_v5 }
 0x731   : > { %5815 = vrcp.f32 %v3099_v50  ;;  %1729 = vst.msk [vmem:[#allocation2] sm:$0xf] %vm1728_vm13, %v1705_v23  ;;  %v1191_v7 = vpop.permute.xlu0 %1190  ;;  %v8724_v55 = vpop.eup %5809 }
 0x732   : > { %1209 = vst.msk [vmem:[#allocation2 + $0x18] sm:$0xf] %vm1202_vm11, %v1191_v7  ;;  %v2899_v61 = vpack.c.bf16 %v2893_v37, %v2892_v20  ;;  %v8731_v2 = vpop.eup %5811  ;;  %v2876_v53 = vsel %vm781_vm2, %v8724_v55, 0.0 }
 0x733   : > { %1472 = vst.msk [vmem:[#allocation2 + $0x18] sm:$0xf] %vm1465_vm12, %v10170_v26  ;;  %v5814_v44 = vpop.eup %5813  ;;  %v3106_v4 = vsel %vm781_vm2, %v8731_v2, 0.0  ;;  %v8754_v50 = vpop.f32.mrf.mxu3 }
 0x734   : > { %5254 = vmatmul.msk.bf16.gmra.mxu1 %vm781_vm2, %v2899_v61  ;;  %v3122_v8 = vmul.f32 %v5814_v44, %v8465_v60  ;;  %v8749_v20 = vpop.f32.mrf.mxu0  ;;  %v3321_v60 = vsel %vm781_vm2, %v8746_v47, -inf  ;;  %v2856_v61 = vmul.f32 1.442695, %v2841_v58 }
 0x736   : > { %2877 = vadd.xlane.f32.xlu2 %v2876_v53  ;;  %v10171_v53 = vld [vmem:[#allocation16_spill] sm:$0xff]  ;;  %5817 = vpow2.f32 %v2856_v61 }
 0x737   : > { %v5816_v30 = vpop.eup %5815 }
 0x738   : > { %v3123_v32 = vmul.f32 %v5816_v30, %v8571_v1  ;;  %v1711_v25 = vpop.permute.xlu2 %1710  ;;  %3107 = vadd.xlane.f32.xlu1 %v3106_v4  ;;  %v2179_v30 = vpack.c.bf16 %v8635_v40, %v8635_v40 }
 0x739   : > { %1732 = vst.msk [vmem:[#allocation2 + $0xc] sm:$0xf] %vm1728_vm13, %v1711_v25  ;;  %v4256_v52 = vpop.permute.xlu0 %4255 }
 0x73a   : > { %5300 = vmatmul.msk.bf16.gmra.mxu0 %vm727_vm0, %v4256_v52  ;;  %v3129_v39 = vpack.c.bf16 %v3123_v32, %v3122_v8  ;;  %v2180_v52 = vpack.c.bf16 %v8649_v35, %v8649_v35  ;;  %v10172_v35 = vld [vmem:[#allocation32_spill] sm:$0xff] }
 0x73b   : > { %v8767_v4 = vpop.f32.mrf.mxu3 }
 0x73c   : > { %5262 = vmatmul.msk.bf16.gmra.mxu3 %vm781_vm2, %v3129_v39  ;;  %v8759_v23 = vpop.f32.mrf.mxu0  ;;  %v8774_v32 = vpop.eup %5817 }
 0x73d   : > { %v2879_v40 = vsel %vm781_vm2, %v8774_v32, 0.0 }
 0x740   : > { %v1717_v1 = vpop.permute.xlu2 %1716  ;;  %3322 = vmax.xlane.f32.xlu1 %v3321_v60 }
 0x741   : > { %1735 = vst.msk [vmem:[#allocation2 + $0x18] sm:$0xf] %vm1728_vm13, %v1717_v1  ;;  %v1707_v37 = vpop.permute.xlu0 %1706 }
 0x742   : > { %1730 = vst.msk [vmem:[#allocation2 + $0x4] sm:$0xf] %vm1728_vm13, %v1707_v37 }
 0x743   : > { %v8776_v25 = vpop.f32.mrf.mxu3 }
 0x744   : > { %v8770_v5 = vpop.f32.mrf.mxu0 }
 0x748   : > { %v1193_v7 = vpop.permute.xlu1 %1192 }
 0x749   : > { %1210 = vst.msk [vmem:[#allocation2 + $0x1c] sm:$0xf] %vm1202_vm11, %v1193_v7  ;;  %v1713_v26 = vpop.permute.xlu0 %1712  ;;  %v5385_v44 = vld [vmem:[#allocation2] sm:$0xff] }
 0x74a   : > { %1473 = vst.msk [vmem:[#allocation2 + $0x1c] sm:$0xf] %vm1465_vm12, %v10171_v53  ;;  %4937 = vmatmul.bf16.vlgmr.msra.gmra.mxu0 %v5385_v44 }
 0x74b   : > { %1733 = vst.msk [vmem:[#allocation2 + $0x10] sm:$0xf] %vm1728_vm13, %v1713_v26  ;;  %v8789_v58 = vpop.f32.mrf.mxu3  ;;  %v3563_v26 = vpop.f32.mrf.mxu2 }
 0x74c   : > { %v8785_v37 = vpop.f32.mrf.mxu0 }
 0x74e   : > { %2197 = vrot.lane.b32.xlu2 %v2179_v30, %s6231_s24  ;;  %v2184_v30 = vpack.c.bf16 %v8739_v43, %v8739_v43 }
 0x750   : > { %v1709_v17 = vpop.permute.xlu1 %1708 }
 0x751   : > { %1731 = vst.msk [vmem:[#allocation2 + $0x8] sm:$0xf] %vm1728_vm13, %v1709_v17  ;;  %v1719_v8 = vpop.permute.xlu0 %1718 }
 0x752   : > { %1736 = vst.msk [vmem:[#allocation2 + $0x1c] sm:$0xf] %vm1728_vm13, %v1719_v8 }
 0x753   : > { %v8799_v17 = vpop.f32.mrf.mxu3 }
 0x754   : > { %v8794_v61 = vpop.f32.mrf.mxu0 }
 0x755   : > { %10173 = vst [vmem:[#allocation40_spill] sm:$0xff] %v8794_v61 }
 0x757   : > { %2880 = vadd.xlane.f32.xlu0 %v2879_v40 }
 0x758   : > { %v1715_v39 = vpop.permute.xlu1 %1714  ;;  %v5386_v60 = vld [vmem:[#allocation2 + $0x8] sm:$0xff] }
 0x759   : > { %1734 = vst.msk [vmem:[#allocation2 + $0x14] sm:$0xf] %vm1728_vm13, %v1715_v39  ;;  %2199 = vrot.lane.b32.xlu1 %v2180_v52, %s6231_s24  ;;  %v2196_v1 = vpop.permute.xlu0 %2195  ;;  %v3565_v52 = vpop.f32.mrf.mxu2 }
 0x75a   : > { %2218 = vst.msk [vmem:[#allocation2 + $0x24] sm:$0xf] %vm1202_vm11, %v2196_v1  ;;  %4942 = vmatmul.bf16.gmra.mxu0 %v5386_v60  ;;  %v8806_v60 = vadd.f32 %v3565_v52, %v7070_v46 }
 0x75b   : > { %2480 = vst.msk [vmem:[#allocation2 + $0x24] sm:$0xf] %vm1465_vm12, %v8361_v10  ;;  %v8810_v43 = vpop.f32.mrf.mxu3 }
 0x75c   : > { %v8802_v40 = vpop.f32.mrf.mxu0  ;;  %v3589_v1 = vsel %vm781_vm2, %v8806_v60, -inf }
 0x75d   : > { %10174 = vst [vmem:[#allocation43_spill] sm:$0xff] %v8802_v40 }
 0x760   : > { %v2194_v7 = vpop.permute.xlu1 %2193  ;;  %v5387_v10 = vld [vmem:[#allocation2 + $0x10] sm:$0xff] }
 0x761   : > { %2217 = vst.msk [vmem:[#allocation2 + $0x20] sm:$0xf] %vm1202_vm11, %v2194_v7 }
 0x762   : > { %2479 = vst.msk [vmem:[#allocation2 + $0x20] sm:$0xf] %vm1465_vm12, %v10172_v35 }
 0x764   : > { %v8814_v7 = vpop.f32.mrf.mxu0 }
 0x765   : > { %10175 = vst [vmem:[#allocation63_spill] sm:$0xff] %v8814_v7 }
 0x766   : > { %v2927_v44 = vpop.f32.mrf.mxu1 }
 0x767   : > { %v2947_v53 = vpack.c.bf16 %v2927_v44, %v2927_v44  ;;  %v5388_v44 = vld [vmem:[#allocation2 + $0x18] sm:$0xff] }
 0x769   : > { %2955 = vst.msk [vmem:[#allocation2 + $0x40] sm:$0xf] %vm927_vm10, %v2947_v53  ;;  %v8821_v53 = vadd.f32 %v3563_v26, %v7051_v34  ;;  %v2182_v26 = vpack.c.bf16 %v8695_v18, %v8695_v18 }
 0x76a   : > { %4947 = vmatmul.bf16.gmra.mxu0 %v5387_v10 }
 0x76b   : > { %2207 = vrot.lane.b32.xlu0 %v2184_v30, %s6231_s24  ;;  %10176 = vst [vmem:[#allocation69_spill] sm:$0xff] %v8821_v53  ;;  %v2696_v30 = vpop.f32.mrf.mxu3 }
 0x76c   : > { %v8823_v10 = vpop.f32.mrf.mxu0 }
 0x76d   : > { %10177 = vst [vmem:[#allocation48_spill] sm:$0xff] %v8823_v10 }
 0x76e   : > { %v2929_v8 = vpop.f32.mrf.mxu1 }
 0x76f   : > { %v2948_v39 = vpack.c.bf16 %v2929_v8, %v2929_v8  ;;  %v2707_v8 = vpack.c.bf16 %v2696_v30, %v2696_v30 }
 0x771   : > { %2956 = vst.msk [vmem:[#allocation2 + $0x44] sm:$0xf] %vm927_vm10, %v2948_v39  ;;  %v3586_v39 = vsel %vm781_vm2, %v8821_v53, -inf }
 0x773   : > { %3666 = vrot.lane.b32.xlu0 %v7806_v33, %s6231_s24 }
 0x774   : > { %v8830_v40 = vpop.f32.mrf.mxu0 }
 0x775   : > { %10178 = vst [vmem:[#allocation49_spill] sm:$0xff] %v8830_v40 }
 0x777   : > { %3590 = vmax.xlane.f32.xlu2 %v3589_v1 }
 0x779   : > { %v8816_v35 = vpop.xlane.xlu2 %3578 }
 0x77a   : > { %4952 = vmatmul.bf16.gmra.mxu0 %v5388_v44 }
 0x77b   : > { %3404 = vrot.lane.b32.xlu0 %v7806_v33, %s6232_s29 }
 0x781   : > { %v3105_v52 = vpop.xlane.xlu2 %3104 }
 0x782   : > { %5819 = vrcp.f32 %v3105_v52 }
 0x783   : > { %3587 = vmax.xlane.f32.xlu1 %v3586_v39  ;;  %2729 = vrot.lane.b32.xlu0 %v2707_v8, %s6233_s28  ;;  %v8837_v39 = vpop.f32.mrf.mxu0 }
 0x784   : > { %v8834_v44 = vpop.xlane.xlu0 %3575  ;;  %10179 = vst [vmem:[#allocation80_spill] sm:$0xff] %v8837_v39  ;;  %v3331_v39 = vsub.f32 %v8546_v6, %v8705_v48 }
 0x788   : > { %v5820_v30 = vpop.eup %5819 }
 0x789   : > { %v8828_v1 = vpop.xlane.xlu2 %3316  ;;  %v3125_v8 = vmul.f32 %v5820_v30, %v8640_v56 }
 0x78b   : > { %v3102_v33 = vpop.xlane.xlu1 %3101  ;;  %v8853_v56 = vpop.f32.mrf.mxu0 }
 0x78c   : > { %5821 = vrcp.f32 %v3102_v33  ;;  %v8843_v33 = vpop.xlane.xlu0 %3319 }
 0x78f   : > { %2203 = vrot.lane.b32.xlu2 %v2182_v26, %s6231_s24  ;;  %v2183_v26 = vpack.c.bf16 %v8716_v45, %v8716_v45 }
 0x791   : > { %v2875_v10 = vpop.xlane.xlu2 %2874 }
 0x792   : > { %v5822_v7 = vpop.eup %5821  ;;  %5823 = vrcp.f32 %v2875_v10 }
 0x793   : > { %v3124_v52 = vmul.f32 %v5822_v7, %v8656_v14  ;;  %v8841_v61 = vpop.xlane.xlu1 %3313  ;;  %v3340_v14 = vmul.f32 1.442695, %v3331_v39  ;;  %v3593_v39 = vsub.f32 %v8457_v59, %v8594_v0 }
 0x795   : > { %v3130_v40 = vpack.c.bf16 %v3125_v8, %v3124_v52 }
 0x797   : > { %5263 = vmatmul.msk.bf16.gmra.mxu3 %vm781_vm2, %v3130_v40 }
 0x798   : > { %v5824_v30 = vpop.eup %5823 }
 0x799   : > { %v8846_v18 = vpop.xlane.xlu2 %3584  ;;  %v2895_v10 = vmul.f32 %v5824_v30, %v8673_v19 }
 0x79b   : > { %v2872_v53 = vpop.xlane.xlu1 %2871 }
 0x79c   : > { %5825 = vrcp.f32 %v2872_v53  ;;  %2205 = vrot.lane.b32.xlu1 %v2183_v26, %s6231_s24  ;;  %v8862_v53 = vpop.f32.mrf.mxu0  ;;  %v3602_v26 = vmul.f32 1.442695, %v3593_v39  ;;  %v3592_v39 = vsub.f32 %v8476_v31, %v8601_v38  ;;  %v8892_v31 = vadd.f32 %v8703_v41, %v7070_v46 }
 0x79d   : > { %5827 = vpow2.f32 %v3340_v14 }
 0x79e   : > { %v3327_v38 = vsel %vm781_vm2, %v8892_v31, -inf }
 0x79f   : > { %v2202_v7 = vpop.permute.xlu0 %2201 }
 0x7a0   : > { %2221 = vst.msk [vmem:[#allocation2 + $0x30] sm:$0xf] %vm1202_vm11, %v2202_v7 }
 0x7a1   : > { %2483 = vst.msk [vmem:[#allocation2 + $0x30] sm:$0xf] %vm1465_vm12, %v8433_v12  ;;  %v3111_v40 = vpop.xlane.xlu2 %3110 }
 0x7a2   : > { %v5826_v45 = vpop.eup %5825  ;;  %5829 = vrcp.f32 %v3111_v40 }
 0x7a3   : > { %v2894_v6 = vmul.f32 %v5826_v45, %v8691_v49  ;;  %v8860_v48 = vpop.xlane.xlu1 %3581  ;;  %v8867_v52 = vpop.eup %5827 }
 0x7a4   : > { %v3357_v19 = vsel %vm781_vm2, %v8867_v52, 0.0  ;;  %v8871_v49 = vpop.f32.mrf.mxu0 }
 0x7a5   : > { %v2900_v8 = vpack.c.bf16 %v2895_v10, %v2894_v6  ;;  %v10180_v6 = vld [vmem:[#allocation45_spill] sm:$0xff] }
 0x7a7   : > { %5255 = vmatmul.msk.bf16.gmra.mxu1 %vm781_vm2, %v2900_v8 }
 0x7a8   : > { %v5830_v7 = vpop.eup %5829 }
 0x7a9   : > { %v2878_v12 = vpop.xlane.xlu2 %2877  ;;  %v3127_v10 = vmul.f32 %v5830_v7, %v8707_v21 }
 0x7ab   : > { %v3108_v14 = vpop.xlane.xlu1 %3107 }
 0x7ac   : > { %5831 = vrcp.f32 %v3108_v14  ;;  %v3330_v14 = vsub.f32 %v8529_v42, %v8684_v22 }
 0x7ad   : > { %3358 = vadd.xlane.f32.xlu0 %v3357_v19  ;;  %5833 = vpow2.f32 %v3602_v26 }
 0x7b1   : > { %v2198_v30 = vpop.permute.xlu2 %2197  ;;  %v2932_v45 = vpop.f32.mrf.mxu1 }
 0x7b2   : > { %v5832_v59 = vpop.eup %5831  ;;  %2219 = vst.msk [vmem:[#allocation2 + $0x28] sm:$0xf] %vm1202_vm11, %v2198_v30  ;;  %v2949_v0 = vpack.c.bf16 %v2932_v45, %v2932_v45  ;;  %v3338_v30 = vmul.f32 1.442695, %v3330_v14 }
 0x7b3   : > { %v3126_v40 = vmul.f32 %v5832_v59, %v8731_v2  ;;  %2481 = vst.msk [vmem:[#allocation2 + $0x28] sm:$0xf] %vm1465_vm12, %v10180_v6  ;;  %v8878_v8 = vpop.eup %5833  ;;  %v3600_v2 = vmul.f32 1.442695, %v3592_v39  ;;  %v8903_v59 = vpop.xlane.xlu1 %3322  ;;  %v8918_v39 = vadd.f32 %v8682_v27, %v7051_v34 }
 0x7b4   : > { %2957 = vst.msk [vmem:[#allocation2 + $0x48] sm:$0xf] %vm927_vm10, %v2949_v0  ;;  %v3619_v21 = vsel %vm781_vm2, %v8878_v8, 0.0 }
 0x7b5   : > { %v3131_v26 = vpack.c.bf16 %v3127_v10, %v3126_v40  ;;  %5835 = vpow2.f32 %v3600_v2  ;;  %v8912_v10 = vld [vmem:[%s9880_s4] ss:$0 sm:$0xff]  ;;  %v3324_v27 = vsel %vm781_vm2, %v8918_v39, -inf }
 0x7b6   : > { %5837 = vpow2.f32 %v3338_v30 }
 0x7b7   : > { %5264 = vmatmul.msk.bf16.gmra.mxu3 %vm781_vm2, %v3131_v26  ;;  %v8886_v19 = vpop.f32.mrf.mxu0  ;;  %v8920_v26 = vpop.f32.mrf.mxu2  ;;  %5839 = vrcp.f32 %v2878_v12 }
 0x7b8   : > { %10181 = vst [vmem:[#allocation79_spill] sm:$0xff] %v8886_v19  ;;  %3620 = vadd.xlane.f32.xlu2 %v3619_v21 }
 0x7b9   : > { %v2934_v7 = vpop.f32.mrf.mxu1 }
 0x7ba   : > { %v2950_v45 = vpack.c.bf16 %v2934_v7, %v2934_v7  ;;  %v10183_v7 = vld [vmem:[#allocation36_spill] sm:$0xff] }
 0x7bb   : > { %v8901_v22 = vpop.eup %5835 }
 0x7bc   : > { %2958 = vst.msk [vmem:[#allocation2 + $0x4c] sm:$0xf] %vm927_vm10, %v2950_v45  ;;  %v8905_v41 = vpop.eup %5837  ;;  %v3616_v0 = vsel %vm781_vm2, %v8901_v22, 0.0 }
 0x7bd   : > { %v3354_v40 = vsel %vm781_vm2, %v8905_v41, 0.0  ;;  %v5840_v12 = vpop.eup %5839 }
 0x7bf   : > { %v8895_v42 = vpop.f32.mrf.mxu0 }
 0x7c0   : > { %10182 = vst [vmem:[#allocation65_spill] sm:$0xff] %v8895_v42  ;;  %3328 = vmax.xlane.f32.xlu2 %v3327_v38 }
 0x7c1   : > { %3398 = vrot.lane.b32.xlu0 %v10155_v16, %s6232_s29 }
 0x7c6   : > { %3617 = vadd.xlane.f32.xlu1 %v3616_v0  ;;  %v2896_v0 = vmul.f32 %v5840_v12, %v8724_v55  ;;  %v10184_v12 = vld [vmem:[#allocation29_spill] sm:$0xff] }
 0x7c7   : > { %v4938_v6 = vpop.f32.mrf.mxu0 }
 0x7c8   : > { %3355 = vadd.xlane.f32.xlu2 %v3354_v40  ;;  %v4939_v14 = vadd.f32 %v8912_v10, %v4938_v6  ;;  %v8936_v6 = vpop.f32.mrf.mxu2 }
 0x7ca   : > { %v2881_v21 = vpop.xlane.xlu0 %2880  ;;  %5018 = vst [vmem:[%s8925_s26] sm:$0xff] %v4939_v14 }
 0x7cb   : > { %5841 = vrcp.f32 %v2881_v21  ;;  %v2200_v2 = vpop.permute.xlu1 %2199 }
 0x7cc   : > { %2220 = vst.msk [vmem:[#allocation2 + $0x2c] sm:$0xf] %vm1202_vm11, %v2200_v2  ;;  %v3594_v2 = vsub.f32 %v8643_v24, %v8834_v44  ;;  %v3597_v24 = vsub.f32 %v8689_v15, %v8846_v18  ;;  %v3334_v18 = vsub.f32 %v8659_v29, %v8843_v33 }
 0x7cd   : > { %2482 = vst.msk [vmem:[#allocation2 + $0x2c] sm:$0xf] %vm1465_vm12, %v10183_v7 }
 0x7ce   : > { %3325 = vmax.xlane.f32.xlu1 %v3324_v27 }
 0x7cf   : > { %v4940_v30 = vpop.f32.mrf.mxu0 }
 0x7d0   : > { %v4941_v38 = vadd.f32 %v8912_v10, %v4940_v30  ;;  %v8944_v27 = vpop.f32.mrf.mxu2  ;;  %v3604_v30 = vmul.f32 1.442695, %v3594_v2 }
 0x7d1   : > { %v5842_v45 = vpop.eup %5841 }
 0x7d2   : > { %v2897_v40 = vmul.f32 %v5842_v45, %v8774_v32  ;;  %5019 = vst [vmem:[%s8925_s26 + $0x8] sm:$0xff] %v4941_v38  ;;  %v2701_v32 = vpack.c.bf16 %v8754_v50, %v8754_v50  ;;  %5843 = vpow2.f32 %v3604_v30  ;;  %v3610_v38 = vmul.f32 1.442695, %v3597_v24 }
 0x7d3   : > { %v2703_v50 = vpack.c.bf16 %v8776_v25, %v8776_v25  ;;  %v2702_v30 = vpack.c.bf16 %v8767_v4, %v8767_v4 }
 0x7d4   : > { %v2901_v14 = vpack.c.bf16 %v2897_v40, %v2896_v0  ;;  %5845 = vpow2.f32 %v3610_v38  ;;  %v10186_v38 = vld [vmem:[#allocation47_spill] sm:$0xff] }
 0x7d6   : > { %5256 = vmatmul.msk.bf16.gmra.mxu1 %vm781_vm2, %v2901_v14 }
 0x7d7   : > { %v4943_v21 = vpop.f32.mrf.mxu0 }
 0x7d8   : > { %v4944_v7 = vadd.f32 %v8912_v10, %v4943_v21  ;;  %v8958_v40 = vpop.eup %5843  ;;  %v8960_v14 = vpop.f32.mrf.mxu2  ;;  %v10185_v21 = vld [vmem:[#allocation53_spill] sm:$0xff] }
 0x7d9   : > { %v3622_v25 = vsel %vm781_vm2, %v8958_v40, 0.0 }
 0x7da   : > { %5020 = vst [vmem:[%s8925_s26 + $0x10] sm:$0xff] %v4944_v7  ;;  %v8977_v29 = vpop.eup %5845 }
 0x7dd   : > { %v2208_v55 = vpop.permute.xlu0 %2207 }
 0x7de   : > { %2224 = vst.msk [vmem:[#allocation2 + $0x3c] sm:$0xf] %vm1202_vm11, %v2208_v55  ;;  %v3346_v55 = vmul.f32 1.442695, %v3334_v18 }
 0x7df   : > { %2486 = vst.msk [vmem:[#allocation2 + $0x3c] sm:$0xf] %vm1465_vm12, %v10184_v12  ;;  %v4945_v45 = vpop.f32.mrf.mxu0  ;;  %v2705_v12 = vpack.c.bf16 %v8799_v17, %v8799_v17  ;;  %v2704_v17 = vpack.c.bf16 %v8789_v58, %v8789_v58  ;;  %v2706_v58 = vpack.c.bf16 %v8810_v43, %v8810_v43 }
 0x7e0   : > { %2717 = vrot.lane.b32.xlu2 %v2701_v32, %s6233_s28  ;;  %v4946_v44 = vadd.f32 %v8912_v10, %v4945_v45  ;;  %v8981_v45 = vpop.f32.mrf.mxu2  ;;  %5847 = vpow2.f32 %v3346_v55 }
 0x7e2   : > { %5021 = vst [vmem:[%s8925_s26 + $0x18] sm:$0xff] %v4946_v44  ;;  %v3631_v44 = vsel %vm781_vm2, %v8977_v29, 0.0 }
 0x7e5   : > { %v3667_v0 = vpop.permute.xlu0 %3666 }
 0x7e6   : > { %3688 = vmatpush.bf16.msrb.mxu3 %v3667_v0  ;;  %v8992_v0 = vpop.eup %5847 }
 0x7e7   : > { %3664 = vrot.lane.b32.xlu1 %v10185_v21, %s6231_s24  ;;  %v4948_v15 = vpop.f32.mrf.mxu0 }
 0x7e8   : > { %2721 = vrot.lane.b32.xlu2 %v2703_v50, %s6233_s28  ;;  %v4949_v2 = vadd.f32 %v8912_v10, %v4948_v15  ;;  %v10187_v50 = vld [vmem:[#allocation57_spill] sm:$0xff] }
 0x7ea   : > { %v8968_v7 = vpop.xlane.xlu2 %3590  ;;  %5022 = vst [vmem:[%s8925_s26 + $0x20] sm:$0xff] %v4949_v2  ;;  %v3366_v2 = vsel %vm781_vm2, %v8992_v0, 0.0 }
 0x7eb   : > { %3623 = vadd.xlane.f32.xlu0 %v3622_v25  ;;  %v4044_v25 = vpop.f32.mrf.mxu2 }
 0x7ed   : > { %v3405_v32 = vpop.permute.xlu0 %3404 }
 0x7ee   : > { %3426 = vmatpush.bf16.msra.mxu1 %v3405_v32 }
 0x7ef   : > { %2719 = vrot.lane.b32.xlu1 %v2702_v30, %s6233_s28  ;;  %v4950_v33 = vpop.f32.mrf.mxu0  ;;  %v9004_v30 = vadd.f32 %v4044_v25, %v7033_v36 }
 0x7f0   : > { %2725 = vrot.lane.b32.xlu2 %v2705_v12, %s6233_s28  ;;  %v4951_v24 = vadd.f32 %v8912_v10, %v4950_v33  ;;  %v9015_v33 = vadd.f32 %v8785_v37, %v10167_v9  ;;  %v2698_v37 = vpop.f32.mrf.mxu3 }
 0x7f1   : > { %v4067_v12 = vsel %vm781_vm2, %v9004_v30, -inf }
 0x7f2   : > { %v2204_v4 = vpop.permute.xlu2 %2203  ;;  %5023 = vst [vmem:[%s8925_s26 + $0x28] sm:$0xff] %v4951_v24  ;;  %v3834_v24 = vsel %vm781_vm2, %v9015_v33, -inf }
 0x7f3   : > { %3632 = vadd.xlane.f32.xlu0 %v3631_v44  ;;  %2222 = vst.msk [vmem:[#allocation2 + $0x34] sm:$0xf] %vm1202_vm11, %v2204_v4 }
 0x7f4   : > { %2484 = vst.msk [vmem:[#allocation2 + $0x34] sm:$0xf] %vm1465_vm12, %v10186_v38  ;;  %v2708_v38 = vpack.c.bf16 %v2698_v37, %v2698_v37 }
 0x7f5   : > { %v2730_v44 = vpop.permute.xlu0 %2729 }
 0x7f6   : > { %v9017_v43 = vpop.xlane.xlu1 %3587 }
 0x7f7   : > { %2723 = vrot.lane.b32.xlu1 %v2704_v17, %s6233_s28  ;;  %v4953_v15 = vpop.f32.mrf.mxu0  ;;  %v10188_v17 = vld [vmem:[#allocation26_spill] sm:$0xff] }
 0x7f8   : > { %3662 = vrot.lane.b32.xlu2 %v10187_v50, %s6231_s24  ;;  %v4954_v18 = vadd.f32 %v8912_v10, %v4953_v15 }
 0x7fa   : > { %5024 = vst [vmem:[%s8925_s26 + $0x30] sm:$0xff] %v4954_v18  ;;  %v3332_v18 = vsub.f32 %v8676_v11, %v8841_v61 }
 0x7fb   : > { %3367 = vadd.xlane.f32.xlu0 %v3366_v2 }
 0x7fc   : > { %v3342_v2 = vmul.f32 1.442695, %v3332_v18  ;;  %v3333_v18 = vsub.f32 %v8654_v54, %v8828_v1  ;;  %v10189_v54 = vld [vmem:[#allocation20_spill] sm:$0xff]  ;;  %v10190_v1 = vld [vmem:[#allocation70_spill] sm:$0xff] }
 0x7fe   : > { %5849 = vpow2.f32 %v3342_v2 }
 0x7ff   : > { %2727 = vrot.lane.b32.xlu1 %v2706_v58, %s6233_s28  ;;  %v4955_v55 = vpop.f32.mrf.mxu0  ;;  %v9043_v58 = vadd.f32 %v8727_v62, %v6946_v13  ;;  %v3596_v62 = vsub.f32 %v8711_v63, %v8860_v48 }
 0x800   : > { %3400 = vrot.lane.b32.xlu2 %v10187_v50, %s6232_s29  ;;  %v4956_v32 = vadd.f32 %v8912_v10, %v4955_v55 }
 0x801   : > { %v3822_v11 = vsel %vm781_vm2, %v9043_v58, -inf  ;;  %v3608_v37 = vmul.f32 1.442695, %v3596_v62 }
 0x802   : > { %5025 = vst [vmem:[%s8925_s26 + $0x38] sm:$0xff] %v4956_v32 }
 0x803   : > { %4068 = vmax.xlane.f32.xlu0 %v4067_v12 }
 0x804   : > { %v9049_v12 = vpop.eup %5849 }
 0x807   : > { %3402 = vrot.lane.b32.xlu1 %v10185_v21, %s6232_s29  ;;  %v9032_v21 = vadd.f32 %v8936_v6, %v6962_v28 }
 0x80b   : > { %3835 = vmax.xlane.f32.xlu0 %v3834_v24  ;;  %v3595_v24 = vsub.f32 %v8629_v51, %v8816_v35  ;;  %v9065_v51 = vadd.f32 %v8944_v27, %v10165_v57 }
 0x80e   : > { %v2206_v4 = vpop.permute.xlu1 %2205 }
 0x80f   : > { %2223 = vst.msk [vmem:[#allocation2 + $0x38] sm:$0xf] %vm1202_vm11, %v2206_v4  ;;  %3660 = vrot.lane.b32.xlu1 %v10155_v16, %s6231_s24  ;;  %v4055_v16 = vsel %vm781_vm2, %v9032_v21, -inf }
 0x810   : > { %2485 = vst.msk [vmem:[#allocation2 + $0x38] sm:$0xf] %vm1465_vm12, %v10188_v17  ;;  %v3606_v17 = vmul.f32 1.442695, %v3595_v24  ;;  %v688_v24 = vadd.f32 %v10190_v1, %v10189_v54  ;;  %v9126_v1 = vadd.f32 %v8960_v14, %v6999_v3 }
 0x811   : > { %2747 = vst.msk [vmem:[#allocation2 + $0x38] sm:$0xf] %vm1728_vm13, %v2730_v44  ;;  %v3360_v44 = vsel %vm781_vm2, %v9049_v12, 0.0 }
 0x817   : > { %2731 = vrot.lane.b32.xlu1 %v2708_v38, %s6233_s28 }
 0x824   : > { %v2937_v50 = vpop.f32.mrf.mxu1 }
 0x825   : > { %v2951_v15 = vpack.c.bf16 %v2937_v50, %v2937_v50  ;;  %v4058_v50 = vsel %vm781_vm2, %v9065_v51, -inf }
 0x827   : > { %2959 = vst.msk [vmem:[#allocation2 + $0x50] sm:$0xf] %vm927_vm10, %v2951_v15 }
 0x829   : > { %4056 = vmax.xlane.f32.xlu2 %v4055_v16 }
 0x82b   : > { %v9039_v25 = vpop.xlane.xlu2 %3620 }
 0x82c   : > { %v2939_v6 = vpop.f32.mrf.mxu1 }
 0x82d   : > { %v2952_v55 = vpack.c.bf16 %v2939_v6, %v2939_v6 }
 0x82f   : > { %2960 = vst.msk [vmem:[#allocation2 + $0x54] sm:$0xf] %vm927_vm10, %v2952_v55  ;;  %v3344_v55 = vmul.f32 1.442695, %v3333_v18 }
 0x831   : > { %3823 = vmax.xlane.f32.xlu2 %v3822_v11 }
 0x833   : > { %v3329_v61 = vpop.xlane.xlu2 %3328 }
 0x834   : > { %v3337_v32 = vsub.f32 %v8892_v31, %v3329_v61  ;;  %v9061_v31 = vadd.f32 %v8920_v26, %v6946_v13  ;;  %v9090_v61 = vadd.f32 %v8749_v20, %v6962_v28 }
 0x836   : > { %v3352_v4 = vmul.f32 1.442695, %v3337_v32  ;;  %v4052_v48 = vsel %vm781_vm2, %v9061_v31, -inf  ;;  %v9094_v32 = vadd.f32 %v8770_v5, %v6999_v3  ;;  %v3825_v20 = vsel %vm781_vm2, %v9090_v61, -inf }
 0x838   : > { %5851 = vpow2.f32 %v3352_v4  ;;  %v10191_v4 = vld [vmem:[#allocation71_spill] sm:$0xff] }
 0x839   : > { %3361 = vadd.xlane.f32.xlu2 %v3360_v44  ;;  %5853 = vpow2.f32 %v3606_v17  ;;  %v9082_v16 = vpop.xlane.xlu1 %3617  ;;  %v690_v62 = vadd.f32 %v10191_v4, %v10189_v54  ;;  %v3599_v44 = vsub.f32 %v8806_v60, %v8968_v7  ;;  %v3831_v17 = vsel %vm781_vm2, %v9094_v32, -inf }
 0x83a   : > { %5855 = vpow2.f32 %v3608_v37 }
 0x83b   : > { %v9057_v38 = vpop.xlane.xlu2 %3355  ;;  %5857 = vpow2.f32 %v3344_v55  ;;  %v9107_v37 = vpack.c.bf16 %v690_v62, %v688_v24  ;;  %v9131_v62 = vpop.f32.mrf.mxu2 }
 0x83e   : > { %v9067_v35 = vpop.eup %5851 }
 0x83f   : > { %v3375_v63 = vsel %vm781_vm2, %v9067_v35, 0.0  ;;  %v9075_v15 = vpop.eup %5853 }
 0x840   : > { %3376 = vadd.xlane.f32.xlu0 %v3375_v63  ;;  %v9078_v27 = vpop.eup %5855  ;;  %v3625_v2 = vsel %vm781_vm2, %v9075_v15, 0.0  ;;  %v3614_v63 = vmul.f32 1.442695, %v3599_v44  ;;  %v3335_v44 = vsub.f32 %v8746_v47, %v8903_v59  ;;  %v10192_v47 = vld [vmem:[#allocation69_spill] sm:$0xff] }
 0x841   : > { %4053 = vmax.xlane.f32.xlu1 %v4052_v48  ;;  %4059 = vmax.xlane.f32.xlu2 %v4058_v50  ;;  %v3628_v6 = vsel %vm781_vm2, %v9078_v27, 0.0  ;;  %v3326_v5 = vpop.xlane.xlu1 %3325  ;;  %v9116_v7 = vpop.eup %5857  ;;  %v3598_v59 = vsub.f32 %v10192_v47, %v9017_v43 }
 0x842   : > { %5859 = vpow2.f32 %v3614_v63  ;;  %v3336_v18 = vsub.f32 %v8918_v39, %v3326_v5  ;;  %v3348_v5 = vmul.f32 1.442695, %v3335_v44  ;;  %v9142_v63 = vadd.f32 %v8759_v23, %v10165_v57 }
 0x843   : > { %v2718_v26 = vpop.permute.xlu2 %2717  ;;  %v3612_v23 = vmul.f32 1.442695, %v3598_v59  ;;  %v10193_v59 = vld [vmem:[#allocation40_spill] sm:$0xff] }
 0x844   : > { %2741 = vst.msk [vmem:[#allocation2 + $0x20] sm:$0xf] %vm1728_vm13, %v2718_v26  ;;  %v9111_v26 = vadd.f32 %v8981_v45, %v10167_v9  ;;  %v3350_v55 = vmul.f32 1.442695, %v3336_v18  ;;  %v4049_v18 = vpop.f32.mrf.mxu2 }
 0x846   : > { %v4064_v45 = vsel %vm781_vm2, %v9111_v26, -inf  ;;  %5861 = vpow2.f32 %v3350_v55 }
 0x847   : > { %5863 = vpow2.f32 %v3348_v5 }
 0x848   : > { %v9128_v4 = vpop.eup %5859  ;;  %5865 = vpow2.f32 %v3612_v23 }
 0x849   : > { %3626 = vadd.xlane.f32.xlu1 %v3625_v2  ;;  %3629 = vadd.xlane.f32.xlu2 %v3628_v6  ;;  %v3363_v2 = vsel %vm781_vm2, %v9116_v7, 0.0  ;;  %v3637_v14 = vsel %vm781_vm2, %v9128_v4, 0.0  ;;  %5867 = vrcp.f32 %v9082_v16 }
 0x84a   : > { %5869 = vrcp.f32 %v9057_v38 }
 0x84b   : > { %v2722_v11 = vpop.permute.xlu2 %2721 }
 0x84c   : > { %2743 = vst.msk [vmem:[#allocation2 + $0x28] sm:$0xf] %vm1728_vm13, %v2722_v11 }
 0x851   : > { %3826 = vmax.xlane.f32.xlu1 %v3825_v20  ;;  %3832 = vmax.xlane.f32.xlu2 %v3831_v17  ;;  %v4061_v20 = vsel %vm781_vm2, %v9126_v1, -inf }
 0x853   : > { %v2726_v48 = vpop.permute.xlu2 %2725  ;;  %v2942_v50 = vpop.f32.mrf.mxu1 }
 0x854   : > { %2745 = vst.msk [vmem:[#allocation2 + $0x30] sm:$0xf] %vm1728_vm13, %v2726_v48  ;;  %v2953_v60 = vpack.c.bf16 %v2942_v50, %v2942_v50  ;;  %4154 = vrot.lane.b32.xlu0 %v9107_v37, %s6233_s28  ;;  %v9144_v48 = vpop.eup %5861  ;;  %v3828_v50 = vsel %vm781_vm2, %v9142_v63, -inf }
 0x855   : > { %v9156_v55 = vpop.eup %5863 }
 0x856   : > { %2961 = vst.msk [vmem:[#allocation2 + $0x58] sm:$0xf] %vm927_vm10, %v2953_v60  ;;  %v3372_v60 = vsel %vm781_vm2, %v9144_v48, 0.0  ;;  %v3369_v43 = vsel %vm781_vm2, %v9156_v55, 0.0  ;;  %v9163_v44 = vpop.eup %5865 }
 0x857   : > { %v5868_v5 = vpop.eup %5867 }
 0x858   : > { %v5870_v47 = vpop.eup %5869 }
 0x859   : > { %3364 = vadd.xlane.f32.xlu1 %v3363_v2  ;;  %v3665_v6 = vpop.permute.xlu1 %3664  ;;  %4065 = vmax.xlane.f32.xlu2 %v4064_v45 }
 0x85a   : > { %3689 = vmatpush.bf16.msrb.mxu3 %v3665_v6  ;;  %v9154_v6 = vadd.f32 %v4049_v18, %v7070_v46  ;;  %v3386_v18 = vmul.f32 %v5870_v47, %v8905_v41 }
 0x85b   : > { %v2944_v11 = vpop.f32.mrf.mxu1  ;;  %v3663_v39 = vpop.permute.xlu2 %3662 }
 0x85c   : > { %v2954_v24 = vpack.c.bf16 %v2944_v11, %v2944_v11  ;;  %v4073_v11 = vsel %vm781_vm2, %v9154_v6, -inf }
 0x85e   : > { %2962 = vst.msk [vmem:[#allocation2 + $0x5c] sm:$0xf] %vm927_vm10, %v2954_v24  ;;  %3690 = vmatpush.bf16.msrb.mxu3 %v3663_v39  ;;  %v3359_v39 = vpop.xlane.xlu0 %3358 }
 0x85f   : > { %5871 = vrcp.f32 %v3359_v39 }
 0x860   : > { %5873 = vrcp.f32 %v9039_v25  ;;  %v3648_v25 = vmul.f32 %v5868_v5, %v8901_v22  ;;  %v10196_v5 = vld [vmem:[#allocation64_spill] sm:$0xff] }
 0x861   : > { %4062 = vmax.xlane.f32.xlu1 %v4061_v20  ;;  %v2720_v17 = vpop.permute.xlu1 %2719  ;;  %3638 = vadd.xlane.f32.xlu2 %v3637_v14  ;;  %v3634_v20 = vsel %vm781_vm2, %v9163_v44, 0.0  ;;  %v678_v47 = vadd.f32 %v10196_v5, %v10189_v54 }
 0x862   : > { %2742 = vst.msk [vmem:[#allocation2 + $0x24] sm:$0xf] %vm1728_vm13, %v2720_v17 }
 0x865   : > { %v5872_v16 = vpop.eup %5871 }
 0x866   : > { %v5874_v38 = vpop.eup %5873 }
 0x867   : > { %v3649_v39 = vmul.f32 %v5874_v38, %v8878_v8  ;;  %v10199_v38 = vld [vmem:[#allocation62_spill] sm:$0xff] }
 0x869   : > { %3829 = vmax.xlane.f32.xlu1 %v3828_v50  ;;  %v2724_v2 = vpop.permute.xlu1 %2723  ;;  %3373 = vadd.xlane.f32.xlu2 %v3372_v60  ;;  %v5389_v45 = vld [vmem:[#allocation2 + $0x20] sm:$0xff]  ;;  %v9172_v50 = vadd.f32 %v10193_v59, %v7033_v36  ;;  %v3401_v60 = vpop.permute.xlu2 %3400  ;;  %v3656_v22 = vpack.c.bf16 %v3649_v39, %v3648_v25  ;;  %v675_v25 = vadd.f32 %v10199_v38, %v10189_v54 }
 0x86a   : > { %2744 = vst.msk [vmem:[#allocation2 + $0x2c] sm:$0xf] %vm1728_vm13, %v2724_v2  ;;  %4957 = vmatmul.bf16.gmra.mxu0 %v5389_v45  ;;  %v10194_v45 = vld [vmem:[#allocation67_spill] sm:$0xff] }
 0x86b   : > { %v3837_v2 = vsel %vm781_vm2, %v9172_v50, -inf  ;;  %v683_v23 = vadd.f32 %v10194_v45, %v10189_v54 }
 0x871   : > { %3370 = vadd.xlane.f32.xlu1 %v3369_v43  ;;  %v2728_v24 = vpop.permute.xlu1 %2727  ;;  %4074 = vmax.xlane.f32.xlu2 %v4073_v11  ;;  %v5390_v17 = vld [vmem:[#allocation2 + $0x28] sm:$0xff] }
 0x872   : > { %2746 = vst.msk [vmem:[#allocation2 + $0x34] sm:$0xf] %vm1728_vm13, %v2728_v24  ;;  %v10195_v43 = vld [vmem:[#allocation68_spill] sm:$0xff]  ;;  %v3387_v24 = vmul.f32 %v5872_v16, %v8867_v52  ;;  %v10197_v52 = vld [vmem:[#allocation66_spill] sm:$0xff] }
 0x873   : > { %v685_v11 = vadd.f32 %v10195_v43, %v10189_v54  ;;  %v680_v59 = vadd.f32 %v10197_v52, %v10189_v54 }
 0x874   : > { %v3394_v41 = vpack.c.bf16 %v3387_v24, %v3386_v18 }
 0x875   : > { %v9193_v8 = vpack.c.bf16 %v685_v11, %v683_v23  ;;  %v9204_v18 = vpack.c.bf16 %v680_v59, %v678_v47  ;;  %v10200_v59 = vld [vmem:[#allocation63_spill] sm:$0xff] }
 0x879   : > { %3635 = vadd.xlane.f32.xlu1 %v3634_v20  ;;  %v3403_v14 = vpop.permute.xlu1 %3402  ;;  %v3399_v20 = vpop.permute.xlu0 %3398  ;;  %v5391_v45 = vld [vmem:[#allocation2 + $0x30] sm:$0xff] }
 0x87a   : > { %3427 = vmatpush.bf16.msra.mxu1 %v3403_v14  ;;  %4962 = vmatmul.bf16.gmra.mxu0 %v5390_v17  ;;  %v9187_v17 = vadd.f32 %v9131_v62, %v7051_v34  ;;  %v10198_v62 = vld [vmem:[#allocation60_spill] sm:$0xff] }
 0x87c   : > { %v4070_v16 = vsel %vm781_vm2, %v9187_v17, -inf }
 0x87e   : > { %3428 = vmatpush.bf16.msra.mxu1 %v3401_v60  ;;  %v673_v60 = vadd.f32 %v10198_v62, %v10189_v54 }
 0x880   : > { %v9208_v23 = vpack.c.bf16 %v675_v25, %v673_v60 }
 0x881   : > { %3838 = vmax.xlane.f32.xlu1 %v3837_v2  ;;  %v3661_v14 = vpop.permute.xlu1 %3660  ;;  %v3624_v43 = vpop.xlane.xlu0 %3623 }
 0x882   : > { %3429 = vmatpush.bf16.msra.mxu1 %v3399_v20  ;;  %3691 = vmatpush.bf16.msrb.mxu3 %v3661_v14 }
 0x885   : > { %5269 = vmatmul.msk.bf16.vlgmr.msra.gmra.mxu1 %vm781_vm2, %v3394_v41  ;;  %5277 = vmatmul.msk.bf16.vlgmr.msrb.gmra.mxu3 %vm781_vm2, %v3656_v22 }
 0x886   : > { %3934 = vmatpush.bf16.msrb.mxu1 %v9107_v37 }
 0x889   : > { %4071 = vmax.xlane.f32.xlu1 %v4070_v16  ;;  %v2732_v2 = vpop.permute.xlu1 %2731  ;;  %v3633_v11 = vpop.xlane.xlu0 %3632  ;;  %v9221_v16 = vadd.f32 %v10200_v59, %v7070_v46 }
 0x88a   : > { %3935 = vmatpush.bf16.msrb.mxu1 %v9193_v8  ;;  %2748 = vst.msk [vmem:[#allocation2 + $0x3c] sm:$0xf] %vm1728_vm13, %v2732_v2  ;;  %4967 = vmatmul.bf16.gmra.mxu0 %v5391_v45 }
 0x88e   : > { %3936 = vmatpush.bf16.msrb.mxu1 %v9204_v18 }
 0x891   : > { %v5392_v24 = vld [vmem:[#allocation2 + $0x38] sm:$0xff]  ;;  %v9212_v14 = vpop.xlane.xlu0 %3367 }
 0x892   : > { %3937 = vmatpush.bf16.msrb.mxu1 %v9208_v23 }
 0x899   : > { %v9223_v62 = vpop.xlane.xlu0 %4068 }
 0x89a   : > { %4972 = vmatmul.bf16.gmra.mxu0 %v5392_v24 }
 0x89c   : > { %v4057_v39 = vpop.xlane.xlu2 %4056 }
 0x89d   : > { %v4077_v54 = vsub.f32 %v9032_v21, %v4057_v39  ;;  %v3843_v21 = vsel %vm781_vm2, %v9221_v16, -inf }
 0x89f   : > { %v4086_v20 = vmul.f32 1.442695, %v4077_v54 }
 0x8a1   : > { %5875 = vpow2.f32 %v4086_v20  ;;  %v9230_v2 = vpop.xlane.xlu0 %3835 }
 0x8a4   : > { %v3824_v22 = vpop.xlane.xlu2 %3823 }
 0x8a5   : > { %v3846_v5 = vsub.f32 %v9043_v58, %v3824_v22 }
 0x8a7   : > { %v9214_v41 = vpop.eup %5875  ;;  %v3854_v52 = vmul.f32 1.442695, %v3846_v5 }
 0x8a8   : > { %v4103_v47 = vsel %vm781_vm2, %v9214_v41, 0.0 }
 0x8a9   : > { %4104 = vadd.xlane.f32.xlu2 %v4103_v47  ;;  %5877 = vpow2.f32 %v3854_v52  ;;  %v10201_v52 = vld [vmem:[#allocation43_spill] sm:$0xff] }
 0x8aa   : > { %v9242_v59 = vadd.f32 %v10201_v52, %v7051_v34 }
 0x8ac   : > { %v3362_v60 = vpop.xlane.xlu2 %3361 }
 0x8af   : > { %v9227_v25 = vpop.eup %5877 }
 0x8b0   : > { %v3870_v24 = vsel %vm781_vm2, %v9227_v25, 0.0 }
 0x8b1   : > { %3844 = vmax.xlane.f32.xlu2 %v3843_v21 }
 0x8b3   : > { %v9234_v20 = vpop.xlane.xlu0 %3376 }
 0x8b4   : > { %v4054_v38 = vpop.xlane.xlu1 %4053  ;;  %v4060_v39 = vpop.xlane.xlu2 %4059 }
 0x8b5   : > { %v4076_v58 = vsub.f32 %v9061_v31, %v4054_v38  ;;  %v4078_v19 = vsub.f32 %v9065_v51, %v4060_v39 }
 0x8b7   : > { %v4084_v45 = vmul.f32 1.442695, %v4076_v58 }
 0x8b9   : > { %5879 = vpow2.f32 %v4084_v45  ;;  %3871 = vadd.xlane.f32.xlu2 %v3870_v24 }
 0x8ba   : > { %5881 = vrcp.f32 %v3624_v43 }
 0x8bc   : > { %v3627_v54 = vpop.xlane.xlu1 %3626  ;;  %v3630_v58 = vpop.xlane.xlu2 %3629 }
 0x8bd   : > { %5883 = vrcp.f32 %v3627_v54 }
 0x8be   : > { %5885 = vrcp.f32 %v3630_v58 }
 0x8bf   : > { %v9236_v22 = vpop.eup %5879 }
 0x8c0   : > { %v4100_v5 = vsel %vm781_vm2, %v9236_v22, 0.0  ;;  %v5882_v31 = vpop.eup %5881 }
 0x8c1   : > { %4101 = vadd.xlane.f32.xlu1 %v4100_v5  ;;  %v3650_v21 = vmul.f32 %v5882_v31, %v8958_v40  ;;  %v3840_v5 = vsel %vm781_vm2, %v9242_v59, -inf  ;;  %v4088_v40 = vmul.f32 1.442695, %v4078_v19 }
 0x8c3   : > { %v5884_v47 = vpop.eup %5883 }
 0x8c4   : > { %v3651_v43 = vmul.f32 %v5884_v47, %v9075_v15  ;;  %v3827_v38 = vpop.xlane.xlu1 %3826  ;;  %v9253_v39 = vpop.xlane.xlu2 %3832 }
 0x8c5   : > { %v3847_v45 = vsub.f32 %v9090_v61, %v3827_v38  ;;  %v5886_v61 = vpop.eup %5885 }
 0x8c6   : > { %v4155_v24 = vpop.permute.xlu0 %4154  ;;  %v3657_v54 = vpack.c.bf16 %v3651_v43, %v3650_v21 }
 0x8c7   : > { %v3856_v42 = vmul.f32 1.442695, %v3847_v45  ;;  %4176 = vmatpush.bf16.msra.mxu3 %v4155_v24 }
 0x8c8   : > { %5278 = vmatmul.msk.bf16.gmra.mxu3 %vm781_vm2, %v3657_v54 }
 0x8c9   : > { %5887 = vpow2.f32 %v3856_v42  ;;  %3841 = vmax.xlane.f32.xlu1 %v3840_v5  ;;  %v3652_v42 = vmul.f32 %v5886_v61, %v9078_v27 }
 0x8ca   : > { %5889 = vrcp.f32 %v3633_v11 }
 0x8cb   : > { %5891 = vrcp.f32 %v3362_v60 }
 0x8cc   : > { %v3365_v15 = vpop.xlane.xlu1 %3364 }
 0x8cd   : > { %5893 = vrcp.f32 %v3365_v15  ;;  %v10202_v15 = vld [vmem:[#allocation48_spill] sm:$0xff] }
 0x8ce   : > { %5895 = vpow2.f32 %v4088_v40  ;;  %v9283_v61 = vadd.f32 %v10202_v15, %v6946_v13 }
 0x8cf   : > { %v9251_v31 = vpop.eup %5887 }
 0x8d0   : > { %v5890_v51 = vpop.eup %5889  ;;  %v3873_v47 = vsel %vm781_vm2, %v9251_v31, 0.0 }
 0x8d1   : > { %v5892_v52 = vpop.eup %5891  ;;  %4150 = vrot.lane.b32.xlu2 %v9204_v18, %s6233_s28  ;;  %3874 = vadd.xlane.f32.xlu0 %v3873_v47  ;;  %v3653_v11 = vmul.f32 %v5890_v51, %v8977_v29  ;;  %v9270_v29 = vpop.f32.mrf.mxu2 }
 0x8d2   : > { %v3388_v60 = vmul.f32 %v5892_v52, %v9049_v12  ;;  %v9272_v12 = vpop.xlane.xlu2 %4065 }
 0x8d3   : > { %v5894_v19 = vpop.eup %5893  ;;  %v3658_v24 = vpack.c.bf16 %v3653_v11, %v3652_v42  ;;  %v4318_v42 = vsel %vm781_vm2, %v9283_v61, -inf }
 0x8d4   : > { %v3389_v21 = vmul.f32 %v5894_v19, %v9116_v7  ;;  %v4063_v43 = vpop.xlane.xlu1 %4062  ;;  %v9263_v38 = vpop.eup %5895 }
 0x8d5   : > { %v4079_v58 = vsub.f32 %v9126_v1, %v4063_v43  ;;  %v4106_v27 = vsel %vm781_vm2, %v9263_v38, 0.0 }
 0x8d6   : > { %v3395_v45 = vpack.c.bf16 %v3389_v21, %v3388_v60  ;;  %v10203_v21 = vld [vmem:[#allocation49_spill] sm:$0xff] }
 0x8d7   : > { %v4090_v54 = vmul.f32 1.442695, %v4079_v58  ;;  %v9293_v43 = vadd.f32 %v10203_v21, %v6962_v28 }
 0x8d8   : > { %5270 = vmatmul.msk.bf16.gmra.mxu1 %vm781_vm2, %v3395_v45  ;;  %5279 = vmatmul.msk.bf16.gmra.mxu3 %vm781_vm2, %v3658_v24 }
 0x8d9   : > { %5897 = vpow2.f32 %v4090_v54  ;;  %4107 = vadd.xlane.f32.xlu0 %v4106_v27  ;;  %v4562_v40 = vpop.f32.mrf.mxu2 }
 0x8da   : > { %5899 = vrcp.f32 %v9212_v14  ;;  %v3639_v51 = vpop.xlane.xlu2 %3638 }
 0x8dc   : > { %v3830_v7 = vpop.xlane.xlu1 %3829 }
 0x8dd   : > { %v3848_v15 = vsub.f32 %v9142_v63, %v3830_v7 }
 0x8df   : > { %v9274_v5 = vpop.eup %5897 }
 0x8e0   : > { %v4109_v1 = vsel %vm781_vm2, %v9274_v5, 0.0  ;;  %v5900_v19 = vpop.eup %5899 }
 0x8e1   : > { %4110 = vadd.xlane.f32.xlu0 %v4109_v1  ;;  %v4565_v14 = vpop.f32.mrf.mxu2  ;;  %v3390_v58 = vmul.f32 %v5900_v19, %v8992_v0  ;;  %v4081_v1 = vsub.f32 %v9004_v30, %v9223_v62  ;;  %v3858_v62 = vmul.f32 1.442695, %v3848_v15  ;;  %v9312_v19 = vadd.f32 %v4562_v40, %v6962_v28 }
 0x8e2   : > { %4152 = vrot.lane.b32.xlu1 %v9193_v8, %s6233_s28  ;;  %v3374_v54 = vpop.xlane.xlu2 %3373  ;;  %v9307_v30 = vadd.f32 %v4565_v14, %v10165_v57 }
 0x8e3   : > { %v4583_v28 = vsel %vm781_vm2, %v9312_v19, -inf }
 0x8e4   : > { %v3371_v47 = vpop.xlane.xlu1 %3370 }
 0x8e5   : > { %5901 = vrcp.f32 %v3371_v47  ;;  %v4321_v47 = vsel %vm781_vm2, %v9293_v43, -inf }
 0x8e6   : > { %5903 = vrcp.f32 %v3639_v51 }
 0x8e7   : > { %v4958_v52 = vpop.f32.mrf.mxu0 }
 0x8e8   : > { %v4959_v11 = vadd.f32 %v8912_v10, %v4958_v52 }
 0x8e9   : > { %4319 = vmax.xlane.f32.xlu0 %v4318_v42  ;;  %v4094_v42 = vmul.f32 1.442695, %v4081_v1 }
 0x8ea   : > { %4148 = vrot.lane.b32.xlu1 %v9208_v23, %s6233_s28  ;;  %5026 = vst [vmem:[%s8925_s26 + $0x40] sm:$0xff] %v4959_v11  ;;  %v4567_v11 = vpop.f32.mrf.mxu2 }
 0x8eb   : > { %v5902_v60 = vpop.eup %5901 }
 0x8ec   : > { %v3391_v45 = vmul.f32 %v5902_v60, %v9156_v55  ;;  %v3636_v24 = vpop.xlane.xlu1 %3635  ;;  %v5904_v52 = vpop.eup %5903 }
 0x8ed   : > { %5905 = vrcp.f32 %v3636_v24  ;;  %v3655_v63 = vmul.f32 %v5904_v52, %v9128_v4  ;;  %v4586_v4 = vsel %vm781_vm2, %v9307_v30, -inf  ;;  %v9341_v52 = vadd.f32 %v4567_v11, %v6999_v3 }
 0x8ee   : > { %v3396_v27 = vpack.c.bf16 %v3391_v45, %v3390_v58  ;;  %5907 = vrcp.f32 %v3374_v54 }
 0x8ef   : > { %v4960_v51 = vpop.f32.mrf.mxu0  ;;  %5909 = vrcp.f32 %v9234_v20  ;;  %v3850_v20 = vsub.f32 %v9015_v33, %v9230_v2 }
 0x8f0   : > { %5271 = vmatmul.msk.bf16.gmra.mxu1 %vm781_vm2, %v3396_v27  ;;  %v4961_v0 = vadd.f32 %v8912_v10, %v4960_v51  ;;  %5911 = vpow2.f32 %v4094_v42 }
 0x8f1   : > { %4322 = vmax.xlane.f32.xlu0 %v4321_v47  ;;  %5913 = vpow2.f32 %v3858_v62  ;;  %v3862_v45 = vmul.f32 1.442695, %v3850_v20 }
 0x8f2   : > { %5027 = vst [vmem:[%s8925_s26 + $0x48] sm:$0xff] %v4961_v0  ;;  %v9329_v27 = vpop.f32.mrf.mxu2 }
 0x8f3   : > { %v5906_v55 = vpop.eup %5905  ;;  %5915 = vpow2.f32 %v3862_v45 }
 0x8f4   : > { %v3654_v7 = vmul.f32 %v5906_v55, %v9163_v44  ;;  %v5908_v21 = vpop.eup %5907  ;;  %v3839_v51 = vpop.xlane.xlu1 %3838 }
 0x8f5   : > { %v5910_v58 = vpop.eup %5909  ;;  %v3392_v40 = vmul.f32 %v5908_v21, %v9144_v48  ;;  %v3851_v0 = vsub.f32 %v9172_v50, %v3839_v51  ;;  %v10204_v21 = vld [vmem:[#allocation80_spill] sm:$0xff] }
 0x8f6   : > { %v3659_v60 = vpack.c.bf16 %v3655_v63, %v3654_v7  ;;  %v3393_v33 = vmul.f32 %v5910_v58, %v9067_v35  ;;  %v9325_v2 = vpop.eup %5911  ;;  %v4589_v7 = vsel %vm781_vm2, %v9341_v52, -inf  ;;  %v9357_v20 = vadd.f32 %v10204_v21, %v10165_v57 }
 0x8f7   : > { %v4963_v14 = vpop.f32.mrf.mxu0  ;;  %v9327_v24 = vpop.eup %5913  ;;  %v4115_v48 = vsel %vm781_vm2, %v9325_v2, 0.0  ;;  %v3864_v50 = vmul.f32 1.442695, %v3851_v0  ;;  %v9361_v58 = vadd.f32 %v9270_v29, %v6946_v13  ;;  %v9407_v21 = vadd.f32 %v8853_v56, %v6999_v3 }
 0x8f8   : > { %5280 = vmatmul.msk.bf16.gmra.mxu3 %vm781_vm2, %v3659_v60  ;;  %v4964_v44 = vadd.f32 %v8912_v10, %v4963_v14  ;;  %v3397_v54 = vpack.c.bf16 %v3393_v33, %v3392_v40  ;;  %v3876_v35 = vsel %vm781_vm2, %v9327_v24, 0.0  ;;  %v3849_v60 = vsub.f32 %v9094_v32, %v9253_v39  ;;  %v4075_v29 = vpop.xlane.xlu2 %4074 }
 0x8f9   : > { %4587 = vmax.xlane.f32.xlu0 %v4586_v4  ;;  %v9338_v47 = vpop.eup %5915  ;;  %5917 = vpow2.f32 %v3864_v50  ;;  %v4324_v57 = vsel %vm781_vm2, %v9357_v20, -inf  ;;  %v4080_v40 = vsub.f32 %v9111_v26, %v9272_v12  ;;  %v4580_v13 = vsel %vm781_vm2, %v9361_v58, -inf }
 0x8fa   : > { %4584 = vmax.xlane.f32.xlu2 %v4583_v28  ;;  %5028 = vst [vmem:[%s8925_s26 + $0x50] sm:$0xff] %v4964_v44  ;;  %v3882_v42 = vsel %vm781_vm2, %v9338_v47, 0.0  ;;  %v4572_v63 = vpop.f32.mrf.mxu2  ;;  %v3860_v4 = vmul.f32 1.442695, %v3849_v60  ;;  %v9402_v60 = vadd.f32 %v8871_v49, %v7033_v36  ;;  %v9421_v3 = vadd.f32 %v9329_v27, %v10167_v9 }
 0x8fb   : > { %v9353_v11 = vadd.f32 %v4572_v63, %v7033_v36 }
 0x8fc   : > { %v4072_v14 = vpop.xlane.xlu1 %4071  ;;  %5919 = vpow2.f32 %v3860_v4 }
 0x8fd   : > { %v4082_v32 = vsub.f32 %v9187_v17, %v4072_v14  ;;  %v4595_v44 = vsel %vm781_vm2, %v9353_v11, -inf  ;;  %v9376_v17 = vadd.f32 %v8862_v53, %v10167_v9  ;;  %v4333_v14 = vsel %vm781_vm2, %v9402_v60, -inf }
 0x8ff   : > { %v4965_v1 = vpop.f32.mrf.mxu0  ;;  %v4096_v45 = vmul.f32 1.442695, %v4082_v32  ;;  %v9378_v33 = vpop.eup %5917  ;;  %v4330_v12 = vsel %vm781_vm2, %v9376_v17, -inf  ;;  %v4083_v32 = vsub.f32 %v9154_v6, %v4075_v29 }
 0x900   : > { %5272 = vmatmul.msk.bf16.gmra.mxu1 %vm781_vm2, %v3397_v54  ;;  %v4966_v15 = vadd.f32 %v8912_v10, %v4965_v1  ;;  %v4092_v54 = vmul.f32 1.442695, %v4080_v40  ;;  %v3885_v53 = vsel %vm781_vm2, %v9378_v33, 0.0 }
 0x901   : > { %4116 = vadd.xlane.f32.xlu0 %v4115_v48  ;;  %5921 = vpow2.f32 %v4096_v45  ;;  %v4098_v49 = vmul.f32 1.442695, %v4083_v32 }
 0x902   : > { %3877 = vadd.xlane.f32.xlu2 %v3876_v35  ;;  %5029 = vst [vmem:[%s8925_s26 + $0x58] sm:$0xff] %v4966_v15  ;;  %v9380_v1 = vpop.eup %5919  ;;  %5923 = vpow2.f32 %v4092_v54  ;;  %v4575_v4 = vpop.f32.mrf.mxu2 }
 0x903   : > { %v3879_v15 = vsel %vm781_vm2, %v9380_v1, 0.0  ;;  %v9415_v36 = vadd.f32 %v4575_v4, %v7051_v34 }
 0x905   : > { %v4598_v6 = vsel %vm781_vm2, %v9415_v36, -inf }
 0x907   : > { %v4968_v55 = vpop.f32.mrf.mxu0  ;;  %v9390_v51 = vpop.eup %5921 }
 0x908   : > { %v4969_v62 = vadd.f32 %v8912_v10, %v4968_v55  ;;  %v9392_v0 = vpop.eup %5923  ;;  %v4118_v63 = vsel %vm781_vm2, %v9390_v51, 0.0 }
 0x909   : > { %3883 = vadd.xlane.f32.xlu0 %v3882_v42 }
 0x90a   : > { %4590 = vmax.xlane.f32.xlu2 %v4589_v7  ;;  %5030 = vst [vmem:[%s8925_s26 + $0x60] sm:$0xff] %v4969_v62  ;;  %v4112_v62 = vsel %vm781_vm2, %v9392_v0, 0.0 }
 0x90f   : > { %v4970_v39 = vpop.f32.mrf.mxu0 }
 0x910   : > { %v4971_v28 = vadd.f32 %v8912_v10, %v4970_v39  ;;  %v4327_v39 = vsel %vm781_vm2, %v9407_v21, -inf }
 0x911   : > { %4596 = vmax.xlane.f32.xlu0 %v4595_v44  ;;  %v4592_v44 = vsel %vm781_vm2, %v9421_v3, -inf }
 0x912   : > { %4325 = vmax.xlane.f32.xlu2 %v4324_v57  ;;  %5031 = vst [vmem:[%s8925_s26 + $0x68] sm:$0xff] %v4971_v28 }
 0x914   : > { %4581 = vmax.xlane.f32.xlu1 %v4580_v13 }
 0x917   : > { %v4973_v26 = vpop.f32.mrf.mxu0 }
 0x918   : > { %v4974_v48 = vadd.f32 %v8912_v10, %v4973_v26 }
 0x919   : > { %4331 = vmax.xlane.f32.xlu0 %v4330_v12 }
 0x91a   : > { %3886 = vadd.xlane.f32.xlu2 %v3885_v53  ;;  %5032 = vst [vmem:[%s8925_s26 + $0x70] sm:$0xff] %v4974_v48  ;;  %v4577_v48 = vpop.f32.mrf.mxu2 }
 0x91c   : > { %3880 = vadd.xlane.f32.xlu1 %v3879_v15  ;;  %v4105_v35 = vpop.xlane.xlu2 %4104 }
 0x91f   : > { %v4975_v55 = vpop.f32.mrf.mxu0 }
 0x920   : > { %v4976_v42 = vadd.f32 %v8912_v10, %v4975_v55 }
 0x922   : > { %4119 = vadd.xlane.f32.xlu2 %v4118_v63  ;;  %5033 = vst [vmem:[%s8925_s26 + $0x78] sm:$0xff] %v4976_v42 }
 0x924   : > { %4113 = vadd.xlane.f32.xlu1 %v4112_v62  ;;  %v3845_v7 = vpop.xlane.xlu2 %3844 }
 0x925   : > { %v3853_v50 = vsub.f32 %v9221_v16, %v3845_v7 }
 0x927   : > { %v3868_v10 = vmul.f32 1.442695, %v3853_v50 }
 0x929   : > { %5925 = vpow2.f32 %v3868_v10 }
 0x92a   : > { %4334 = vmax.xlane.f32.xlu2 %v4333_v14  ;;  %5927 = vpow2.f32 %v4098_v49 }
 0x92c   : > { %4328 = vmax.xlane.f32.xlu1 %v4327_v39  ;;  %v3872_v29 = vpop.xlane.xlu2 %3871 }
 0x92f   : > { %v9417_v16 = vpop.eup %5925 }
 0x930   : > { %v3891_v56 = vsel %vm781_vm2, %v9417_v16, 0.0  ;;  %v9429_v57 = vpop.eup %5927 }
 0x931   : > { %3892 = vadd.xlane.f32.xlu0 %v3891_v56  ;;  %v4121_v9 = vsel %vm781_vm2, %v9429_v57, 0.0 }
 0x932   : > { %4599 = vmax.xlane.f32.xlu2 %v4598_v6 }
 0x934   : > { %v4102_v28 = vpop.xlane.xlu1 %4101  ;;  %4593 = vmax.xlane.f32.xlu1 %v4592_v44 }
 0x93c   : > { %v3842_v27 = vpop.xlane.xlu1 %3841  ;;  %4122 = vadd.xlane.f32.xlu1 %v4121_v9 }
 0x93d   : > { %v3852_v40 = vsub.f32 %v9242_v59, %v3842_v27  ;;  %v9441_v59 = vadd.f32 %v4577_v48, %v7070_v46 }
 0x93f   : > { %v3866_v13 = vmul.f32 1.442695, %v3852_v40  ;;  %v4601_v62 = vsel %vm781_vm2, %v9441_v59, -inf }
 0x941   : > { %5929 = vpow2.f32 %v3866_v13 }
 0x942   : > { %5931 = vrcp.f32 %v3872_v29 }
 0x944   : > { %v3875_v45 = vpop.xlane.xlu0 %3874 }
 0x945   : > { %5933 = vrcp.f32 %v3875_v45  ;;  %4678 = vrot.lane.b32.xlu0 %v9107_v37, %s6231_s24 }
 0x946   : > { %5935 = vrcp.f32 %v4102_v28 }
 0x947   : > { %v9436_v54 = vpop.eup %5929  ;;  %5937 = vrcp.f32 %v4105_v35 }
 0x948   : > { %v3888_v26 = vsel %vm781_vm2, %v9436_v54, 0.0  ;;  %v5932_v12 = vpop.eup %5931 }
 0x949   : > { %3889 = vadd.xlane.f32.xlu1 %v3888_v26  ;;  %v3902_v15 = vmul.f32 %v5932_v12, %v9227_v25  ;;  %v4151_v25 = vpop.permute.xlu2 %4150  ;;  %v10205_v12 = vld [vmem:[#allocation65_spill] sm:$0xff] }
 0x94a   : > { %v9469_v48 = vadd.f32 %v10205_v12, %v7070_v46 }
 0x94b   : > { %v5934_v53 = vpop.eup %5933 }
 0x94c   : > { %v3903_v55 = vmul.f32 %v5934_v53, %v9251_v31  ;;  %v4108_v42 = vpop.xlane.xlu0 %4107  ;;  %v5936_v10 = vpop.eup %5935 }
 0x94d   : > { %4676 = vrot.lane.b32.xlu0 %v9193_v8, %s6231_s24  ;;  %v5938_v14 = vpop.eup %5937  ;;  %v4132_v31 = vmul.f32 %v5936_v10, %v9236_v22 }
 0x94e   : > { %v3910_v63 = vpack.c.bf16 %v3903_v55, %v3902_v15  ;;  %v4133_v4 = vmul.f32 %v5938_v14, %v9214_v41 }
 0x950   : > { %5285 = vmatmul.msk.bf16.vlgmr.msrb.gmra.mxu1 %vm781_vm2, %v3910_v63  ;;  %v4140_v49 = vpack.c.bf16 %v4133_v4, %v4132_v31  ;;  %v4339_v63 = vsel %vm781_vm2, %v9469_v48, -inf }
 0x951   : > { %4602 = vmax.xlane.f32.xlu1 %v4601_v62 }
 0x954   : > { %v4153_v7 = vpop.permute.xlu1 %4152  ;;  %v4111_v50 = vpop.xlane.xlu0 %4110 }
 0x955   : > { %4177 = vmatpush.bf16.msra.mxu3 %v4153_v7  ;;  %5939 = vrcp.f32 %v4111_v50 }
 0x956   : > { %5941 = vrcp.f32 %v4108_v42 }
 0x959   : > { %4178 = vmatpush.bf16.msra.mxu3 %v4151_v25 }
 0x95b   : > { %v5940_v6 = vpop.eup %5939 }
 0x95c   : > { %v4149_v32 = vpop.permute.xlu1 %4148  ;;  %v4320_v39 = vpop.xlane.xlu0 %4319  ;;  %v4135_v9 = vmul.f32 %v5940_v6, %v9274_v5 }
 0x95d   : > { %4179 = vmatpush.bf16.msra.mxu3 %v4149_v32  ;;  %v5942_v44 = vpop.eup %5941 }
 0x95e   : > { %v4134_v22 = vmul.f32 %v5942_v44, %v9263_v38  ;;  %v4342_v38 = vsub.f32 %v9283_v61, %v4320_v39  ;;  %v9476_v61 = vpop.f32.mrf.mxu1  ;;  %v10206_v44 = vld [vmem:[#allocation79_spill] sm:$0xff] }
 0x960   : > { %5293 = vmatmul.msk.bf16.vlgmr.msra.gmra.mxu3 %vm781_vm2, %v4140_v49  ;;  %v4141_v40 = vpack.c.bf16 %v4135_v9, %v4134_v22 }
 0x964   : > { %v4323_v35 = vpop.xlane.xlu0 %4322 }
 0x965   : > { %v4343_v56 = vsub.f32 %v9293_v43, %v4323_v35 }
 0x966   : > { %v9487_v31 = vpop.f32.mrf.mxu1 }
 0x967   : > { %v4352_v28 = vmul.f32 1.442695, %v4343_v56 }
 0x969   : > { %5943 = vpow2.f32 %v4352_v28  ;;  %v9499_v28 = vadd.f32 %v10206_v44, %v7051_v34 }
 0x96c   : > { %v9472_v55 = vpop.xlane.xlu0 %4587 }
 0x96d   : > { %v4585_v41 = vpop.xlane.xlu2 %4584 }
 0x96e   : > { %v4605_v27 = vsub.f32 %v9312_v19, %v4585_v41  ;;  %v4350_v19 = vmul.f32 1.442695, %v4342_v38  ;;  %v9495_v56 = vpop.f32.mrf.mxu1 }
 0x96f   : > { %v9458_v29 = vpop.eup %5943 }
 0x970   : > { %v4614_v13 = vmul.f32 1.442695, %v4605_v27  ;;  %5294 = vmatmul.msk.bf16.gmra.mxu3 %vm781_vm2, %v4141_v40  ;;  %v4369_v43 = vsel %vm781_vm2, %v9458_v29, 0.0 }
 0x972   : > { %5945 = vpow2.f32 %v4614_v13  ;;  %v4336_v13 = vsel %vm781_vm2, %v9499_v28, -inf }
 0x973   : > { %5947 = vpow2.f32 %v4350_v19 }
 0x974   : > { %v4117_v10 = vpop.xlane.xlu0 %4116 }
 0x975   : > { %v3878_v45 = vpop.xlane.xlu2 %3877 }
 0x976   : > { %v9506_v34 = vpop.f32.mrf.mxu1 }
 0x977   : > { %4370 = vadd.xlane.f32.xlu0 %v4369_v43 }
 0x978   : > { %v9462_v26 = vpop.eup %5945 }
 0x979   : > { %v4631_v5 = vsel %vm781_vm2, %v9462_v26, 0.0  ;;  %v9478_v62 = vpop.eup %5947 }
 0x97a   : > { %4632 = vadd.xlane.f32.xlu1 %v4631_v5 }
 0x97d   : > { %v4591_v53 = vpop.xlane.xlu2 %4590 }
 0x97e   : > { %v4607_v15 = vsub.f32 %v9341_v52, %v4591_v53  ;;  %v4366_v52 = vsel %vm781_vm2, %v9478_v62, 0.0 }
 0x980   : > { %v4618_v42 = vmul.f32 1.442695, %v4607_v15 }
 0x982   : > { %5949 = vpow2.f32 %v4618_v42  ;;  %4340 = vmax.xlane.f32.xlu1 %v4339_v63 }
 0x985   : > { %v9489_v4 = vpop.xlane.xlu2 %4325 }
 0x987   : > { %v4582_v7 = vpop.xlane.xlu1 %4581 }
 0x988   : > { %v9480_v50 = vpop.eup %5949  ;;  %v4604_v46 = vsub.f32 %v9361_v58, %v4582_v7  ;;  %v3884_v58 = vpop.xlane.xlu0 %3883 }
 0x989   : > { %v4637_v25 = vsel %vm781_vm2, %v9480_v50, 0.0 }
 0x98a   : > { %v4612_v14 = vmul.f32 1.442695, %v4604_v46  ;;  %4367 = vadd.xlane.f32.xlu1 %v4366_v52  ;;  %4638 = vadd.xlane.f32.xlu0 %v4637_v25  ;;  %v9515_v46 = vpop.f32.mrf.mxu1 }
 0x98c   : > { %5951 = vpow2.f32 %v4612_v14 }
 0x98d   : > { %5953 = vrcp.f32 %v3878_v45  ;;  %v3887_v27 = vpop.xlane.xlu2 %3886 }
 0x98f   : > { %v3881_v32 = vpop.xlane.xlu1 %3880 }
 0x990   : > { %5955 = vrcp.f32 %v3881_v32  ;;  %v4597_v43 = vpop.xlane.xlu0 %4596 }
 0x991   : > { %5957 = vrcp.f32 %v4117_v10  ;;  %v4609_v14 = vsub.f32 %v9353_v11, %v4597_v43 }
 0x992   : > { %v9491_v39 = vpop.eup %5951 }
 0x993   : > { %v4628_v49 = vsel %vm781_vm2, %v9491_v39, 0.0  ;;  %v5954_v35 = vpop.eup %5953 }
 0x994   : > { %4629 = vadd.xlane.f32.xlu2 %v4628_v49  ;;  %v3904_v9 = vmul.f32 %v5954_v35, %v9327_v24  ;;  %v9527_v35 = vpop.f32.mrf.mxu1 }
 0x995   : > { %v4120_v42 = vpop.xlane.xlu2 %4119 }
 0x996   : > { %v5956_v6 = vpop.eup %5955 }
 0x997   : > { %v3905_v22 = vmul.f32 %v5956_v6, %v9380_v1  ;;  %v4114_v41 = vpop.xlane.xlu1 %4113  ;;  %v5958_v45 = vpop.eup %5957 }
 0x998   : > { %5959 = vrcp.f32 %v4114_v41  ;;  %v4137_v24 = vmul.f32 %v5958_v45, %v9325_v2 }
 0x999   : > { %v3911_v40 = vpack.c.bf16 %v3905_v22, %v3904_v9  ;;  %5961 = vrcp.f32 %v3887_v27  ;;  %v9534_v9 = vpop.f32.mrf.mxu3 }
 0x99a   : > { %5963 = vrcp.f32 %v3884_v58  ;;  %v4622_v58 = vmul.f32 1.442695, %v4609_v14 }
 0x99b   : > { %5286 = vmatmul.msk.bf16.gmra.mxu1 %vm781_vm2, %v3911_v40 }
 0x99c   : > { %4337 = vmax.xlane.f32.xlu2 %v4336_v13 }
 0x99e   : > { %v5960_v38 = vpop.eup %5959 }
 0x99f   : > { %v4136_v1 = vmul.f32 %v5960_v38, %v9392_v0  ;;  %v4329_v5 = vpop.xlane.xlu1 %4328  ;;  %v5962_v53 = vpop.eup %5961 }
 0x9a0   : > { %v4345_v19 = vsub.f32 %v9407_v21, %v4329_v5  ;;  %v5964_v63 = vpop.eup %5963  ;;  %v3907_v7 = vmul.f32 %v5962_v53, %v9378_v33  ;;  %v4332_v0 = vpop.xlane.xlu0 %4331  ;;  %v4606_v53 = vsub.f32 %v9307_v30, %v9472_v55 }
 0x9a1   : > { %v4142_v12 = vpack.c.bf16 %v4137_v24, %v4136_v1  ;;  %v3906_v2 = vmul.f32 %v5964_v63, %v9338_v47  ;;  %v4335_v47 = vpop.xlane.xlu2 %4334  ;;  %v9543_v24 = vpop.f32.mrf.mxu1 }
 0x9a2   : > { %v4356_v15 = vmul.f32 1.442695, %v4345_v19  ;;  %v4347_v30 = vsub.f32 %v9402_v60, %v4335_v47 }
 0x9a3   : > { %4674 = vrot.lane.b32.xlu1 %v9204_v18, %s6231_s24  ;;  %5295 = vmatmul.msk.bf16.gmra.mxu3 %vm781_vm2, %v4142_v12  ;;  %v3912_v52 = vpack.c.bf16 %v3907_v7, %v3906_v2 }
 0x9a4   : > { %5965 = vpow2.f32 %v4356_v15 }
 0x9a7   : > { %v4594_v10 = vpop.xlane.xlu1 %4593 }
 0x9a8   : > { %v4608_v21 = vsub.f32 %v9421_v3, %v4594_v10  ;;  %v3893_v3 = vpop.xlane.xlu0 %3892 }
 0x9a9   : > { %v4600_v40 = vpop.xlane.xlu2 %4599  ;;  %v9562_v63 = vpop.f32.mrf.mxu1 }
 0x9aa   : > { %v9519_v25 = vpop.eup %5965  ;;  %v4620_v32 = vmul.f32 1.442695, %v4608_v21  ;;  %v4610_v38 = vsub.f32 %v9415_v36, %v4600_v40  ;;  %v4360_v21 = vmul.f32 1.442695, %v4347_v30 }
 0x9ab   : > { %4412 = vrot.lane.b32.xlu1 %v9204_v18, %s6232_s29  ;;  %5287 = vmatmul.msk.bf16.gmra.mxu1 %vm781_vm2, %v3912_v52  ;;  %v4375_v33 = vsel %vm781_vm2, %v9519_v25, 0.0  ;;  %v4346_v18 = vsub.f32 %v9376_v17, %v4332_v0  ;;  %v4616_v0 = vmul.f32 1.442695, %v4606_v53 }
 0x9ac   : > { %5967 = vpow2.f32 %v4620_v32  ;;  %4376 = vadd.xlane.f32.xlu0 %v4375_v33  ;;  %v4624_v1 = vmul.f32 1.442695, %v4610_v38 }
 0x9ad   : > { %5969 = vrcp.f32 %v4120_v42  ;;  %v4358_v41 = vmul.f32 1.442695, %v4346_v18 }
 0x9af   : > { %v4123_v49 = vpop.xlane.xlu1 %4122 }
 0x9b0   : > { %5971 = vrcp.f32 %v4123_v49  ;;  %v4344_v49 = vsub.f32 %v9357_v20, %v9489_v4 }
 0x9b1   : > { %5973 = vpow2.f32 %v4622_v58 }
 0x9b2   : > { %v9529_v11 = vpop.eup %5967  ;;  %5975 = vpow2.f32 %v4358_v41 }
 0x9b3   : > { %v4640_v6 = vsel %vm781_vm2, %v9529_v11, 0.0  ;;  %v5970_v44 = vpop.eup %5969  ;;  %5977 = vrcp.f32 %v3893_v3 }
 0x9b4   : > { %4416 = vrot.lane.b32.xlu2 %v9107_v37, %s6232_s29  ;;  %4641 = vadd.xlane.f32.xlu0 %v4640_v6  ;;  %v4138_v27 = vmul.f32 %v5970_v44, %v9390_v51  ;;  %v4354_v6 = vmul.f32 1.442695, %v4344_v49 }
 0x9b6   : > { %v5972_v22 = vpop.eup %5971 }
 0x9b7   : > { %v4139_v13 = vmul.f32 %v5972_v22, %v9429_v57  ;;  %v4679_v45 = vpop.permute.xlu0 %4678  ;;  %v9540_v43 = vpop.eup %5973 }
 0x9b8   : > { %4700 = vmatpush.bf16.msrb.mxu3 %v4679_v45  ;;  %v4643_v37 = vsel %vm781_vm2, %v9540_v43, 0.0  ;;  %v9550_v57 = vpop.f32.mrf.mxu3  ;;  %v9552_v19 = vpop.eup %5975 }
 0x9b9   : > { %v4143_v17 = vpack.c.bf16 %v4139_v13, %v4138_v27  ;;  %v5978_v36 = vpop.eup %5977  ;;  %v4378_v15 = vsel %vm781_vm2, %v9552_v19, 0.0 }
 0x9bb   : > { %5296 = vmatmul.msk.bf16.gmra.mxu3 %vm781_vm2, %v4143_v17 }
 0x9bc   : > { %v3890_v51 = vpop.xlane.xlu1 %3889  ;;  %4414 = vrot.lane.b32.xlu2 %v9193_v8, %s6232_s29  ;;  %4644 = vadd.xlane.f32.xlu0 %v4643_v37  ;;  %v3909_v8 = vmul.f32 %v5978_v36, %v9417_v16 }
 0x9bd   : > { %5979 = vrcp.f32 %v3890_v51 }
 0x9be   : > { %5981 = vpow2.f32 %v4624_v1 }
 0x9bf   : > { %v4677_v5 = vpop.permute.xlu0 %4676  ;;  %5983 = vpow2.f32 %v4616_v0 }
 0x9c0   : > { %4701 = vmatpush.bf16.msrb.mxu3 %v4677_v5  ;;  %v9564_v7 = vpop.f32.mrf.mxu3  ;;  %5985 = vpow2.f32 %v4360_v21 }
 0x9c1   : > { %5987 = vpow2.f32 %v4354_v6 }
 0x9c3   : > { %v5980_v12 = vpop.eup %5979 }
 0x9c4   : > { %v3908_v42 = vmul.f32 %v5980_v12, %v9436_v54  ;;  %4672 = vrot.lane.b32.xlu2 %v9208_v23, %s6231_s24  ;;  %4379 = vadd.xlane.f32.xlu0 %v4378_v15  ;;  %v9566_v10 = vpop.eup %5981  ;;  %v4603_v18 = vpop.xlane.xlu1 %4602 }
 0x9c5   : > { %v4646_v16 = vsel %vm781_vm2, %v9566_v10, 0.0  ;;  %v9577_v14 = vpop.eup %5983  ;;  %v4611_v22 = vsub.f32 %v9441_v59, %v4603_v18 }
 0x9c6   : > { %v3913_v2 = vpack.c.bf16 %v3909_v8, %v3908_v42  ;;  %v4634_v60 = vsel %vm781_vm2, %v9577_v14, 0.0  ;;  %v3189_v42 = vpack.c.bf16 %v9534_v9, %v9534_v9  ;;  %v3452_v9 = vpack.c.bf16 %v9487_v31, %v9487_v31 }
 0x9c7   : > { %v4626_v27 = vmul.f32 1.442695, %v4611_v22  ;;  %v3191_v31 = vpack.c.bf16 %v9564_v7, %v9564_v7 }
 0x9c8   : > { %5288 = vmatmul.msk.bf16.gmra.mxu1 %vm781_vm2, %v3913_v2  ;;  %v9574_v52 = vpop.f32.mrf.mxu3  ;;  %v3451_v2 = vpack.c.bf16 %v9476_v61, %v9476_v61 }
 0x9c9   : > { %5989 = vpow2.f32 %v4626_v27  ;;  %v3192_v27 = vpack.c.bf16 %v9574_v52, %v9574_v52  ;;  %v3454_v52 = vpack.c.bf16 %v9506_v34, %v9506_v34 }
 0x9cc   : > { %4410 = vrot.lane.b32.xlu2 %v9208_v23, %s6232_s29  ;;  %4647 = vadd.xlane.f32.xlu0 %v4646_v16  ;;  %v9584_v23 = vpop.eup %5985 }
 0x9cd   : > { %v3939_v54 = vpop.f32.mrf.mxu1  ;;  %v4381_v58 = vsel %vm781_vm2, %v9584_v23, 0.0  ;;  %v9595_v40 = vpop.eup %5987 }
 0x9ce   : > { %v3959_v55 = vpack.c.bf16 %v3939_v54, %v3939_v54  ;;  %v4372_v45 = vsel %vm781_vm2, %v9595_v40, 0.0 }
 0x9cf   : > { %v9602_v38 = vpop.eup %5989 }
 0x9d0   : > { %3967 = vst.msk [vmem:[#allocation2 + $0x60] sm:$0xf] %vm927_vm10, %v3959_v55  ;;  %v9581_v47 = vpop.f32.mrf.mxu3  ;;  %v4649_v59 = vsel %vm781_vm2, %v9602_v38, 0.0 }
 0x9d5   : > { %v3941_v32 = vpop.f32.mrf.mxu1  ;;  %4635 = vadd.xlane.f32.xlu1 %v4634_v60 }
 0x9d6   : > { %v3960_v33 = vpack.c.bf16 %v3941_v32, %v3941_v32 }
 0x9d8   : > { %3968 = vst.msk [vmem:[#allocation2 + $0x64] sm:$0xf] %vm927_vm10, %v3960_v33  ;;  %v9588_v3 = vpop.f32.mrf.mxu3 }
 0x9dd   : > { %4382 = vadd.xlane.f32.xlu1 %v4381_v58 }
 0x9e0   : > { %v9592_v44 = vpop.f32.mrf.mxu3 }
 0x9e8   : > { %v9597_v13 = vpop.f32.mrf.mxu3 }
 0x9ea   : > { %v4371_v18 = vpop.xlane.xlu0 %4370 }
 0x9ed   : > { %v4633_v41 = vpop.xlane.xlu1 %4632 }
 0x9f0   : > { %v3693_v37 = vpop.f32.mrf.mxu3 }
 0x9f1   : > { %v3713_v21 = vpack.c.bf16 %v3693_v37, %v3693_v37 }
 0x9f5   : > { %v4341_v17 = vpop.xlane.xlu1 %4340  ;;  %4373 = vadd.xlane.f32.xlu2 %v4372_v45 }
 0x9f6   : > { %v4349_v20 = vsub.f32 %v9469_v48, %v4341_v17 }
 0x9f8   : > { %v4364_v4 = vmul.f32 1.442695, %v4349_v20  ;;  %v9610_v5 = vpop.f32.mrf.mxu3 }
 0x9fa   : > { %5991 = vpow2.f32 %v4364_v4 }
 0x9fd   : > { %4650 = vadd.xlane.f32.xlu2 %v4649_v59  ;;  %v4368_v12 = vpop.xlane.xlu1 %4367 }
 0xa00   : > { %v9606_v51 = vpop.eup %5991  ;;  %v3698_v48 = vpop.f32.mrf.mxu3 }
 0xa01   : > { %v4387_v1 = vsel %vm781_vm2, %v9606_v51, 0.0  ;;  %v3715_v59 = vpack.c.bf16 %v3698_v48, %v3698_v48  ;;  %v3193_v48 = vpack.c.bf16 %v9581_v47, %v9581_v47  ;;  %v3456_v47 = vpack.c.bf16 %v9527_v35, %v9527_v35 }
 0xa02   : > { %4388 = vadd.xlane.f32.xlu0 %v4387_v1 }
 0xa07   : > { %v4630_v36 = vpop.xlane.xlu2 %4629 }
 0xa08   : > { %v9619_v16 = vpop.f32.mrf.mxu3 }
 0xa0f   : > { %v4338_v53 = vpop.xlane.xlu2 %4337 }
 0xa10   : > { %v4348_v15 = vsub.f32 %v9499_v28, %v4338_v53  ;;  %v3703_v49 = vpop.f32.mrf.mxu3 }
 0xa12   : > { %v4362_v8 = vmul.f32 1.442695, %v4348_v15 }
 0xa14   : > { %5993 = vpow2.f32 %v4362_v8  ;;  %v3190_v8 = vpack.c.bf16 %v9550_v57, %v9550_v57  ;;  %v3714_v57 = vpack.c.bf16 %v9610_v5, %v9610_v5  ;;  %v3196_v5 = vpack.c.bf16 %v9597_v13, %v9597_v13 }
 0xa15   : > { %3205 = vrot.lane.b32.xlu2 %v3189_v42, %s6231_s24  ;;  %v4675_v0 = vpop.permute.xlu1 %4674  ;;  %5995 = vrcp.f32 %v4630_v36  ;;  %v3458_v13 = vpack.c.bf16 %v9562_v63, %v9562_v63 }
 0xa16   : > { %3467 = vrot.lane.b32.xlu0 %v3451_v2, %s6232_s29  ;;  %4702 = vmatpush.bf16.msrb.mxu3 %v4675_v0  ;;  %5997 = vrcp.f32 %v4633_v41  ;;  %v3717_v2 = vpack.c.bf16 %v3703_v49, %v3703_v49 }
 0xa17   : > { %v4417_v30 = vpop.permute.xlu2 %4416  ;;  %5999 = vrcp.f32 %v4368_v12 }
 0xa18   : > { %v3944_v54 = vpop.f32.mrf.mxu1  ;;  %4438 = vmatpush.bf16.msra.mxu1 %v4417_v30  ;;  %6001 = vrcp.f32 %v4371_v18  ;;  %v9643_v1 = vpop.f32.mrf.mxu3  ;;  %v3195_v30 = vpack.c.bf16 %v9592_v44, %v9592_v44 }
 0xa19   : > { %v3961_v28 = vpack.c.bf16 %v3944_v54, %v3944_v54  ;;  %v3453_v54 = vpack.c.bf16 %v9495_v56, %v9495_v56  ;;  %v3716_v56 = vpack.c.bf16 %v9619_v16, %v9619_v16 }
 0xa1a   : > { %v9621_v55 = vpop.eup %5993 }
 0xa1b   : > { %3969 = vst.msk [vmem:[#allocation2 + $0x68] sm:$0xf] %vm927_vm10, %v3961_v28  ;;  %v4384_v61 = vsel %vm781_vm2, %v9621_v55, 0.0  ;;  %v5996_v58 = vpop.eup %5995 }
 0xa1c   : > { %4385 = vadd.xlane.f32.xlu1 %v4384_v61  ;;  %v5998_v22 = vpop.eup %5997  ;;  %v4660_v41 = vmul.f32 %v5996_v58, %v9491_v39 }
 0xa1d   : > { %3469 = vrot.lane.b32.xlu2 %v3452_v9, %s6232_s29  ;;  %v4413_v6 = vpop.permute.xlu1 %4412  ;;  %v4661_v45 = vmul.f32 %v5998_v22, %v9462_v26  ;;  %v6000_v37 = vpop.eup %5999 }
 0xa1e   : > { %3729 = vrot.lane.b32.xlu0 %v3713_v21, %s6233_s28  ;;  %v6002_v39 = vpop.eup %6001  ;;  %v4398_v36 = vmul.f32 %v6000_v37, %v9478_v62  ;;  %v3194_v62 = vpack.c.bf16 %v9588_v3, %v9588_v3 }
 0xa1f   : > { %v4415_v60 = vpop.permute.xlu2 %4414  ;;  %v4668_v20 = vpack.c.bf16 %v4661_v45, %v4660_v41  ;;  %v4399_v26 = vmul.f32 %v6002_v39, %v9458_v29  ;;  %v4639_v29 = vpop.xlane.xlu0 %4638 }
 0xa20   : > { %v3946_v32 = vpop.f32.mrf.mxu1  ;;  %4439 = vmatpush.bf16.msra.mxu1 %v4415_v60  ;;  %v3708_v42 = vpop.f32.mrf.mxu3  ;;  %6003 = vrcp.f32 %v4639_v29 }
 0xa21   : > { %v3962_v33 = vpack.c.bf16 %v3946_v32, %v3946_v32  ;;  %v4406_v34 = vpack.c.bf16 %v4399_v26, %v4398_v36  ;;  %v3719_v21 = vpack.c.bf16 %v3708_v42, %v3708_v42 }
 0xa23   : > { %3970 = vst.msk [vmem:[#allocation2 + $0x6c] sm:$0xf] %vm927_vm10, %v3962_v33 }
 0xa24   : > { %4440 = vmatpush.bf16.msra.mxu1 %v4413_v6  ;;  %v3455_v6 = vpack.c.bf16 %v9515_v46, %v9515_v46 }
 0xa25   : > { %3209 = vrot.lane.b32.xlu2 %v3191_v31, %s6231_s24 }
 0xa26   : > { %3211 = vrot.lane.b32.xlu0 %v3192_v27, %s6231_s24  ;;  %v6004_v60 = vpop.eup %6003 }
 0xa27   : > { %v4673_v7 = vpop.permute.xlu2 %4672  ;;  %v4377_v3 = vpop.xlane.xlu0 %4376  ;;  %v4663_v49 = vmul.f32 %v6004_v60, %v9480_v50 }
 0xa28   : > { %v3949_v17 = vpop.f32.mrf.mxu1  ;;  %4703 = vmatpush.bf16.msrb.mxu3 %v4673_v7  ;;  %v3710_v0 = vpop.f32.mrf.mxu3 }
 0xa29   : > { %v3963_v4 = vpack.c.bf16 %v3949_v17, %v3949_v17  ;;  %v3720_v37 = vpack.c.bf16 %v3710_v0, %v3710_v0 }
 0xa2b   : > { %3971 = vst.msk [vmem:[#allocation2 + $0x70] sm:$0xf] %vm927_vm10, %v3963_v4  ;;  %5309 = vmatmul.msk.bf16.vlgmr.msrb.gmra.mxu3 %vm781_vm2, %v4668_v20  ;;  %v3457_v20 = vpack.c.bf16 %v9543_v24, %v9543_v24 }
 0xa2d   : > { %3473 = vrot.lane.b32.xlu2 %v3454_v52, %s6232_s29 }
 0xa2e   : > { %3733 = vrot.lane.b32.xlu0 %v3715_v59, %s6233_s28 }
 0xa2f   : > { %v4411_v12 = vpop.permute.xlu2 %4410  ;;  %v4642_v61 = vpop.xlane.xlu0 %4641 }
 0xa30   : > { %v3951_v53 = vpop.f32.mrf.mxu1  ;;  %4441 = vmatpush.bf16.msra.mxu1 %v4411_v12  ;;  %v4181_v9 = vpop.f32.mrf.mxu3 }
 0xa31   : > { %v3964_v15 = vpack.c.bf16 %v3951_v53, %v3951_v53  ;;  %v4201_v22 = vpack.c.bf16 %v4181_v9, %v4181_v9 }
 0xa33   : > { %3972 = vst.msk [vmem:[#allocation2 + $0x74] sm:$0xf] %vm927_vm10, %v3964_v15  ;;  %5301 = vmatmul.msk.bf16.vlgmr.msra.gmra.mxu1 %vm781_vm2, %v4406_v34 }
 0xa35   : > { %3213 = vrot.lane.b32.xlu2 %v3193_v48, %s6231_s24  ;;  %3207 = vrot.lane.b32.xlu1 %v3190_v8, %s6231_s24 }
 0xa36   : > { %3215 = vrot.lane.b32.xlu0 %v3194_v62, %s6231_s24 }
 0xa37   : > { %v4645_v18 = vpop.xlane.xlu0 %4644 }
 0xa38   : > { %v4183_v16 = vpop.f32.mrf.mxu3 }
 0xa39   : > { %v4202_v27 = vpack.c.bf16 %v4183_v16, %v4183_v16 }
 0xa3d   : > { %3477 = vrot.lane.b32.xlu2 %v3456_v47, %s6232_s29  ;;  %3731 = vrot.lane.b32.xlu1 %v3714_v57, %s6233_s28 }
 0xa3e   : > { %3737 = vrot.lane.b32.xlu0 %v3717_v2, %s6233_s28 }
 0xa3f   : > { %v4380_v7 = vpop.xlane.xlu0 %4379 }
 0xa40   : > { %v9706_v53 = vpop.f32.mrf.mxu3 }
 0xa45   : > { %3217 = vrot.lane.b32.xlu2 %v3195_v30, %s6231_s24  ;;  %3471 = vrot.lane.b32.xlu1 %v3453_v54, %s6232_s29  ;;  %v3954_v35 = vpop.f32.mrf.mxu1 }
 0xa46   : > { %v3965_v28 = vpack.c.bf16 %v3954_v35, %v3954_v35  ;;  %3219 = vrot.lane.b32.xlu0 %v3196_v5, %s6231_s24 }
 0xa47   : > { %v4648_v52 = vpop.xlane.xlu0 %4647 }
 0xa48   : > { %3973 = vst.msk [vmem:[#allocation2 + $0x78] sm:$0xf] %vm927_vm10, %v3965_v28  ;;  %v4636_v44 = vpop.xlane.xlu1 %4635  ;;  %v4188_v47 = vpop.f32.mrf.mxu3 }
 0xa49   : > { %6005 = vrcp.f32 %v4636_v44 }
 0xa4a   : > { %6007 = vrcp.f32 %v4645_v18 }
 0xa4b   : > { %6009 = vrcp.f32 %v4642_v61 }
 0xa4c   : > { %6011 = vrcp.f32 %v4377_v3 }
 0xa4d   : > { %3481 = vrot.lane.b32.xlu2 %v3458_v13, %s6232_s29  ;;  %3735 = vrot.lane.b32.xlu1 %v3716_v56, %s6233_s28  ;;  %v3956_v32 = vpop.f32.mrf.mxu1 }
 0xa4e   : > { %v3966_v33 = vpack.c.bf16 %v3956_v32, %v3956_v32  ;;  %3741 = vrot.lane.b32.xlu0 %v3719_v21, %s6233_s28 }
 0xa4f   : > { %v6006_v58 = vpop.eup %6005 }
 0xa50   : > { %v4662_v31 = vmul.f32 %v6006_v58, %v9577_v14  ;;  %3974 = vst.msk [vmem:[#allocation2 + $0x7c] sm:$0xf] %vm927_vm10, %v3966_v33  ;;  %v6008_v50 = vpop.eup %6007  ;;  %v3718_v14 = vpack.c.bf16 %v9643_v1, %v9643_v1  ;;  %v4383_v24 = vpop.xlane.xlu1 %4382 }
 0xa51   : > { %v6010_v41 = vpop.eup %6009  ;;  %v4665_v46 = vmul.f32 %v6008_v50, %v9540_v43  ;;  %v9716_v3 = vpop.f32.mrf.mxu3 }
 0xa52   : > { %v4669_v63 = vpack.c.bf16 %v4663_v49, %v4662_v31  ;;  %v4664_v45 = vmul.f32 %v6010_v41, %v9529_v11  ;;  %v6012_v39 = vpop.eup %6011 }
 0xa53   : > { %v4401_v11 = vmul.f32 %v6012_v39, %v9519_v25 }
 0xa54   : > { %5310 = vmatmul.msk.bf16.gmra.mxu3 %vm781_vm2, %v4669_v63  ;;  %v4670_v17 = vpack.c.bf16 %v4665_v46, %v4664_v45 }
 0xa55   : > { %4217 = vrot.lane.b32.xlu2 %v4201_v22, %s6231_s24  ;;  %3475 = vrot.lane.b32.xlu1 %v3455_v6, %s6232_s29  ;;  %v4204_v22 = vpack.c.bf16 %v4188_v47, %v4188_v47 }
 0xa56   : > { %4219 = vrot.lane.b32.xlu0 %v4202_v27, %s6231_s24 }
 0xa59   : > { %v9720_v54 = vpop.f32.mrf.mxu3 }
 0xa5d   : > { %3739 = vrot.lane.b32.xlu1 %v3718_v14, %s6233_s28 }
 0xa61   : > { %v9728_v56 = vpop.f32.mrf.mxu3 }
 0xa64   : > { %5311 = vmatmul.msk.bf16.gmra.mxu3 %vm781_vm2, %v4670_v17 }
 0xa65   : > { %3479 = vrot.lane.b32.xlu1 %v3457_v20, %s6232_s29  ;;  %v4203_v20 = vpack.c.bf16 %v9706_v53, %v9706_v53 }
 0xa68   : > { %v4374_v4 = vpop.xlane.xlu2 %4373 }
 0xa69   : > { %6013 = vrcp.f32 %v4374_v4  ;;  %v9730_v60 = vpop.f32.mrf.mxu3 }
 0xa6a   : > { %6015 = vrcp.f32 %v4648_v52 }
 0xa6d   : > { %3743 = vrot.lane.b32.xlu1 %v3720_v37, %s6233_s28 }
 0xa6f   : > { %v6014_v43 = vpop.eup %6013 }
 0xa70   : > { %v4400_v59 = vmul.f32 %v6014_v43, %v9595_v40  ;;  %v4651_v1 = vpop.xlane.xlu2 %4650  ;;  %v6016_v26 = vpop.eup %6015 }
 0xa71   : > { %6017 = vrcp.f32 %v4651_v1  ;;  %v4666_v34 = vmul.f32 %v6016_v26, %v9566_v10 }
 0xa72   : > { %v4407_v36 = vpack.c.bf16 %v4401_v11, %v4400_v59  ;;  %6019 = vrcp.f32 %v4383_v24 }
 0xa73   : > { %6021 = vrcp.f32 %v4380_v7 }
 0xa74   : > { %5302 = vmatmul.msk.bf16.gmra.mxu1 %vm781_vm2, %v4407_v36 }
 0xa75   : > { %v4389_v29 = vpop.xlane.xlu0 %4388 }
 0xa76   : > { %6023 = vrcp.f32 %v4389_v29 }
 0xa77   : > { %v6018_v12 = vpop.eup %6017 }
 0xa78   : > { %v4667_v15 = vmul.f32 %v6018_v12, %v9602_v38  ;;  %v3206_v8 = vpop.permute.xlu2 %3205  ;;  %v6020_v40 = vpop.eup %6019  ;;  %v4206_v12 = vpack.c.bf16 %v9720_v54, %v9720_v54 }
 0xa79   : > { %3229 = vst.msk [vmem:[#allocation2 + $0x40] sm:$0xf] %vm1202_vm11, %v3206_v8  ;;  %v6022_v48 = vpop.eup %6021  ;;  %v4403_v62 = vmul.f32 %v6020_v40, %v9584_v23  ;;  %v4208_v8 = vpack.c.bf16 %v9730_v60, %v9730_v60 }
 0xa7a   : > { %v4671_v25 = vpack.c.bf16 %v4667_v15, %v4666_v34  ;;  %v4402_v42 = vmul.f32 %v6022_v48, %v9552_v19 }
 0xa7c   : > { %5312 = vmatmul.msk.bf16.gmra.mxu3 %vm781_vm2, %v4671_v25  ;;  %v4408_v2 = vpack.c.bf16 %v4403_v62, %v4402_v42  ;;  %v6024_v19 = vpop.eup %6023 }
 0xa7d   : > { %v4405_v35 = vmul.f32 %v6024_v19, %v9606_v51  ;;  %v4207_v19 = vpack.c.bf16 %v9728_v56, %v9728_v56 }
 0xa80   : > { %v3470_v57 = vpop.permute.xlu2 %3469 }
 0xa84   : > { %5303 = vmatmul.msk.bf16.gmra.mxu1 %vm781_vm2, %v4408_v2 }
 0xa88   : > { %v3210_v10 = vpop.permute.xlu2 %3209  ;;  %v3468_v38 = vpop.permute.xlu0 %3467 }
 0xa89   : > { %3231 = vst.msk [vmem:[#allocation2 + $0x48] sm:$0xf] %vm1202_vm11, %v3210_v10  ;;  %v4205_v10 = vpack.c.bf16 %v9716_v3, %v9716_v3 }
 0xa8a   : > { %3491 = vst.msk [vmem:[#allocation2 + $0x40] sm:$0xf] %vm1465_vm12, %v3468_v38 }
 0xa8f   : > { %v4386_v0 = vpop.xlane.xlu1 %4385 }
 0xa90   : > { %6025 = vrcp.f32 %v4386_v0  ;;  %v3474_v23 = vpop.permute.xlu2 %3473  ;;  %v3730_v30 = vpop.permute.xlu0 %3729 }
 0xa91   : > { %3753 = vst.msk [vmem:[#allocation2 + $0x40] sm:$0xf] %vm1728_vm13, %v3730_v30 }
 0xa96   : > { %v6026_v5 = vpop.eup %6025 }
 0xa97   : > { %v4404_v28 = vmul.f32 %v6026_v5, %v9621_v55 }
 0xa98   : > { %v3214_v9 = vpop.permute.xlu2 %3213  ;;  %v3212_v61 = vpop.permute.xlu0 %3211 }
 0xa99   : > { %3233 = vst.msk [vmem:[#allocation2 + $0x50] sm:$0xf] %vm1202_vm11, %v3214_v9  ;;  %v4409_v44 = vpack.c.bf16 %v4405_v35, %v4404_v28 }
 0xa9a   : > { %3232 = vst.msk [vmem:[#allocation2 + $0x4c] sm:$0xf] %vm1202_vm11, %v3212_v61 }
 0xa9b   : > { %3494 = vst.msk [vmem:[#allocation2 + $0x4c] sm:$0xf] %vm1465_vm12, %v3474_v23  ;;  %5304 = vmatmul.msk.bf16.gmra.mxu1 %vm781_vm2, %v4409_v44 }
 0xaa0   : > { %v3478_v13 = vpop.permute.xlu2 %3477  ;;  %v3734_v21 = vpop.permute.xlu0 %3733 }
 0xaa7   : > { %v3208_v51 = vpop.permute.xlu1 %3207 }
 0xaa8   : > { %3230 = vst.msk [vmem:[#allocation2 + $0x44] sm:$0xf] %vm1202_vm11, %v3208_v51  ;;  %v3218_v55 = vpop.permute.xlu2 %3217  ;;  %v3216_v32 = vpop.permute.xlu0 %3215 }
 0xaa9   : > { %3492 = vst.msk [vmem:[#allocation2 + $0x44] sm:$0xf] %vm1465_vm12, %v3470_v57 }
 0xaaa   : > { %3235 = vst.msk [vmem:[#allocation2 + $0x58] sm:$0xf] %vm1202_vm11, %v3218_v55 }
 0xaab   : > { %3234 = vst.msk [vmem:[#allocation2 + $0x54] sm:$0xf] %vm1202_vm11, %v3216_v32  ;;  %v9792_v32 = vld [vmem:[%s9880_s4] ss:$0 sm:$0xff] }
 0xaac   : > { %3496 = vst.msk [vmem:[#allocation2 + $0x54] sm:$0xf] %vm1465_vm12, %v3478_v13 }
 0xaae   : > { %v4705_v33 = vpop.f32.mrf.mxu3 }
 0xaaf   : > { %v4725_v58 = vpack.c.bf16 %v4705_v33, %v4705_v33  ;;  %v3732_v49 = vpop.permute.xlu1 %3731 }
 0xab0   : > { %3754 = vst.msk [vmem:[#allocation2 + $0x44] sm:$0xf] %vm1728_vm13, %v3732_v49  ;;  %v3482_v31 = vpop.permute.xlu2 %3481  ;;  %v4443_v16 = vpop.f32.mrf.mxu1 }
 0xab1   : > { %v4463_v18 = vpack.c.bf16 %v4443_v16, %v4443_v16  ;;  %v3738_v63 = vpop.permute.xlu0 %3737  ;;  %4741 = vrot.lane.b32.xlu0 %v4725_v58, %s6233_s28 }
 0xab3   : > { %4479 = vrot.lane.b32.xlu1 %v4463_v18, %s6232_s29 }
 0xab6   : > { %v4707_v6 = vpop.f32.mrf.mxu3 }
 0xab7   : > { %v3472_v27 = vpop.permute.xlu1 %3471  ;;  %v5393_v50 = vld [vmem:[#allocation2 + $0x40] sm:$0xff]  ;;  %v4726_v46 = vpack.c.bf16 %v4707_v6, %v4707_v6 }
 0xab8   : > { %3493 = vst.msk [vmem:[#allocation2 + $0x48] sm:$0xf] %vm1465_vm12, %v3472_v27  ;;  %v4218_v14 = vpop.permute.xlu2 %4217  ;;  %v4445_v41 = vpop.f32.mrf.mxu1  ;;  %4977 = vmatmul.bf16.gmra.mxu0 %v5393_v50 }
 0xab9   : > { %3755 = vst.msk [vmem:[#allocation2 + $0x48] sm:$0xf] %vm1728_vm13, %v3734_v21  ;;  %v4464_v45 = vpack.c.bf16 %v4445_v41, %v4445_v41  ;;  %v3220_v7 = vpop.permute.xlu0 %3219  ;;  %4223 = vrot.lane.b32.xlu0 %v4204_v22, %s6231_s24 }
 0xaba   : > { %4241 = vst.msk [vmem:[#allocation2 + $0x60] sm:$0xf] %vm1202_vm11, %v4218_v14 }
 0xabb   : > { %3236 = vst.msk [vmem:[#allocation2 + $0x5c] sm:$0xf] %vm1202_vm11, %v3220_v7  ;;  %4743 = vrot.lane.b32.xlu1 %v4726_v46, %s6233_s28  ;;  %4481 = vrot.lane.b32.xlu2 %v4464_v45, %s6232_s29 }
 0xabc   : > { %3498 = vst.msk [vmem:[#allocation2 + $0x5c] sm:$0xf] %vm1465_vm12, %v3482_v31 }
 0xabf   : > { %v3736_v17 = vpop.permute.xlu1 %3735 }
 0xac0   : > { %3756 = vst.msk [vmem:[#allocation2 + $0x4c] sm:$0xf] %vm1728_vm13, %v3736_v17 }
 0xac1   : > { %v3742_v4 = vpop.permute.xlu0 %3741 }
 0xac3   : > { %4221 = vrot.lane.b32.xlu2 %v4203_v20, %s6231_s24 }
 0xac7   : > { %v3476_v37 = vpop.permute.xlu1 %3475  ;;  %v5394_v52 = vld [vmem:[#allocation2 + $0x48] sm:$0xff] }
 0xac8   : > { %3495 = vst.msk [vmem:[#allocation2 + $0x50] sm:$0xf] %vm1465_vm12, %v3476_v37  ;;  %4982 = vmatmul.bf16.gmra.mxu0 %v5394_v52 }
 0xac9   : > { %3757 = vst.msk [vmem:[#allocation2 + $0x50] sm:$0xf] %vm1728_vm13, %v3738_v63  ;;  %v4220_v39 = vpop.permute.xlu0 %4219 }
 0xaca   : > { %4242 = vst.msk [vmem:[#allocation2 + $0x64] sm:$0xf] %vm1202_vm11, %v4220_v39 }
 0xacf   : > { %v3740_v43 = vpop.permute.xlu1 %3739 }
 0xad0   : > { %3758 = vst.msk [vmem:[#allocation2 + $0x54] sm:$0xf] %vm1728_vm13, %v3740_v43 }
 0xad7   : > { %v3480_v11 = vpop.permute.xlu1 %3479  ;;  %v4710_v59 = vpop.f32.mrf.mxu3  ;;  %v5395_v1 = vld [vmem:[#allocation2 + $0x50] sm:$0xff] }
 0xad8   : > { %3497 = vst.msk [vmem:[#allocation2 + $0x58] sm:$0xf] %vm1465_vm12, %v3480_v11  ;;  %v4727_v24 = vpack.c.bf16 %v4710_v59, %v4710_v59  ;;  %4987 = vmatmul.bf16.gmra.mxu0 %v5395_v1 }
 0xad9   : > { %3759 = vst.msk [vmem:[#allocation2 + $0x58] sm:$0xf] %vm1728_vm13, %v3742_v4 }
 0xada   : > { %4745 = vrot.lane.b32.xlu0 %v4727_v24, %s6233_s28 }
 0xadf   : > { %v3744_v36 = vpop.permute.xlu1 %3743  ;;  %v4712_v26 = vpop.f32.mrf.mxu3 }
 0xae0   : > { %3760 = vst.msk [vmem:[#allocation2 + $0x5c] sm:$0xf] %vm1728_vm13, %v3744_v36  ;;  %v4728_v42 = vpack.c.bf16 %v4712_v26, %v4712_v26 }
 0xae2   : > { %4227 = vrot.lane.b32.xlu0 %v4206_v12, %s6231_s24 }
 0xae7   : > { %v4715_v53 = vpop.f32.mrf.mxu3  ;;  %v5396_v34 = vld [vmem:[#allocation2 + $0x58] sm:$0xff] }
 0xae8   : > { %v4729_v15 = vpack.c.bf16 %v4715_v53, %v4715_v53  ;;  %4992 = vmatmul.bf16.gmra.mxu0 %v5396_v34 }
 0xaea   : > { %4749 = vrot.lane.b32.xlu0 %v4729_v15, %s6233_s28 }
 0xaef   : > { %v4717_v48 = vpop.f32.mrf.mxu3 }
 0xaf0   : > { %v4730_v23 = vpack.c.bf16 %v4717_v48, %v4717_v48 }
 0xaf1   : > { %v4448_v25 = vpop.f32.mrf.mxu1 }
 0xaf2   : > { %v4465_v40 = vpack.c.bf16 %v4448_v25, %v4448_v25  ;;  %4231 = vrot.lane.b32.xlu0 %v4208_v8, %s6231_s24 }
 0xaf4   : > { %4483 = vrot.lane.b32.xlu1 %v4465_v40, %s6232_s29 }
 0xaf9   : > { %v4450_v62 = vpop.f32.mrf.mxu1 }
 0xafa   : > { %v4466_v29 = vpack.c.bf16 %v4450_v62, %v4450_v62 }
 0xafc   : > { %4747 = vrot.lane.b32.xlu1 %v4728_v42, %s6233_s28  ;;  %4485 = vrot.lane.b32.xlu2 %v4466_v29, %s6232_s29 }
 0xaff   : > { %v4720_v57 = vpop.f32.mrf.mxu3 }
 0xb00   : > { %v4731_v47 = vpack.c.bf16 %v4720_v57, %v4720_v57 }
 0xb01   : > { %v4453_v2 = vpop.f32.mrf.mxu1 }
 0xb02   : > { %v4467_v38 = vpack.c.bf16 %v4453_v2, %v4453_v2  ;;  %4753 = vrot.lane.b32.xlu0 %v4731_v47, %s6233_s28 }
 0xb04   : > { %4225 = vrot.lane.b32.xlu2 %v4205_v10, %s6231_s24  ;;  %4487 = vrot.lane.b32.xlu1 %v4467_v38, %s6232_s29 }
 0xb07   : > { %v4722_v28 = vpop.f32.mrf.mxu3 }
 0xb08   : > { %v4732_v61 = vpack.c.bf16 %v4722_v28, %v4722_v28 }
 0xb09   : > { %v4455_v0 = vpop.f32.mrf.mxu1 }
 0xb0a   : > { %v4468_v30 = vpack.c.bf16 %v4455_v0, %v4455_v0 }
 0xb0c   : > { %4751 = vrot.lane.b32.xlu1 %v4730_v23, %s6233_s28  ;;  %4489 = vrot.lane.b32.xlu2 %v4468_v30, %s6232_s29 }
 0xb14   : > { %4229 = vrot.lane.b32.xlu2 %v4207_v19, %s6231_s24  ;;  %s6162_s24 = sshra.s32 %s5067_s8, 4  ;;  %s6163_s24 = int_to_ptr.hbm [resolvable:$true] %s6162_s24 }
 0xb15   : > { %v4482_v3 = vpop.permute.xlu2 %4481  ;;  %s6164_s22 = scalar_lea.hbm %s6163_s24, 256  ;;  %p6169_p11 = scmp.lt.s32.totalorder %s6163_s24, %s9881_s5 }
 0xb16   : > { %4504 = vst.msk [vmem:[#allocation2 + $0x64] sm:$0xf] %vm1465_vm12, %v4482_v3  ;;  %p6165_p1 = scmp.ne.s32.totalorder %s6163_s24, %s6164_s22  ;;  %p6170_p9 = scmp.lt.s32.totalorder %s6168_s16, %s6164_s22 }
 0xb18   : > { %v4458_v54 = vpop.f32.mrf.mxu1  ;;  %p6166_p4 = pnand %p6165_p1, %p6352_p3  ;;  %p6171_p2 = por %p6170_p9, %p6169_p11 }
 0xb19   : > { %v4469_v5 = vpack.c.bf16 %v4458_v54, %v4458_v54 }
 0xb1a   : > { %p6167_p8 = pneg %p6166_p4 }
 0xb1b   : > { %4491 = vrot.lane.b32.xlu1 %v4469_v5, %s6232_s29 }
 0xb1c   : > { %p6172_p10 = pnand %p6171_p2, %p6167_p8 }
 0xb1d   : > { %v4222_v35 = vpop.permute.xlu2 %4221 }
 0xb1e   : > { %4243 = vst.msk [vmem:[#allocation2 + $0x68] sm:$0xf] %vm1202_vm11, %v4222_v35 }
 0xb20   : > { %v4460_v9 = vpop.f32.mrf.mxu1 }
 0xb21   : > { %v4470_v44 = vpack.c.bf16 %v4460_v9, %v4460_v9 }
 0xb23   : > { %4755 = vrot.lane.b32.xlu1 %v4732_v61, %s6233_s28  ;;  %4493 = vrot.lane.b32.xlu2 %v4470_v44, %s6232_s29  ;;  %v4742_v56 = vpop.permute.xlu0 %4741 }
 0xb25   : > { %v4480_v13 = vpop.permute.xlu1 %4479 }
 0xb26   : > { %4503 = vst.msk [vmem:[#allocation2 + $0x60] sm:$0xf] %vm1465_vm12, %v4480_v13 }
 0xb27   : > { %4765 = vst.msk [vmem:[#allocation2 + $0x60] sm:$0xf] %vm1728_vm13, %v4742_v56 }
 0xb2b   : > { %v4224_v21 = vpop.permute.xlu0 %4223 }
 0xb2c   : > { %4244 = vst.msk [vmem:[#allocation2 + $0x6c] sm:$0xf] %vm1202_vm11, %v4224_v21 }
 0xb2d   : > { %v4744_v60 = vpop.permute.xlu1 %4743 }
 0xb2e   : > { %4766 = vst.msk [vmem:[#allocation2 + $0x64] sm:$0xf] %vm1728_vm13, %v4744_v60 }
 0xb35   : > { %v5397_v51 = vld [vmem:[#allocation2 + $0x60] sm:$0xff]  ;;  %v4978_v55 = vpop.f32.mrf.mxu0 }
 0xb36   : > { %v4979_v33 = vadd.f32 %v9792_v32, %v4978_v55  ;;  %4997 = vmatmul.bf16.gmra.mxu0 %v5397_v51 }
 0xb38   : > { %5034 = vst [vmem:[%s8925_s26 + $0x80] sm:$0xff] %v4979_v33 }
 0xb3d   : > { %v4980_v58 = vpop.f32.mrf.mxu0 }
 0xb3e   : > { %v4981_v49 = vadd.f32 %v9792_v32, %v4980_v58 }
 0xb40   : > { %5035 = vst [vmem:[%s8925_s26 + $0x88] sm:$0xff] %v4981_v49 }
 0xb45   : > { %v4983_v31 = vpop.f32.mrf.mxu0 }
 0xb46   : > { %v4984_v16 = vadd.f32 %v9792_v32, %v4983_v31 }
 0xb48   : > { %5036 = vst [vmem:[%s8925_s26 + $0x90] sm:$0xff] %v4984_v16 }
 0xb4c   : > { %v4746_v18 = vpop.permute.xlu0 %4745 }
 0xb4d   : > { %v4985_v63 = vpop.f32.mrf.mxu0 }
 0xb4e   : > { %v4986_v6 = vadd.f32 %v9792_v32, %v4985_v63 }
 0xb50   : > { %5037 = vst [vmem:[%s8925_s26 + $0x98] sm:$0xff] %v4986_v6 }
 0xb54   : > { %v4228_v22 = vpop.permute.xlu0 %4227 }
 0xb55   : > { %4246 = vst.msk [vmem:[#allocation2 + $0x74] sm:$0xf] %vm1202_vm11, %v4228_v22  ;;  %v4988_v50 = vpop.f32.mrf.mxu0 }
 0xb56   : > { %v4486_v27 = vpop.permute.xlu2 %4485  ;;  %v4989_v14 = vadd.f32 %v9792_v32, %v4988_v50 }
 0xb57   : > { %4506 = vst.msk [vmem:[#allocation2 + $0x6c] sm:$0xf] %vm1465_vm12, %v4486_v27 }
 0xb58   : > { %5038 = vst [vmem:[%s8925_s26 + $0xa0] sm:$0xff] %v4989_v14 }
 0xb5c   : > { %v4750_v41 = vpop.permute.xlu0 %4749 }
 0xb5d   : > { %v4990_v45 = vpop.f32.mrf.mxu0 }
 0xb5e   : > { %v4226_v46 = vpop.permute.xlu2 %4225  ;;  %v4991_v7 = vadd.f32 %v9792_v32, %v4990_v45 }
 0xb5f   : > { %4245 = vst.msk [vmem:[#allocation2 + $0x70] sm:$0xf] %vm1202_vm11, %v4226_v46 }
 0xb60   : > { %5039 = vst [vmem:[%s8925_s26 + $0xa8] sm:$0xff] %v4991_v7 }
 0xb64   : > { %v4232_v17 = vpop.permute.xlu0 %4231 }
 0xb65   : > { %4248 = vst.msk [vmem:[#allocation2 + $0x7c] sm:$0xf] %vm1202_vm11, %v4232_v17  ;;  %v4993_v37 = vpop.f32.mrf.mxu0 }
 0xb66   : > { %v4484_v20 = vpop.permute.xlu1 %4483  ;;  %v4490_v4 = vpop.permute.xlu2 %4489  ;;  %v4994_v52 = vadd.f32 %v9792_v32, %v4993_v37 }
 0xb67   : > { %4505 = vst.msk [vmem:[#allocation2 + $0x68] sm:$0xf] %vm1465_vm12, %v4484_v20 }
 0xb68   : > { %4767 = vst.msk [vmem:[#allocation2 + $0x68] sm:$0xf] %vm1728_vm13, %v4746_v18 }
 0xb69   : > { %4508 = vst.msk [vmem:[#allocation2 + $0x74] sm:$0xf] %vm1465_vm12, %v4490_v4 }
 0xb6a   : > { %5040 = vst [vmem:[%s8925_s26 + $0xb0] sm:$0xff] %v4994_v52 }
 0xb6d   : > { %v4995_v11 = vpop.f32.mrf.mxu0 }
 0xb6e   : > { %v4748_v39 = vpop.permute.xlu1 %4747  ;;  %v4230_v43 = vpop.permute.xlu2 %4229  ;;  %v4996_v59 = vadd.f32 %v9792_v32, %v4995_v11 }
 0xb6f   : > { %4768 = vst.msk [vmem:[#allocation2 + $0x6c] sm:$0xf] %vm1728_vm13, %v4748_v39 }
 0xb70   : > { %4247 = vst.msk [vmem:[#allocation2 + $0x78] sm:$0xf] %vm1202_vm11, %v4230_v43 }
 0xb71   : > { %5041 = vst [vmem:[%s8925_s26 + $0xb8] sm:$0xff] %v4996_v59 }
 0xb74   : > { %v4754_v34 = vpop.permute.xlu0 %4753 }
 0xb76   : > { %v4488_v1 = vpop.permute.xlu1 %4487  ;;  %v5398_v24 = vld [vmem:[#allocation2 + $0x68] sm:$0xff] }
 0xb77   : > { %4507 = vst.msk [vmem:[#allocation2 + $0x70] sm:$0xf] %vm1465_vm12, %v4488_v1  ;;  %5002 = vmatmul.bf16.gmra.mxu0 %v5398_v24 }
 0xb78   : > { %4769 = vst.msk [vmem:[#allocation2 + $0x70] sm:$0xf] %vm1728_vm13, %v4750_v41 }
 0xb7d   : > { %v4494_v36 = vpop.permute.xlu2 %4493 }
 0xb7e   : > { %4510 = vst.msk [vmem:[#allocation2 + $0x7c] sm:$0xf] %vm1465_vm12, %v4494_v36  ;;  %v4752_v26 = vpop.permute.xlu1 %4751 }
 0xb7f   : > { %4770 = vst.msk [vmem:[#allocation2 + $0x74] sm:$0xf] %vm1728_vm13, %v4752_v26 }
 0xb86   : > { %v5399_v12 = vld [vmem:[#allocation2 + $0x70] sm:$0xff] }
 0xb87   : > { %5007 = vmatmul.bf16.gmra.mxu0 %v5399_v12 }
 0xb8d   : > { %v4492_v53 = vpop.permute.xlu1 %4491 }
 0xb8e   : > { %4509 = vst.msk [vmem:[#allocation2 + $0x78] sm:$0xf] %vm1465_vm12, %v4492_v53 }
 0xb8f   : > { %4771 = vst.msk [vmem:[#allocation2 + $0x78] sm:$0xf] %vm1728_vm13, %v4754_v34 }
 0xb95   : > { %v4756_v15 = vpop.permute.xlu1 %4755 }
 0xb96   : > { %4772 = vst.msk [vmem:[#allocation2 + $0x7c] sm:$0xf] %vm1728_vm13, %v4756_v15 }
 0xb9d   : > { %v5400_v8 = vld [vmem:[#allocation2 + $0x78] sm:$0xff] }
 0xb9e   : > { %5012 = vmatmul.bf16.gmra.mxu0 %v5400_v8 }
 0xbb3   : > { %v4998_v25 = vpop.f32.mrf.mxu0 }
 0xbb4   : > { %v4999_v40 = vadd.f32 %v9792_v32, %v4998_v25 }
 0xbb6   : > { %5042 = vst [vmem:[%s8925_s26 + $0xc0] sm:$0xff] %v4999_v40 }
 0xbbb   : > { %v5000_v48 = vpop.f32.mrf.mxu0 }
 0xbbc   : > { %v5001_v62 = vadd.f32 %v9792_v32, %v5000_v48 }
 0xbbe   : > { %5043 = vst [vmem:[%s8925_s26 + $0xc8] sm:$0xff] %v5001_v62 }
 0xbf4   : > { %v5003_v42 = vpop.f32.mrf.mxu0 }
 0xbf5   : > { %v5004_v29 = vadd.f32 %v9792_v32, %v5003_v42 }
 0xbf7   : > { %5044 = vst [vmem:[%s8925_s26 + $0xd0] sm:$0xff] %v5004_v29 }
 0xbfc   : > { %v5005_v57 = vpop.f32.mrf.mxu0 }
 0xbfd   : > { %v5006_v47 = vadd.f32 %v9792_v32, %v5005_v57 }
 0xbff   : > { %5045 = vst [vmem:[%s8925_s26 + $0xd8] sm:$0xff] %v5006_v47 }
 0xc04   : > { %v5008_v2 = vpop.f32.mrf.mxu0 }
 0xc05   : > { %v5009_v10 = vadd.f32 %v9792_v32, %v5008_v2 }
 0xc07   : > { %5046 = vst [vmem:[%s8925_s26 + $0xe0] sm:$0xff] %v5009_v10 }
 0xc0c   : > { %v5010_v38 = vpop.f32.mrf.mxu0 }
 0xc0d   : > { %v5011_v0 = vadd.f32 %v9792_v32, %v5010_v38 }
 0xc0f   : > { %5047 = vst [vmem:[%s8925_s26 + $0xe8] sm:$0xff] %v5011_v0 }
 0xc1b   : > { %v5013_v23 = vpop.f32.mrf.mxu0 }
 0xc1c   : > { %v5014_v30 = vadd.f32 %v9792_v32, %v5013_v23 }
 0xc1e   : > { %5048 = vst [vmem:[%s8925_s26 + $0xf0] sm:$0xff] %v5014_v30 }
 0xc23   : > { %v5015_v19 = vpop.f32.mrf.mxu0 }
 0xc24   : > { %v5016_v3 = vadd.f32 %v9792_v32, %v5015_v19 }
 0xc26   : > { %5049 = vst [vmem:[%s8925_s26 + $0xf8] sm:$0xff] %v5016_v3 }
 0xc27   : > { %6175 = shalt.err (!%p6172_p10)
}
 0xc28   : > { %s6235_s17 = smov 128   ;;  %s6236_s26 = smov 8  }
 0xc29   : > { %5441 = dma.vmem_to_hbm [thread:$0]  (%p6352_p3), %s5065_s27, 4096, %s5067_s8, %s5051_s11, %s6235_s17, %s6235_s17, %s6236_s26  }
 0xc2a PF: > { %s5081_s13 = sand.u32 1, %s6210_s18   ;;  %p10207_p12 = scmp.ge.s32.totalorder %s6222_s21, 2 }
 0xc2b   : > { %s5082_s12 = scalar_lea.sflag [#allocation5], %s5081_s13 }
 0xc2c   : > { %p5458_p13 = pnand %p10207_p12, %p6302_p6 }
 0xc2e   : > { %p5459_p0 = pneg %p5458_p13 }
 0xc30   : > { %6205 = dma.done.wait (%p5459_p0), %s5082_s12, 4096  }
 0xc31   : > { %6207 = vsyncadd (%p5459_p0), %s5082_s12, 4294963200  ;;  %p20_p5 = scmp.ge.s32.totalorder %s6339_s30, 4   ;;  %s10208_s18 = smov %s6214_s19 }
 0xc32   : > { %s10209_s19 = smov %s6218_s20  ;;  %s10210_s20 = smov %s6348_s9 }
 0xc33   : > { %s10211_s21 = smov %s6339_s30  ;;  %22 = sbr.rel (!%p20_p5) target bundleno = 7 (0x7), region = 97 }
 0xc38   :  { %5088 = vsyncpa [#allocation4], 1 }
 0xc39   :  { %5090 = vsyncpa [#allocation4 + $0x1], 1 }
 0xc3a   :  { %5091 = vsyncpa [#allocation7], 1 }
 0xc3b   :  { %5092 = vsyncpa [#allocation10], 1 }
 0xc3c   :  { %5093 = vsyncpa [#allocation5], 1 }
 0xc3d   :  { %5095 = vsyncpa [#allocation5 + $0x1], 1 }

</bundles_post_ra>
